<compile_context>
chip_gen: v5e
topology: v5e:2x2
jax: 0.10.0
libtpu: 0.0.40
codegen_flags: <defaults>
</compile_context>

<pallas_src>
import functools

import jax
import jax.numpy as jnp
from jax.experimental import pallas as pl
from jax.experimental.pallas import tpu as pltpu

F32 = jnp.float32
BF16 = jnp.bfloat16
EPS = 1e-5            # BatchNorm2d default eps
WIDTH = 100           # width in ResNet2D.__init__
CPAD = 128            # channel dim padded to a full lane width / MXU tile
N_BLOCKS = 9          # n_layers - 1
FC1 = 128
OUT_CHANNELS = 32


# ---------------------------------------------------------------------------
# Fused network kernel: grid=(N_BLOCKS,), one grid step == one residual block.
# fc0 is fused into step 0, the fc1/relu/fc2 head into the last step.
# ---------------------------------------------------------------------------
def _net_kernel(x_ref, fc0w_ref, fc0b_ref, wtap_ref, gamma_ref, beta_ref,
                fc1w_ref, fc1b_ref, fc2w_ref, fc2b_ref,
                o_ref, slab_ref, *, B, H, W):
    C = CPAD
    N = B * H * W
    blk = pl.program_id(0)
    n_blk = pl.num_programs(0)

    def store_rows(val):
        # One strided (H, W, C) interior store per batch into the zero-padded
        # bf16 slab (borders stay zero for the whole grid).
        v = val.astype(BF16).reshape(B, H, W, C)
        for bi in range(B):
            slab_ref[bi, 2:2 + H, 2:2 + W, :] = v[bi]

    @pl.when(blk == 0)
    def _():
        # Zero the padded slab once and fuse fc0 = Linear(in_channels -> width),
        # channel-padded to 128 lanes.
        slab_ref[...] = jnp.zeros_like(slab_ref)
        a0 = jnp.dot(x_ref[...], fc0w_ref[...],
                     preferred_element_type=F32) + fc0b_ref[...]
        store_rows(a0)

    # 5x5 conv (with the 1x1 shortcut folded into the center tap) as 25
    # accumulating (N, C) x (C, C) bf16 MXU matmuls that read each shifted slab
    # patch directly; the f32 accumulator stays in registers (no im2col buffer).
    acc = None
    for t in range(25):
        dy, dx = divmod(t, 5)
        patch = slab_ref[:, dy:dy + H, dx:dx + W, :].reshape(N, C)
        d = jnp.dot(patch, wtap_ref[0, t], preferred_element_type=F32)
        acc = d if acc is None else acc + d

    # BatchNorm2d, training-mode forward: batch stats over (B, H, W) per channel,
    # affine folded into a single multiply-add, then ReLU (activation=True).
    mean = jnp.mean(acc, axis=0, keepdims=True)
    var = jnp.mean(jnp.square(acc - mean), axis=0, keepdims=True)
    s = gamma_ref[0] * jax.lax.rsqrt(var + EPS)
    shift = beta_ref[0] - mean * s
    y = jnp.maximum(acc * s + shift, 0.0)

    @pl.when(blk != n_blk - 1)
    def _():
        store_rows(y)   # the last block's y is consumed directly by the head

    @pl.when(blk == n_blk - 1)
    def _():
        # Head: fc1 -> relu -> fc2, fused into the last grid step.  Output is
        # produced 128-lane wide (cols 32: are zero) and sliced in the wrapper.
        h1 = jnp.dot(y.astype(BF16), fc1w_ref[...],
                     preferred_element_type=F32) + fc1b_ref[...]
        h1 = jnp.maximum(h1, 0.0)
        o_ref[...] = jnp.dot(h1.astype(BF16), fc2w_ref[...],
                             preferred_element_type=F32) + fc2b_ref[...]


# ---------------------------------------------------------------------------
# Parameter preparation: pad channels to 128 lanes, fold the 1x1 shortcut into
# the conv center tap, drop the BN-cancelled conv/shortcut biases, cast matmul
# weights to bf16.
# ---------------------------------------------------------------------------
def _prepare_params(params, cin):
    width = params['fc0_w'].shape[1]
    cout = params['fc2_w'].shape[1]

    fc0_w = jnp.zeros((CPAD, CPAD), F32).at[:cin, :width].set(params['fc0_w'])
    fc0_b = jnp.zeros((1, CPAD), F32).at[:, :width].set(params['fc0_b'])
    fc1_w = jnp.zeros((CPAD, FC1), F32).at[:width, :].set(params['fc1_w'])
    fc2_w = jnp.zeros((FC1, CPAD), F32).at[:, :cout].set(params['fc2_w'])
    fc2_b = jnp.zeros((1, CPAD), F32).at[:, :cout].set(params['fc2_b'])

    wt_all, g_all, b_all = [], [], []
    for (wtap, bconv, wsc, bsc, gamma, beta) in params['blocks']:
        # Conv1d(k=1) shortcut acts on the un-shifted patch == center tap (12).
        wt = wtap.at[12].add(wsc)
        wt = jnp.zeros((25, CPAD, CPAD), F32).at[:, :width, :width].set(wt)
        wt_all.append(wt)
        g_all.append(jnp.zeros((1, CPAD), F32).at[:, :width].set(gamma))
        b_all.append(jnp.zeros((1, CPAD), F32).at[:, :width].set(beta))
        # bconv / bsc are per-channel constants that the training-mode BN mean
        # subtraction cancels exactly -> dropped (dead work).
    return dict(
        fc0_w=fc0_w.astype(BF16), fc0_b=fc0_b,
        wtap=jnp.stack(wt_all).astype(BF16),            # (9, 25, 128, 128)
        gamma=jnp.stack(g_all), beta=jnp.stack(b_all),  # (9, 1, 128)
        fc1_w=fc1_w.astype(BF16), fc1_b=params['fc1_b'],
        fc2_w=fc2_w.astype(BF16), fc2_b=fc2_b)


# ---------------------------------------------------------------------------
# Full forward (NCHW in, NCHW out -- matches the PyTorch module)
# ---------------------------------------------------------------------------
def resnet2d_forward(x_nchw, params):
    B, cin, H, W = x_nchw.shape
    N = B * H * W
    p = _prepare_params(params, cin)

    # NCHW -> flattened channels-last, channel-padded to 128 lanes (glue).
    x2d = jnp.transpose(x_nchw, (0, 2, 3, 1)).reshape(N, cin)
    x_pad = jnp.zeros((N, CPAD), BF16).at[:, :cin].set(x2d.astype(BF16))

    const2 = lambda blk: (0, 0)

    out = pl.pallas_call(
        functools.partial(_net_kernel, B=B, H=H, W=W),
        out_shape=jax.ShapeDtypeStruct((N, CPAD), F32),
        grid_spec=pltpu.PrefetchScalarGridSpec(
            num_scalar_prefetch=0,
            grid=(N_BLOCKS,),
            in_specs=[
                pl.BlockSpec((N, CPAD), const2),            # x (padded, step 0 only)
                pl.BlockSpec((CPAD, CPAD), const2),         # fc0_w
                pl.BlockSpec((1, CPAD), const2),            # fc0_b
                pl.BlockSpec((1, 25, CPAD, CPAD),           # per-block conv(+shortcut)
                             lambda blk: (blk, 0, 0, 0)),
                pl.BlockSpec((1, 1, CPAD), lambda blk: (blk, 0, 0)),   # bn gamma
                pl.BlockSpec((1, 1, CPAD), lambda blk: (blk, 0, 0)),   # bn beta
                pl.BlockSpec((CPAD, FC1), const2),          # fc1_w
                pl.BlockSpec((1, FC1), const2),             # fc1_b
                pl.BlockSpec((FC1, CPAD), const2),          # fc2_w
                pl.BlockSpec((1, CPAD), const2),            # fc2_b
            ],
            out_specs=pl.BlockSpec((N, CPAD), const2),      # lane-dense, resident
            scratch_shapes=[
                # zero-padded bf16 activation slab (only scratch; no im2col buffer)
                pltpu.VMEM((B, H + 4, W + 4, CPAD), BF16),
            ]),
        # Footprint ~2.5 MiB -> default scoped VMEM limits are fine on every
        # generation (incl. v7x); no explicit vmem_limit_bytes needed.
        compiler_params=pltpu.CompilerParams(
            dimension_semantics=("arbitrary",)),
    )(x_pad, p['fc0_w'], p['fc0_b'], p['wtap'], p['gamma'], p['beta'],
      p['fc1_w'], p['fc1_b'], p['fc2_w'], p['fc2_b'])

    out = out[:, :OUT_CHANNELS]                             # un-pad lanes (glue)
    return jnp.transpose(out.reshape(B, H, W, OUT_CHANNELS), (0, 3, 1, 2))


# ---------------------------------------------------------------------------
# Deterministic synthetic parameters (shapes from the module's __init__).
# Conv weights are stored as (kh*kw, Cin, Cout): wtap[kh*5+kw, i, o]
# corresponds to PyTorch OIHW weight[o, i, kh, kw].
# ---------------------------------------------------------------------------
def init_params(key, in_channels=1, width=WIDTH, out_channels=OUT_CHANNELS,
                n_blocks=N_BLOCKS):
    ks = jax.random.split(key, 3 + 3 * n_blocks)

    def dense(k, fan_in, shape):
        return jax.random.normal(k, shape, F32) / jnp.sqrt(float(fan_in))

    params = {
        'fc0_w': dense(ks[0], in_channels, (in_channels, width)),
        'fc0_b': jnp.full((1, width), 0.01, F32),
        'fc1_w': dense(ks[1], width, (width, FC1)),
        'fc1_b': jnp.full((1, FC1), 0.01, F32),
        'fc2_w': dense(ks[2], FC1, (FC1, out_channels)),
        'fc2_b': jnp.full((1, out_channels), 0.01, F32),
    }
    blocks = []
    for i in range(n_blocks):
        k1, k2, k3 = ks[3 + 3 * i], ks[4 + 3 * i], ks[5 + 3 * i]
        wtap = dense(k1, 25 * width, (25, width, width))       # Conv2d(k=5) weight
        bconv = 0.01 * jax.random.normal(k2, (1, width), F32)  # Conv2d bias
        wsc = dense(k3, width, (width, width))                 # Conv1d(k=1) weight
        bsc = jnp.zeros((1, width), F32)                       # Conv1d bias
        gamma = jnp.ones((1, width), F32)                      # BN weight init
        beta = jnp.zeros((1, width), F32)                      # BN bias init
        blocks.append((wtap, bconv, wsc, bsc, gamma, beta))
    params['blocks'] = blocks
    return params


# ---------------------------------------------------------------------------
# Pure-JAX reference (same math, un-padded, un-folded, with all biases) for a
# correctness sanity check -- it also validates the fold / pad / bias-drop.
# ---------------------------------------------------------------------------
def reference_forward(x_nchw, params):
    hi = jax.lax.Precision.HIGHEST
    B, Cin, H, W = x_nchw.shape
    x = jnp.transpose(x_nchw, (0, 2, 3, 1))
    h = jnp.einsum('bhwc,cd->bhwd', x, params['fc0_w'],
                   precision=hi) + params['fc0_b'][0]
    for (wtap, bconv, wsc, bsc, gamma, beta) in params['blocks']:
        hp = jnp.pad(h, ((0, 0), (2, 2), (2, 2), (0, 0)))
        conv = bconv[0]
        for t in range(25):
            dy, dx = t // 5, t % 5
            conv = conv + jnp.einsum('bhwc,cd->bhwd',
                                     hp[:, dy:dy + H, dx:dx + W, :], wtap[t],
                                     precision=hi)
        sc = jnp.einsum('bhwc,cd->bhwd', h, wsc, precision=hi) + bsc[0]
        o = conv + sc
        mean = jnp.mean(o, axis=(0, 1, 2), keepdims=True)
        var = jnp.mean((o - mean) ** 2, axis=(0, 1, 2), keepdims=True)
        o = (o - mean) * jax.lax.rsqrt(var + EPS) * gamma[0] + beta[0]
        h = jnp.maximum(o, 0.0)
    f1 = jnp.maximum(
        jnp.einsum('bhwc,cd->bhwd', h, params['fc1_w'], precision=hi)
        + params['fc1_b'][0], 0.0)
    f2 = jnp.einsum('bhwc,cd->bhwd', f1, params['fc2_w'], precision=hi) \
        + params['fc2_b'][0]
    return jnp.transpose(f2, (0, 3, 1, 2))


if __name__ == "__main__":
    key = jax.random.PRNGKey(0)
    kx, kp = jax.random.split(key)

    B, Cin, H, W = 2, 1, 8, 8          # small NCHW input (in_channels=1 default)
    x = jax.random.normal(kx, (B, Cin, H, W), dtype=F32)
    params = init_params(kp)

    fwd = jax.jit(resnet2d_forward)
    out = jax.block_until_ready(fwd(x, params))
    assert out.shape == (B, OUT_CHANNELS, H, W), out.shape
    assert bool(jnp.all(jnp.isfinite(out)))

    ref = jax.block_until_ready(jax.jit(reference_forward)(x, params))
    max_err = float(jnp.max(jnp.abs(out - ref)))
    assert bool(jnp.allclose(out, ref, atol=5e-2, rtol=5e-2)), max_err

    print("KERNEL_OK")
</pallas_src>

<mosaic_0001>
module attributes {stable_mosaic.version = 11 : i64} {
  func.func @_net_kernel(%arg0: i32, %arg1: memref<128x128xbf16, #tpu.memory_space<vmem>>, %arg2: memref<128x128xbf16, #tpu.memory_space<vmem>>, %arg3: memref<1x128xf32, #tpu.memory_space<vmem>>, %arg4: memref<1x25x128x128xbf16, #tpu.memory_space<vmem>>, %arg5: memref<1x1x128xf32, #tpu.memory_space<vmem>>, %arg6: memref<1x1x128xf32, #tpu.memory_space<vmem>>, %arg7: memref<128x128xbf16, #tpu.memory_space<vmem>>, %arg8: memref<1x128xf32, #tpu.memory_space<vmem>>, %arg9: memref<128x128xbf16, #tpu.memory_space<vmem>>, %arg10: memref<1x128xf32, #tpu.memory_space<vmem>>, %arg11: memref<128x128xf32, #tpu.memory_space<vmem>>, %arg12: memref<2x12x12x128xbf16, #tpu.memory_space<vmem>>) attributes {dimension_semantics = [#tpu.dimension_semantics<arbitrary>], iteration_bounds = array<i64: 9>, scalar_prefetch = 0 : i64, scratch_operands = 1 : i64, tpu.core_type = #tpu.core_type<tc>, window_params = [{pipeline_mode = #tpu.pipeline_mode<synchronous>, transform_indices = @transform_0, window_bounds = array<i64: 128, 128>}, {pipeline_mode = #tpu.pipeline_mode<synchronous>, transform_indices = @transform_1, window_bounds = array<i64: 128, 128>}, {pipeline_mode = #tpu.pipeline_mode<synchronous>, transform_indices = @transform_2, window_bounds = array<i64: 1, 128>}, {transform_indices = @transform_3, window_bounds = array<i64: 1, 25, 128, 128>}, {transform_indices = @transform_4, window_bounds = array<i64: 1, 1, 128>}, {transform_indices = @transform_5, window_bounds = array<i64: 1, 1, 128>}, {pipeline_mode = #tpu.pipeline_mode<synchronous>, transform_indices = @transform_6, window_bounds = array<i64: 128, 128>}, {pipeline_mode = #tpu.pipeline_mode<synchronous>, transform_indices = @transform_7, window_bounds = array<i64: 1, 128>}, {pipeline_mode = #tpu.pipeline_mode<synchronous>, transform_indices = @transform_8, window_bounds = array<i64: 128, 128>}, {pipeline_mode = #tpu.pipeline_mode<synchronous>, transform_indices = @transform_9, window_bounds = array<i64: 1, 128>}, {pipeline_mode = #tpu.pipeline_mode<synchronous>, transform_indices = @transform_10, window_bounds = array<i64: 128, 128>}]} {
    %c0_i32 = arith.constant 0 : i32
    %0 = arith.cmpi eq, %arg0, %c0_i32 : i32
    %1 = arith.extui %0 : i1 to i32
    %c0_i32_0 = arith.constant 0 : i32
    %2 = arith.cmpi ne, %1, %c0_i32_0 : i32
    scf.if %2 {
      %cst_215 = arith.constant 0.000000e+00 : bf16
      %185 = vector.broadcast %cst_215 : bf16 to vector<2x12x12x128xbf16>
      %c0_216 = arith.constant 0 : index
      %c0_217 = arith.constant 0 : index
      %c0_218 = arith.constant 0 : index
      %c0_219 = arith.constant 0 : index
      %186 = vector.load %arg12[%c0_216, %c0_217, %c0_218, %c0_219] : memref<2x12x12x128xbf16, #tpu.memory_space<vmem>>, vector<2x12x12x128xbf16>
      tpu.vector_store %arg12[%c0_216, %c0_217, %c0_218, %c0_219], %185 {strides = array<i32>} : memref<2x12x12x128xbf16, #tpu.memory_space<vmem>>, vector<2x12x12x128xbf16>,
      %c0_220 = arith.constant 0 : index
      %c0_221 = arith.constant 0 : index
      %187 = vector.load %arg1[%c0_220, %c0_221] : memref<128x128xbf16, #tpu.memory_space<vmem>>, vector<128x128xbf16>
      %c0_222 = arith.constant 0 : index
      %c0_223 = arith.constant 0 : index
      %188 = vector.load %arg2[%c0_222, %c0_223] : memref<128x128xbf16, #tpu.memory_space<vmem>>, vector<128x128xbf16>
      %cst_224 = arith.constant dense<0.000000e+00> : vector<128x128xf32>
      %189 = tpu.matmul %187, %188, %cst_224 {dimension_numbers = #tpu.dot_dimension_numbers<[1], [0], [0], [1], [0, 0, 1, 1], [], []>} : vector<128x128xbf16>, vector<128x128xbf16>, vector<128x128xf32> -> vector<128x128xf32>
      %c0_225 = arith.constant 0 : index
      %c0_226 = arith.constant 0 : index
      %190 = vector.load %arg3[%c0_225, %c0_226] : memref<1x128xf32, #tpu.memory_space<vmem>>, vector<1x128xf32>
      %191 = vector.broadcast %190 : vector<1x128xf32> to vector<128x128xf32>
      %192 = arith.addf %189, %191 : vector<128x128xf32>
      %193 = arith.truncf %192 : vector<128x128xf32> to vector<128x128xbf16>
      %194 = vector.shape_cast %193 : vector<128x128xbf16> to vector<2x8x8x128xbf16>
      %195 = vector.extract_strided_slice %194 {offsets = [0, 0, 0, 0], sizes = [1, 8, 8, 128], strides = [1, 1, 1, 1]} : vector<2x8x8x128xbf16> to vector<1x8x8x128xbf16>
      %196 = vector.shape_cast %195 : vector<1x8x8x128xbf16> to vector<8x8x128xbf16>
      %c0_227 = arith.constant 0 : index
      %c2_228 = arith.constant 2 : index
      %c2_229 = arith.constant 2 : index
      %c0_230 = arith.constant 0 : index
      %197 = vector.load %arg12[%c0_227, %c2_228, %c2_229, %c0_230] : memref<2x12x12x128xbf16, #tpu.memory_space<vmem>>, vector<1x8x8x128xbf16>
      %198 = vector.shape_cast %197 : vector<1x8x8x128xbf16> to vector<8x8x128xbf16>
      %199 = vector.shape_cast %196 : vector<8x8x128xbf16> to vector<1x8x8x128xbf16>
      tpu.vector_store %arg12[%c0_227, %c2_228, %c2_229, %c0_230], %199 {strides = array<i32>} : memref<2x12x12x128xbf16, #tpu.memory_space<vmem>>, vector<1x8x8x128xbf16>,
      %200 = vector.extract_strided_slice %194 {offsets = [1, 0, 0, 0], sizes = [1, 8, 8, 128], strides = [1, 1, 1, 1]} : vector<2x8x8x128xbf16> to vector<1x8x8x128xbf16>
      %201 = vector.shape_cast %200 : vector<1x8x8x128xbf16> to vector<8x8x128xbf16>
      %c1_231 = arith.constant 1 : index
      %c2_232 = arith.constant 2 : index
      %c2_233 = arith.constant 2 : index
      %c0_234 = arith.constant 0 : index
      %202 = vector.load %arg12[%c1_231, %c2_232, %c2_233, %c0_234] : memref<2x12x12x128xbf16, #tpu.memory_space<vmem>>, vector<1x8x8x128xbf16>
      %203 = vector.shape_cast %202 : vector<1x8x8x128xbf16> to vector<8x8x128xbf16>
      %204 = vector.shape_cast %201 : vector<8x8x128xbf16> to vector<1x8x8x128xbf16>
      tpu.vector_store %arg12[%c1_231, %c2_232, %c2_233, %c0_234], %204 {strides = array<i32>} : memref<2x12x12x128xbf16, #tpu.memory_space<vmem>>, vector<1x8x8x128xbf16>,
    } else {
    }
    %c0 = arith.constant 0 : index
    %c0_1 = arith.constant 0 : index
    %c0_2 = arith.constant 0 : index
    %c0_3 = arith.constant 0 : index
    %3 = vector.load %arg12[%c0, %c0_1, %c0_2, %c0_3] : memref<2x12x12x128xbf16, #tpu.memory_space<vmem>>, vector<2x8x8x128xbf16>
    %4 = vector.shape_cast %3 : vector<2x8x8x128xbf16> to vector<128x128xbf16>
    %c0_4 = arith.constant 0 : index
    %c0_5 = arith.constant 0 : index
    %c0_6 = arith.constant 0 : index
    %c0_7 = arith.constant 0 : index
    %5 = vector.load %arg4[%c0_4, %c0_5, %c0_6, %c0_7] : memref<1x25x128x128xbf16, #tpu.memory_space<vmem>>, vector<1x1x128x128xbf16>
    %6 = vector.shape_cast %5 : vector<1x1x128x128xbf16> to vector<128x128xbf16>
    %cst = arith.constant dense<0.000000e+00> : vector<128x128xf32>
    %7 = tpu.matmul %4, %6, %cst {dimension_numbers = #tpu.dot_dimension_numbers<[1], [0], [0], [1], [0, 0, 1, 1], [], []>} : vector<128x128xbf16>, vector<128x128xbf16>, vector<128x128xf32> -> vector<128x128xf32>
    %c0_8 = arith.constant 0 : index
    %c0_9 = arith.constant 0 : index
    %c1 = arith.constant 1 : index
    %c0_10 = arith.constant 0 : index
    %8 = vector.load %arg12[%c0_8, %c0_9, %c1, %c0_10] : memref<2x12x12x128xbf16, #tpu.memory_space<vmem>>, vector<2x8x8x128xbf16>
    %9 = vector.shape_cast %8 : vector<2x8x8x128xbf16> to vector<128x128xbf16>
    %c0_11 = arith.constant 0 : index
    %c1_12 = arith.constant 1 : index
    %c0_13 = arith.constant 0 : index
    %c0_14 = arith.constant 0 : index
    %10 = vector.load %arg4[%c0_11, %c1_12, %c0_13, %c0_14] : memref<1x25x128x128xbf16, #tpu.memory_space<vmem>>, vector<1x1x128x128xbf16>
    %11 = vector.shape_cast %10 : vector<1x1x128x128xbf16> to vector<128x128xbf16>
    %cst_15 = arith.constant dense<0.000000e+00> : vector<128x128xf32>
    %12 = tpu.matmul %9, %11, %cst_15 {dimension_numbers = #tpu.dot_dimension_numbers<[1], [0], [0], [1], [0, 0, 1, 1], [], []>} : vector<128x128xbf16>, vector<128x128xbf16>, vector<128x128xf32> -> vector<128x128xf32>
    %13 = arith.addf %7, %12 : vector<128x128xf32>
    %c0_16 = arith.constant 0 : index
    %c0_17 = arith.constant 0 : index
    %c2 = arith.constant 2 : index
    %c0_18 = arith.constant 0 : index
    %14 = vector.load %arg12[%c0_16, %c0_17, %c2, %c0_18] : memref<2x12x12x128xbf16, #tpu.memory_space<vmem>>, vector<2x8x8x128xbf16>
    %15 = vector.shape_cast %14 : vector<2x8x8x128xbf16> to vector<128x128xbf16>
    %c0_19 = arith.constant 0 : index
    %c2_20 = arith.constant 2 : index
    %c0_21 = arith.constant 0 : index
    %c0_22 = arith.constant 0 : index
    %16 = vector.load %arg4[%c0_19, %c2_20, %c0_21, %c0_22] : memref<1x25x128x128xbf16, #tpu.memory_space<vmem>>, vector<1x1x128x128xbf16>
    %17 = vector.shape_cast %16 : vector<1x1x128x128xbf16> to vector<128x128xbf16>
    %cst_23 = arith.constant dense<0.000000e+00> : vector<128x128xf32>
    %18 = tpu.matmul %15, %17, %cst_23 {dimension_numbers = #tpu.dot_dimension_numbers<[1], [0], [0], [1], [0, 0, 1, 1], [], []>} : vector<128x128xbf16>, vector<128x128xbf16>, vector<128x128xf32> -> vector<128x128xf32>
    %19 = arith.addf %13, %18 : vector<128x128xf32>
    %c0_24 = arith.constant 0 : index
    %c0_25 = arith.constant 0 : index
    %c3 = arith.constant 3 : index
    %c0_26 = arith.constant 0 : index
    %20 = vector.load %arg12[%c0_24, %c0_25, %c3, %c0_26] : memref<2x12x12x128xbf16, #tpu.memory_space<vmem>>, vector<2x8x8x128xbf16>
    %21 = vector.shape_cast %20 : vector<2x8x8x128xbf16> to vector<128x128xbf16>
    %c0_27 = arith.constant 0 : index
    %c3_28 = arith.constant 3 : index
    %c0_29 = arith.constant 0 : index
    %c0_30 = arith.constant 0 : index
    %22 = vector.load %arg4[%c0_27, %c3_28, %c0_29, %c0_30] : memref<1x25x128x128xbf16, #tpu.memory_space<vmem>>, vector<1x1x128x128xbf16>
    %23 = vector.shape_cast %22 : vector<1x1x128x128xbf16> to vector<128x128xbf16>
    %cst_31 = arith.constant dense<0.000000e+00> : vector<128x128xf32>
    %24 = tpu.matmul %21, %23, %cst_31 {dimension_numbers = #tpu.dot_dimension_numbers<[1], [0], [0], [1], [0, 0, 1, 1], [], []>} : vector<128x128xbf16>, vector<128x128xbf16>, vector<128x128xf32> -> vector<128x128xf32>
    %25 = arith.addf %19, %24 : vector<128x128xf32>
    %c0_32 = arith.constant 0 : index
    %c0_33 = arith.constant 0 : index
    %c4 = arith.constant 4 : index
    %c0_34 = arith.constant 0 : index
    %26 = vector.load %arg12[%c0_32, %c0_33, %c4, %c0_34] : memref<2x12x12x128xbf16, #tpu.memory_space<vmem>>, vector<2x8x8x128xbf16>
    %27 = vector.shape_cast %26 : vector<2x8x8x128xbf16> to vector<128x128xbf16>
    %c0_35 = arith.constant 0 : index
    %c4_36 = arith.constant 4 : index
    %c0_37 = arith.constant 0 : index
    %c0_38 = arith.constant 0 : index
    %28 = vector.load %arg4[%c0_35, %c4_36, %c0_37, %c0_38] : memref<1x25x128x128xbf16, #tpu.memory_space<vmem>>, vector<1x1x128x128xbf16>
    %29 = vector.shape_cast %28 : vector<1x1x128x128xbf16> to vector<128x128xbf16>
    %cst_39 = arith.constant dense<0.000000e+00> : vector<128x128xf32>
    %30 = tpu.matmul %27, %29, %cst_39 {dimension_numbers = #tpu.dot_dimension_numbers<[1], [0], [0], [1], [0, 0, 1, 1], [], []>} : vector<128x128xbf16>, vector<128x128xbf16>, vector<128x128xf32> -> vector<128x128xf32>
    %31 = arith.addf %25, %30 : vector<128x128xf32>
    %c0_40 = arith.constant 0 : index
    %c1_41 = arith.constant 1 : index
    %c0_42 = arith.constant 0 : index
    %c0_43 = arith.constant 0 : index
    %32 = vector.load %arg12[%c0_40, %c1_41, %c0_42, %c0_43] : memref<2x12x12x128xbf16, #tpu.memory_space<vmem>>, vector<2x8x8x128xbf16>
    %33 = vector.shape_cast %32 : vector<2x8x8x128xbf16> to vector<128x128xbf16>
    %c0_44 = arith.constant 0 : index
    %c5 = arith.constant 5 : index
    %c0_45 = arith.constant 0 : index
    %c0_46 = arith.constant 0 : index
    %34 = vector.load %arg4[%c0_44, %c5, %c0_45, %c0_46] : memref<1x25x128x128xbf16, #tpu.memory_space<vmem>>, vector<1x1x128x128xbf16>
    %35 = vector.shape_cast %34 : vector<1x1x128x128xbf16> to vector<128x128xbf16>
    %cst_47 = arith.constant dense<0.000000e+00> : vector<128x128xf32>
    %36 = tpu.matmul %33, %35, %cst_47 {dimension_numbers = #tpu.dot_dimension_numbers<[1], [0], [0], [1], [0, 0, 1, 1], [], []>} : vector<128x128xbf16>, vector<128x128xbf16>, vector<128x128xf32> -> vector<128x128xf32>
    %37 = arith.addf %31, %36 : vector<128x128xf32>
    %c0_48 = arith.constant 0 : index
    %c1_49 = arith.constant 1 : index
    %c1_50 = arith.constant 1 : index
    %c0_51 = arith.constant 0 : index
    %38 = vector.load %arg12[%c0_48, %c1_49, %c1_50, %c0_51] : memref<2x12x12x128xbf16, #tpu.memory_space<vmem>>, vector<2x8x8x128xbf16>
    %39 = vector.shape_cast %38 : vector<2x8x8x128xbf16> to vector<128x128xbf16>
    %c0_52 = arith.constant 0 : index
    %c6 = arith.constant 6 : index
    %c0_53 = arith.constant 0 : index
    %c0_54 = arith.constant 0 : index
    %40 = vector.load %arg4[%c0_52, %c6, %c0_53, %c0_54] : memref<1x25x128x128xbf16, #tpu.memory_space<vmem>>, vector<1x1x128x128xbf16>
    %41 = vector.shape_cast %40 : vector<1x1x128x128xbf16> to vector<128x128xbf16>
    %cst_55 = arith.constant dense<0.000000e+00> : vector<128x128xf32>
    %42 = tpu.matmul %39, %41, %cst_55 {dimension_numbers = #tpu.dot_dimension_numbers<[1], [0], [0], [1], [0, 0, 1, 1], [], []>} : vector<128x128xbf16>, vector<128x128xbf16>, vector<128x128xf32> -> vector<128x128xf32>
    %43 = arith.addf %37, %42 : vector<128x128xf32>
    %c0_56 = arith.constant 0 : index
    %c1_57 = arith.constant 1 : index
    %c2_58 = arith.constant 2 : index
    %c0_59 = arith.constant 0 : index
    %44 = vector.load %arg12[%c0_56, %c1_57, %c2_58, %c0_59] : memref<2x12x12x128xbf16, #tpu.memory_space<vmem>>, vector<2x8x8x128xbf16>
    %45 = vector.shape_cast %44 : vector<2x8x8x128xbf16> to vector<128x128xbf16>
    %c0_60 = arith.constant 0 : index
    %c7 = arith.constant 7 : index
    %c0_61 = arith.constant 0 : index
    %c0_62 = arith.constant 0 : index
    %46 = vector.load %arg4[%c0_60, %c7, %c0_61, %c0_62] : memref<1x25x128x128xbf16, #tpu.memory_space<vmem>>, vector<1x1x128x128xbf16>
    %47 = vector.shape_cast %46 : vector<1x1x128x128xbf16> to vector<128x128xbf16>
    %cst_63 = arith.constant dense<0.000000e+00> : vector<128x128xf32>
    %48 = tpu.matmul %45, %47, %cst_63 {dimension_numbers = #tpu.dot_dimension_numbers<[1], [0], [0], [1], [0, 0, 1, 1], [], []>} : vector<128x128xbf16>, vector<128x128xbf16>, vector<128x128xf32> -> vector<128x128xf32>
    %49 = arith.addf %43, %48 : vector<128x128xf32>
    %c0_64 = arith.constant 0 : index
    %c1_65 = arith.constant 1 : index
    %c3_66 = arith.constant 3 : index
    %c0_67 = arith.constant 0 : index
    %50 = vector.load %arg12[%c0_64, %c1_65, %c3_66, %c0_67] : memref<2x12x12x128xbf16, #tpu.memory_space<vmem>>, vector<2x8x8x128xbf16>
    %51 = vector.shape_cast %50 : vector<2x8x8x128xbf16> to vector<128x128xbf16>
    %c0_68 = arith.constant 0 : index
    %c8 = arith.constant 8 : index
    %c0_69 = arith.constant 0 : index
    %c0_70 = arith.constant 0 : index
    %52 = vector.load %arg4[%c0_68, %c8, %c0_69, %c0_70] : memref<1x25x128x128xbf16, #tpu.memory_space<vmem>>, vector<1x1x128x128xbf16>
    %53 = vector.shape_cast %52 : vector<1x1x128x128xbf16> to vector<128x128xbf16>
    %cst_71 = arith.constant dense<0.000000e+00> : vector<128x128xf32>
    %54 = tpu.matmul %51, %53, %cst_71 {dimension_numbers = #tpu.dot_dimension_numbers<[1], [0], [0], [1], [0, 0, 1, 1], [], []>} : vector<128x128xbf16>, vector<128x128xbf16>, vector<128x128xf32> -> vector<128x128xf32>
    %55 = arith.addf %49, %54 : vector<128x128xf32>
    %c0_72 = arith.constant 0 : index
    %c1_73 = arith.constant 1 : index
    %c4_74 = arith.constant 4 : index
    %c0_75 = arith.constant 0 : index
    %56 = vector.load %arg12[%c0_72, %c1_73, %c4_74, %c0_75] : memref<2x12x12x128xbf16, #tpu.memory_space<vmem>>, vector<2x8x8x128xbf16>
    %57 = vector.shape_cast %56 : vector<2x8x8x128xbf16> to vector<128x128xbf16>
    %c0_76 = arith.constant 0 : index
    %c9 = arith.constant 9 : index
    %c0_77 = arith.constant 0 : index
    %c0_78 = arith.constant 0 : index
    %58 = vector.load %arg4[%c0_76, %c9, %c0_77, %c0_78] : memref<1x25x128x128xbf16, #tpu.memory_space<vmem>>, vector<1x1x128x128xbf16>
    %59 = vector.shape_cast %58 : vector<1x1x128x128xbf16> to vector<128x128xbf16>
    %cst_79 = arith.constant dense<0.000000e+00> : vector<128x128xf32>
    %60 = tpu.matmul %57, %59, %cst_79 {dimension_numbers = #tpu.dot_dimension_numbers<[1], [0], [0], [1], [0, 0, 1, 1], [], []>} : vector<128x128xbf16>, vector<128x128xbf16>, vector<128x128xf32> -> vector<128x128xf32>
    %61 = arith.addf %55, %60 : vector<128x128xf32>
    %c0_80 = arith.constant 0 : index
    %c2_81 = arith.constant 2 : index
    %c0_82 = arith.constant 0 : index
    %c0_83 = arith.constant 0 : index
    %62 = vector.load %arg12[%c0_80, %c2_81, %c0_82, %c0_83] : memref<2x12x12x128xbf16, #tpu.memory_space<vmem>>, vector<2x8x8x128xbf16>
    %63 = vector.shape_cast %62 : vector<2x8x8x128xbf16> to vector<128x128xbf16>
    %c0_84 = arith.constant 0 : index
    %c10 = arith.constant 10 : index
    %c0_85 = arith.constant 0 : index
    %c0_86 = arith.constant 0 : index
    %64 = vector.load %arg4[%c0_84, %c10, %c0_85, %c0_86] : memref<1x25x128x128xbf16, #tpu.memory_space<vmem>>, vector<1x1x128x128xbf16>
    %65 = vector.shape_cast %64 : vector<1x1x128x128xbf16> to vector<128x128xbf16>
    %cst_87 = arith.constant dense<0.000000e+00> : vector<128x128xf32>
    %66 = tpu.matmul %63, %65, %cst_87 {dimension_numbers = #tpu.dot_dimension_numbers<[1], [0], [0], [1], [0, 0, 1, 1], [], []>} : vector<128x128xbf16>, vector<128x128xbf16>, vector<128x128xf32> -> vector<128x128xf32>
    %67 = arith.addf %61, %66 : vector<128x128xf32>
    %c0_88 = arith.constant 0 : index
    %c2_89 = arith.constant 2 : index
    %c1_90 = arith.constant 1 : index
    %c0_91 = arith.constant 0 : index
    %68 = vector.load %arg12[%c0_88, %c2_89, %c1_90, %c0_91] : memref<2x12x12x128xbf16, #tpu.memory_space<vmem>>, vector<2x8x8x128xbf16>
    %69 = vector.shape_cast %68 : vector<2x8x8x128xbf16> to vector<128x128xbf16>
    %c0_92 = arith.constant 0 : index
    %c11 = arith.constant 11 : index
    %c0_93 = arith.constant 0 : index
    %c0_94 = arith.constant 0 : index
    %70 = vector.load %arg4[%c0_92, %c11, %c0_93, %c0_94] : memref<1x25x128x128xbf16, #tpu.memory_space<vmem>>, vector<1x1x128x128xbf16>
    %71 = vector.shape_cast %70 : vector<1x1x128x128xbf16> to vector<128x128xbf16>
    %cst_95 = arith.constant dense<0.000000e+00> : vector<128x128xf32>
    %72 = tpu.matmul %69, %71, %cst_95 {dimension_numbers = #tpu.dot_dimension_numbers<[1], [0], [0], [1], [0, 0, 1, 1], [], []>} : vector<128x128xbf16>, vector<128x128xbf16>, vector<128x128xf32> -> vector<128x128xf32>
    %73 = arith.addf %67, %72 : vector<128x128xf32>
    %c0_96 = arith.constant 0 : index
    %c2_97 = arith.constant 2 : index
    %c2_98 = arith.constant 2 : index
    %c0_99 = arith.constant 0 : index
    %74 = vector.load %arg12[%c0_96, %c2_97, %c2_98, %c0_99] : memref<2x12x12x128xbf16, #tpu.memory_space<vmem>>, vector<2x8x8x128xbf16>
    %75 = vector.shape_cast %74 : vector<2x8x8x128xbf16> to vector<128x128xbf16>
    %c0_100 = arith.constant 0 : index
    %c12 = arith.constant 12 : index
    %c0_101 = arith.constant 0 : index
    %c0_102 = arith.constant 0 : index
    %76 = vector.load %arg4[%c0_100, %c12, %c0_101, %c0_102] : memref<1x25x128x128xbf16, #tpu.memory_space<vmem>>, vector<1x1x128x128xbf16>
    %77 = vector.shape_cast %76 : vector<1x1x128x128xbf16> to vector<128x128xbf16>
    %cst_103 = arith.constant dense<0.000000e+00> : vector<128x128xf32>
    %78 = tpu.matmul %75, %77, %cst_103 {dimension_numbers = #tpu.dot_dimension_numbers<[1], [0], [0], [1], [0, 0, 1, 1], [], []>} : vector<128x128xbf16>, vector<128x128xbf16>, vector<128x128xf32> -> vector<128x128xf32>
    %79 = arith.addf %73, %78 : vector<128x128xf32>
    %c0_104 = arith.constant 0 : index
    %c2_105 = arith.constant 2 : index
    %c3_106 = arith.constant 3 : index
    %c0_107 = arith.constant 0 : index
    %80 = vector.load %arg12[%c0_104, %c2_105, %c3_106, %c0_107] : memref<2x12x12x128xbf16, #tpu.memory_space<vmem>>, vector<2x8x8x128xbf16>
    %81 = vector.shape_cast %80 : vector<2x8x8x128xbf16> to vector<128x128xbf16>
    %c0_108 = arith.constant 0 : index
    %c13 = arith.constant 13 : index
    %c0_109 = arith.constant 0 : index
    %c0_110 = arith.constant 0 : index
    %82 = vector.load %arg4[%c0_108, %c13, %c0_109, %c0_110] : memref<1x25x128x128xbf16, #tpu.memory_space<vmem>>, vector<1x1x128x128xbf16>
    %83 = vector.shape_cast %82 : vector<1x1x128x128xbf16> to vector<128x128xbf16>
    %cst_111 = arith.constant dense<0.000000e+00> : vector<128x128xf32>
    %84 = tpu.matmul %81, %83, %cst_111 {dimension_numbers = #tpu.dot_dimension_numbers<[1], [0], [0], [1], [0, 0, 1, 1], [], []>} : vector<128x128xbf16>, vector<128x128xbf16>, vector<128x128xf32> -> vector<128x128xf32>
    %85 = arith.addf %79, %84 : vector<128x128xf32>
    %c0_112 = arith.constant 0 : index
    %c2_113 = arith.constant 2 : index
    %c4_114 = arith.constant 4 : index
    %c0_115 = arith.constant 0 : index
    %86 = vector.load %arg12[%c0_112, %c2_113, %c4_114, %c0_115] : memref<2x12x12x128xbf16, #tpu.memory_space<vmem>>, vector<2x8x8x128xbf16>
    %87 = vector.shape_cast %86 : vector<2x8x8x128xbf16> to vector<128x128xbf16>
    %c0_116 = arith.constant 0 : index
    %c14 = arith.constant 14 : index
    %c0_117 = arith.constant 0 : index
    %c0_118 = arith.constant 0 : index
    %88 = vector.load %arg4[%c0_116, %c14, %c0_117, %c0_118] : memref<1x25x128x128xbf16, #tpu.memory_space<vmem>>, vector<1x1x128x128xbf16>
    %89 = vector.shape_cast %88 : vector<1x1x128x128xbf16> to vector<128x128xbf16>
    %cst_119 = arith.constant dense<0.000000e+00> : vector<128x128xf32>
    %90 = tpu.matmul %87, %89, %cst_119 {dimension_numbers = #tpu.dot_dimension_numbers<[1], [0], [0], [1], [0, 0, 1, 1], [], []>} : vector<128x128xbf16>, vector<128x128xbf16>, vector<128x128xf32> -> vector<128x128xf32>
    %91 = arith.addf %85, %90 : vector<128x128xf32>
    %c0_120 = arith.constant 0 : index
    %c3_121 = arith.constant 3 : index
    %c0_122 = arith.constant 0 : index
    %c0_123 = arith.constant 0 : index
    %92 = vector.load %arg12[%c0_120, %c3_121, %c0_122, %c0_123] : memref<2x12x12x128xbf16, #tpu.memory_space<vmem>>, vector<2x8x8x128xbf16>
    %93 = vector.shape_cast %92 : vector<2x8x8x128xbf16> to vector<128x128xbf16>
    %c0_124 = arith.constant 0 : index
    %c15 = arith.constant 15 : index
    %c0_125 = arith.constant 0 : index
    %c0_126 = arith.constant 0 : index
    %94 = vector.load %arg4[%c0_124, %c15, %c0_125, %c0_126] : memref<1x25x128x128xbf16, #tpu.memory_space<vmem>>, vector<1x1x128x128xbf16>
    %95 = vector.shape_cast %94 : vector<1x1x128x128xbf16> to vector<128x128xbf16>
    %cst_127 = arith.constant dense<0.000000e+00> : vector<128x128xf32>
    %96 = tpu.matmul %93, %95, %cst_127 {dimension_numbers = #tpu.dot_dimension_numbers<[1], [0], [0], [1], [0, 0, 1, 1], [], []>} : vector<128x128xbf16>, vector<128x128xbf16>, vector<128x128xf32> -> vector<128x128xf32>
    %97 = arith.addf %91, %96 : vector<128x128xf32>
    %c0_128 = arith.constant 0 : index
    %c3_129 = arith.constant 3 : index
    %c1_130 = arith.constant 1 : index
    %c0_131 = arith.constant 0 : index
    %98 = vector.load %arg12[%c0_128, %c3_129, %c1_130, %c0_131] : memref<2x12x12x128xbf16, #tpu.memory_space<vmem>>, vector<2x8x8x128xbf16>
    %99 = vector.shape_cast %98 : vector<2x8x8x128xbf16> to vector<128x128xbf16>
    %c0_132 = arith.constant 0 : index
    %c16 = arith.constant 16 : index
    %c0_133 = arith.constant 0 : index
    %c0_134 = arith.constant 0 : index
    %100 = vector.load %arg4[%c0_132, %c16, %c0_133, %c0_134] : memref<1x25x128x128xbf16, #tpu.memory_space<vmem>>, vector<1x1x128x128xbf16>
    %101 = vector.shape_cast %100 : vector<1x1x128x128xbf16> to vector<128x128xbf16>
    %cst_135 = arith.constant dense<0.000000e+00> : vector<128x128xf32>
    %102 = tpu.matmul %99, %101, %cst_135 {dimension_numbers = #tpu.dot_dimension_numbers<[1], [0], [0], [1], [0, 0, 1, 1], [], []>} : vector<128x128xbf16>, vector<128x128xbf16>, vector<128x128xf32> -> vector<128x128xf32>
    %103 = arith.addf %97, %102 : vector<128x128xf32>
    %c0_136 = arith.constant 0 : index
    %c3_137 = arith.constant 3 : index
    %c2_138 = arith.constant 2 : index
    %c0_139 = arith.constant 0 : index
    %104 = vector.load %arg12[%c0_136, %c3_137, %c2_138, %c0_139] : memref<2x12x12x128xbf16, #tpu.memory_space<vmem>>, vector<2x8x8x128xbf16>
    %105 = vector.shape_cast %104 : vector<2x8x8x128xbf16> to vector<128x128xbf16>
    %c0_140 = arith.constant 0 : index
    %c17 = arith.constant 17 : index
    %c0_141 = arith.constant 0 : index
    %c0_142 = arith.constant 0 : index
    %106 = vector.load %arg4[%c0_140, %c17, %c0_141, %c0_142] : memref<1x25x128x128xbf16, #tpu.memory_space<vmem>>, vector<1x1x128x128xbf16>
    %107 = vector.shape_cast %106 : vector<1x1x128x128xbf16> to vector<128x128xbf16>
    %cst_143 = arith.constant dense<0.000000e+00> : vector<128x128xf32>
    %108 = tpu.matmul %105, %107, %cst_143 {dimension_numbers = #tpu.dot_dimension_numbers<[1], [0], [0], [1], [0, 0, 1, 1], [], []>} : vector<128x128xbf16>, vector<128x128xbf16>, vector<128x128xf32> -> vector<128x128xf32>
    %109 = arith.addf %103, %108 : vector<128x128xf32>
    %c0_144 = arith.constant 0 : index
    %c3_145 = arith.constant 3 : index
    %c3_146 = arith.constant 3 : index
    %c0_147 = arith.constant 0 : index
    %110 = vector.load %arg12[%c0_144, %c3_145, %c3_146, %c0_147] : memref<2x12x12x128xbf16, #tpu.memory_space<vmem>>, vector<2x8x8x128xbf16>
    %111 = vector.shape_cast %110 : vector<2x8x8x128xbf16> to vector<128x128xbf16>
    %c0_148 = arith.constant 0 : index
    %c18 = arith.constant 18 : index
    %c0_149 = arith.constant 0 : index
    %c0_150 = arith.constant 0 : index
    %112 = vector.load %arg4[%c0_148, %c18, %c0_149, %c0_150] : memref<1x25x128x128xbf16, #tpu.memory_space<vmem>>, vector<1x1x128x128xbf16>
    %113 = vector.shape_cast %112 : vector<1x1x128x128xbf16> to vector<128x128xbf16>
    %cst_151 = arith.constant dense<0.000000e+00> : vector<128x128xf32>
    %114 = tpu.matmul %111, %113, %cst_151 {dimension_numbers = #tpu.dot_dimension_numbers<[1], [0], [0], [1], [0, 0, 1, 1], [], []>} : vector<128x128xbf16>, vector<128x128xbf16>, vector<128x128xf32> -> vector<128x128xf32>
    %115 = arith.addf %109, %114 : vector<128x128xf32>
    %c0_152 = arith.constant 0 : index
    %c3_153 = arith.constant 3 : index
    %c4_154 = arith.constant 4 : index
    %c0_155 = arith.constant 0 : index
    %116 = vector.load %arg12[%c0_152, %c3_153, %c4_154, %c0_155] : memref<2x12x12x128xbf16, #tpu.memory_space<vmem>>, vector<2x8x8x128xbf16>
    %117 = vector.shape_cast %116 : vector<2x8x8x128xbf16> to vector<128x128xbf16>
    %c0_156 = arith.constant 0 : index
    %c19 = arith.constant 19 : index
    %c0_157 = arith.constant 0 : index
    %c0_158 = arith.constant 0 : index
    %118 = vector.load %arg4[%c0_156, %c19, %c0_157, %c0_158] : memref<1x25x128x128xbf16, #tpu.memory_space<vmem>>, vector<1x1x128x128xbf16>
    %119 = vector.shape_cast %118 : vector<1x1x128x128xbf16> to vector<128x128xbf16>
    %cst_159 = arith.constant dense<0.000000e+00> : vector<128x128xf32>
    %120 = tpu.matmul %117, %119, %cst_159 {dimension_numbers = #tpu.dot_dimension_numbers<[1], [0], [0], [1], [0, 0, 1, 1], [], []>} : vector<128x128xbf16>, vector<128x128xbf16>, vector<128x128xf32> -> vector<128x128xf32>
    %121 = arith.addf %115, %120 : vector<128x128xf32>
    %c0_160 = arith.constant 0 : index
    %c4_161 = arith.constant 4 : index
    %c0_162 = arith.constant 0 : index
    %c0_163 = arith.constant 0 : index
    %122 = vector.load %arg12[%c0_160, %c4_161, %c0_162, %c0_163] : memref<2x12x12x128xbf16, #tpu.memory_space<vmem>>, vector<2x8x8x128xbf16>
    %123 = vector.shape_cast %122 : vector<2x8x8x128xbf16> to vector<128x128xbf16>
    %c0_164 = arith.constant 0 : index
    %c20 = arith.constant 20 : index
    %c0_165 = arith.constant 0 : index
    %c0_166 = arith.constant 0 : index
    %124 = vector.load %arg4[%c0_164, %c20, %c0_165, %c0_166] : memref<1x25x128x128xbf16, #tpu.memory_space<vmem>>, vector<1x1x128x128xbf16>
    %125 = vector.shape_cast %124 : vector<1x1x128x128xbf16> to vector<128x128xbf16>
    %cst_167 = arith.constant dense<0.000000e+00> : vector<128x128xf32>
    %126 = tpu.matmul %123, %125, %cst_167 {dimension_numbers = #tpu.dot_dimension_numbers<[1], [0], [0], [1], [0, 0, 1, 1], [], []>} : vector<128x128xbf16>, vector<128x128xbf16>, vector<128x128xf32> -> vector<128x128xf32>
    %127 = arith.addf %121, %126 : vector<128x128xf32>
    %c0_168 = arith.constant 0 : index
    %c4_169 = arith.constant 4 : index
    %c1_170 = arith.constant 1 : index
    %c0_171 = arith.constant 0 : index
    %128 = vector.load %arg12[%c0_168, %c4_169, %c1_170, %c0_171] : memref<2x12x12x128xbf16, #tpu.memory_space<vmem>>, vector<2x8x8x128xbf16>
    %129 = vector.shape_cast %128 : vector<2x8x8x128xbf16> to vector<128x128xbf16>
    %c0_172 = arith.constant 0 : index
    %c21 = arith.constant 21 : index
    %c0_173 = arith.constant 0 : index
    %c0_174 = arith.constant 0 : index
    %130 = vector.load %arg4[%c0_172, %c21, %c0_173, %c0_174] : memref<1x25x128x128xbf16, #tpu.memory_space<vmem>>, vector<1x1x128x128xbf16>
    %131 = vector.shape_cast %130 : vector<1x1x128x128xbf16> to vector<128x128xbf16>
    %cst_175 = arith.constant dense<0.000000e+00> : vector<128x128xf32>
    %132 = tpu.matmul %129, %131, %cst_175 {dimension_numbers = #tpu.dot_dimension_numbers<[1], [0], [0], [1], [0, 0, 1, 1], [], []>} : vector<128x128xbf16>, vector<128x128xbf16>, vector<128x128xf32> -> vector<128x128xf32>
    %133 = arith.addf %127, %132 : vector<128x128xf32>
    %c0_176 = arith.constant 0 : index
    %c4_177 = arith.constant 4 : index
    %c2_178 = arith.constant 2 : index
    %c0_179 = arith.constant 0 : index
    %134 = vector.load %arg12[%c0_176, %c4_177, %c2_178, %c0_179] : memref<2x12x12x128xbf16, #tpu.memory_space<vmem>>, vector<2x8x8x128xbf16>
    %135 = vector.shape_cast %134 : vector<2x8x8x128xbf16> to vector<128x128xbf16>
    %c0_180 = arith.constant 0 : index
    %c22 = arith.constant 22 : index
    %c0_181 = arith.constant 0 : index
    %c0_182 = arith.constant 0 : index
    %136 = vector.load %arg4[%c0_180, %c22, %c0_181, %c0_182] : memref<1x25x128x128xbf16, #tpu.memory_space<vmem>>, vector<1x1x128x128xbf16>
    %137 = vector.shape_cast %136 : vector<1x1x128x128xbf16> to vector<128x128xbf16>
    %cst_183 = arith.constant dense<0.000000e+00> : vector<128x128xf32>
    %138 = tpu.matmul %135, %137, %cst_183 {dimension_numbers = #tpu.dot_dimension_numbers<[1], [0], [0], [1], [0, 0, 1, 1], [], []>} : vector<128x128xbf16>, vector<128x128xbf16>, vector<128x128xf32> -> vector<128x128xf32>
    %139 = arith.addf %133, %138 : vector<128x128xf32>
    %c0_184 = arith.constant 0 : index
    %c4_185 = arith.constant 4 : index
    %c3_186 = arith.constant 3 : index
    %c0_187 = arith.constant 0 : index
    %140 = vector.load %arg12[%c0_184, %c4_185, %c3_186, %c0_187] : memref<2x12x12x128xbf16, #tpu.memory_space<vmem>>, vector<2x8x8x128xbf16>
    %141 = vector.shape_cast %140 : vector<2x8x8x128xbf16> to vector<128x128xbf16>
    %c0_188 = arith.constant 0 : index
    %c23 = arith.constant 23 : index
    %c0_189 = arith.constant 0 : index
    %c0_190 = arith.constant 0 : index
    %142 = vector.load %arg4[%c0_188, %c23, %c0_189, %c0_190] : memref<1x25x128x128xbf16, #tpu.memory_space<vmem>>, vector<1x1x128x128xbf16>
    %143 = vector.shape_cast %142 : vector<1x1x128x128xbf16> to vector<128x128xbf16>
    %cst_191 = arith.constant dense<0.000000e+00> : vector<128x128xf32>
    %144 = tpu.matmul %141, %143, %cst_191 {dimension_numbers = #tpu.dot_dimension_numbers<[1], [0], [0], [1], [0, 0, 1, 1], [], []>} : vector<128x128xbf16>, vector<128x128xbf16>, vector<128x128xf32> -> vector<128x128xf32>
    %145 = arith.addf %139, %144 : vector<128x128xf32>
    %c0_192 = arith.constant 0 : index
    %c4_193 = arith.constant 4 : index
    %c4_194 = arith.constant 4 : index
    %c0_195 = arith.constant 0 : index
    %146 = vector.load %arg12[%c0_192, %c4_193, %c4_194, %c0_195] : memref<2x12x12x128xbf16, #tpu.memory_space<vmem>>, vector<2x8x8x128xbf16>
    %147 = vector.shape_cast %146 : vector<2x8x8x128xbf16> to vector<128x128xbf16>
    %c0_196 = arith.constant 0 : index
    %c24 = arith.constant 24 : index
    %c0_197 = arith.constant 0 : index
    %c0_198 = arith.constant 0 : index
    %148 = vector.load %arg4[%c0_196, %c24, %c0_197, %c0_198] : memref<1x25x128x128xbf16, #tpu.memory_space<vmem>>, vector<1x1x128x128xbf16>
    %149 = vector.shape_cast %148 : vector<1x1x128x128xbf16> to vector<128x128xbf16>
    %cst_199 = arith.constant dense<0.000000e+00> : vector<128x128xf32>
    %150 = tpu.matmul %147, %149, %cst_199 {dimension_numbers = #tpu.dot_dimension_numbers<[1], [0], [0], [1], [0, 0, 1, 1], [], []>} : vector<128x128xbf16>, vector<128x128xbf16>, vector<128x128xf32> -> vector<128x128xf32>
    %151 = arith.addf %145, %150 : vector<128x128xf32>
    %cst_200 = arith.constant dense<0.000000e+00> : vector<128xf32>
    %152 = vector.multi_reduction <add>, %151, %cst_200 [0] : vector<128x128xf32> to vector<128xf32>
    %153 = vector.shape_cast %152 : vector<128xf32> to vector<1x128xf32>
    %cst_201 = arith.constant 1.280000e+02 : f32
    %154 = vector.broadcast %cst_201 : f32 to vector<1x128xf32>
    %155 = arith.divf %153, %154 : vector<1x128xf32>
    %156 = vector.broadcast %155 : vector<1x128xf32> to vector<128x128xf32>
    %157 = arith.subf %151, %156 : vector<128x128xf32>
    %158 = arith.mulf %157, %157 : vector<128x128xf32>
    %cst_202 = arith.constant dense<0.000000e+00> : vector<128xf32>
    %159 = vector.multi_reduction <add>, %158, %cst_202 [0] : vector<128x128xf32> to vector<128xf32>
    %160 = vector.shape_cast %159 : vector<128xf32> to vector<1x128xf32>
    %cst_203 = arith.constant 1.280000e+02 : f32
    %161 = vector.broadcast %cst_203 : f32 to vector<1x128xf32>
    %162 = arith.divf %160, %161 : vector<1x128xf32>
    %c0_204 = arith.constant 0 : index
    %c0_205 = arith.constant 0 : index
    %c0_206 = arith.constant 0 : index
    %163 = vector.load %arg5[%c0_204, %c0_205, %c0_206] : memref<1x1x128xf32, #tpu.memory_space<vmem>>, vector<1x1x128xf32>
    %164 = vector.shape_cast %163 : vector<1x1x128xf32> to vector<1x128xf32>
    %cst_207 = arith.constant 9.99999974E-6 : f32
    %165 = vector.broadcast %cst_207 : f32 to vector<1x128xf32>
    %166 = arith.addf %162, %165 : vector<1x128xf32>
    %167 = math.rsqrt %166 : vector<1x128xf32>
    %168 = arith.mulf %164, %167 : vector<1x128xf32>
    %c0_208 = arith.constant 0 : index
    %c0_209 = arith.constant 0 : index
    %c0_210 = arith.constant 0 : index
    %169 = vector.load %arg6[%c0_208, %c0_209, %c0_210] : memref<1x1x128xf32, #tpu.memory_space<vmem>>, vector<1x1x128xf32>
    %170 = vector.shape_cast %169 : vector<1x1x128xf32> to vector<1x128xf32>
    %171 = arith.mulf %155, %168 : vector<1x128xf32>
    %172 = arith.subf %170, %171 : vector<1x128xf32>
    %173 = vector.broadcast %168 : vector<1x128xf32> to vector<128x128xf32>
    %174 = arith.mulf %151, %173 : vector<128x128xf32>
    %175 = vector.broadcast %172 : vector<1x128xf32> to vector<128x128xf32>
    %176 = arith.addf %174, %175 : vector<128x128xf32>
    %cst_211 = arith.constant 0.000000e+00 : f32
    %177 = vector.broadcast %cst_211 : f32 to vector<128x128xf32>
    %178 = arith.maximumf %176, %177 : vector<128x128xf32>
    %c8_i32 = arith.constant 8 : i32
    %179 = arith.cmpi ne, %arg0, %c8_i32 : i32
    %180 = arith.extui %179 : i1 to i32
    %c0_i32_212 = arith.constant 0 : i32
    %181 = arith.cmpi ne, %180, %c0_i32_212 : i32
    scf.if %181 {
      %185 = arith.truncf %178 : vector<128x128xf32> to vector<128x128xbf16>
      %186 = vector.shape_cast %185 : vector<128x128xbf16> to vector<2x8x8x128xbf16>
      %187 = vector.extract_strided_slice %186 {offsets = [0, 0, 0, 0], sizes = [1, 8, 8, 128], strides = [1, 1, 1, 1]} : vector<2x8x8x128xbf16> to vector<1x8x8x128xbf16>
      %188 = vector.shape_cast %187 : vector<1x8x8x128xbf16> to vector<8x8x128xbf16>
      %c0_215 = arith.constant 0 : index
      %c2_216 = arith.constant 2 : index
      %c2_217 = arith.constant 2 : index
      %c0_218 = arith.constant 0 : index
      %189 = vector.load %arg12[%c0_215, %c2_216, %c2_217, %c0_218] : memref<2x12x12x128xbf16, #tpu.memory_space<vmem>>, vector<1x8x8x128xbf16>
      %190 = vector.shape_cast %189 : vector<1x8x8x128xbf16> to vector<8x8x128xbf16>
      %191 = vector.shape_cast %188 : vector<8x8x128xbf16> to vector<1x8x8x128xbf16>
      tpu.vector_store %arg12[%c0_215, %c2_216, %c2_217, %c0_218], %191 {strides = array<i32>} : memref<2x12x12x128xbf16, #tpu.memory_space<vmem>>, vector<1x8x8x128xbf16>,
      %192 = vector.extract_strided_slice %186 {offsets = [1, 0, 0, 0], sizes = [1, 8, 8, 128], strides = [1, 1, 1, 1]} : vector<2x8x8x128xbf16> to vector<1x8x8x128xbf16>
      %193 = vector.shape_cast %192 : vector<1x8x8x128xbf16> to vector<8x8x128xbf16>
      %c1_219 = arith.constant 1 : index
      %c2_220 = arith.constant 2 : index
      %c2_221 = arith.constant 2 : index
      %c0_222 = arith.constant 0 : index
      %194 = vector.load %arg12[%c1_219, %c2_220, %c2_221, %c0_222] : memref<2x12x12x128xbf16, #tpu.memory_space<vmem>>, vector<1x8x8x128xbf16>
      %195 = vector.shape_cast %194 : vector<1x8x8x128xbf16> to vector<8x8x128xbf16>
      %196 = vector.shape_cast %193 : vector<8x8x128xbf16> to vector<1x8x8x128xbf16>
      tpu.vector_store %arg12[%c1_219, %c2_220, %c2_221, %c0_222], %196 {strides = array<i32>} : memref<2x12x12x128xbf16, #tpu.memory_space<vmem>>, vector<1x8x8x128xbf16>,
    } else {
    }
    %c8_i32_213 = arith.constant 8 : i32
    %182 = arith.cmpi eq, %arg0, %c8_i32_213 : i32
    %183 = arith.extui %182 : i1 to i32
    %c0_i32_214 = arith.constant 0 : i32
    %184 = arith.cmpi ne, %183, %c0_i32_214 : i32
    scf.if %184 {
      %185 = arith.truncf %178 : vector<128x128xf32> to vector<128x128xbf16>
      %c0_215 = arith.constant 0 : index
      %c0_216 = arith.constant 0 : index
      %186 = vector.load %arg7[%c0_215, %c0_216] : memref<128x128xbf16, #tpu.memory_space<vmem>>, vector<128x128xbf16>
      %cst_217 = arith.constant dense<0.000000e+00> : vector<128x128xf32>
      %187 = tpu.matmul %185, %186, %cst_217 {dimension_numbers = #tpu.dot_dimension_numbers<[1], [0], [0], [1], [0, 0, 1, 1], [], []>} : vector<128x128xbf16>, vector<128x128xbf16>, vector<128x128xf32> -> vector<128x128xf32>
      %c0_218 = arith.constant 0 : index
      %c0_219 = arith.constant 0 : index
      %188 = vector.load %arg8[%c0_218, %c0_219] : memref<1x128xf32, #tpu.memory_space<vmem>>, vector<1x128xf32>
      %189 = vector.broadcast %188 : vector<1x128xf32> to vector<128x128xf32>
      %190 = arith.addf %187, %189 : vector<128x128xf32>
      %cst_220 = arith.constant 0.000000e+00 : f32
      %191 = vector.broadcast %cst_220 : f32 to vector<128x128xf32>
      %192 = arith.maximumf %190, %191 : vector<128x128xf32>
      %193 = arith.truncf %192 : vector<128x128xf32> to vector<128x128xbf16>
      %c0_221 = arith.constant 0 : index
      %c0_222 = arith.constant 0 : index
      %194 = vector.load %arg9[%c0_221, %c0_222] : memref<128x128xbf16, #tpu.memory_space<vmem>>, vector<128x128xbf16>
      %cst_223 = arith.constant dense<0.000000e+00> : vector<128x128xf32>
      %195 = tpu.matmul %193, %194, %cst_223 {dimension_numbers = #tpu.dot_dimension_numbers<[1], [0], [0], [1], [0, 0, 1, 1], [], []>} : vector<128x128xbf16>, vector<128x128xbf16>, vector<128x128xf32> -> vector<128x128xf32>
      %c0_224 = arith.constant 0 : index
      %c0_225 = arith.constant 0 : index
      %196 = vector.load %arg10[%c0_224, %c0_225] : memref<1x128xf32, #tpu.memory_space<vmem>>, vector<1x128xf32>
      %197 = vector.broadcast %196 : vector<1x128xf32> to vector<128x128xf32>
      %198 = arith.addf %195, %197 : vector<128x128xf32>
      %c0_226 = arith.constant 0 : index
      %c0_227 = arith.constant 0 : index
      %199 = vector.load %arg11[%c0_226, %c0_227] : memref<128x128xf32, #tpu.memory_space<vmem>>, vector<128x128xf32>
      tpu.vector_store %arg11[%c0_226, %c0_227], %198 {strides = array<i32>} : memref<128x128xf32, #tpu.memory_space<vmem>>, vector<128x128xf32>,
    } else {
    }
    return
  }
  func.func @transform_0(%arg0: i32) -> (i32, i32) {
    %c0_i32 = arith.constant 0 : i32
    %c0_i32_0 = arith.constant 0 : i32
    %c0_i32_1 = arith.constant 0 : i32
    return %c0_i32, %c0_i32_0 : i32, i32
  }
  func.func @transform_1(%arg0: i32) -> (i32, i32) {
    %c0_i32 = arith.constant 0 : i32
    %c0_i32_0 = arith.constant 0 : i32
    %c0_i32_1 = arith.constant 0 : i32
    return %c0_i32, %c0_i32_0 : i32, i32
  }
  func.func @transform_2(%arg0: i32) -> (i32, i32) {
    %c0_i32 = arith.constant 0 : i32
    %c0_i32_0 = arith.constant 0 : i32
    %c0_i32_1 = arith.constant 0 : i32
    return %c0_i32, %c0_i32_0 : i32, i32
  }
  func.func @transform_3(%arg0: i32) -> (i32, i32, i32, i32) {
    %c0_i32 = arith.constant 0 : i32
    %c0_i32_0 = arith.constant 0 : i32
    %c0_i32_1 = arith.constant 0 : i32
    %c0_i32_2 = arith.constant 0 : i32
    return %arg0, %c0_i32, %c0_i32_0, %c0_i32_1 : i32, i32, i32, i32
  }
  func.func @transform_4(%arg0: i32) -> (i32, i32, i32) {
    %c0_i32 = arith.constant 0 : i32
    %c0_i32_0 = arith.constant 0 : i32
    %c0_i32_1 = arith.constant 0 : i32
    return %arg0, %c0_i32, %c0_i32_0 : i32, i32, i32
  }
  func.func @transform_5(%arg0: i32) -> (i32, i32, i32) {
    %c0_i32 = arith.constant 0 : i32
    %c0_i32_0 = arith.constant 0 : i32
    %c0_i32_1 = arith.constant 0 : i32
    return %arg0, %c0_i32, %c0_i32_0 : i32, i32, i32
  }
  func.func @transform_6(%arg0: i32) -> (i32, i32) {
    %c0_i32 = arith.constant 0 : i32
    %c0_i32_0 = arith.constant 0 : i32
    %c0_i32_1 = arith.constant 0 : i32
    return %c0_i32, %c0_i32_0 : i32, i32
  }
  func.func @transform_7(%arg0: i32) -> (i32, i32) {
    %c0_i32 = arith.constant 0 : i32
    %c0_i32_0 = arith.constant 0 : i32
    %c0_i32_1 = arith.constant 0 : i32
    return %c0_i32, %c0_i32_0 : i32, i32
  }
  func.func @transform_8(%arg0: i32) -> (i32, i32) {
    %c0_i32 = arith.constant 0 : i32
    %c0_i32_0 = arith.constant 0 : i32
    %c0_i32_1 = arith.constant 0 : i32
    return %c0_i32, %c0_i32_0 : i32, i32
  }
  func.func @transform_9(%arg0: i32) -> (i32, i32) {
    %c0_i32 = arith.constant 0 : i32
    %c0_i32_0 = arith.constant 0 : i32
    %c0_i32_1 = arith.constant 0 : i32
    return %c0_i32, %c0_i32_0 : i32, i32
  }
  func.func @transform_10(%arg0: i32) -> (i32, i32) {
    %c0_i32 = arith.constant 0 : i32
    %c0_i32_0 = arith.constant 0 : i32
    %c0_i32_1 = arith.constant 0 : i32
    return %c0_i32, %c0_i32_0 : i32, i32
  }
}

</mosaic_0001>

<bundles_post_ra>
// kernel: resnet2d_forward.1
= control target key start
LH: loop header
LB: loop body
LE: loop exit
PB: predicated region body
PF: predicated region fallthrough
CT: control target
= control target key end

     0   :  { %15 = vsyncpa [#allocation4], 0  ;;  %s11638_s13 = smov 0   ;;  %s14483_s0 = inlined_call_operand.vmem [shape: bf16[128,128], index: 0, kind: input, shape index: {}]   ;;  %s14484_s1 = inlined_call_operand.vmem [shape: bf16[128,128], index: 1, kind: input, shape index: {}]   ;;  %s14485_s2 = inlined_call_operand.vmem [shape: f32[1,128], index: 2, kind: input, shape index: {}]   ;;  %s14486_s3 = inlined_call_operand.vmem [shape: bf16[9,25,128,128], index: 3, kind: input, shape index: {}]   ;;  %s14487_s4 = inlined_call_operand.vmem [shape: f32[9,1,128], index: 4, kind: input, shape index: {}]   ;;  %s14488_s5 = inlined_call_operand.vmem [shape: f32[9,1,128], index: 5, kind: input, shape index: {}]   ;;  %s14489_s6 = inlined_call_operand.vmem [shape: bf16[128,128], index: 6, kind: input, shape index: {}]   ;;  %s14490_s7 = inlined_call_operand.vmem [shape: f32[1,128], index: 7, kind: input, shape index: {}]   ;;  %s14491_s8 = inlined_call_operand.vmem [shape: bf16[128,128], index: 8, kind: input, shape index: {}]   ;;  %s14492_s9 = inlined_call_operand.vmem [shape: f32[1,128], index: 9, kind: input, shape index: {}]   ;;  %s14493_s10 = inlined_call_operand.hbm [shape: f32[128,128], index: 10, kind: output, shape index: {}]  }
   0x1 LB: > { %s11644_s14 = sadd.s32 4294967295, %s11576_s13   ;;  %p9478_p0 = scmp.ge.s32.totalorder %s11576_s13, 1  ;;  %s11576_s13 = sphi %s11638_s13, %s21_s13  }
   0x2   : > { %p324_p1 = scmp.lt.s32.totalorder %s11576_s13, 10 }
   0x4   : > { %p325_p2 = pnand %p9478_p0, %p324_p1 }
   0x6   : > { %328 = sbr.rel (%p325_p2) target bundleno = 1707 (0x6ab), region = 60 }
   0xb   : > { %p363_p3 = scmp.lt.s32.totalorder %s11644_s14, 8  ;;  %p9480_p4 = scmp.ne.s32.totalorder %s11644_s14, 0 }
   0xd   : > { %s11650_s15 = scalar_select %p363_p3, %s11644_s14, 8 }
   0xe   : > { %378 = sbr.rel (%p9480_p4) target bundleno = 218 (0xda), region = 64 }
   0xf   : > { %s11455_s16 = smul.u32 1600, %s11650_s15  ;;  %s370_s19 = scalar_lea.vmem %s14487_s4, %s11650_s15 }
  0x10   : > { %s373_s22 = scalar_lea.vmem %s14488_s5, %s11650_s15 }
  0x11   : > { %s11664_s25 = scalar_lea.vmem %s14486_s3, %s11455_s16 }
  0x13   : > { %v11134_v0 = vld [vmem:[%s14484_s1 + $0x38] sm:$0xff]  ;;  %v11133_v1 = vld [vmem:[%s14484_s1 + $0x30] sm:$0xff]  ;;  %v11132_v2 = vld [vmem:[%s14484_s1 + $0x28] sm:$0xff]  ;;  %v11578_v6 = vmov 0  }
  0x14   : > { %559 = vmatpush.bf16.msra.mxu0 %v11134_v0  ;;  %11391 = vmatpush.bf16.msra.mxu1 %v11134_v0  ;;  %v11131_v3 = vld [vmem:[%s14484_s1 + $0x20] sm:$0xff]  ;;  %v11130_v4 = vld [vmem:[%s14484_s1 + $0x18] sm:$0xff]  ;;  %v11129_v5 = vld [vmem:[%s14484_s1 + $0x10] sm:$0xff]  ;;  %379 = vst [vmem:[#allocation2] sm:$0xf] %v11578_v6 }
  0x15   : > { %11392 = vmatpush.bf16.msra.mxu2 %v11134_v0  ;;  %11393 = vmatpush.bf16.msra.mxu3 %v11134_v0  ;;  %380 = vst [vmem:[#allocation2 + $0x4] sm:$0x3] %v11578_v6  ;;  %v11128_v7 = vld [vmem:[%s14484_s1 + $0x8] sm:$0xff]  ;;  %v11127_v8 = vld [vmem:[%s14484_s1] sm:$0xff]  ;;  %v11121_v10 = vld [vmem:[%s14483_s0 + $0x10] sm:$0xff] }
  0x16   : > { %381 = vst [vmem:[#allocation2 + $0x8] sm:$0xf] %v11578_v6  ;;  %v11119_v9 = vld [vmem:[%s14483_s0] sm:$0xff]  ;;  %v11125_v12 = vld [vmem:[%s14483_s0 + $0x30] sm:$0xff]  ;;  %v11120_v13 = vld [vmem:[%s14483_s0 + $0x8] sm:$0xff] }
  0x17   : > { %382 = vst [vmem:[#allocation2 + $0xc] sm:$0x3] %v11578_v6  ;;  %v11123_v11 = vld [vmem:[%s14483_s0 + $0x20] sm:$0xff]  ;;  %v11122_v14 = vld [vmem:[%s14483_s0 + $0x18] sm:$0xff]  ;;  %v11124_v15 = vld [vmem:[%s14483_s0 + $0x28] sm:$0xff] }
  0x18   : > { %560 = vmatpush.bf16.msra.mxu0 %v11133_v1  ;;  %11394 = vmatpush.bf16.msra.mxu1 %v11133_v1  ;;  %383 = vst [vmem:[#allocation2 + $0x10] sm:$0xf] %v11578_v6  ;;  %v11126_v16 = vld [vmem:[%s14483_s0 + $0x38] sm:$0xff]  ;;  %v11766_v17 = vld [vmem:[%s14485_s2] ss:$0 sm:$0xff] }
  0x19   : > { %11395 = vmatpush.bf16.msra.mxu2 %v11133_v1  ;;  %11396 = vmatpush.bf16.msra.mxu3 %v11133_v1  ;;  %384 = vst [vmem:[#allocation2 + $0x14] sm:$0x3] %v11578_v6 }
  0x1a   : > { %399 = vst [vmem:[#allocation2 + $0x50] sm:$0xf] %v11578_v6 }
  0x1b   : > { %400 = vst [vmem:[#allocation2 + $0x54] sm:$0x3] %v11578_v6 }
  0x1c   : > { %561 = vmatpush.bf16.msra.mxu0 %v11132_v2  ;;  %11397 = vmatpush.bf16.msra.mxu1 %v11132_v2  ;;  %401 = vst [vmem:[#allocation2 + $0x58] sm:$0xf] %v11578_v6 }
  0x1d   : > { %11398 = vmatpush.bf16.msra.mxu2 %v11132_v2  ;;  %11399 = vmatpush.bf16.msra.mxu3 %v11132_v2  ;;  %402 = vst [vmem:[#allocation2 + $0x5c] sm:$0x3] %v11578_v6 }
  0x1e   : > { %403 = vst [vmem:[#allocation2 + $0x60] sm:$0xf] %v11578_v6 }
  0x1f   : > { %404 = vst [vmem:[#allocation2 + $0x64] sm:$0x3] %v11578_v6 }
  0x20   : > { %562 = vmatpush.bf16.msra.mxu0 %v11131_v3  ;;  %11400 = vmatpush.bf16.msra.mxu1 %v11131_v3  ;;  %405 = vst [vmem:[#allocation2 + $0x68] sm:$0xf] %v11578_v6 }
  0x21   : > { %11401 = vmatpush.bf16.msra.mxu2 %v11131_v3  ;;  %11402 = vmatpush.bf16.msra.mxu3 %v11131_v3  ;;  %406 = vst [vmem:[#allocation2 + $0x6c] sm:$0x3] %v11578_v6 }
  0x22   : > { %423 = vst [vmem:[#allocation2 + $0xb0] sm:$0xf] %v11578_v6 }
  0x23   : > { %424 = vst [vmem:[#allocation2 + $0xb4] sm:$0x3] %v11578_v6 }
  0x24   : > { %563 = vmatpush.bf16.msra.mxu0 %v11130_v4  ;;  %11403 = vmatpush.bf16.msra.mxu1 %v11130_v4  ;;  %425 = vst [vmem:[#allocation2 + $0xb8] sm:$0xf] %v11578_v6 }
  0x25   : > { %11404 = vmatpush.bf16.msra.mxu2 %v11130_v4  ;;  %11405 = vmatpush.bf16.msra.mxu3 %v11130_v4  ;;  %426 = vst [vmem:[#allocation2 + $0xbc] sm:$0x3] %v11578_v6 }
  0x26   : > { %385 = vst [vmem:[#allocation2 + $0x18] sm:$0xf] %v11578_v6 }
  0x27   : > { %386 = vst [vmem:[#allocation2 + $0x1c] sm:$0x3] %v11578_v6 }
  0x28   : > { %564 = vmatpush.bf16.msra.mxu0 %v11129_v5  ;;  %11406 = vmatpush.bf16.msra.mxu1 %v11129_v5  ;;  %387 = vst [vmem:[#allocation2 + $0x20] sm:$0xf] %v11578_v6 }
  0x29   : > { %11407 = vmatpush.bf16.msra.mxu2 %v11129_v5  ;;  %11408 = vmatpush.bf16.msra.mxu3 %v11129_v5  ;;  %388 = vst [vmem:[#allocation2 + $0x24] sm:$0x3] %v11578_v6 }
  0x2a   : > { %389 = vst [vmem:[#allocation2 + $0x28] sm:$0xf] %v11578_v6 }
  0x2b   : > { %390 = vst [vmem:[#allocation2 + $0x2c] sm:$0x3] %v11578_v6 }
  0x2c   : > { %565 = vmatpush.bf16.msra.mxu0 %v11128_v7  ;;  %11409 = vmatpush.bf16.msra.mxu1 %v11128_v7  ;;  %391 = vst [vmem:[#allocation2 + $0x30] sm:$0xf] %v11578_v6 }
  0x2d   : > { %11410 = vmatpush.bf16.msra.mxu2 %v11128_v7  ;;  %11411 = vmatpush.bf16.msra.mxu3 %v11128_v7  ;;  %392 = vst [vmem:[#allocation2 + $0x34] sm:$0x3] %v11578_v6 }
  0x2e   : > { %393 = vst [vmem:[#allocation2 + $0x38] sm:$0xf] %v11578_v6 }
  0x2f   : > { %394 = vst [vmem:[#allocation2 + $0x3c] sm:$0x3] %v11578_v6 }
  0x30   : > { %566 = vmatpush.bf16.msra.mxu0 %v11127_v8  ;;  %11412 = vmatpush.bf16.msra.mxu1 %v11127_v8  ;;  %395 = vst [vmem:[#allocation2 + $0x40] sm:$0xf] %v11578_v6 }
  0x31   : > { %11413 = vmatpush.bf16.msra.mxu2 %v11127_v8  ;;  %11414 = vmatpush.bf16.msra.mxu3 %v11127_v8  ;;  %396 = vst [vmem:[#allocation2 + $0x44] sm:$0x3] %v11578_v6 }
  0x32   : > { %397 = vst [vmem:[#allocation2 + $0x48] sm:$0xf] %v11578_v6 }
  0x33   : > { %567 = vmatmul.bf16.vlgmr.msra.gmra.mxu0 %v11119_v9  ;;  %577 = vmatmul.bf16.vlgmr.msra.gmra.mxu1 %v11121_v10  ;;  %398 = vst [vmem:[#allocation2 + $0x4c] sm:$0x3] %v11578_v6 }
  0x34   : > { %587 = vmatmul.bf16.vlgmr.msra.gmra.mxu2 %v11123_v11  ;;  %597 = vmatmul.bf16.vlgmr.msra.gmra.mxu3 %v11125_v12  ;;  %407 = vst [vmem:[#allocation2 + $0x70] sm:$0xf] %v11578_v6 }
  0x35   : > { %408 = vst [vmem:[#allocation2 + $0x74] sm:$0x3] %v11578_v6 }
  0x36   : > { %409 = vst [vmem:[#allocation2 + $0x78] sm:$0xf] %v11578_v6 }
  0x37   : > { %410 = vst [vmem:[#allocation2 + $0x7c] sm:$0x3] %v11578_v6 }
  0x38   : > { %411 = vst [vmem:[#allocation2 + $0x80] sm:$0xf] %v11578_v6 }
  0x39   : > { %412 = vst [vmem:[#allocation2 + $0x84] sm:$0x3] %v11578_v6 }
  0x3a   : > { %413 = vst [vmem:[#allocation2 + $0x88] sm:$0xf] %v11578_v6 }
  0x3b   : > { %414 = vst [vmem:[#allocation2 + $0x8c] sm:$0x3] %v11578_v6 }
  0x3c   : > { %415 = vst [vmem:[#allocation2 + $0x90] sm:$0xf] %v11578_v6 }
  0x3d   : > { %416 = vst [vmem:[#allocation2 + $0x94] sm:$0x3] %v11578_v6 }
  0x3e   : > { %417 = vst [vmem:[#allocation2 + $0x98] sm:$0xf] %v11578_v6 }
  0x3f   : > { %418 = vst [vmem:[#allocation2 + $0x9c] sm:$0x3] %v11578_v6 }
  0x40   : > { %419 = vst [vmem:[#allocation2 + $0xa0] sm:$0xf] %v11578_v6 }
  0x41   : > { %420 = vst [vmem:[#allocation2 + $0xa4] sm:$0x3] %v11578_v6 }
  0x42   : > { %421 = vst [vmem:[#allocation2 + $0xa8] sm:$0xf] %v11578_v6 }
  0x43   : > { %572 = vmatmul.bf16.gmra.mxu0 %v11120_v13  ;;  %582 = vmatmul.bf16.gmra.mxu1 %v11122_v14  ;;  %422 = vst [vmem:[#allocation2 + $0xac] sm:$0x3] %v11578_v6 }
  0x44   : > { %592 = vmatmul.bf16.gmra.mxu2 %v11124_v15  ;;  %602 = vmatmul.bf16.gmra.mxu3 %v11126_v16 }
  0xb0   : > { %v568_v18 = vpop.f32.mrf.mxu0  ;;  %v578_v19 = vpop.f32.mrf.mxu1 }
  0xb1   : > { %v569_v20 = vadd.f32 %v11766_v17, %v568_v18  ;;  %v579_v21 = vadd.f32 %v11766_v17, %v578_v19 }
  0xb3   : > { %v608_v22 = vpack.c.bf16 %v569_v20, %v569_v20  ;;  %v612_v23 = vpack.c.bf16 %v579_v21, %v579_v21 }
  0xb5   : > { %v632_v24 = vrot.slane %v608_v22, 7  ;;  %v640_v25 = vrot.slane %v612_v23, 7 }
  0xb7   : > { %v633_v26 = vrot.slane %v632_v24, 4  ;;  %665 = vst [vmem:[#allocation2 + $0x10] sm:$0xe] %v632_v24  ;;  %v641_v27 = vrot.slane %v640_v25, 4  ;;  %v588_v28 = vpop.f32.mrf.mxu2  ;;  %v598_v29 = vpop.f32.mrf.mxu3 }
  0xb8   : > { %673 = vst [vmem:[#allocation2 + $0x30] sm:$0xe] %v640_v25  ;;  %v589_v30 = vadd.f32 %v11766_v17, %v588_v28  ;;  %v599_v31 = vadd.f32 %v11766_v17, %v598_v29  ;;  %v570_v32 = vpop.f32.mrf.mxu0  ;;  %v580_v33 = vpop.f32.mrf.mxu1 }
  0xb9   : > { %666 = vst [vmem:[#allocation2 + $0x14] sm:$0x1] %v633_v26  ;;  %v571_v34 = vadd.f32 %v11766_v17, %v570_v32  ;;  %v581_v35 = vadd.f32 %v11766_v17, %v580_v33 }
  0xba   : > { %674 = vst [vmem:[#allocation2 + $0x34] sm:$0x1] %v641_v27  ;;  %v616_v36 = vpack.c.bf16 %v589_v30, %v589_v30  ;;  %v620_v37 = vpack.c.bf16 %v599_v31, %v599_v31 }
  0xbb   : > { %v609_v38 = vpack.c.bf16 %v571_v34, %v571_v34  ;;  %v613_v39 = vpack.c.bf16 %v581_v35, %v581_v35 }
  0xbc   : > { %v689_v40 = vrot.slane %v616_v36, 7  ;;  %v697_v41 = vrot.slane %v620_v37, 7 }
  0xbd   : > { %v634_v42 = vrot.slane %v609_v38, 7  ;;  %v642_v43 = vrot.slane %v613_v39, 7 }
  0xbe   : > { %v690_v44 = vrot.slane %v689_v40, 4  ;;  %722 = vst [vmem:[#allocation2 + $0x70] sm:$0xe] %v689_v40  ;;  %v698_v45 = vrot.slane %v697_v41, 4 }
  0xbf   : > { %730 = vst [vmem:[#allocation2 + $0x90] sm:$0xe] %v697_v41  ;;  %v635_v46 = vrot.slane %v634_v42, 4  ;;  %v590_v47 = vpop.f32.mrf.mxu2  ;;  %v600_v48 = vpop.f32.mrf.mxu3  ;;  %v643_v53 = vrot.slane %v642_v43, 4 }
  0xc0   : > { %723 = vst [vmem:[#allocation2 + $0x74] sm:$0x1] %v690_v44  ;;  %v591_v49 = vadd.f32 %v11766_v17, %v590_v47  ;;  %v601_v50 = vadd.f32 %v11766_v17, %v600_v48  ;;  %v573_v51 = vpop.f32.mrf.mxu0  ;;  %v583_v52 = vpop.f32.mrf.mxu1 }
  0xc1   : > { %731 = vst [vmem:[#allocation2 + $0x94] sm:$0x1] %v698_v45  ;;  %v574_v54 = vadd.f32 %v11766_v17, %v573_v51  ;;  %v584_v55 = vadd.f32 %v11766_v17, %v583_v52 }
  0xc2   : > { %667 = vst [vmem:[#allocation2 + $0x18] sm:$0xe] %v634_v42  ;;  %v617_v56 = vpack.c.bf16 %v591_v49, %v591_v49  ;;  %v621_v57 = vpack.c.bf16 %v601_v50, %v601_v50 }
  0xc3   : > { %668 = vst [vmem:[#allocation2 + $0x1c] sm:$0x1] %v635_v46  ;;  %v610_v58 = vpack.c.bf16 %v574_v54, %v574_v54  ;;  %v614_v59 = vpack.c.bf16 %v584_v55, %v584_v55 }
  0xc4   : > { %675 = vst [vmem:[#allocation2 + $0x38] sm:$0xe] %v642_v43  ;;  %v691_v60 = vrot.slane %v617_v56, 7  ;;  %v699_v61 = vrot.slane %v621_v57, 7 }
  0xc5   : > { %676 = vst [vmem:[#allocation2 + $0x3c] sm:$0x1] %v643_v53  ;;  %v636_v62 = vrot.slane %v610_v58, 7  ;;  %v644_v63 = vrot.slane %v614_v59, 7 }
  0xc6   : > { %v692_v0 = vrot.slane %v691_v60, 4  ;;  %724 = vst [vmem:[#allocation2 + $0x78] sm:$0xe] %v691_v60  ;;  %v700_v1 = vrot.slane %v699_v61, 4 }
  0xc7   : > { %732 = vst [vmem:[#allocation2 + $0x98] sm:$0xe] %v699_v61  ;;  %v637_v2 = vrot.slane %v636_v62, 4  ;;  %v593_v3 = vpop.f32.mrf.mxu2  ;;  %v603_v4 = vpop.f32.mrf.mxu3  ;;  %v645_v9 = vrot.slane %v644_v63, 4 }
  0xc8   : > { %725 = vst [vmem:[#allocation2 + $0x7c] sm:$0x1] %v692_v0  ;;  %v594_v5 = vadd.f32 %v11766_v17, %v593_v3  ;;  %v604_v6 = vadd.f32 %v11766_v17, %v603_v4  ;;  %v575_v7 = vpop.f32.mrf.mxu0  ;;  %v585_v8 = vpop.f32.mrf.mxu1 }
  0xc9   : > { %733 = vst [vmem:[#allocation2 + $0x9c] sm:$0x1] %v700_v1  ;;  %v576_v10 = vadd.f32 %v11766_v17, %v575_v7  ;;  %v586_v11 = vadd.f32 %v11766_v17, %v585_v8 }
  0xca   : > { %669 = vst [vmem:[#allocation2 + $0x20] sm:$0xe] %v636_v62  ;;  %v618_v12 = vpack.c.bf16 %v594_v5, %v594_v5  ;;  %v622_v13 = vpack.c.bf16 %v604_v6, %v604_v6 }
  0xcb   : > { %670 = vst [vmem:[#allocation2 + $0x24] sm:$0x1] %v637_v2  ;;  %v611_v14 = vpack.c.bf16 %v576_v10, %v576_v10  ;;  %v615_v15 = vpack.c.bf16 %v586_v11, %v586_v11 }
  0xcc   : > { %677 = vst [vmem:[#allocation2 + $0x40] sm:$0xe] %v644_v63  ;;  %v693_v16 = vrot.slane %v618_v12, 7  ;;  %v701_v18 = vrot.slane %v622_v13, 7 }
  0xcd   : > { %678 = vst [vmem:[#allocation2 + $0x44] sm:$0x1] %v645_v9  ;;  %v638_v19 = vrot.slane %v611_v14, 7  ;;  %v646_v20 = vrot.slane %v615_v15, 7 }
  0xce   : > { %v694_v21 = vrot.slane %v693_v16, 4  ;;  %726 = vst [vmem:[#allocation2 + $0x80] sm:$0xe] %v693_v16  ;;  %v702_v22 = vrot.slane %v701_v18, 4 }
  0xcf   : > { %734 = vst [vmem:[#allocation2 + $0xa0] sm:$0xe] %v701_v18  ;;  %v639_v23 = vrot.slane %v638_v19, 4  ;;  %v595_v24 = vpop.f32.mrf.mxu2  ;;  %v605_v25 = vpop.f32.mrf.mxu3  ;;  %v647_v28 = vrot.slane %v646_v20, 4 }
  0xd0   : > { %727 = vst [vmem:[#allocation2 + $0x84] sm:$0x1] %v694_v21  ;;  %v596_v26 = vadd.f32 %v11766_v17, %v595_v24  ;;  %v606_v27 = vadd.f32 %v11766_v17, %v605_v25 }
  0xd1   : > { %735 = vst [vmem:[#allocation2 + $0xa4] sm:$0x1] %v702_v22 }
  0xd2   : > { %671 = vst [vmem:[#allocation2 + $0x28] sm:$0xe] %v638_v19  ;;  %v619_v29 = vpack.c.bf16 %v596_v26, %v596_v26  ;;  %v623_v30 = vpack.c.bf16 %v606_v27, %v606_v27 }
  0xd3   : > { %672 = vst [vmem:[#allocation2 + $0x2c] sm:$0x1] %v639_v23 }
  0xd4   : > { %679 = vst [vmem:[#allocation2 + $0x48] sm:$0xe] %v646_v20  ;;  %v695_v31 = vrot.slane %v619_v29, 7  ;;  %v703_v32 = vrot.slane %v623_v30, 7 }
  0xd5   : > { %680 = vst [vmem:[#allocation2 + $0x4c] sm:$0x1] %v647_v28 }
  0xd6   : > { %v696_v33 = vrot.slane %v695_v31, 4  ;;  %728 = vst [vmem:[#allocation2 + $0x88] sm:$0xe] %v695_v31  ;;  %v704_v34 = vrot.slane %v703_v32, 4 }
  0xd7   : > { %736 = vst [vmem:[#allocation2 + $0xa8] sm:$0xe] %v703_v32 }
  0xd8   : > { %729 = vst [vmem:[#allocation2 + $0x8c] sm:$0x1] %v696_v33 }
  0xd9   : > { %737 = vst [vmem:[#allocation2 + $0xac] sm:$0x1] %v704_v34 }
  0xda PF: > { %v11158_v17 = vld [vmem:[%s11664_s25 + $0x78] sm:$0xff]  ;;  %v11157_v35 = vld [vmem:[%s11664_s25 + $0x70] sm:$0xff]  ;;  %v742_v36 = vld [vmem:[#allocation2 + $0x20] sm:$0xf]  ;;  %vm786_vm0 = vsmask.f32 3328 }
  0xdb   : > { %11415 = vmatpush.bf16.msra.mxu1 %v11158_v17  ;;  %11416 = vmatpush.bf16.msra.mxu2 %v11158_v17  ;;  %vm787_vm1 = vsmask.f32 7440  ;;  %v743_v37 = vld [vmem:[#allocation2 + $0x28] sm:$0xf]  ;;  %v11786_v38 = vld [vmem:[#allocation2 + $0x24] sm:$0x1] }
  0xdc   : > { %11417 = vmatpush.bf16.msra.mxu3 %v11158_v17  ;;  %1110 = vmatpush.bf16.msra.mxu0 %v11158_v17  ;;  %v11788_v39 = vld [vmem:[#allocation2 + $0x2c] sm:$0x1]  ;;  %v846_v41 = vshrl.u32 %v742_v36, 16  ;;  %v849_v42 = vshll.u32 %v742_v36, 16  ;;  %v855_v43 = vshll.u32 %v11786_v38, 16  ;;  %v860_v44 = vshrl.u32 %v743_v37, 16  ;;  %vm11795_vm2 = vmor %vm786_vm0, %vm787_vm1 }
  0xdd   : > { %v11156_v40 = vld [vmem:[%s11664_s25 + $0x68] sm:$0xff]  ;;  %v746_v45 = vld [vmem:[#allocation2 + $0x60] sm:$0xf]  ;;  %v863_v46 = vshll.u32 %v743_v37, 16  ;;  %v869_v47 = vshll.u32 %v11788_v39, 16  ;;  %v14496_v0 = vmov 0 }
  0xde   : > { %v747_v48 = vld [vmem:[#allocation2 + $0x68] sm:$0xf]  ;;  %v778_v49 = vld [vmem:[#allocation2 + $0x64] sm:$0x1]  ;;  %v848_v50 = vrot.slane %v846_v41, 4  ;;  %v851_v51 = vrot.slane %v849_v42, 5 }
  0xdf   : > { %11418 = vmatpush.bf16.msra.mxu1 %v11157_v35  ;;  %11419 = vmatpush.bf16.msra.mxu2 %v11157_v35  ;;  %v857_v52 = vrot.slane %v855_v43, 5  ;;  %v862_v53 = vrot.slane %v860_v44, 4  ;;  %v779_v54 = vld [vmem:[#allocation2 + $0x6c] sm:$0x1]  ;;  %v865_v55 = vrot.slane %v863_v46, 5  ;;  %v871_v56 = vrot.slane %v869_v47, 5 }
  0xe0   : > { %11420 = vmatpush.bf16.msra.mxu3 %v11157_v35  ;;  %1111 = vmatpush.bf16.msra.mxu0 %v11157_v35  ;;  %v902_v57 = vshrl.u32 %v746_v45, 16  ;;  %v905_v58 = vshll.u32 %v746_v45, 16  ;;  %v852_v59 = vor.u32 %v851_v51, %v848_v50  ;;  %v911_v60 = vshll.u32 %v778_v49, 16  ;;  %v750_v63 = vld [vmem:[#allocation2 + $0x80] sm:$0xf]  ;;  %v11154_v26 = vld [vmem:[%s11664_s25 + $0x58] sm:$0xff] }
  0xe1   : > { %v916_v61 = vshrl.u32 %v747_v48, 16  ;;  %v919_v62 = vshll.u32 %v747_v48, 16  ;;  %v14497_v0 = vsel %vm11795_vm2, 4294967295, %v14496_v0  ;;  %v866_v1 = vor.u32 %v865_v55, %v862_v53  ;;  %v782_v5 = vld [vmem:[#allocation2 + $0x84] sm:$0x1]  ;;  %v11153_v43 = vld [vmem:[%s11664_s25 + $0x50] sm:$0xff] }
  0xe2   : > { %14498 = vst [vmem:[#allocation6_spill] sm:$0xff] %v14497_v0  ;;  %v904_v2 = vrot.slane %v902_v57, 4  ;;  %v907_v3 = vrot.slane %v905_v58, 5  ;;  %v925_v4 = vshll.u32 %v779_v54, 16  ;;  %v11155_v6 = vld [vmem:[%s11664_s25 + $0x60] sm:$0xff]  ;;  %v853_v7 = vrot.slane %v852_v59, 4 }
  0xe3   : > { %11421 = vmatpush.bf16.msra.mxu1 %v11156_v40  ;;  %11422 = vmatpush.bf16.msra.mxu2 %v11156_v40  ;;  %v913_v8 = vrot.slane %v911_v60, 5  ;;  %v918_v9 = vrot.slane %v916_v61, 4  ;;  %v921_v10 = vrot.slane %v919_v62, 5  ;;  %v867_v11 = vrot.slane %v866_v1, 4  ;;  %v751_v18 = vld [vmem:[#allocation2 + $0x88] sm:$0xf] }
  0xe4   : > { %11423 = vmatpush.bf16.msra.mxu3 %v11156_v40  ;;  %1112 = vmatpush.bf16.msra.mxu0 %v11156_v40  ;;  %v908_v12 = vor.u32 %v907_v3, %v904_v2  ;;  %v927_v13 = vrot.slane %v925_v4, 5  ;;  %v958_v14 = vshrl.u32 %v750_v63, 16  ;;  %v858_v15 = vsel %vm11795_vm2, %v853_v7, %v857_v52  ;;  %v783_v19 = vld [vmem:[#allocation2 + $0x8c] sm:$0x1]  ;;  %v738_v31 = vld [vmem:[#allocation2] sm:$0xf] }
  0xe5   : > { %v922_v16 = vor.u32 %v921_v10, %v918_v9  ;;  %v961_v20 = vshll.u32 %v750_v63, 16  ;;  %v967_v21 = vshll.u32 %v782_v5, 16  ;;  %v872_v22 = vsel %vm11795_vm2, %v867_v11, %v871_v56  ;;  %v11811_v35 = vld [vmem:[#allocation2 + $0x4] sm:$0x1]  ;;  %v739_v42 = vld [vmem:[#allocation2 + $0x8] sm:$0xf] }
  0xe6   : > { %v11804_v23 = vunpack.c.l.b16 %v858_v15  ;;  %v909_v24 = vrot.slane %v908_v12, 4  ;;  %v960_v25 = vrot.slane %v958_v14, 4  ;;  %v11807_v27 = vunpack.c.l.b16 %v872_v22  ;;  %v11822_v49 = vld [vmem:[#allocation2 + $0xc] sm:$0x1]  ;;  %v744_v57 = vld [vmem:[#allocation2 + $0x30] sm:$0xf] }
  0xe7   : > { %11424 = vmatpush.bf16.msra.mxu1 %v11155_v6  ;;  %11425 = vmatpush.bf16.msra.mxu2 %v11155_v6  ;;  %v923_v28 = vrot.slane %v922_v16, 4  ;;  %v963_v29 = vrot.slane %v961_v20, 5  ;;  %v969_v30 = vrot.slane %v967_v21, 5  ;;  %v972_v33 = vshrl.u32 %v751_v18, 16  ;;  %v745_v58 = vld [vmem:[#allocation2 + $0x38] sm:$0xf] }
  0xe8   : > { %11426 = vmatpush.bf16.msra.mxu3 %v11155_v6  ;;  %1113 = vmatpush.bf16.msra.mxu0 %v11155_v6  ;;  %v914_v32 = vsel %vm11795_vm2, %v909_v24, %v913_v8  ;;  %v975_v34 = vshll.u32 %v751_v18, 16  ;;  %v981_v17 = vshll.u32 %v783_v19, 16  ;;  %v1048_v36 = vpack.c.b16 %v11807_v27, %v11804_v23  ;;  %v11829_v63 = vld [vmem:[#allocation2 + $0x34] sm:$0x1]  ;;  %v11152_v5 = vld [vmem:[%s11664_s25 + $0x48] sm:$0xff]  ;;  %v11151_v21 = vld [vmem:[%s11664_s25 + $0x40] sm:$0xff] }
  0xe9   : > { %v928_v37 = vsel %vm11795_vm2, %v923_v28, %v927_v13  ;;  %v11817_v40 = vunpack.c.l.b16 %v914_v32  ;;  %v964_v41 = vor.u32 %v963_v29, %v960_v25  ;;  %v974_v45 = vrot.slane %v972_v33, 4  ;;  %v11837_v12 = vld [vmem:[#allocation2 + $0x3c] sm:$0x1]  ;;  %v748_v20 = vld [vmem:[#allocation2 + $0x70] sm:$0xf]  ;;  %p11049_p5 = scmp.eq.s32.totalorder %s11644_s14, 8 }
  0xea   : > { %v11820_v44 = vunpack.c.l.b16 %v928_v37  ;;  %v977_v46 = vrot.slane %v975_v34, 5  ;;  %v983_v47 = vrot.slane %v981_v17, 5  ;;  %v790_v50 = vshrl.u32 %v738_v31, 16  ;;  %v749_v32 = vld [vmem:[#allocation2 + $0x78] sm:$0xf] }
  0xeb   : > { %11427 = vmatpush.bf16.msra.mxu1 %v11154_v26  ;;  %11428 = vmatpush.bf16.msra.mxu2 %v11154_v26  ;;  %v965_v48 = vrot.slane %v964_v41, 4  ;;  %v793_v51 = vshll.u32 %v738_v31, 16  ;;  %v799_v52 = vshll.u32 %v11811_v35, 16  ;;  %v804_v55 = vshrl.u32 %v739_v42, 16  ;;  %v780_v33 = vld [vmem:[#allocation2 + $0x74] sm:$0x1] }
  0xec   : > { %11429 = vmatpush.bf16.msra.mxu3 %v11154_v26  ;;  %1114 = vmatpush.bf16.msra.mxu0 %v11154_v26  ;;  %v1050_v53 = vpack.c.b16 %v11820_v44, %v11817_v40  ;;  %v978_v54 = vor.u32 %v977_v46, %v974_v45  ;;  %v807_v56 = vshll.u32 %v739_v42, 16  ;;  %v792_v60 = vrot.slane %v790_v50, 4  ;;  %v11166_v34 = vld [vmem:[%s11664_s25 + $0xb8] sm:$0xff]  ;;  %v11181_v40 = vld [vmem:[%s11664_s25 + $0x130] sm:$0xff]  ;;  %v11164_v44 = vld [vmem:[%s11664_s25 + $0xa8] sm:$0xff] }
  0xed   : > { %v970_v59 = vsel %vm11795_vm2, %v965_v48, %v969_v30  ;;  %v795_v61 = vrot.slane %v793_v51, 5  ;;  %v801_v62 = vrot.slane %v799_v52, 5  ;;  %v806_v3 = vrot.slane %v804_v55, 4  ;;  %v781_v48 = vld [vmem:[#allocation2 + $0x7c] sm:$0x1] }
  0xee   : > { %v979_v1 = vrot.slane %v978_v54, 4  ;;  %v11831_v2 = vunpack.c.l.b16 %v970_v59  ;;  %v809_v4 = vrot.slane %v807_v56, 5  ;;  %v813_v7 = vshll.u32 %v11822_v49, 16  ;;  %v785_v27 = vld [vmem:[#allocation2 + $0x9c] sm:$0x1] }
  0xef   : > { %11430 = vmatpush.bf16.msra.mxu1 %v11153_v43  ;;  %11431 = vmatpush.bf16.msra.mxu2 %v11153_v43  ;;  %v796_v6 = vor.u32 %v795_v61, %v792_v60  ;;  %v874_v8 = vshrl.u32 %v744_v57, 16  ;;  %v877_v9 = vshll.u32 %v744_v57, 16  ;;  %v883_v13 = vshll.u32 %v11829_v63, 16  ;;  %v752_v60 = vld [vmem:[#allocation2 + $0x90] sm:$0xf] }
  0xf0   : > { %11432 = vmatpush.bf16.msra.mxu3 %v11153_v43  ;;  %1115 = vmatpush.bf16.msra.mxu0 %v11153_v43  ;;  %v984_v10 = vsel %vm11795_vm2, %v979_v1, %v983_v47  ;;  %v810_v11 = vor.u32 %v809_v4, %v806_v3  ;;  %v888_v14 = vshrl.u32 %v745_v58, 16  ;;  %v815_v18 = vrot.slane %v813_v7, 5  ;;  %v11150_v43 = vld [vmem:[%s11664_s25 + $0x38] sm:$0xff]  ;;  %v784_v61 = vld [vmem:[#allocation2 + $0x94] sm:$0x1] }
  0xf1   : > { %v11840_v15 = vunpack.c.l.b16 %v984_v10  ;;  %v797_v16 = vrot.slane %v796_v6, 4  ;;  %v876_v19 = vrot.slane %v874_v8, 4  ;;  %v879_v24 = vrot.slane %v877_v9, 5  ;;  %v11182_v1 = vld [vmem:[%s11664_s25 + $0x138] sm:$0xff]  ;;  %v11165_v6 = vld [vmem:[%s11664_s25 + $0xb0] sm:$0xff] }
  0xf2   : > { %v811_v22 = vrot.slane %v810_v11, 4  ;;  %v11843_v25 = vrot.slane %v883_v13, 5  ;;  %v890_v26 = vrot.slane %v888_v14, 4  ;;  %v891_v30 = vshll.u32 %v745_v58, 16  ;;  %v11149_v7 = vld [vmem:[%s11664_s25 + $0x30] sm:$0xff] }
  0xf3   : > { %11433 = vmatpush.bf16.msra.mxu1 %v11152_v5  ;;  %11434 = vmatpush.bf16.msra.mxu2 %v11152_v5  ;;  %v1052_v28 = vpack.c.b16 %v11840_v15, %v11831_v2  ;;  %v802_v29 = vsel %vm11795_vm2, %v797_v16, %v801_v62  ;;  %v897_v31 = vshll.u32 %v11837_v12, 16  ;;  %v880_v41 = vor.u32 %v879_v24, %v876_v19  ;;  %v11174_v62 = vld [vmem:[%s11664_s25 + $0xf8] sm:$0xff] }
  0xf4   : > { %11435 = vmatpush.bf16.msra.mxu3 %v11152_v5  ;;  %1116 = vmatpush.bf16.msra.mxu0 %v11152_v5  ;;  %v816_v17 = vsel %vm11795_vm2, %v811_v22, %v815_v18  ;;  %v1030_v37 = vunpack.c.l.b16 %v802_v29  ;;  %v930_v42 = vshrl.u32 %v748_v20, 16  ;;  %v893_v46 = vrot.slane %v891_v30, 5  ;;  %v753_v5 = vld [vmem:[#allocation2 + $0x98] sm:$0xf]  ;;  %v11173_v18 = vld [vmem:[%s11664_s25 + $0xf0] sm:$0xff] }
  0xf5   : > { %v1031_v45 = vunpack.c.l.b16 %v816_v17  ;;  %v899_v47 = vrot.slane %v897_v31, 5  ;;  %v933_v50 = vshll.u32 %v748_v20, 16  ;;  %v881_v51 = vrot.slane %v880_v41, 4  ;;  %v741_v41 = vld [vmem:[#allocation2 + $0x18] sm:$0xf] }
  0xf6   : > { %v932_v52 = vrot.slane %v930_v42, 4  ;;  %v939_v54 = vshll.u32 %v780_v33, 16  ;;  %v944_v55 = vshrl.u32 %v749_v32, 16  ;;  %v894_v57 = vor.u32 %v893_v46, %v890_v26  ;;  %v11148_v26 = vld [vmem:[%s11664_s25 + $0x28] sm:$0xff] }
  0xf7   : > { %11436 = vmatpush.bf16.msra.mxu1 %v11151_v21  ;;  %11437 = vmatpush.bf16.msra.mxu2 %v11151_v21  ;;  %v1046_v56 = vpack.c.b16 %v1031_v45, %v1030_v37  ;;  %v935_v58 = vrot.slane %v933_v50, 5  ;;  %v947_v59 = vshll.u32 %v749_v32, 16  ;;  %v886_v2 = vsel %vm11795_vm2, %v881_v51, %v11843_v25  ;;  %v740_v25 = vld [vmem:[#allocation2 + $0x10] sm:$0xf]  ;;  %v11879_v32 = vld [vmem:[#allocation2 + $0x14] sm:$0x1] }
  0xf8   : > { %11438 = vmatpush.bf16.msra.mxu3 %v11151_v21  ;;  %1117 = vmatpush.bf16.msra.mxu0 %v11151_v21  ;;  %v946_v3 = vrot.slane %v944_v55, 4  ;;  %v953_v4 = vshll.u32 %v781_v48, 16  ;;  %v895_v8 = vrot.slane %v894_v57, 4  ;;  %v941_v10 = vrot.slane %v939_v54, 5  ;;  %v11180_v48 = vld [vmem:[%s11664_s25 + $0x128] sm:$0xff]  ;;  %v11163_v50 = vld [vmem:[%s11664_s25 + $0xa0] sm:$0xff] }
  0xf9   : > { %v936_v9 = vor.u32 %v935_v58, %v932_v52  ;;  %v949_v11 = vrot.slane %v947_v59, 5  ;;  %v986_v14 = vshrl.u32 %v752_v60, 16  ;;  %v989_v15 = vshll.u32 %v752_v60, 16  ;;  %v11892_v58 = vld [vmem:[#allocation2 + $0x1c] sm:$0x1] }
  0xfa   : > { %1128 = vmatmul.bf16.vlgmr.msra.gmra.mxu1 %v1048_v36  ;;  %1138 = vmatmul.bf16.vlgmr.msra.gmra.mxu2 %v1050_v53  ;;  %v955_v13 = vrot.slane %v953_v4, 5  ;;  %v995_v16 = vshll.u32 %v784_v61, 16  ;;  %v900_v19 = vsel %vm11795_vm2, %v895_v8, %v899_v47  ;;  %v1000_v36 = vshrl.u32 %v753_v5, 16  ;;  %v11172_v47 = vld [vmem:[%s11664_s25 + $0xe8] sm:$0xff]  ;;  %v11171_v4 = vld [vmem:[%s11664_s25 + $0xe0] sm:$0xff] }
  0xfb   : > { %1516 = vmatpush.bf16.msrb.mxu2 %v11166_v34  ;;  %1255 = vmatpush.bf16.msrb.mxu1 %v11150_v43  ;;  %v937_v20 = vrot.slane %v936_v9, 4  ;;  %v950_v23 = vor.u32 %v949_v11, %v946_v3  ;;  %v11872_v53 = vunpack.c.l.b16 %v886_v2  ;;  %v11874_v21 = vunpack.c.l.b16 %v900_v19  ;;  %v11179_v9 = vld [vmem:[%s11664_s25 + $0x120] sm:$0xff] }
  0xfc   : > { %1148 = vmatmul.bf16.vlgmr.msra.gmra.mxu3 %v1052_v28  ;;  %1118 = vmatmul.bf16.vlgmr.msra.gmra.mxu0 %v1046_v56  ;;  %v988_v22 = vrot.slane %v986_v14, 4  ;;  %v991_v24 = vrot.slane %v989_v15, 5  ;;  %v1002_v30 = vrot.slane %v1000_v36, 4  ;;  %v1003_v31 = vshll.u32 %v753_v5, 16  ;;  %v11147_v56 = vld [vmem:[%s11664_s25 + $0x20] sm:$0xff] }
  0xfd   : > { %1985 = vmatpush.bf16.msrb.mxu3 %v11174_v62  ;;  %2262 = vmatpush.bf16.msrb.mxu0 %v11182_v1  ;;  %v942_v28 = vsel %vm11795_vm2, %v937_v20, %v941_v10  ;;  %v951_v29 = vrot.slane %v950_v23, 4  ;;  %v997_v17 = vrot.slane %v995_v16, 5  ;;  %v1009_v37 = vshll.u32 %v785_v27, 16  ;;  %v1304_v14 = vld [vmem:[#allocation2] sm:$0xe]  ;;  %v11162_v16 = vld [vmem:[%s11664_s25 + $0x98] sm:$0xff] }
  0xfe   : > { %v11881_v33 = vunpack.c.l.b16 %v942_v28  ;;  %v992_v34 = vor.u32 %v991_v24, %v988_v22  ;;  %v1005_v43 = vrot.slane %v1003_v31, 5  ;;  %v818_v45 = vshrl.u32 %v740_v25, 16  ;;  %v11170_v28 = vld [vmem:[%s11664_s25 + $0xd8] sm:$0xff] }
  0xff   : > { %1517 = vmatpush.bf16.msrb.mxu2 %v11165_v6  ;;  %1256 = vmatpush.bf16.msrb.mxu1 %v11149_v7  ;;  %v956_v42 = vsel %vm11795_vm2, %v951_v29, %v955_v13  ;;  %v821_v46 = vshll.u32 %v740_v25, 16  ;;  %v1011_v54 = vrot.slane %v1009_v37, 5  ;;  %v827_v55 = vshll.u32 %v11879_v32, 16  ;;  %v11915_v25 = vld [vmem:[#allocation2 + $0x4] sm:$0x3] }
 0x100   : > { %v11888_v51 = vunpack.c.l.b16 %v956_v42  ;;  %v993_v52 = vrot.slane %v992_v34, 4  ;;  %v1006_v57 = vor.u32 %v1005_v43, %v1002_v30  ;;  %v820_v59 = vrot.slane %v818_v45, 4  ;;  %v11178_v30 = vld [vmem:[%s11664_s25 + $0x118] sm:$0xff]  ;;  %v11145_v34 = vld [vmem:[%s11664_s25 + $0x10] sm:$0xff]  ;;  %v11932_v42 = vld [vmem:[#allocation2 + $0xc] sm:$0x3] }
 0x101   : > { %1986 = vmatpush.bf16.msrb.mxu3 %v11173_v18  ;;  %2263 = vmatpush.bf16.msrb.mxu0 %v11181_v40  ;;  %v823_v60 = vrot.slane %v821_v46, 5  ;;  %v832_v61 = vshrl.u32 %v741_v41, 16  ;;  %v1049_v62 = vpack.c.b16 %v11874_v21, %v11872_v53  ;;  %v835_v3 = vshll.u32 %v741_v41, 16  ;;  %v11146_v18 = vld [vmem:[%s11664_s25 + $0x18] sm:$0xff]  ;;  %v1305_v40 = vld [vmem:[#allocation2 + $0x8] sm:$0xe] }
 0x102   : > { %v1051_v1 = vpack.c.b16 %v11888_v51, %v11881_v33  ;;  %v998_v2 = vsel %vm11795_vm2, %v993_v52, %v997_v17  ;;  %v1007_v5 = vrot.slane %v1006_v57, 4  ;;  %v829_v7 = vrot.slane %v827_v55, 5  ;;  %v11161_v33 = vld [vmem:[%s11664_s25 + $0x90] sm:$0xff] }
 0x103   : > { %1518 = vmatpush.bf16.msrb.mxu2 %v11164_v44  ;;  %1257 = vmatpush.bf16.msrb.mxu1 %v11148_v26  ;;  %v824_v6 = vor.u32 %v823_v60, %v820_v59  ;;  %v834_v8 = vrot.slane %v832_v61, 4  ;;  %v1044_v10 = vunpack.c.l.b16 %v998_v2  ;;  %v837_v11 = vrot.slane %v835_v3, 5  ;;  %v11177_v52 = vld [vmem:[%s11664_s25 + $0x110] sm:$0xff]  ;;  %v2050_v59 = vld [vmem:[#allocation2] sm:$0xc]  ;;  %v11160_v61 = vld [vmem:[%s11664_s25 + $0x88] sm:$0xff] }
 0x104   : > { %v841_v13 = vshll.u32 %v11892_v58, 16  ;;  %vm1352_vm3 = vcmask 1042432   ;;  %v1012_v15 = vsel %vm11795_vm2, %v1007_v5, %v1011_v54  ;;  %vm1353_vm4 = vcmask 1046532  }
 0x105   : > { %1987 = vmatpush.bf16.msrb.mxu3 %v11172_v47  ;;  %2264 = vmatpush.bf16.msrb.mxu0 %v11180_v48  ;;  %v825_v19 = vrot.slane %v824_v6, 4  ;;  %v9657_v20 = vrot.slane %v1304_v14, 9  ;;  %v1045_v23 = vunpack.c.l.b16 %v1012_v15  ;;  %v838_v27 = vor.u32 %v837_v11, %v834_v8  ;;  %vm11907_vm5 = vmor %vm1352_vm3, %vm1353_vm4  ;;  %v11169_v47 = vld [vmem:[%s11664_s25 + $0xd0] sm:$0xff]  ;;  %v11168_v8 = vld [vmem:[%s11664_s25 + $0xc8] sm:$0xff] }
 0x106   : > { %v843_v36 = vrot.slane %v841_v13, 5  ;;  %v1357_v53 = vrot.slane %v11811_v35, 5  ;;  %v9658_v22 = vrot.slane %v1305_v40, 9  ;;  %v1361_v24 = vrot.slane %v11822_v49, 5  ;;  %v11159_v15 = vld [vmem:[%s11664_s25 + $0x80] sm:$0xff] }
 0x107   : > { %1519 = vmatpush.bf16.msrb.mxu2 %v11163_v50  ;;  %1258 = vmatpush.bf16.msrb.mxu1 %v11147_v56  ;;  %v830_v21 = vsel %vm11795_vm2, %v825_v19, %v829_v7  ;;  %v1053_v26 = vpack.c.b16 %v1045_v23, %v1044_v10  ;;  %v839_v29 = vrot.slane %v838_v27, 4  ;;  %vm1597_vm6 = vsmask.f32 2304  ;;  %v2051_v7 = vld [vmem:[#allocation2 + $0x8] sm:$0xc] }
 0x108   : > { %v11921_v31 = vsel %vm11907_vm5, %v9657_v20, %v1357_v53  ;;  %v1032_v35 = vunpack.c.l.b16 %v830_v21  ;;  %v11927_v49 = vsel %vm11907_vm5, %v9658_v22, %v1361_v24  ;;  %v1601_v37 = vshrl.u32 %v1304_v14, 16 }
 0x109   : > { %1988 = vmatpush.bf16.msrb.mxu3 %v11171_v4  ;;  %2265 = vmatpush.bf16.msrb.mxu0 %v11179_v9  ;;  %v1436_v17 = vunpack.c.l.b16 %v11921_v31  ;;  %v844_v41 = vsel %vm11795_vm2, %v839_v29, %v843_v36  ;;  %vm1598_vm7 = vsmask.f32 6416  ;;  %v1604_v43 = vshll.u32 %v1304_v14, 16  ;;  %v11176_v9 = vld [vmem:[%s11664_s25 + $0x108] sm:$0xff]  ;;  %v9595_v36 = vld [vmem:[#allocation2] sm:$0xf] }
 0x10a   : > { %1133 = vmatmul.bf16.gmra.mxu1 %v1049_v62  ;;  %1143 = vmatmul.bf16.gmra.mxu2 %v1051_v1  ;;  %v1610_v45 = vshrl.u32 %v11915_v25, 16  ;;  %v1033_v46 = vunpack.c.l.b16 %v844_v41  ;;  %v1603_v48 = vrot.slane %v1601_v37, 5  ;;  %v1613_v50 = vshll.u32 %v11915_v25, 16  ;;  %v11144_v62 = vld [vmem:[%s11664_s25 + $0x8] sm:$0xff]  ;;  %vm11947_vm9 = vmor %vm1597_vm6, %vm1598_vm7  ;;  %v11175_v37 = vld [vmem:[%s11664_s25 + $0x100] sm:$0xff] }
 0x10b   : > { %1520 = vmatpush.bf16.msrb.mxu2 %v11162_v16  ;;  %1259 = vmatpush.bf16.msrb.mxu1 %v11146_v18  ;;  %v1619_v51 = vshrl.u32 %v1305_v40, 16  ;;  %v1437_v54 = vunpack.c.l.b16 %v11927_v49  ;;  %v1606_v55 = vrot.slane %v1604_v43, 6  ;;  %v1622_v57 = vshll.u32 %v1305_v40, 16  ;;  %v11143_v16 = vld [vmem:[%s11664_s25] sm:$0xff]  ;;  %v11135_v40 = vld [vmem:[#allocation2 + $0x4] sm:$0xf0] }
 0x10c   : > { %1153 = vmatmul.bf16.gmra.mxu3 %v1053_v26  ;;  %v1612_v56 = vrot.slane %v1610_v45, 5  ;;  %v1047_v60 = vpack.c.b16 %v1033_v46, %v1032_v35  ;;  %v1615_v1 = vrot.slane %v1613_v50, 6  ;;  %v1628_v3 = vshrl.u32 %v11932_v42, 16  ;;  %v11167_v49 = vld [vmem:[%s11664_s25 + $0xc0] sm:$0xff]  ;;  %v11222_v50 = vld [vmem:[%s11664_s25 + $0x238] sm:$0xff] }
 0x10d   : > { %1989 = vmatpush.bf16.msrb.mxu3 %v11170_v28  ;;  %2266 = vmatpush.bf16.msrb.mxu0 %v11178_v30  ;;  %v1621_v2 = vrot.slane %v1619_v51, 5  ;;  %v1607_v4 = vor.u32 %v1606_v55, %v1603_v48  ;;  %v1624_v5 = vrot.slane %v1622_v57, 6  ;;  %v1631_v6 = vshll.u32 %v11932_v42, 16  ;;  %v11206_v28 = vld [vmem:[%s11664_s25 + $0x1b8] sm:$0xff] }
 0x10e   : > { %vm2098_vm8 = vcmask 1041408   ;;  %1123 = vmatmul.bf16.gmra.mxu0 %v1047_v60  ;;  %v1616_v11 = vor.u32 %v1615_v1, %v1612_v56  ;;  %v1630_v13 = vrot.slane %v1628_v3, 5  ;;  %vm2099_vm10 = vcmask 1045508   ;;  %v11198_v30 = vld [vmem:[%s11664_s25 + $0x178] sm:$0xff]  ;;  %v11205_v1 = vld [vmem:[%s11664_s25 + $0x1b0] sm:$0xff] }
 0x10f   : > { %1521 = vmatpush.bf16.msrb.mxu2 %v11161_v33  ;;  %1260 = vmatpush.bf16.msrb.mxu1 %v11145_v34  ;;  %v9769_v14 = vrot.slane %v2050_v59, 10  ;;  %v1608_v18 = vrot.slane %v1607_v4, 4  ;;  %v1625_v19 = vor.u32 %v1624_v5, %v1621_v2  ;;  %v1633_v20 = vrot.slane %v1631_v6, 6  ;;  %vm11954_vm11 = vmor %vm2098_vm8, %vm2099_vm10  ;;  %v11968_v34 = vld [vmem:[#allocation2 + $0x14] sm:$0x3]  ;;  %v11214_v48 = vld [vmem:[%s11664_s25 + $0x1f8] sm:$0xff] }
 0x110   : > { %v2103_v27 = vrot.slane %v11915_v25, 6  ;;  %v9770_v53 = vrot.slane %v2051_v7, 10  ;;  %v2107_v21 = vrot.slane %v11932_v42, 6  ;;  %v1306_v25 = vld [vmem:[#allocation2 + $0x10] sm:$0xe]  ;;  %v9596_v41 = vor.u32 %v11135_v40, %v9595_v36  ;;  %v11204_v36 = vld [vmem:[%s11664_s25 + $0x1a8] sm:$0xff] }
 0x111   : > { %1990 = vmatpush.bf16.msrb.mxu3 %v11169_v47  ;;  %2267 = vmatpush.bf16.msrb.mxu0 %v11177_v52  ;;  %v1617_v22 = vsel %vm11947_vm9, %v1608_v18, %v1616_v11  ;;  %v1626_v24 = vrot.slane %v1625_v19, 4  ;;  %v1634_v26 = vor.u32 %v1633_v20, %v1630_v13  ;;  %v1452_v42 = vpack.c.b16 %v1437_v54, %v1436_v17  ;;  %v1307_v51 = vld [vmem:[#allocation2 + $0x18] sm:$0xe]  ;;  %v11979_v54 = vld [vmem:[#allocation2 + $0x1c] sm:$0x3]  ;;  %v11197_v5 = vld [vmem:[%s11664_s25 + $0x170] sm:$0xff] }
 0x112   : > { %v2104_v29 = vsel %vm11954_vm11, %v9769_v14, %v2103_v27  ;;  %v1905_v35 = vunpack.c.l.b16 %v1617_v22  ;;  %v2108_v33 = vsel %vm11954_vm11, %v9770_v53, %v2107_v21  ;;  %v9659_v45 = vrot.slane %v1306_v25, 9  ;;  %v2053_v27 = vld [vmem:[#allocation2 + $0x18] sm:$0xc] }
 0x113   : > { %1522 = vmatpush.bf16.msrb.mxu2 %v11160_v61  ;;  %1261 = vmatpush.bf16.msrb.mxu1 %v11144_v62  ;;  %v1635_v43 = vsel %vm11947_vm9, %v1626_v24, %v1634_v26  ;;  %v2182_v47 = vunpack.c.l.b16 %v2104_v29  ;;  %v1637_v52 = vshrl.u32 %v1306_v25, 16  ;;  %v1640_v55 = vshll.u32 %v1306_v25, 16  ;;  %v9599_v24 = vld [vmem:[#allocation2 + $0x10] sm:$0xf]  ;;  %v11136_v26 = vld [vmem:[#allocation2 + $0x14] sm:$0xf0] }
 0x114   : > { %v1906_v46 = vunpack.c.l.b16 %v1635_v43  ;;  %v2183_v56 = vunpack.c.l.b16 %v2108_v33  ;;  %v1365_v31 = vrot.slane %v11879_v32, 5  ;;  %v9660_v17 = vrot.slane %v1307_v51, 9  ;;  %v11996_v25 = vld [vmem:[#allocation2 + $0x20] sm:$0xe]  ;;  %v11212_v43 = vld [vmem:[%s11664_s25 + $0x1e8] sm:$0xff] }
 0x115   : > { %1991 = vmatpush.bf16.msrb.mxu3 %v11168_v8  ;;  %2268 = vmatpush.bf16.msrb.mxu0 %v11176_v9  ;;  %v1646_v57 = vshrl.u32 %v11968_v34, 16  ;;  %v1369_v60 = vrot.slane %v11892_v58, 5  ;;  %v1639_v61 = vrot.slane %v1637_v52, 5  ;;  %v1642_v62 = vrot.slane %v1640_v55, 6  ;;  %v11213_v8 = vld [vmem:[%s11664_s25 + $0x1f0] sm:$0xff] }
 0x116   : > { %v1921_v59 = vpack.c.b16 %v1906_v46, %v1905_v35  ;;  %v1649_v3 = vshll.u32 %v11968_v34, 16  ;;  %v1655_v4 = vshrl.u32 %v1307_v51, 16  ;;  %v1658_v32 = vshll.u32 %v1307_v51, 16  ;;  %v11221_v9 = vld [vmem:[%s11664_s25 + $0x230] sm:$0xff]  ;;  %v11220_v46 = vld [vmem:[%s11664_s25 + $0x228] sm:$0xff] }
 0x117   : > { %1523 = vmatpush.bf16.msrb.mxu2 %v11159_v15  ;;  %1262 = vmatpush.bf16.msrb.mxu1 %v11143_v16  ;;  %v1648_v2 = vrot.slane %v1646_v57, 5  ;;  %v1643_v6 = vor.u32 %v1642_v62, %v1639_v61  ;;  %v1664_v7 = vshrl.u32 %v11979_v54, 16  ;;  %v1667_v58 = vshll.u32 %v11979_v54, 16  ;;  %v2052_v15 = vld [vmem:[#allocation2 + $0x10] sm:$0xc] }
 0x118   : > { %v1651_v11 = vrot.slane %v1649_v3, 6  ;;  %v1657_v13 = vrot.slane %v1655_v4, 5  ;;  %v1660_v14 = vrot.slane %v1658_v32, 6  ;;  %v2198_v16 = vpack.c.b16 %v2183_v56, %v2182_v47  ;;  %v1309_v52 = vld [vmem:[#allocation2 + $0x28] sm:$0xe] }
 0x119   : > { %1992 = vmatpush.bf16.msrb.mxu3 %v11167_v49  ;;  %2269 = vmatpush.bf16.msrb.mxu0 %v11175_v37  ;;  %v1366_v18 = vsel %vm11907_vm5, %v9659_v45, %v1365_v31  ;;  %v1666_v19 = vrot.slane %v1664_v7, 5  ;;  %v1669_v20 = vrot.slane %v1667_v58, 6  ;;  %v1370_v40 = vsel %vm11907_vm5, %v9660_v17, %v1369_v60  ;;  %v11999_v37 = vld [vmem:[#allocation2 + $0x24] sm:$0x3]  ;;  %v11196_v45 = vld [vmem:[%s11664_s25 + $0x168] sm:$0xff] }
 0x11a   : > { %1263 = vmatmul.bf16.vlgmr.msrb.gmra.mxu1 %v9596_v41  ;;  %1524 = vmatmul.bf16.vlgmr.msrb.gmra.mxu2 %v1452_v42  ;;  %v1644_v53 = vrot.slane %v1643_v6, 4  ;;  %v1652_v21 = vor.u32 %v1651_v11, %v1648_v2  ;;  %v1661_v22 = vor.u32 %v1660_v14, %v1657_v13  ;;  %v9771_v29 = vrot.slane %v2052_v15, 10  ;;  %v12012_v55 = vld [vmem:[#allocation2 + $0x2c] sm:$0x3]  ;;  %v1310_v15 = vld [vmem:[#allocation2 + $0x30] sm:$0xe] }
 0x11b   : > { %2875 = vmatpush.bf16.msra.mxu2 %v11206_v28  ;;  %2457 = vmatpush.bf16.msra.mxu1 %v11198_v30  ;;  %v1670_v28 = vor.u32 %v1669_v20, %v1666_v19  ;;  %v2111_v30 = vrot.slane %v11968_v34, 6  ;;  %v9772_v33 = vrot.slane %v2053_v27, 10  ;;  %v2115_v49 = vrot.slane %v11979_v54, 6 }
 0x11c   : > { %1993 = vmatmul.bf16.vlgmr.msrb.gmra.mxu3 %v1921_v59  ;;  %v1662_v35 = vrot.slane %v1661_v22, 4  ;;  %v1438_v41 = vunpack.c.l.b16 %v1366_v18  ;;  %v1439_v42 = vunpack.c.l.b16 %v1370_v40  ;;  %v1653_v34 = vsel %vm11947_vm9, %v1644_v53, %v1652_v21 }
 0x11d   : > { %3149 = vmatpush.bf16.msra.mxu3 %v11214_v48  ;;  %3615 = vmatpush.bf16.msra.mxu0 %v11222_v50  ;;  %v1673_v48 = vshrl.u32 %v11996_v25, 16  ;;  %v1676_v50 = vshll.u32 %v11996_v25, 16  ;;  %v2112_v51 = vsel %vm11954_vm11, %v9771_v29, %v2111_v30  ;;  %v1682_v56 = vshrl.u32 %v11999_v37, 16  ;;  %v2055_v30 = vld [vmem:[#allocation2 + $0x28] sm:$0xc] }
 0x11e   : > { %2270 = vmatmul.bf16.vlgmr.msrb.gmra.mxu0 %v2198_v16  ;;  %v1671_v47 = vsel %vm11947_vm9, %v1662_v35, %v1670_v28  ;;  %v9600_v31 = vor.u32 %v11136_v26, %v9599_v24  ;;  %v2116_v17 = vsel %vm11954_vm11, %v9772_v33, %v2115_v49  ;;  %v1453_v59 = vpack.c.b16 %v1439_v42, %v1438_v41  ;;  %v2054_v26 = vld [vmem:[#allocation2 + $0x20] sm:$0xc]  ;;  %v1311_v28 = vld [vmem:[#allocation2 + $0x38] sm:$0xe] }
 0x11f   : > { %2876 = vmatpush.bf16.msra.mxu2 %v11205_v1  ;;  %2458 = vmatpush.bf16.msra.mxu1 %v11197_v5  ;;  %v1675_v54 = vrot.slane %v1673_v48, 5  ;;  %v1678_v57 = vrot.slane %v1676_v50, 6  ;;  %v1907_v60 = vunpack.c.l.b16 %v1653_v34  ;;  %v1908_v61 = vunpack.c.l.b16 %v1671_v47  ;;  %v11203_v35 = vld [vmem:[%s11664_s25 + $0x1a0] sm:$0xff] }
 0x120   : > { %v1685_v62 = vshll.u32 %v11999_v37, 16  ;;  %v2184_v1 = vunpack.c.l.b16 %v2112_v51  ;;  %v1691_v2 = vshrl.u32 %v1309_v52, 16  ;;  %v1694_v3 = vshll.u32 %v1309_v52, 16  ;;  %v11211_v51 = vld [vmem:[%s11664_s25 + $0x1e0] sm:$0xff] }
 0x121   : > { %3150 = vmatpush.bf16.msra.mxu3 %v11213_v8  ;;  %3616 = vmatpush.bf16.msra.mxu0 %v11221_v9  ;;  %v1700_v4 = vshrl.u32 %v12012_v55, 16  ;;  %v2185_v32 = vunpack.c.l.b16 %v2116_v17  ;;  %v1679_v5 = vor.u32 %v1678_v57, %v1675_v54  ;;  %v1684_v6 = vrot.slane %v1682_v56, 5  ;;  %v11219_v56 = vld [vmem:[%s11664_s25 + $0x220] sm:$0xff]  ;;  %v12045_v17 = vld [vmem:[#allocation2 + $0x34] sm:$0x3] }
 0x122   : > { %v1703_v7 = vshll.u32 %v12012_v55, 16  ;;  %v1687_v58 = vrot.slane %v1685_v62, 6  ;;  %v1693_v8 = vrot.slane %v1691_v2, 5  ;;  %v1696_v9 = vrot.slane %v1694_v3, 6  ;;  %v11137_v3 = vld [vmem:[#allocation2 + $0x24] sm:$0xf0] }
 0x123   : > { %2877 = vmatpush.bf16.msra.mxu2 %v11204_v36  ;;  %2459 = vmatpush.bf16.msra.mxu1 %v11196_v45  ;;  %v1702_v11 = vrot.slane %v1700_v4, 5  ;;  %v1922_v13 = vpack.c.b16 %v1908_v61, %v1907_v60  ;;  %v9661_v16 = vrot.slane %v11996_v25, 9  ;;  %v9663_v19 = vrot.slane %v1310_v15, 9  ;;  %v9603_v60 = vld [vmem:[#allocation2 + $0x20] sm:$0xf] }
 0x124   : > { %v1705_v14 = vrot.slane %v1703_v7, 6  ;;  %v1697_v18 = vor.u32 %v1696_v9, %v1693_v8  ;;  %v1373_v20 = vrot.slane %v11786_v38, 5  ;;  %v9662_v27 = vrot.slane %v1309_v52, 9  ;;  %v11195_v52 = vld [vmem:[%s11664_s25 + $0x160] sm:$0xff] }
 0x125   : > { %3151 = vmatpush.bf16.msra.mxu3 %v11212_v43  ;;  %3617 = vmatpush.bf16.msra.mxu0 %v11220_v46  ;;  %v1377_v36 = vrot.slane %v11788_v39, 5  ;;  %v1381_v40 = vrot.slane %v11829_v63, 5  ;;  %v2199_v53 = vpack.c.b16 %v2185_v32, %v2184_v1  ;;  %v1680_v21 = vrot.slane %v1679_v5, 4 }
 0x126   : > { %v1688_v22 = vor.u32 %v1687_v58, %v1684_v6  ;;  %v1706_v24 = vor.u32 %v1705_v14, %v1702_v11  ;;  %v1698_v29 = vrot.slane %v1697_v18, 4  ;;  %v9664_v25 = vrot.slane %v1311_v28, 9 }
 0x127   : > { %v1382_v38 = vsel %vm11907_vm5, %v9663_v19, %v1381_v40  ;;  %v1385_v39 = vrot.slane %v11837_v12, 5  ;;  %v1374_v33 = vsel %vm11907_vm5, %v9661_v16, %v1373_v20  ;;  %v1378_v49 = vsel %vm11907_vm5, %v9662_v27, %v1377_v36  ;;  %2878 = vmatpush.bf16.msra.mxu2 %v11203_v35  ;;  %2460 = vmatpush.bf16.msra.mxu1 %v11195_v52  ;;  %v11138_v52 = vld [vmem:[#allocation2 + $0x34] sm:$0xf0] }
 0x128   : > { %v1442_v63 = vunpack.c.l.b16 %v1382_v38  ;;  %v9773_v41 = vrot.slane %v2054_v26, 10  ;;  %v2119_v43 = vrot.slane %v11999_v37, 6  ;;  %v9774_v45 = vrot.slane %v2055_v30, 10  ;;  %v2057_v26 = vld [vmem:[#allocation2 + $0x38] sm:$0xc] }
 0x129   : > { %v1386_v42 = vsel %vm11907_vm5, %v9664_v25, %v1385_v39  ;;  %v2123_v12 = vrot.slane %v12012_v55, 6  ;;  %v1689_v34 = vsel %vm11947_vm9, %v1680_v21, %v1688_v22  ;;  %v1707_v47 = vsel %vm11947_vm9, %v1698_v29, %v1706_v24  ;;  %3152 = vmatpush.bf16.msra.mxu3 %v11211_v51  ;;  %3618 = vmatpush.bf16.msra.mxu0 %v11219_v56  ;;  %v11202_v29 = vld [vmem:[%s11664_s25 + $0x198] sm:$0xff]  ;;  %v1313_v39 = vld [vmem:[#allocation2 + $0x68] sm:$0xe]  ;;  %v9607_v51 = vld [vmem:[#allocation2 + $0x30] sm:$0xf] }
 0x12a   : > { %1268 = vmatmul.bf16.gmra.mxu1 %v9600_v31  ;;  %1529 = vmatmul.bf16.gmra.mxu2 %v1453_v59  ;;  %v1443_v46 = vunpack.c.l.b16 %v1386_v42  ;;  %v1709_v48 = vshrl.u32 %v1310_v15, 16  ;;  %v1712_v50 = vshll.u32 %v1310_v15, 16  ;;  %v1727_v37 = vshrl.u32 %v1311_v28, 16  ;;  %v12047_v59 = vld [vmem:[#allocation2 + $0x3c] sm:$0x3] }
 0x12b   : > { %v1730_v54 = vshll.u32 %v1311_v28, 16  ;;  %v1440_v55 = vunpack.c.l.b16 %v1374_v33  ;;  %v1441_v57 = vunpack.c.l.b16 %v1378_v49  ;;  %v1909_v61 = vunpack.c.l.b16 %v1689_v34  ;;  %v1312_v28 = vld [vmem:[#allocation2 + $0x60] sm:$0xe]  ;;  %2879 = vmatpush.bf16.msra.mxu2 %v11202_v29  ;;  %v12067_v34 = vld [vmem:[#allocation2 + $0x64] sm:$0x3] }
 0x12c   : > { %1998 = vmatmul.bf16.gmra.mxu3 %v1922_v13  ;;  %v12043_v31 = vpack.c.b16 %v1443_v46, %v1442_v63  ;;  %v1910_v62 = vunpack.c.l.b16 %v1707_v47  ;;  %v2120_v1 = vsel %vm11954_vm11, %v9773_v41, %v2119_v43  ;;  %v2124_v2 = vsel %vm11954_vm11, %v9774_v45, %v2123_v12  ;;  %v11210_v43 = vld [vmem:[%s11664_s25 + $0x1d8] sm:$0xff]  ;;  %v2059_v29 = vld [vmem:[#allocation2 + $0x68] sm:$0xc] }
 0x12d   : > { %v1711_v4 = vrot.slane %v1709_v48, 5  ;;  %v1714_v32 = vrot.slane %v1712_v50, 6  ;;  %v1718_v5 = vshrl.u32 %v12045_v17, 16  ;;  %v1721_v6 = vshll.u32 %v12045_v17, 16  ;;  %v11194_v45 = vld [vmem:[%s11664_s25 + $0x158] sm:$0xff]  ;;  %3153 = vmatpush.bf16.msra.mxu3 %v11210_v43  ;;  %v11209_v43 = vld [vmem:[%s11664_s25 + $0x1d0] sm:$0xff] }
 0x12e   : > { %2275 = vmatmul.bf16.gmra.mxu0 %v2199_v53  ;;  %v1729_v7 = vrot.slane %v1727_v37, 5  ;;  %v1732_v58 = vrot.slane %v1730_v54, 6  ;;  %v1736_v8 = vshrl.u32 %v12047_v59, 16  ;;  %v1739_v9 = vshll.u32 %v12047_v59, 16  ;;  %v2056_v53 = vld [vmem:[#allocation2 + $0x30] sm:$0xc]  ;;  %2461 = vmatpush.bf16.msra.mxu1 %v11194_v45 }
 0x12f   : > { %v9604_v11 = vor.u32 %v11137_v3, %v9603_v60  ;;  %v1454_v13 = vpack.c.b16 %v1441_v57, %v1440_v55  ;;  %v2186_v14 = vunpack.c.l.b16 %v2120_v1  ;;  %v2187_v15 = vunpack.c.l.b16 %v2124_v2  ;;  %v11218_v12 = vld [vmem:[%s11664_s25 + $0x218] sm:$0xff]  ;;  %v12069_v50 = vld [vmem:[#allocation2 + $0x6c] sm:$0x3]  ;;  %v11193_v45 = vld [vmem:[%s11664_s25 + $0x150] sm:$0xff] }
 0x130   : > { %v1923_v16 = vpack.c.b16 %v1910_v62, %v1909_v61  ;;  %v1715_v18 = vor.u32 %v1714_v32, %v1711_v4  ;;  %v1720_v19 = vrot.slane %v1718_v5, 5  ;;  %v1723_v20 = vrot.slane %v1721_v6, 6  ;;  %3619 = vmatpush.bf16.msra.mxu0 %v11218_v12  ;;  %v11480_v6 = vld [vmem:[#allocation2 + $0x64] sm:$0x1]  ;;  %v11217_v12 = vld [vmem:[%s11664_s25 + $0x210] sm:$0xff] }
 0x131   : > { %v1733_v27 = vor.u32 %v1732_v58, %v1729_v7  ;;  %v1738_v36 = vrot.slane %v1736_v8, 5  ;;  %v1741_v40 = vrot.slane %v1739_v9, 6  ;;  %v2200_v21 = vpack.c.b16 %v2187_v15, %v2186_v14  ;;  %v11481_v9 = vld [vmem:[#allocation2 + $0x6c] sm:$0x1]  ;;  %3154 = vmatpush.bf16.msra.mxu3 %v11209_v43 }
 0x132   : > { %v1716_v22 = vrot.slane %v1715_v18, 4  ;;  %v1724_v24 = vor.u32 %v1723_v20, %v1720_v19  ;;  %v9775_v25 = vrot.slane %v2056_v53, 10  ;;  %v2127_v35 = vrot.slane %v12045_v17, 6  ;;  %v12080_v20 = vld [vmem:[#allocation2 + $0x70] sm:$0xe]  ;;  %2462 = vmatpush.bf16.msra.mxu1 %v11193_v45 }
 0x133   : > { %v1734_v30 = vrot.slane %v1733_v27, 4  ;;  %v1742_v38 = vor.u32 %v1741_v40, %v1738_v36  ;;  %v9776_v63 = vrot.slane %v2057_v26, 10  ;;  %v2131_v33 = vrot.slane %v12047_v59, 6  ;;  %v12086_v53 = vld [vmem:[#allocation2 + $0x78] sm:$0xe] }
 0x134   : > { %v1745_v49 = vshrl.u32 %v1312_v28, 16  ;;  %v1725_v41 = vsel %vm11947_vm9, %v1716_v22, %v1724_v24  ;;  %v1748_v42 = vshll.u32 %v1312_v28, 16  ;;  %v1763_v47 = vshrl.u32 %v1313_v39, 16  ;;  %3620 = vmatpush.bf16.msra.mxu0 %v11217_v12 }
 0x135   : > { %v1743_v46 = vsel %vm11947_vm9, %v1734_v30, %v1742_v38  ;;  %v1766_v48 = vshll.u32 %v1313_v39, 16  ;;  %v1911_v56 = vunpack.c.l.b16 %v1725_v41  ;;  %v2128_v17 = vsel %vm11954_vm11, %v9775_v25, %v2127_v35  ;;  %v12091_v25 = vld [vmem:[#allocation2 + $0x74] sm:$0x3] }
 0x136   : > { %v2132_v37 = vsel %vm11954_vm11, %v9776_v63, %v2131_v33  ;;  %v1747_v54 = vrot.slane %v1745_v49, 5  ;;  %v1912_v55 = vunpack.c.l.b16 %v1743_v46  ;;  %v1750_v57 = vrot.slane %v1748_v42, 6 }
 0x137   : > { %v1754_v59 = vshrl.u32 %v12067_v34, 16  ;;  %v1757_v60 = vshll.u32 %v12067_v34, 16  ;;  %v1765_v61 = vrot.slane %v1763_v47, 5  ;;  %v1768_v62 = vrot.slane %v1766_v48, 6 }
 0x138   : > { %v1772_v1 = vshrl.u32 %v12069_v50, 16  ;;  %v1775_v2 = vshll.u32 %v12069_v50, 16  ;;  %v9608_v3 = vor.u32 %v11138_v52, %v9607_v51  ;;  %v2188_v4 = vunpack.c.l.b16 %v2128_v17  ;;  %v9611_v52 = vld [vmem:[#allocation2 + $0x60] sm:$0xf] }
 0x139   : > { %v2189_v32 = vunpack.c.l.b16 %v2132_v37  ;;  %v9665_v5 = vrot.slane %v1312_v28, 9  ;;  %v1389_v7 = vrot.slane %v11480_v6, 5  ;;  %v9666_v58 = vrot.slane %v1313_v39, 9  ;;  %v12093_v39 = vld [vmem:[#allocation2 + $0x7c] sm:$0x3] }
 0x13a   : > { %1273 = vmatmul.bf16.gmra.mxu1 %v9604_v11  ;;  %1534 = vmatmul.bf16.gmra.mxu2 %v1454_v13  ;;  %v1924_v8 = vpack.c.b16 %v1912_v55, %v1911_v56  ;;  %v1393_v11 = vrot.slane %v11481_v9, 5  ;;  %v1756_v13 = vrot.slane %v1754_v59, 5  ;;  %v1759_v14 = vrot.slane %v1757_v60, 6 }
 0x13b   : > { %v1751_v15 = vor.u32 %v1750_v57, %v1747_v54  ;;  %v1774_v18 = vrot.slane %v1772_v1, 5  ;;  %v1777_v19 = vrot.slane %v1775_v2, 6  ;;  %v2201_v27 = vpack.c.b16 %v2189_v32, %v2188_v4 }
 0x13c   : > { %2003 = vmatmul.bf16.gmra.mxu3 %v1923_v16  ;;  %v1769_v16 = vor.u32 %v1768_v62, %v1765_v61  ;;  %v1390_v36 = vsel %vm11907_vm5, %v9665_v5, %v1389_v7  ;;  %v1394_v40 = vsel %vm11907_vm5, %v9666_v58, %v1393_v11  ;;  %v1760_v24 = vor.u32 %v1759_v14, %v1756_v13  ;;  %v11482_v14 = vld [vmem:[#allocation2 + $0x74] sm:$0x1] }
 0x13d   : > { %v1752_v22 = vrot.slane %v1751_v15, 4  ;;  %v1778_v28 = vor.u32 %v1777_v19, %v1774_v18  ;;  %v1781_v30 = vshrl.u32 %v12080_v20, 16  ;;  %v1784_v38 = vshll.u32 %v12080_v20, 16  ;;  %v11483_v18 = vld [vmem:[#allocation2 + $0x7c] sm:$0x1] }
 0x13e   : > { %2280 = vmatmul.bf16.gmra.mxu0 %v2200_v21  ;;  %v11201_v21 = vld [vmem:[%s11664_s25 + $0x190] sm:$0xff]  ;;  %v1770_v26 = vrot.slane %v1769_v16, 4  ;;  %v1799_v35 = vshrl.u32 %v12086_v53, 16  ;;  %v1802_v63 = vshll.u32 %v12086_v53, 16  ;;  %v1444_v33 = vunpack.c.l.b16 %v1390_v36 }
 0x13f   : > { %2880 = vmatpush.bf16.msra.mxu2 %v11201_v21  ;;  %v1445_v49 = vunpack.c.l.b16 %v1394_v40  ;;  %v2135_v42 = vrot.slane %v12067_v34, 6  ;;  %v1761_v46 = vsel %vm11947_vm9, %v1752_v22, %v1760_v24  ;;  %v9778_v48 = vrot.slane %v2059_v29, 10  ;;  %v11139_v34 = vld [vmem:[#allocation2 + $0x64] sm:$0xf0]  ;;  %v2060_v24 = vld [vmem:[#allocation2 + $0x70] sm:$0xc] }
 0x140   : > { %v1779_v47 = vsel %vm11947_vm9, %v1770_v26, %v1778_v28  ;;  %v2139_v51 = vrot.slane %v12069_v50, 6  ;;  %v1783_v56 = vrot.slane %v1781_v30, 5  ;;  %v1786_v17 = vrot.slane %v1784_v38, 6  ;;  %v2061_v26 = vld [vmem:[#allocation2 + $0x78] sm:$0xc] }
 0x141   : > { %v1790_v37 = vshrl.u32 %v12091_v25, 16  ;;  %v1793_v54 = vshll.u32 %v12091_v25, 16  ;;  %v1801_v55 = vrot.slane %v1799_v35, 5  ;;  %v1804_v57 = vrot.slane %v1802_v63, 6 }
 0x142   : > { %v1808_v59 = vshrl.u32 %v12093_v39, 16  ;;  %v1811_v60 = vshll.u32 %v12093_v39, 16  ;;  %v1913_v61 = vunpack.c.l.b16 %v1761_v46  ;;  %v1914_v62 = vunpack.c.l.b16 %v1779_v47  ;;  %v12137_v47 = vld [vmem:[#allocation2 + $0x8c] sm:$0x3] }
 0x143   : > { %v2140_v1 = vsel %vm11954_vm11, %v9778_v48, %v2139_v51  ;;  %v9612_v2 = vor.u32 %v11139_v34, %v9611_v52  ;;  %v1792_v4 = vrot.slane %v1790_v37, 5  ;;  %v1795_v32 = vrot.slane %v1793_v54, 6  ;;  %v11192_v48 = vld [vmem:[%s11664_s25 + $0x148] sm:$0xff]  ;;  %v9615_v54 = vld [vmem:[#allocation2 + $0x70] sm:$0xf] }
 0x144   : > { %v1787_v5 = vor.u32 %v1786_v17, %v1783_v56  ;;  %v1805_v6 = vor.u32 %v1804_v57, %v1801_v55  ;;  %v1810_v7 = vrot.slane %v1808_v59, 5  ;;  %v1813_v58 = vrot.slane %v1811_v60, 6  ;;  %v11216_v37 = vld [vmem:[%s11664_s25 + $0x208] sm:$0xff]  ;;  %2463 = vmatpush.bf16.msra.mxu1 %v11192_v48  ;;  %v11140_v60 = vld [vmem:[#allocation2 + $0x74] sm:$0xf0] }
 0x145   : > { %v2191_v11 = vunpack.c.l.b16 %v2140_v1  ;;  %v9667_v13 = vrot.slane %v12080_v20, 9  ;;  %v1397_v15 = vrot.slane %v11482_v14, 5  ;;  %v9668_v16 = vrot.slane %v12086_v53, 9  ;;  %v12118_v20 = vld [vmem:[#allocation2 + $0x88] sm:$0xe]  ;;  %3621 = vmatpush.bf16.msra.mxu0 %v11216_v37 }
 0x146   : > { %v1401_v19 = vrot.slane %v11483_v18, 5  ;;  %v1788_v36 = vrot.slane %v1787_v5, 4  ;;  %v1796_v40 = vor.u32 %v1795_v32, %v1792_v4  ;;  %v1806_v21 = vrot.slane %v1805_v6, 4 }
 0x147   : > { %v1814_v22 = vor.u32 %v1813_v58, %v1810_v7  ;;  %v1398_v53 = vsel %vm11907_vm5, %v9667_v13, %v1397_v15  ;;  %v9779_v35 = vrot.slane %v2060_v24, 10  ;;  %v2143_v63 = vrot.slane %v12091_v25, 6  ;;  %v12150_v13 = vld [vmem:[#allocation2 + $0x90] sm:$0xe]  ;;  %v11484_v15 = vld [vmem:[#allocation2 + $0x84] sm:$0x1] }
 0x148   : > { %v1402_v29 = vsel %vm11907_vm5, %v9668_v16, %v1401_v19  ;;  %v1835_v45 = vshrl.u32 %v12118_v20, 16  ;;  %v1838_v12 = vshll.u32 %v12118_v20, 16  ;;  %v1446_v46 = vunpack.c.l.b16 %v1398_v53  ;;  %v11485_v19 = vld [vmem:[#allocation2 + $0x8c] sm:$0x1]  ;;  %v2062_v24 = vld [vmem:[#allocation2 + $0x80] sm:$0xc] }
 0x149   : > { %v1815_v43 = vsel %vm11947_vm9, %v1806_v21, %v1814_v22  ;;  %v1447_v25 = vunpack.c.l.b16 %v1402_v29  ;;  %v2144_v57 = vsel %vm11954_vm11, %v9779_v35, %v2143_v63  ;;  %v1847_v1 = vshll.u32 %v12137_v47, 16  ;;  %v12158_v29 = vld [vmem:[#allocation2 + $0x94] sm:$0x3] }
 0x14a   : > { %1278 = vmatmul.bf16.gmra.mxu1 %v9608_v3  ;;  %1539 = vmatmul.bf16.gmra.mxu2 %v12043_v31  ;;  %v2058_v31 = vld [vmem:[#allocation2 + $0x60] sm:$0xc]  ;;  %v1456_v3 = vpack.c.b16 %v1445_v49, %v1444_v33  ;;  %v9780_v33 = vrot.slane %v2061_v26, 10  ;;  %v2147_v49 = vrot.slane %v12093_v39, 6  ;;  %v11208_v39 = vld [vmem:[%s11664_s25 + $0x1c8] sm:$0xff]  ;;  %v1916_v55 = vunpack.c.l.b16 %v1815_v43 }
 0x14b   : > { %v9777_v41 = vrot.slane %v2058_v31, 10  ;;  %v11200_v31 = vld [vmem:[%s11664_s25 + $0x188] sm:$0xff]  ;;  %3155 = vmatpush.bf16.msra.mxu3 %v11208_v39  ;;  %v9616_v32 = vor.u32 %v11140_v60, %v9615_v54  ;;  %v1457_v5 = vpack.c.b16 %v1447_v25, %v1446_v46  ;;  %v2192_v6 = vunpack.c.l.b16 %v2144_v57  ;;  %v11207_v54 = vld [vmem:[%s11664_s25 + $0x1c0] sm:$0xff] }
 0x14c   : > { %2008 = vmatmul.bf16.gmra.mxu3 %v1924_v8  ;;  %v1925_v8 = vpack.c.b16 %v1914_v62, %v1913_v61  ;;  %2881 = vmatpush.bf16.msra.mxu2 %v11200_v31  ;;  %v2148_v59 = vsel %vm11954_vm11, %v9780_v33, %v2147_v49  ;;  %v1837_v61 = vrot.slane %v1835_v45, 5  ;;  %v1840_v62 = vrot.slane %v1838_v12, 6  ;;  %v2063_v26 = vld [vmem:[#allocation2 + $0x88] sm:$0xc]  ;;  %v12169_v45 = vld [vmem:[#allocation2 + $0x9c] sm:$0x3] }
 0x14d   : > { %v2136_v50 = vsel %vm11954_vm11, %v9777_v41, %v2135_v42  ;;  %v12129_v41 = vld [vmem:[#allocation2 + $0x84] sm:$0x3]  ;;  %v1797_v42 = vsel %vm11947_vm9, %v1788_v36, %v1796_v40  ;;  %v2193_v7 = vunpack.c.l.b16 %v2148_v59  ;;  %v1405_v16 = vrot.slane %v11484_v15, 5  ;;  %v12154_v40 = vld [vmem:[#allocation2 + $0x98] sm:$0xe] }
 0x14e   : > { %2285 = vmatmul.bf16.gmra.mxu0 %v2201_v27  ;;  %v2190_v9 = vunpack.c.l.b16 %v2136_v50  ;;  %v12116_v27 = vld [vmem:[#allocation2 + $0x80] sm:$0xe]  ;;  %v1826_v56 = vshrl.u32 %v12129_v41, 16  ;;  %v1829_v17 = vshll.u32 %v12129_v41, 16  ;;  %v1915_v34 = vunpack.c.l.b16 %v1797_v42  ;;  %v2524_v15 = vld [vmem:[#allocation2 + $0x10] sm:$0xf] }
 0x14f   : > { %v1817_v30 = vshrl.u32 %v12116_v27, 16  ;;  %v1820_v38 = vshll.u32 %v12116_v27, 16  ;;  %v1844_v50 = vshrl.u32 %v12137_v47, 16  ;;  %v9669_v14 = vrot.slane %v12116_v27, 9  ;;  %v11199_v12 = vld [vmem:[%s11664_s25 + $0x180] sm:$0xff]  ;;  %3156 = vmatpush.bf16.msra.mxu3 %v11207_v54 }
 0x150   : > { %v2202_v28 = vpack.c.b16 %v2191_v11, %v2190_v9  ;;  %v1831_v4 = vrot.slane %v1829_v17, 6  ;;  %v1926_v58 = vpack.c.b16 %v1916_v55, %v1915_v34  ;;  %v1849_v11 = vrot.slane %v1847_v1, 6  ;;  %2882 = vmatpush.bf16.msra.mxu2 %v11199_v12  ;;  %v11191_v34 = vld [vmem:[%s11664_s25 + $0x140] sm:$0xff]  ;;  %v12210_v54 = vld [vmem:[#allocation2 + $0x94] sm:$0xf0] }
 0x151   : > { %v1819_v51 = vrot.slane %v1817_v30, 5  ;;  %v1822_v52 = vrot.slane %v1820_v38, 6  ;;  %v1846_v9 = vrot.slane %v1844_v50, 5  ;;  %v9670_v18 = vrot.slane %v12118_v20, 9  ;;  %v9619_v60 = vld [vmem:[#allocation2 + $0x80] sm:$0xf]  ;;  %2464 = vmatpush.bf16.msra.mxu1 %v11191_v34 }
 0x152   : > { %v1409_v36 = vrot.slane %v11485_v19, 5  ;;  %v1856_v31 = vshll.u32 %v12150_v13, 16  ;;  %v1871_v20 = vshrl.u32 %v12154_v40, 16  ;;  %v1874_v30 = vshll.u32 %v12154_v40, 16 }
 0x153   : > { %v1850_v53 = vor.u32 %v1849_v11, %v1846_v9  ;;  %v2203_v38 = vpack.c.b16 %v2193_v7, %v2192_v6  ;;  %v1406_v35 = vsel %vm11907_vm5, %v9669_v14, %v1405_v16  ;;  %v9781_v49 = vrot.slane %v2062_v24, 10  ;;  %v2522_v7 = vld [vmem:[#allocation2 + $0x8] sm:$0xf]  ;;  %v2064_v24 = vld [vmem:[#allocation2 + $0x90] sm:$0xc] }
 0x154   : > { %v1410_v63 = vsel %vm11907_vm5, %v9670_v18, %v1409_v36  ;;  %v2151_v42 = vrot.slane %v12129_v41, 6  ;;  %v9782_v43 = vrot.slane %v2063_v26, 10  ;;  %v2155_v46 = vrot.slane %v12137_v47, 6  ;;  %v11215_v36 = vld [vmem:[%s11664_s25 + $0x200] sm:$0xff] }
 0x155   : > { %v1858_v39 = vrot.slane %v1856_v31, 6  ;;  %v1862_v48 = vshrl.u32 %v12158_v29, 16  ;;  %v1876_v17 = vrot.slane %v1874_v30, 6  ;;  %v1880_v41 = vshrl.u32 %v12169_v45, 16  ;;  %3622 = vmatpush.bf16.msra.mxu0 %v11215_v36 }
 0x156   : > { %v1883_v37 = vshll.u32 %v12169_v45, 16  ;;  %v1448_v47 = vunpack.c.l.b16 %v1406_v35  ;;  %v1449_v55 = vunpack.c.l.b16 %v1410_v63  ;;  %v2152_v59 = vsel %vm11954_vm11, %v9781_v49, %v2151_v42  ;;  %v2065_v42 = vld [vmem:[#allocation2 + $0x98] sm:$0xc] }
 0x157   : > { %v2156_v50 = vsel %vm11954_vm11, %v9782_v43, %v2155_v46  ;;  %v1882_v11 = vrot.slane %v1880_v41, 5  ;;  %v2194_v18 = vunpack.c.l.b16 %v2152_v59  ;;  %v2558_v26 = vshll.u32 %v2522_v7, 16  ;;  %v12199_v46 = vld [vmem:[#allocation2 + $0x90] sm:$0xf]  ;;  %v12208_v41 = vld [vmem:[#allocation2 + $0x14] sm:$0x1] }
 0x158   : > { %v1885_v14 = vrot.slane %v1883_v37, 6  ;;  %v2195_v19 = vunpack.c.l.b16 %v2156_v50  ;;  %v9783_v43 = vrot.slane %v2064_v24, 10  ;;  %v2159_v12 = vrot.slane %v12158_v29, 6  ;;  %v11230_v24 = vld [vmem:[%s11664_s25 + $0x278] sm:$0xff] }
 0x159   : > { %3889 = vmatpush.bf16.msrb.mxu1 %v11230_v24  ;;  %v12281_v24 = vld [vmem:[#allocation2 + $0x20] sm:$0xe] }
 0x15a   : > { %1283 = vmatmul.bf16.gmra.mxu1 %v9612_v2  ;;  %1544 = vmatmul.bf16.gmra.mxu2 %v1456_v3  ;;  %v1823_v2 = vor.u32 %v1822_v52, %v1819_v51  ;;  %v1828_v3 = vrot.slane %v1826_v56, 5  ;;  %v1865_v52 = vshll.u32 %v12158_v29, 16  ;;  %v1873_v56 = vrot.slane %v1871_v20, 5 }
 0x15b   : > { %v1886_v63 = vor.u32 %v1885_v14, %v1882_v11  ;;  %v2204_v49 = vpack.c.b16 %v2195_v19, %v2194_v18  ;;  %v12218_v59 = vsel %vm11954_vm11, %v9783_v43, %v2159_v12  ;;  %v3215_v14 = vld [vmem:[#allocation2 + $0x14] sm:$0x3]  ;;  %v2526_v18 = vld [vmem:[#allocation2 + $0x18] sm:$0xf] }
 0x15c   : > { %2013 = vmatmul.bf16.gmra.mxu3 %v1925_v8  ;;  %v1841_v8 = vor.u32 %v1840_v62, %v1837_v61  ;;  %v1824_v21 = vrot.slane %v1823_v2, 4  ;;  %v1832_v22 = vor.u32 %v1831_v4, %v1828_v3  ;;  %v11141_v61 = vld [vmem:[#allocation2 + $0x84] sm:$0xf0]  ;;  %v1864_v2 = vrot.slane %v1862_v48, 5  ;;  %v11486_v4 = vld [vmem:[#allocation2 + $0x94] sm:$0x1] }
 0x15d   : > { %v9671_v3 = vrot.slane %v12150_v13, 9  ;;  %v1877_v6 = vor.u32 %v1876_v17, %v1873_v56  ;;  %v9620_v16 = vor.u32 %v11141_v61, %v9619_v60  ;;  %v2560_v48 = vrot.slane %v2558_v26, 5  ;;  %v12206_v17 = vld [vmem:[#allocation2 + $0xc] sm:$0x1]  ;;  %v11246_v60 = vld [vmem:[%s11664_s25 + $0x2b8] sm:$0xff] }
 0x15e   : > { %2290 = vmatmul.bf16.gmra.mxu0 %v2202_v28  ;;  %v1853_v28 = vshrl.u32 %v12150_v13, 16  ;;  %v1842_v27 = vrot.slane %v1841_v8, 4  ;;  %v1833_v33 = vsel %vm11947_vm9, %v1824_v21, %v1832_v22  ;;  %v11487_v8 = vld [vmem:[#allocation2 + $0x9c] sm:$0x1]  ;;  %v1458_v21 = vpack.c.b16 %v1449_v55, %v1448_v47  ;;  %4084 = vmatpush.bf16.msrb.mxu2 %v11246_v60 }
 0x15f   : > { %v1917_v57 = vunpack.c.l.b16 %v1833_v33  ;;  %v1417_v9 = vrot.slane %v11487_v8, 5  ;;  %v2555_v13 = vshrl.u32 %v2522_v7, 16  ;;  %v1878_v35 = vrot.slane %v1877_v6, 4 }
 0x160   : > { %v1855_v25 = vrot.slane %v1853_v28, 5  ;;  %v1851_v51 = vsel %vm11947_vm9, %v1842_v27, %v1850_v53  ;;  %v2572_v27 = vshll.u32 %v2524_v15, 16  ;;  %v12190_v53 = vld [vmem:[#allocation2 + $0x8] sm:$0xe]  ;;  %v9784_v47 = vrot.slane %v2065_v42, 10 }
 0x161   : > { %v1918_v62 = vunpack.c.l.b16 %v1851_v51  ;;  %v3231_v51 = vshrl.u32 %v12190_v53, 16  ;;  %v1887_v34 = vsel %vm11947_vm9, %v1878_v35, %v1886_v63  ;;  %v2163_v55 = vrot.slane %v12169_v45, 6 }
 0x162   : > { %v1859_v1 = vor.u32 %v1858_v39, %v1855_v25  ;;  %v2557_v39 = vrot.slane %v2555_v13, 4  ;;  %v2574_v37 = vrot.slane %v2572_v27, 5  ;;  %v2196_v11 = vunpack.c.l.b16 %v12218_v59 }
 0x163   : > { %v1927_v30 = vpack.c.b16 %v1918_v62, %v1917_v57  ;;  %v3234_v57 = vshll.u32 %v12190_v53, 16  ;;  %v12230_v7 = vrot.slane %v3231_v51, 5  ;;  %v2583_v35 = vshrl.u32 %v2526_v18, 16 }
 0x164   : > { %v1860_v22 = vrot.slane %v1859_v1, 4  ;;  %v2561_v50 = vor.u32 %v2560_v48, %v2557_v39  ;;  %v2564_v1 = vshll.u32 %v12206_v17, 16  ;;  %v2586_v63 = vshll.u32 %v2526_v18, 16  ;;  %v11262_v48 = vld [vmem:[%s11664_s25 + $0x338] sm:$0xff]  ;;  %v12273_v18 = vld [vmem:[#allocation2 + $0x24] sm:$0x1] }
 0x165   : > { %v2994_v42 = vrot.slane %v12208_v41, 5  ;;  %v3258_v43 = vshrl.u32 %v3215_v14, 16  ;;  %v3261_v12 = vshll.u32 %v3215_v14, 16  ;;  %4776 = vmatpush.bf16.msrb.mxu0 %v11262_v48  ;;  %v12267_v14 = vld [vmem:[#allocation2 + $0x8] sm:$0xf] }
 0x166   : > { %v2562_v13 = vrot.slane %v2561_v50, 4  ;;  %v2566_v26 = vrot.slane %v2564_v1, 5 }
 0x167   : > { %v3260_v1 = vrot.slane %v3258_v43, 5 }
 0x16a   : > { %1288 = vmatmul.bf16.gmra.mxu1 %v9616_v32  ;;  %1549 = vmatmul.bf16.gmra.mxu2 %v1457_v5  ;;  %v1413_v32 = vrot.slane %v11486_v4, 5  ;;  %v1867_v5 = vrot.slane %v1865_v52, 6  ;;  %v3214_v4 = vld [vmem:[#allocation2 + $0xc] sm:$0x3] }
 0x16b   : > { %v3240_v19 = vshrl.u32 %v3214_v4, 16  ;;  %v3243_v36 = vshll.u32 %v3214_v4, 16  ;;  %v3263_v4 = vrot.slane %v3261_v12, 6 }
 0x16c   : > { %2018 = vmatmul.bf16.gmra.mxu3 %v1926_v58  ;;  %v9672_v58 = vrot.slane %v12154_v40, 9  ;;  %v1414_v28 = vsel %vm11907_vm5, %v9671_v3, %v1413_v32  ;;  %v1868_v31 = vor.u32 %v1867_v5, %v1864_v2  ;;  %v2569_v40 = vshrl.u32 %v2524_v15, 16  ;;  %v2941_v3 = vld [vmem:[#allocation2 + $0x10] sm:$0xe] }
 0x16d   : > { %v1450_v25 = vunpack.c.l.b16 %v1414_v28  ;;  %v2578_v2 = vshll.u32 %v12208_v41, 16  ;;  %v9624_v32 = vor.u32 %v12210_v54, %v12199_v46  ;;  %v1920_v5 = vunpack.c.l.b16 %v1887_v34 }
 0x16e   : > { %2295 = vmatmul.bf16.gmra.mxu0 %v2203_v38  ;;  %v1418_v38 = vsel %vm11907_vm5, %v9672_v58, %v1417_v9  ;;  %v12204_v56 = vsel %vm11947_vm9, %v1860_v22, %v1868_v31  ;;  %v2571_v29 = vrot.slane %v2569_v40, 4  ;;  %v2164_v9 = vsel %vm11954_vm11, %v9784_v47, %v2163_v55  ;;  %v2528_v40 = vld [vmem:[#allocation2 + $0x20] sm:$0xf] }
 0x16f   : > { %v1451_v52 = vunpack.c.l.b16 %v1418_v38  ;;  %v1919_v62 = vunpack.c.l.b16 %v12204_v56  ;;  %v12237_v15 = vrot.slane %v3234_v57, 6  ;;  %v3252_v22 = vshll.u32 %v2941_v3, 16 }
 0x170   : > { %v2575_v6 = vor.u32 %v2574_v37, %v2571_v29  ;;  %v2580_v28 = vrot.slane %v2578_v2, 5  ;;  %v9961_v31 = vrot.slane %v12190_v53, 9  ;;  %v2990_v38 = vrot.slane %v12206_v17, 5  ;;  %v12263_v2 = vld [vmem:[#allocation2 + $0x1c] sm:$0x1] }
 0x171   : > { %v1459_v8 = vpack.c.b16 %v1451_v52, %v1450_v25  ;;  %v3254_v39 = vrot.slane %v3252_v22, 6  ;;  %v2597_v51 = vshrl.u32 %v2528_v40, 16  ;;  %v2600_v53 = vshll.u32 %v2528_v40, 16 }
 0x172   : > { %v1928_v56 = vpack.c.b16 %v1920_v5, %v1919_v62  ;;  %v2197_v29 = vunpack.c.l.b16 %v2164_v9  ;;  %v2567_v17 = vsel %vm11795_vm2, %v2562_v13, %v2566_v26  ;;  %v3237_v37 = vor.u32 %v12237_v15, %v12230_v7  ;;  %v12265_v7 = vld [vmem:[#allocation2 + $0x18] sm:$0xe] }
 0x173   : > { %v3242_v47 = vrot.slane %v3240_v19, 5  ;;  %v2585_v55 = vrot.slane %v2583_v35, 4  ;;  %v2588_v57 = vrot.slane %v2586_v63, 5  ;;  %v2991_v60 = vsel %vm11907_vm5, %v9961_v31, %v2990_v38  ;;  %v12278_v19 = vld [vmem:[#allocation2 + $0xc] sm:$0xf0] }
 0x174   : > { %v3245_v50 = vrot.slane %v3243_v36, 6  ;;  %v2599_v5 = vrot.slane %v2597_v51, 4  ;;  %v2205_v9 = vpack.c.b16 %v2197_v29, %v2196_v11  ;;  %v12269_v15 = vunpack.c.l.b16 %v2567_v17  ;;  %v3216_v38 = vld [vmem:[#allocation2 + $0x1c] sm:$0x3]  ;;  %v3217_v51 = vld [vmem:[#allocation2 + $0x24] sm:$0x3] }
 0x175   : > { %v3069_v36 = vunpack.c.l.b16 %v2991_v60  ;;  %v2589_v22 = vor.u32 %v2588_v57, %v2585_v55  ;;  %v2592_v11 = vshll.u32 %v12263_v2, 16  ;;  %v3238_v13 = vrot.slane %v3237_v37, 4 }
 0x176   : > { %v3246_v26 = vor.u32 %v3245_v50, %v3242_v47  ;;  %v3270_v31 = vshll.u32 %v12265_v7, 16  ;;  %v2606_v40 = vshll.u32 %v12273_v18, 16  ;;  %v9852_v63 = vor.u32 %v12278_v19, %v12267_v14  ;;  %v2530_v50 = vld [vmem:[#allocation2 + $0x28] sm:$0xf] }
 0x177   : > { %v12192_v20 = vpop.f32.mrf.mxu1  ;;  %v2594_v48 = vrot.slane %v2592_v11, 5  ;;  %v3276_v37 = vshrl.u32 %v3216_v38, 16  ;;  %v3279_v60 = vshll.u32 %v3216_v38, 16  ;;  %v3002_v11 = vrot.slane %v12273_v18, 5 }
 0x178   : > { %v3272_v17 = vrot.slane %v3270_v31, 6  ;;  %v2608_v57 = vrot.slane %v2606_v40, 5 }
 0x179   : > { %v12196_v33 = vpop.f32.mrf.mxu0 }
 0x17a   : > { %1293 = vmatmul.bf16.gmra.mxu1 %v9620_v16  ;;  %1554 = vmatmul.bf16.gmra.mxu2 %v1458_v21  ;;  %v11254_v16 = vld [vmem:[%s11664_s25 + $0x2f8] sm:$0xff]  ;;  %v3249_v21 = vshrl.u32 %v2941_v3, 16 }
 0x17b   : > { %4502 = vmatpush.bf16.msrb.mxu3 %v11254_v16 }
 0x17c   : > { %2023 = vmatmul.bf16.gmra.mxu3 %v1927_v30  ;;  %v2576_v30 = vrot.slane %v2575_v6, 4  ;;  %v3251_v25 = vrot.slane %v3249_v21, 5  ;;  %v2602_v6 = vrot.slane %v2600_v53, 5 }
 0x17d   : > { %v12221_v61 = vpop.f32.mrf.mxu2 }
 0x17e   : > { %2300 = vmatmul.bf16.gmra.mxu0 %v2204_v49  ;;  %v9962_v49 = vrot.slane %v2941_v3, 9  ;;  %v2581_v41 = vsel %vm11795_vm2, %v2576_v30, %v2580_v28  ;;  %v3255_v3 = vor.u32 %v3254_v39, %v3251_v25  ;;  %v3267_v28 = vshrl.u32 %v12265_v7, 16  ;;  %v11245_v30 = vld [vmem:[%s11664_s25 + $0x2b0] sm:$0xff] }
 0x17f   : > { %v12226_v45 = vpop.f32.mrf.mxu3  ;;  %v12232_v58 = vpop.f32.mrf.mxu1  ;;  %v12271_v16 = vunpack.c.l.b16 %v2581_v41  ;;  %v2590_v39 = vrot.slane %v2589_v22, 4  ;;  %4085 = vmatpush.bf16.msrb.mxu2 %v11245_v30  ;;  %v11253_v41 = vld [vmem:[%s11664_s25 + $0x2f0] sm:$0xff]  ;;  %v9964_v22 = vrot.slane %v12281_v24, 9 }
 0x180   : > { %v2995_v62 = vsel %vm11907_vm5, %v9962_v49, %v2994_v42  ;;  %v3256_v54 = vrot.slane %v3255_v3, 4  ;;  %v3285_v49 = vshrl.u32 %v12281_v24, 16  ;;  %v3288_v42 = vshll.u32 %v12281_v24, 16  ;;  %4503 = vmatpush.bf16.msrb.mxu3 %v11253_v41 }
 0x181   : > { %v12242_v27 = vpop.f32.mrf.mxu0  ;;  %v3070_v21 = vunpack.c.l.b16 %v2995_v62  ;;  %v2811_v12 = vpack.c.b16 %v12271_v16, %v12269_v15  ;;  %v3269_v29 = vrot.slane %v3267_v28, 5  ;;  %v11229_v62 = vld [vmem:[%s11664_s25 + $0x270] sm:$0xff]  ;;  %v2614_v28 = vshll.u32 %v2530_v50, 16  ;;  %v11244_v16 = vld [vmem:[%s11664_s25 + $0x2a8] sm:$0xff] }
 0x182   : > { %v3290_v3 = vrot.slane %v3288_v42, 6  ;;  %3890 = vmatpush.bf16.msrb.mxu1 %v11229_v62  ;;  %v3003_v41 = vsel %vm11907_vm5, %v9964_v22, %v3002_v11  ;;  %v2945_v15 = vld [vmem:[#allocation2 + $0x30] sm:$0xe] }
 0x183   : > { %v12299_v25 = vpack.c.b16 %v3070_v21, %v3069_v36  ;;  %v9963_v36 = vrot.slane %v12265_v7, 9  ;;  %v2998_v21 = vrot.slane %v12263_v2, 5  ;;  %v3281_v2 = vrot.slane %v3279_v60, 6  ;;  %4086 = vmatpush.bf16.msrb.mxu2 %v11244_v16 }
 0x184   : > { %v3072_v19 = vunpack.c.l.b16 %v3003_v41  ;;  %v3321_v41 = vshrl.u32 %v2945_v15, 16 }
 0x185   : > { %v12247_v52 = vpop.f32.mrf.mxu2 }
 0x186   : > { %v3323_v16 = vrot.slane %v3321_v41, 5 }
 0x187   : > { %v12253_v34 = vpop.f32.mrf.mxu3  ;;  %v12257_v59 = vpop.f32.mrf.mxu1 }
 0x18a   : > { %1298 = vmatmul.bf16.gmra.mxu1 %v9624_v32  ;;  %1559 = vmatmul.bf16.gmra.mxu2 %v1459_v8  ;;  %v3264_v32 = vor.u32 %v3263_v4, %v3260_v1  ;;  %v2603_v8 = vor.u32 %v2602_v6, %v2599_v5  ;;  %v3287_v1 = vrot.slane %v3285_v49, 5  ;;  %v3294_v4 = vshrl.u32 %v3217_v51, 16  ;;  %v2532_v6 = vld [vmem:[#allocation2 + $0x30] sm:$0xf] }
 0x18b   : > { %v12285_v46 = vpop.f32.mrf.mxu0  ;;  %v3297_v5 = vshll.u32 %v3217_v51, 16  ;;  %v2625_v40 = vshrl.u32 %v2532_v6, 16  ;;  %v2628_v30 = vshll.u32 %v2532_v6, 16  ;;  %v12334_v51 = vsel %vm11907_vm5, %v9963_v36, %v2998_v21 }
 0x18c   : > { %2028 = vmatmul.bf16.gmra.mxu3 %v1928_v56  ;;  %v12305_v56 = vsel %vm11947_vm9, %v3238_v13, %v3246_v26  ;;  %v12310_v47 = vsel %vm11947_vm9, %v3256_v54, %v3264_v32  ;;  %v2604_v55 = vrot.slane %v2603_v8, 4  ;;  %v3273_v13 = vor.u32 %v3272_v17, %v3269_v29  ;;  %v11261_v8 = vld [vmem:[%s11664_s25 + $0x330] sm:$0xff]  ;;  %v12336_v29 = vld [vmem:[#allocation2 + $0x28] sm:$0xe] }
 0x18d   : > { %v12289_v35 = vpop.f32.mrf.mxu2  ;;  %v2611_v26 = vshrl.u32 %v2530_v50, 16  ;;  %v3278_v32 = vrot.slane %v3276_v37, 5  ;;  %v3291_v38 = vor.u32 %v3290_v3, %v3287_v1  ;;  %v3296_v24 = vrot.slane %v3294_v4, 5  ;;  %4777 = vmatpush.bf16.msrb.mxu0 %v11261_v8  ;;  %v12347_v3 = vld [vmem:[#allocation2 + $0x18] sm:$0xf] }
 0x18e   : > { %2305 = vmatmul.bf16.gmra.mxu0 %v2205_v9  ;;  %v2595_v9 = vsel %vm11795_vm2, %v2590_v39, %v2594_v48  ;;  %v2609_v54 = vsel %vm11795_vm2, %v2604_v55, %v2608_v57  ;;  %v3299_v49 = vrot.slane %v3297_v5, 6  ;;  %v3535_v18 = vunpack.c.l.b16 %v12305_v56  ;;  %v12342_v55 = vld [vmem:[#allocation2 + $0x2c] sm:$0x1]  ;;  %v12344_v56 = vld [vmem:[#allocation2 + $0x34] sm:$0x1] }
 0x18f   : > { %v12295_v43 = vpop.f32.mrf.mxu3  ;;  %v12301_v53 = vpop.f32.mrf.mxu1  ;;  %v3536_v39 = vunpack.c.l.b16 %v12310_v47  ;;  %v12330_v48 = vunpack.c.l.b16 %v2595_v9  ;;  %v12338_v37 = vunpack.c.l.b16 %v2609_v54  ;;  %v2613_v47 = vrot.slane %v2611_v26, 4  ;;  %v12349_v4 = vld [vmem:[#allocation2 + $0x1c] sm:$0xf0]  ;;  %v3218_v8 = vld [vmem:[#allocation2 + $0x2c] sm:$0x3] }
 0x190   : > { %v2616_v57 = vrot.slane %v2614_v28, 5  ;;  %v3274_v62 = vrot.slane %v3273_v13, 4  ;;  %v2627_v50 = vrot.slane %v2625_v40, 4  ;;  %v2630_v1 = vrot.slane %v2628_v30, 5 }
 0x191   : > { %v3282_v5 = vor.u32 %v3281_v2, %v3278_v32  ;;  %v3292_v6 = vrot.slane %v3291_v38, 4  ;;  %v3300_v9 = vor.u32 %v3299_v49, %v3296_v24  ;;  %v3303_v36 = vshrl.u32 %v12336_v29, 16  ;;  %v3219_v49 = vld [vmem:[#allocation2 + $0x34] sm:$0x3] }
 0x192   : > { %v2634_v21 = vshll.u32 %v12344_v56, 16  ;;  %v3306_v22 = vshll.u32 %v12336_v29, 16  ;;  %v3551_v11 = vpack.c.b16 %v3536_v39, %v3535_v18  ;;  %v2617_v13 = vor.u32 %v2616_v57, %v2613_v47  ;;  %v11252_v57 = vld [vmem:[%s11664_s25 + $0x2e8] sm:$0xff] }
 0x193   : > { %v12319_v31 = vpop.f32.mrf.mxu0  ;;  %v9856_v28 = vor.u32 %v12349_v4, %v12347_v3  ;;  %v3071_v14 = vunpack.c.l.b16 %v12334_v51  ;;  %v2812_v54 = vpack.c.b16 %v12338_v37, %v12330_v48  ;;  %v3283_v32 = vsel %vm11947_vm9, %v3274_v62, %v3282_v5  ;;  %v11228_v5 = vld [vmem:[%s11664_s25 + $0x268] sm:$0xff]  ;;  %4504 = vmatpush.bf16.msrb.mxu3 %v11252_v57  ;;  %v11243_v37 = vld [vmem:[%s11664_s25 + $0x2a0] sm:$0xff] }
 0x194   : > { %v12372_v40 = vrot.slane %v3303_v36, 5  ;;  %v2636_v24 = vrot.slane %v2634_v21, 5  ;;  %v3308_v18 = vrot.slane %v3306_v22, 6  ;;  %v2618_v51 = vrot.slane %v2617_v13, 4  ;;  %3891 = vmatpush.bf16.msrb.mxu1 %v11228_v5  ;;  %v2534_v13 = vld [vmem:[#allocation2 + $0x38] sm:$0xf]  ;;  %4087 = vmatpush.bf16.msrb.mxu2 %v11243_v37 }
 0x195   : > { %v12324_v7 = vpop.f32.mrf.mxu2  ;;  %v3324_v47 = vshll.u32 %v2945_v15, 16  ;;  %v3312_v36 = vshrl.u32 %v3218_v8, 16  ;;  %v3086_v21 = vpack.c.b16 %v3072_v19, %v3071_v14  ;;  %v3537_v22 = vunpack.c.l.b16 %v3283_v32  ;;  %v11260_v32 = vld [vmem:[%s11664_s25 + $0x328] sm:$0xff] }
 0x196   : > { %4778 = vmatpush.bf16.msrb.mxu0 %v11260_v32 }
 0x197   : > { %v12326_v42 = vpop.f32.mrf.mxu3  ;;  %v1264_v17 = vpop.f32.mrf.mxu1 }
 0x198   : > { %v1265_v60 = vadd.f32 %v1264_v17, %v12196_v33  ;;  %v2620_v33 = vshll.u32 %v12342_v55, 16  ;;  %v9965_v17 = vrot.slane %v12336_v29, 9 }
 0x19a   : > { %2465 = vmatmul.bf16.vlgmr.msra.gmra.mxu1 %v9852_v63  ;;  %2883 = vmatmul.bf16.vlgmr.msra.gmra.mxu2 %v2811_v12  ;;  %v2631_v63 = vor.u32 %v2630_v1, %v2627_v50  ;;  %v2622_v38 = vrot.slane %v2620_v33, 5  ;;  %v3315_v33 = vshll.u32 %v3218_v8, 16 }
 0x19b   : > { %v2271_v26 = vpop.f32.mrf.mxu0 }
 0x19c   : > { %3157 = vmatmul.bf16.vlgmr.msra.gmra.mxu3 %v12299_v25  ;;  %v3301_v25 = vsel %vm11947_vm9, %v3292_v6, %v3300_v9  ;;  %v2632_v1 = vrot.slane %v2631_v63, 4  ;;  %v9966_v6 = vrot.slane %v2945_v15, 9  ;;  %v3010_v9 = vrot.slane %v12344_v56, 5  ;;  %v2536_v63 = vld [vmem:[#allocation2 + $0x40] sm:$0xf] }
 0x19d   : > { %v1525_v12 = vpop.f32.mrf.mxu2  ;;  %v3538_v29 = vunpack.c.l.b16 %v3301_v25  ;;  %v2623_v56 = vsel %vm11795_vm2, %v2618_v51, %v2622_v38  ;;  %v3309_v15 = vor.u32 %v3308_v18, %v12372_v40  ;;  %v2642_v38 = vshll.u32 %v2534_v13, 16 }
 0x19e   : > { %v1565_v30 = vadd.f32 %v1525_v12, %v1265_v60  ;;  %3623 = vmatmul.bf16.vlgmr.msra.gmra.mxu0 %v3551_v11  ;;  %v3006_v60 = vrot.slane %v12342_v55, 5  ;;  %v3330_v11 = vshrl.u32 %v3219_v49, 16  ;;  %v3326_v12 = vrot.slane %v3324_v47, 6 }
 0x19f   : > { %v1994_v2 = vpop.f32.mrf.mxu3  ;;  %v1266_v39 = vpop.f32.mrf.mxu1  ;;  %v2637_v14 = vsel %vm11795_vm2, %v2632_v1, %v2636_v24  ;;  %v3011_v8 = vsel %vm11907_vm5, %v9966_v6, %v3010_v9  ;;  %v2653_v51 = vshrl.u32 %v2536_v63, 16  ;;  %v2656_v47 = vshll.u32 %v2536_v63, 16  ;;  %v12397_v6 = vld [vmem:[#allocation2 + $0x38] sm:$0xe]  ;;  %v12399_v9 = vld [vmem:[#allocation2 + $0x28] sm:$0xf] }
 0x1a0   : > { %v2034_v62 = vadd.f32 %v1994_v2, %v1565_v30  ;;  %v1267_v50 = vadd.f32 %v1266_v39, %v12242_v27  ;;  %v3333_v27 = vshll.u32 %v3219_v49, 16  ;;  %v3007_v19 = vsel %vm11907_vm5, %v9965_v17, %v3006_v60 }
 0x1a1   : > { %v3317_v2 = vrot.slane %v3315_v33, 6  ;;  %v2639_v49 = vshrl.u32 %v2534_v13, 16  ;;  %v3552_v57 = vpack.c.b16 %v3538_v29, %v3537_v22  ;;  %v3332_v17 = vrot.slane %v3330_v11, 5 }
 0x1a2   : > { %v12380_v30 = vadd.f32 %v2271_v26, %v2034_v62  ;;  %v3314_v26 = vrot.slane %v3312_v36, 5  ;;  %v3327_v62 = vor.u32 %v3326_v12, %v3323_v16  ;;  %v3335_v1 = vrot.slane %v3333_v27, 6 }
 0x1a3   : > { %v12382_v55 = vpop.f32.mrf.mxu0  ;;  %v12395_v60 = vunpack.c.l.b16 %v2623_v56  ;;  %v3073_v5 = vunpack.c.l.b16 %v3007_v19  ;;  %v12403_v36 = vunpack.c.l.b16 %v2637_v14  ;;  %v3074_v33 = vunpack.c.l.b16 %v3011_v8  ;;  %v12413_v56 = vld [vmem:[#allocation2 + $0x44] sm:$0x1] }
 0x1a4   : > { %v3310_v13 = vrot.slane %v3309_v15, 4  ;;  %v3318_v22 = vor.u32 %v3317_v2, %v3314_v26  ;;  %v2641_v29 = vrot.slane %v2639_v49, 4  ;;  %v2644_v11 = vrot.slane %v2642_v38, 5 }
 0x1a5   : > { %v1527_v25 = vpop.f32.mrf.mxu2  ;;  %v2655_v16 = vrot.slane %v2653_v51, 4  ;;  %v2658_v12 = vrot.slane %v2656_v47, 5  ;;  %v3328_v27 = vrot.slane %v3327_v62, 4  ;;  %v3336_v63 = vor.u32 %v3335_v1, %v3332_v17  ;;  %v11251_v62 = vld [vmem:[%s11664_s25 + $0x2e0] sm:$0xff] }
 0x1a6   : > { %v1566_v39 = vadd.f32 %v1527_v25, %v1267_v50  ;;  %v12401_v50 = vld [vmem:[#allocation2 + $0x2c] sm:$0xf0]  ;;  %v3339_v14 = vshrl.u32 %v12397_v6, 16  ;;  %v3342_v3 = vshll.u32 %v12397_v6, 16  ;;  %v2813_v19 = vpack.c.b16 %v12403_v36, %v12395_v60  ;;  %4505 = vmatpush.bf16.msrb.mxu3 %v11251_v62  ;;  %v12477_v60 = vld [vmem:[#allocation2 + $0x68] sm:$0xe] }
 0x1a7   : > { %v1996_v41 = vpop.f32.mrf.mxu3  ;;  %v1269_v24 = vpop.f32.mrf.mxu1  ;;  %v9860_v48 = vor.u32 %v12401_v50, %v12399_v9  ;;  %v12422_v15 = vpack.c.b16 %v3074_v33, %v3073_v5  ;;  %v2645_v26 = vor.u32 %v2644_v11, %v2641_v29  ;;  %v2659_v2 = vor.u32 %v2658_v12, %v2655_v16  ;;  %v11227_v5 = vld [vmem:[%s11664_s25 + $0x260] sm:$0xff]  ;;  %v12473_v9 = vld [vmem:[#allocation2 + $0x6c] sm:$0x1]  ;;  %v12475_v50 = vld [vmem:[#allocation2 + $0x74] sm:$0x1] }
 0x1a8   : > { %v2035_v40 = vadd.f32 %v1996_v41, %v1566_v39  ;;  %v1270_v18 = vadd.f32 %v1269_v24, %v12285_v46  ;;  %v12411_v46 = vld [vmem:[#allocation2 + $0x3c] sm:$0x1]  ;;  %v2662_v49 = vshll.u32 %v12413_v56, 16  ;;  %v2947_v39 = vld [vmem:[#allocation2 + $0x40] sm:$0xe]  ;;  %v3337_v38 = vsel %vm11947_vm9, %v3328_v27, %v3336_v63  ;;  %3892 = vmatpush.bf16.msrb.mxu1 %v11227_v5 }
 0x1a9   : > { %v2648_v32 = vshll.u32 %v12411_v46, 16  ;;  %v3341_v51 = vrot.slane %v3339_v14, 5  ;;  %v3344_v47 = vrot.slane %v3342_v3, 6  ;;  %v3357_v29 = vshrl.u32 %v2947_v39, 16 }
 0x1aa   : > { %2470 = vmatmul.bf16.gmra.mxu1 %v9856_v28  ;;  %2888 = vmatmul.bf16.gmra.mxu2 %v2812_v54  ;;  %v3220_v28 = vld [vmem:[#allocation2 + $0x3c] sm:$0x3]  ;;  %v12436_v33 = vadd.f32 %v12382_v55, %v2035_v40  ;;  %v3360_v11 = vshll.u32 %v2947_v39, 16  ;;  %v2646_v16 = vrot.slane %v2645_v26, 4  ;;  %v2660_v12 = vrot.slane %v2659_v2, 4 }
 0x1ab   : > { %v2276_v4 = vpop.f32.mrf.mxu0  ;;  %v3348_v24 = vshrl.u32 %v3220_v28, 16  ;;  %v2664_v27 = vrot.slane %v2662_v49, 5  ;;  %v3014_v63 = vrot.slane %v12411_v46, 5  ;;  %v9968_v14 = vrot.slane %v2947_v39, 9  ;;  %v2540_v46 = vld [vmem:[#allocation2 + $0x70] sm:$0xf] }
 0x1ac   : > { %3162 = vmatmul.bf16.gmra.mxu3 %v3086_v21  ;;  %v12426_v21 = vsel %vm11947_vm9, %v3310_v13, %v3318_v22  ;;  %v2650_v13 = vrot.slane %v2648_v32, 5  ;;  %v9967_v22 = vrot.slane %v12397_v6, 9  ;;  %v3018_v55 = vrot.slane %v12413_v56, 5  ;;  %v11259_v32 = vld [vmem:[%s11664_s25 + $0x320] sm:$0xff] }
 0x1ad   : > { %v1530_v54 = vpop.f32.mrf.mxu2  ;;  %v3345_v40 = vor.u32 %v3344_v47, %v3341_v51  ;;  %v3540_v6 = vunpack.c.l.b16 %v3337_v38  ;;  %v3350_v37 = vrot.slane %v3348_v24, 5  ;;  %v3359_v26 = vrot.slane %v3357_v29, 5  ;;  %4779 = vmatpush.bf16.msrb.mxu0 %v11259_v32 }
 0x1ae   : > { %v1567_v25 = vadd.f32 %v1530_v54, %v1270_v18  ;;  %3628 = vmatmul.bf16.gmra.mxu0 %v3552_v57  ;;  %v3351_v18 = vshll.u32 %v3220_v28, 16  ;;  %v3221_v57 = vld [vmem:[#allocation2 + $0x44] sm:$0x3]  ;;  %v3362_v2 = vrot.slane %v3360_v11, 6  ;;  %v2651_v56 = vsel %vm11795_vm2, %v2646_v16, %v2650_v13 }
 0x1af   : > { %v1999_v8 = vpop.f32.mrf.mxu3  ;;  %v1271_v41 = vpop.f32.mrf.mxu1  ;;  %v3366_v54 = vshrl.u32 %v3221_v57, 16  ;;  %v3369_v49 = vshll.u32 %v3221_v57, 16  ;;  %v2665_v38 = vsel %vm11795_vm2, %v2660_v12, %v2664_v27  ;;  %v3015_v51 = vsel %vm11907_vm5, %v9967_v22, %v3014_v63  ;;  %v12464_v12 = vld [vmem:[#allocation2 + $0x38] sm:$0xf]  ;;  %v12466_v27 = vld [vmem:[#allocation2 + $0x3c] sm:$0xf0] }
 0x1b0   : > { %v2036_v17 = vadd.f32 %v1999_v8, %v1567_v25  ;;  %v1272_v1 = vadd.f32 %v1271_v41, %v12319_v31  ;;  %v3539_v31 = vunpack.c.l.b16 %v12426_v21  ;;  %v3353_v28 = vrot.slane %v3351_v18, 6  ;;  %v2538_v25 = vld [vmem:[#allocation2 + $0x68] sm:$0xf] }
 0x1b1   : > { %v3019_v24 = vsel %vm11907_vm5, %v9968_v14, %v3018_v55  ;;  %v3346_v62 = vrot.slane %v3345_v40, 4  ;;  %v2667_v18 = vshrl.u32 %v2538_v25, 16  ;;  %v2681_v5 = vshrl.u32 %v2540_v46, 16 }
 0x1b2   : > { %v12445_v41 = vadd.f32 %v2276_v4, %v2036_v17  ;;  %v2670_v4 = vshll.u32 %v2538_v25, 16  ;;  %v2684_v13 = vshll.u32 %v2540_v46, 16  ;;  %v3354_v57 = vor.u32 %v3353_v28, %v3350_v37 }
 0x1b3   : > { %v12442_v3 = vpop.f32.mrf.mxu0  ;;  %v3363_v29 = vor.u32 %v3362_v2, %v3359_v26  ;;  %v3368_v11 = vrot.slane %v3366_v54, 5  ;;  %v3371_v16 = vrot.slane %v3369_v49, 6  ;;  %v3553_v22 = vpack.c.b16 %v3540_v6, %v3539_v31  ;;  %v11242_v6 = vld [vmem:[%s11664_s25 + $0x298] sm:$0xff]  ;;  %v12488_v2 = vld [vmem:[#allocation2 + $0x70] sm:$0xe] }
 0x1b4   : > { %v12471_v63 = vunpack.c.l.b16 %v2665_v38  ;;  %v3075_v14 = vunpack.c.l.b16 %v3015_v51  ;;  %v3076_v55 = vunpack.c.l.b16 %v3019_v24  ;;  %v2683_v31 = vrot.slane %v2681_v5, 4  ;;  %4088 = vmatpush.bf16.msrb.mxu2 %v11242_v6  ;;  %v3222_v38 = vld [vmem:[#allocation2 + $0x6c] sm:$0x3]  ;;  %v11258_v6 = vld [vmem:[%s11664_s25 + $0x318] sm:$0xff] }
 0x1b5   : > { %v1532_v8 = vpop.f32.mrf.mxu2  ;;  %v2686_v40 = vrot.slane %v2684_v13, 5  ;;  %v12484_v37 = vsel %vm11947_vm9, %v3346_v62, %v3354_v57  ;;  %v3364_v28 = vrot.slane %v3363_v29, 4  ;;  %v3372_v54 = vor.u32 %v3371_v16, %v3368_v11  ;;  %4780 = vmatpush.bf16.msrb.mxu0 %v11258_v6  ;;  %v11241_v6 = vld [vmem:[%s11664_s25 + $0x290] sm:$0xff] }
 0x1b6   : > { %v1568_v21 = vadd.f32 %v1532_v8, %v1272_v1  ;;  %v2676_v8 = vshll.u32 %v12473_v9, 16  ;;  %v2690_v26 = vshll.u32 %v12475_v50, 16  ;;  %v3375_v49 = vshrl.u32 %v12477_v60, 16 }
 0x1b7   : > { %v2001_v39 = vpop.f32.mrf.mxu3  ;;  %v1274_v47 = vpop.f32.mrf.mxu1  ;;  %v3378_v51 = vshll.u32 %v12477_v60, 16  ;;  %v3373_v5 = vsel %vm11947_vm9, %v3364_v28, %v3372_v54  ;;  %v3541_v13 = vunpack.c.l.b16 %v12484_v37  ;;  %v3393_v57 = vshrl.u32 %v12488_v2, 16 }
 0x1b8   : > { %v12455_v17 = vadd.f32 %v2001_v39, %v1568_v21  ;;  %v1275_v1 = vadd.f32 %v1274_v47, %v12192_v20  ;;  %v12469_v20 = vunpack.c.l.b16 %v2651_v56  ;;  %v9864_v21 = vor.u32 %v12466_v27, %v12464_v12  ;;  %v11250_v47 = vld [vmem:[%s11664_s25 + $0x2d8] sm:$0xff]  ;;  %4089 = vmatpush.bf16.msrb.mxu2 %v11241_v6 }
 0x1b9   : > { %v12495_v56 = vpack.c.b16 %v3076_v55, %v3075_v14  ;;  %v3396_v29 = vshll.u32 %v12488_v2, 16  ;;  %4506 = vmatpush.bf16.msrb.mxu3 %v11250_v47  ;;  %v2678_v11 = vrot.slane %v2676_v8, 5  ;;  %v2692_v16 = vrot.slane %v2690_v26, 5 }
 0x1ba   : > { %2475 = vmatmul.bf16.gmra.mxu1 %v9860_v48  ;;  %2893 = vmatmul.bf16.gmra.mxu2 %v2813_v19  ;;  %v2669_v48 = vrot.slane %v2667_v18, 4  ;;  %v2672_v19 = vrot.slane %v2670_v4, 5  ;;  %v2814_v39 = vpack.c.b16 %v12471_v63, %v12469_v20  ;;  %v2687_v4 = vor.u32 %v2686_v40, %v2683_v31 }
 0x1bb   : > { %v12479_v36 = vpop.f32.mrf.mxu0  ;;  %v3377_v12 = vrot.slane %v3375_v49, 5  ;;  %v3384_v27 = vshrl.u32 %v3222_v38, 16  ;;  %v3380_v20 = vrot.slane %v3378_v51, 6  ;;  %v3387_v63 = vshll.u32 %v3222_v38, 16  ;;  %v2544_v51 = vld [vmem:[#allocation2 + $0x80] sm:$0xf] }
 0x1bc   : > { %3167 = vmatmul.bf16.gmra.mxu3 %v12422_v15  ;;  %v2673_v18 = vor.u32 %v2672_v19, %v2669_v48  ;;  %v12511_v14 = vadd.f32 %v12442_v3, %v12455_v17  ;;  %v3542_v48 = vunpack.c.l.b16 %v3373_v5  ;;  %v2688_v31 = vrot.slane %v2687_v4, 4 }
 0x1bd   : > { %v1535_v15 = vpop.f32.mrf.mxu2  ;;  %v3022_v40 = vrot.slane %v12473_v9, 5  ;;  %v3395_v28 = vrot.slane %v3393_v57, 5  ;;  %v3398_v54 = vrot.slane %v3396_v29, 6  ;;  %v9970_v26 = vrot.slane %v12488_v2, 9 }
 0x1be   : > { %v1569_v32 = vadd.f32 %v1535_v15, %v1275_v1  ;;  %3633 = vmatmul.bf16.gmra.mxu0 %v3553_v22  ;;  %v11226_v1 = vld [vmem:[%s11664_s25 + $0x258] sm:$0xff]  ;;  %v3223_v22 = vld [vmem:[#allocation2 + $0x74] sm:$0x3]  ;;  %v2674_v19 = vrot.slane %v2673_v18, 4  ;;  %v3026_v3 = vrot.slane %v12475_v50, 5  ;;  %v3386_v17 = vrot.slane %v3384_v27, 5 }
 0x1bf   : > { %v2004_v25 = vpop.f32.mrf.mxu3  ;;  %v1276_v46 = vpop.f32.mrf.mxu1  ;;  %3893 = vmatpush.bf16.msrb.mxu1 %v11226_v1  ;;  %v2542_v15 = vld [vmem:[#allocation2 + $0x78] sm:$0xf]  ;;  %v3389_v38 = vrot.slane %v3387_v63, 6  ;;  %v2693_v50 = vsel %vm11795_vm2, %v2688_v31, %v2692_v16  ;;  %v3399_v1 = vor.u32 %v3398_v54, %v3395_v28  ;;  %v3554_v29 = vpack.c.b16 %v3542_v48, %v3541_v13  ;;  %v12539_v13 = vld [vmem:[#allocation2 + $0x6c] sm:$0xf0] }
 0x1c0   : > { %v12499_v24 = vadd.f32 %v2004_v25, %v1569_v32  ;;  %v1277_v62 = vadd.f32 %v1276_v46, %v12232_v58  ;;  %v9969_v58 = vrot.slane %v12477_v60, 9  ;;  %v3402_v32 = vshrl.u32 %v3223_v22, 16  ;;  %v12532_v27 = vld [vmem:[#allocation2 + $0x78] sm:$0xe] }
 0x1c1   : > { %v3405_v60 = vshll.u32 %v3223_v22, 16  ;;  %v3381_v46 = vor.u32 %v3380_v20, %v3377_v12  ;;  %v2695_v9 = vshrl.u32 %v2542_v15, 16  ;;  %v2698_v47 = vshll.u32 %v2542_v15, 16  ;;  %v12528_v22 = vld [vmem:[#allocation2 + $0x68] sm:$0xf] }
 0x1c2   : > { %v3023_v2 = vsel %vm11907_vm5, %v9969_v58, %v3022_v40  ;;  %v3404_v5 = vrot.slane %v3402_v32, 5  ;;  %v2709_v12 = vshrl.u32 %v2544_v51, 16  ;;  %v3390_v16 = vor.u32 %v3389_v38, %v3386_v17  ;;  %v12535_v20 = vld [vmem:[#allocation2 + $0x7c] sm:$0x1]  ;;  %v12545_v40 = vld [vmem:[#allocation2 + $0x84] sm:$0x1] }
 0x1c3   : > { %v12513_v55 = vpop.f32.mrf.mxu0  ;;  %v3407_v57 = vrot.slane %v3405_v60, 6  ;;  %v3382_v58 = vrot.slane %v3381_v46, 4  ;;  %v2697_v63 = vrot.slane %v2695_v9, 4  ;;  %v3077_v31 = vunpack.c.l.b16 %v3023_v2  ;;  %v11249_v9 = vld [vmem:[%s11664_s25 + $0x2d0] sm:$0xff] }
 0x1c4   : > { %v3411_v54 = vshrl.u32 %v12532_v27, 16  ;;  %v3414_v2 = vshll.u32 %v12532_v27, 16  ;;  %4507 = vmatpush.bf16.msrb.mxu3 %v11249_v9 }
 0x1c5   : > { %v1537_v37 = vpop.f32.mrf.mxu2  ;;  %v3408_v28 = vor.u32 %v3407_v57, %v3404_v5  ;;  %v3391_v46 = vsel %vm11947_vm9, %v3382_v58, %v3390_v16  ;;  %v3224_v57 = vld [vmem:[#allocation2 + $0x7c] sm:$0x3] }
 0x1c6   : > { %v1570_v25 = vadd.f32 %v1537_v37, %v1277_v62  ;;  %v2679_v62 = vsel %vm11795_vm2, %v2674_v19, %v2678_v11  ;;  %v2712_v11 = vshll.u32 %v2544_v51, 16  ;;  %v12543_v19 = vunpack.c.l.b16 %v2693_v50  ;;  %v11225_v50 = vld [vmem:[%s11664_s25 + $0x250] sm:$0xff] }
 0x1c7   : > { %v2006_v8 = vpop.f32.mrf.mxu3  ;;  %v1279_v49 = vpop.f32.mrf.mxu1  ;;  %v12541_v48 = vunpack.c.l.b16 %v2679_v62  ;;  %v3400_v37 = vrot.slane %v3399_v1, 4  ;;  %v2718_v51 = vshll.u32 %v12545_v40, 16  ;;  %v3413_v58 = vrot.slane %v3411_v54, 5  ;;  %3894 = vmatpush.bf16.msrb.mxu1 %v11225_v50 }
 0x1c8   : > { %v12519_v18 = vadd.f32 %v2006_v8, %v1570_v25  ;;  %v1280_v4 = vadd.f32 %v1279_v49, %v12257_v59  ;;  %v3027_v59 = vsel %vm11907_vm5, %v9970_v26, %v3026_v3  ;;  %v2704_v25 = vshll.u32 %v12535_v20, 16  ;;  %v12550_v3 = vld [vmem:[#allocation2 + $0x80] sm:$0xe] }
 0x1c9   : > { %v2711_v8 = vrot.slane %v2709_v12, 4  ;;  %v2714_v26 = vrot.slane %v2712_v11, 5  ;;  %v9868_v49 = vor.u32 %v12539_v13, %v12528_v22  ;;  %v2815_v62 = vpack.c.b16 %v12543_v19, %v12541_v48  ;;  %v3225_v11 = vld [vmem:[#allocation2 + $0x84] sm:$0x3]  ;;  %v2546_v13 = vld [vmem:[#allocation2 + $0x88] sm:$0xf] }
 0x1ca   : > { %2480 = vmatmul.bf16.gmra.mxu1 %v9864_v21  ;;  %2898 = vmatmul.bf16.gmra.mxu2 %v2814_v39  ;;  %v2700_v21 = vrot.slane %v2698_v47, 5  ;;  %v3409_v5 = vsel %vm11947_vm9, %v3400_v37, %v3408_v28  ;;  %v3432_v22 = vshll.u32 %v12550_v3, 16  ;;  %v12569_v12 = vrot.slane %v2704_v25, 5  ;;  %v11257_v37 = vld [vmem:[%s11664_s25 + $0x310] sm:$0xff] }
 0x1cb   : > { %v12537_v39 = vpop.f32.mrf.mxu0  ;;  %v12578_v48 = vadd.f32 %v12479_v36, %v12499_v24  ;;  %v3416_v6 = vrot.slane %v3414_v2, 6  ;;  %v2548_v28 = vld [vmem:[#allocation2 + $0x90] sm:$0xf]  ;;  %v3438_v25 = vshrl.u32 %v3225_v11, 16  ;;  %4781 = vmatpush.bf16.msrb.mxu0 %v11257_v37  ;;  %v2723_v36 = vshrl.u32 %v2546_v13, 16 }
 0x1cc   : > { %3172 = vmatmul.bf16.gmra.mxu3 %v12495_v56  ;;  %v3078_v56 = vunpack.c.l.b16 %v3027_v59  ;;  %v2701_v38 = vor.u32 %v2700_v21, %v2697_v63  ;;  %v3543_v59 = vunpack.c.l.b16 %v3391_v46  ;;  %v12573_v63 = vrot.slane %v2718_v51, 5 }
 0x1cd   : > { %v1540_v15 = vpop.f32.mrf.mxu2  ;;  %v9971_v21 = vrot.slane %v12532_v27, 9  ;;  %v2726_v24 = vshll.u32 %v2546_v13, 16  ;;  %v9972_v51 = vrot.slane %v12550_v3, 9  ;;  %v2737_v9 = vshrl.u32 %v2548_v28, 16 }
 0x1ce   : > { %v1571_v32 = vadd.f32 %v1540_v15, %v1280_v4  ;;  %3638 = vmatmul.bf16.gmra.mxu0 %v3554_v29  ;;  %v3089_v1 = vpack.c.b16 %v3078_v56, %v3077_v31  ;;  %v3429_v29 = vshrl.u32 %v12550_v3, 16  ;;  %v12571_v16 = vrot.slane %v2701_v38, 4 }
 0x1cf   : > { %v2009_v60 = vpop.f32.mrf.mxu3  ;;  %v1281_v17 = vpop.f32.mrf.mxu1  ;;  %v3544_v31 = vunpack.c.l.b16 %v3409_v5  ;;  %v3420_v15 = vshrl.u32 %v3224_v57, 16  ;;  %v3423_v56 = vshll.u32 %v3224_v57, 16  ;;  %v2740_v2 = vshll.u32 %v2548_v28, 16  ;;  %v12587_v5 = vld [vmem:[#allocation2 + $0x78] sm:$0xf] }
 0x1d0   : > { %v12558_v47 = vadd.f32 %v2009_v60, %v1571_v32  ;;  %v1282_v4 = vadd.f32 %v1281_v17, %v12301_v53  ;;  %v2715_v53 = vor.u32 %v2714_v26, %v2711_v8  ;;  %v3431_v32 = vrot.slane %v3429_v29, 5 }
 0x1d1   : > { %v3434_v60 = vrot.slane %v3432_v22, 6  ;;  %v3441_v8 = vshll.u32 %v3225_v11, 16  ;;  %v3030_v17 = vrot.slane %v12535_v20, 5  ;;  %v3034_v57 = vrot.slane %v12545_v40, 5  ;;  %v12590_v22 = vld [vmem:[#allocation2 + $0x7c] sm:$0xf0] }
 0x1d2   : > { %v2716_v38 = vrot.slane %v2715_v53, 4  ;;  %v3417_v29 = vor.u32 %v3416_v6, %v3413_v58  ;;  %v3425_v20 = vrot.slane %v3423_v56, 6  ;;  %v3440_v37 = vrot.slane %v3438_v25, 5  ;;  %v12600_v6 = vld [vmem:[#allocation2 + $0x8c] sm:$0x1] }
 0x1d3   : > { %v12580_v19 = vpop.f32.mrf.mxu0  ;;  %v3435_v11 = vor.u32 %v3434_v60, %v3431_v32  ;;  %v3443_v13 = vrot.slane %v3441_v8, 6  ;;  %v3555_v3 = vpack.c.b16 %v3544_v31, %v3543_v59  ;;  %v2725_v53 = vrot.slane %v2723_v36, 4  ;;  %v2953_v36 = vld [vmem:[#allocation2 + $0x90] sm:$0xe] }
 0x1d4   : > { %v2728_v28 = vrot.slane %v2726_v24, 5  ;;  %v2707_v40 = vsel %vm11795_vm2, %v12571_v16, %v12569_v12  ;;  %v12598_v58 = vsel %vm11907_vm5, %v9971_v21, %v3030_v17  ;;  %v2721_v12 = vsel %vm11795_vm2, %v2716_v38, %v12573_v63  ;;  %v11240_v21 = vld [vmem:[%s11664_s25 + $0x288] sm:$0xff] }
 0x1d5   : > { %v1542_v54 = vpop.f32.mrf.mxu2  ;;  %v3035_v16 = vsel %vm11907_vm5, %v9972_v51, %v3034_v57  ;;  %v3436_v60 = vrot.slane %v3435_v11, 4  ;;  %v3444_v25 = vor.u32 %v3443_v13, %v3440_v37  ;;  %v2732_v17 = vshll.u32 %v12600_v6, 16  ;;  %4090 = vmatpush.bf16.msrb.mxu2 %v11240_v21  ;;  %v11224_v11 = vld [vmem:[%s11664_s25 + $0x248] sm:$0xff]  ;;  %v3227_v21 = vld [vmem:[#allocation2 + $0x94] sm:$0x3] }
 0x1d6   : > { %v1572_v26 = vadd.f32 %v1542_v54, %v1282_v4  ;;  %v3422_v4 = vrot.slane %v3420_v15, 5  ;;  %v12602_v15 = vld [vmem:[#allocation2 + $0x94] sm:$0x1]  ;;  %v3418_v54 = vrot.slane %v3417_v29, 4  ;;  %v2806_v38 = vunpack.c.l.b16 %v2721_v12  ;;  %3895 = vmatpush.bf16.msrb.mxu1 %v11224_v11 }
 0x1d7   : > { %v2011_v27 = vpop.f32.mrf.mxu3  ;;  %v1284_v46 = vpop.f32.mrf.mxu1  ;;  %v2746_v63 = vshll.u32 %v12602_v15, 16  ;;  %v3079_v51 = vunpack.c.l.b16 %v12598_v58  ;;  %v3080_v29 = vunpack.c.l.b16 %v3035_v16  ;;  %v3445_v13 = vsel %vm11947_vm9, %v3436_v60, %v3444_v25 }
 0x1d8   : > { %v12585_v50 = vadd.f32 %v2011_v27, %v1572_v26  ;;  %v1285_v59 = vadd.f32 %v1284_v46, %v12221_v61  ;;  %v3426_v32 = vor.u32 %v3425_v20, %v3422_v4  ;;  %v12615_v61 = vld [vmem:[#allocation2 + $0x88] sm:$0xe]  ;;  %v2729_v27 = vor.u32 %v2728_v28, %v2725_v53 }
 0x1d9   : > { %v2805_v46 = vunpack.c.l.b16 %v2707_v40  ;;  %v3447_v4 = vshrl.u32 %v12615_v61, 16  ;;  %v3450_v20 = vshll.u32 %v12615_v61, 16  ;;  %v3468_v53 = vshll.u32 %v2953_v36, 16 }
 0x1da   : > { %2485 = vmatmul.bf16.gmra.mxu1 %v9868_v49  ;;  %2903 = vmatmul.bf16.gmra.mxu2 %v2815_v62  ;;  %v2739_v49 = vrot.slane %v2737_v9, 4  ;;  %v2742_v62 = vrot.slane %v2740_v2, 5  ;;  %v11248_v2 = vld [vmem:[%s11664_s25 + $0x2c8] sm:$0xff]  ;;  %v3427_v37 = vsel %vm11947_vm9, %v3418_v54, %v3426_v32  ;;  %v2730_v28 = vrot.slane %v2729_v27, 4 }
 0x1db   : > { %v12605_v31 = vpop.f32.mrf.mxu0  ;;  %4508 = vmatpush.bf16.msrb.mxu3 %v11248_v2  ;;  %v2734_v40 = vrot.slane %v2732_v17, 5  ;;  %v2748_v58 = vrot.slane %v2746_v63, 5  ;;  %v3038_v12 = vrot.slane %v12600_v6, 5  ;;  %v9974_v16 = vrot.slane %v2953_v36, 9 }
 0x1dc   : > { %3177 = vmatmul.bf16.gmra.mxu3 %v3089_v1  ;;  %v2743_v9 = vor.u32 %v2742_v62, %v2739_v49  ;;  %v9973_v49 = vrot.slane %v12615_v61, 9  ;;  %v3226_v62 = vld [vmem:[#allocation2 + $0x8c] sm:$0x3]  ;;  %v3042_v60 = vrot.slane %v12602_v15, 5  ;;  %v3449_v25 = vrot.slane %v3447_v4, 5 }
 0x1dd   : > { %v1545_v56 = vpop.f32.mrf.mxu2  ;;  %v11256_v61 = vld [vmem:[%s11664_s25 + $0x308] sm:$0xff]  ;;  %v3456_v27 = vshrl.u32 %v3226_v62, 16  ;;  %v3459_v17 = vshll.u32 %v3226_v62, 16  ;;  %v3470_v6 = vrot.slane %v3468_v53, 6  ;;  %v2816_v2 = vpack.c.b16 %v2806_v38, %v2805_v46  ;;  %v2550_v4 = vld [vmem:[#allocation2 + $0x98] sm:$0xf] }
 0x1de   : > { %v1573_v8 = vadd.f32 %v1545_v56, %v1285_v59  ;;  %3643 = vmatmul.bf16.gmra.mxu0 %v3555_v3  ;;  %v3465_v3 = vshrl.u32 %v2953_v36, 16  ;;  %v2744_v59 = vrot.slane %v2743_v9, 4  ;;  %v12634_v56 = vadd.f32 %v12513_v55, %v12519_v18 }
 0x1df   : > { %v2014_v26 = vpop.f32.mrf.mxu3  ;;  %v1286_v24 = vpop.f32.mrf.mxu1  ;;  %v3474_v11 = vshrl.u32 %v3227_v21, 16  ;;  %v3477_v55 = vshll.u32 %v3227_v21, 16  ;;  %4782 = vmatpush.bf16.msrb.mxu0 %v11256_v61  ;;  %v3546_v1 = vunpack.c.l.b16 %v3445_v13  ;;  %v2735_v15 = vsel %vm11795_vm2, %v2730_v28, %v2734_v40  ;;  %v2552_v40 = vld [vmem:[#allocation2 + $0xa0] sm:$0xf] }
 0x1e0   : > { %v12621_v57 = vadd.f32 %v2014_v26, %v1573_v8  ;;  %v1287_v54 = vadd.f32 %v1286_v24, %v12247_v52  ;;  %v3452_v8 = vrot.slane %v3450_v20, 6  ;;  %v3467_v63 = vrot.slane %v3465_v3, 5 }
 0x1e1   : > { %v3090_v52 = vpack.c.b16 %v3080_v29, %v3079_v51  ;;  %v3545_v24 = vunpack.c.l.b16 %v3427_v37  ;;  %v2749_v3 = vsel %vm11795_vm2, %v2744_v59, %v2748_v58  ;;  %v3039_v53 = vsel %vm11907_vm5, %v9973_v49, %v3038_v12 }
 0x1e2   : > { %v3453_v46 = vor.u32 %v3452_v8, %v3449_v25  ;;  %v3043_v38 = vsel %vm11907_vm5, %v9974_v16, %v3042_v60  ;;  %v3458_v62 = vrot.slane %v3456_v27, 5  ;;  %v3461_v51 = vrot.slane %v3459_v17, 6  ;;  %v12661_v60 = vld [vmem:[#allocation2 + $0x88] sm:$0xf]  ;;  %v11239_v8 = vld [vmem:[%s11664_s25 + $0x280] sm:$0xff] }
 0x1e3   : > { %v12637_v32 = vpop.f32.mrf.mxu0  ;;  %v3471_v29 = vor.u32 %v3470_v6, %v3467_v63  ;;  %v14505_v37 = vor.u32 %v12590_v22, %v12587_v5  ;;  %v3476_v13 = vrot.slane %v3474_v11, 5  ;;  %v3479_v28 = vrot.slane %v3477_v55, 6  ;;  %4091 = vmatpush.bf16.msrb.mxu2 %v11239_v8  ;;  %v11255_v8 = vld [vmem:[%s11664_s25 + $0x300] sm:$0xff] }
 0x1e4   : > { %v2751_v58 = vshrl.u32 %v2550_v4, 16  ;;  %v2754_v59 = vshll.u32 %v2550_v4, 16  ;;  %v3556_v49 = vpack.c.b16 %v3546_v1, %v3545_v24  ;;  %v12654_v12 = vunpack.c.l.b16 %v2735_v15  ;;  %4783 = vmatpush.bf16.msrb.mxu0 %v11255_v8  ;;  %v11278_v8 = vld [vmem:[%s11664_s25 + $0x3b8] sm:$0xff] }
 0x1e5   : > { %v1547_v26 = vpop.f32.mrf.mxu2  ;;  %v12656_v21 = vunpack.c.l.b16 %v2749_v3  ;;  %v3081_v5 = vunpack.c.l.b16 %v3039_v53  ;;  %v3082_v22 = vunpack.c.l.b16 %v3043_v38  ;;  %v3454_v25 = vrot.slane %v3453_v46, 4  ;;  %v12675_v3 = vld [vmem:[#allocation2 + $0xa0] sm:$0xe]  ;;  %v12680_v38 = vld [vmem:[#allocation2 + $0xa4] sm:$0x1] }
 0x1e6   : > { %v1574_v36 = vadd.f32 %v1547_v26, %v1287_v54  ;;  %v12664_v26 = vld [vmem:[#allocation2 + $0x8c] sm:$0xf0]  ;;  %v3462_v27 = vor.u32 %v3461_v51, %v3458_v62  ;;  %v3472_v1 = vrot.slane %v3471_v29, 4  ;;  %v2765_v17 = vshrl.u32 %v2552_v40, 16  ;;  %v11223_v53 = vld [vmem:[%s11664_s25 + $0x240] sm:$0xff] }
 0x1e7   : > { %v2016_v9 = vpop.f32.mrf.mxu3  ;;  %v1289_v18 = vpop.f32.mrf.mxu1  ;;  %v2768_v63 = vshll.u32 %v2552_v40, 16  ;;  %v2756_v11 = vrot.slane %v2754_v59, 5  ;;  %v9876_v15 = vor.u32 %v12664_v26, %v12661_v60  ;;  %v2817_v4 = vpack.c.b16 %v12656_v21, %v12654_v12  ;;  %3896 = vmatpush.bf16.msrb.mxu1 %v11223_v53  ;;  %5516 = vmatpush.bf16.msra.mxu2 %v11278_v8 }
 0x1e8   : > { %v12643_v20 = vadd.f32 %v2016_v9, %v1574_v36  ;;  %v1290_v16 = vadd.f32 %v1289_v18, %v12289_v35  ;;  %v3480_v35 = vor.u32 %v3479_v28, %v3476_v13  ;;  %v12666_v9 = vld [vmem:[#allocation2 + $0x9c] sm:$0x1]  ;;  %v2954_v18 = vld [vmem:[#allocation2 + $0x98] sm:$0xe]  ;;  %v3463_v46 = vsel %vm11947_vm9, %v3454_v25, %v3462_v27 }
 0x1e9   : > { %v2760_v62 = vshll.u32 %v12666_v9, 16  ;;  %v2767_v51 = vrot.slane %v2765_v17, 4  ;;  %v2770_v29 = vrot.slane %v2768_v63, 5  ;;  %v3483_v40 = vshrl.u32 %v2954_v18, 16 }
 0x1ea   : > { %2490 = vmatmul.bf16.gmra.mxu1 %v14505_v37  ;;  %2908 = vmatmul.bf16.gmra.mxu2 %v2816_v2  ;;  %v2753_v2 = vrot.slane %v2751_v58, 4  ;;  %v3091_v37 = vpack.c.b16 %v3082_v22, %v3081_v5  ;;  %v3481_v13 = vsel %vm11947_vm9, %v3472_v1, %v3480_v35  ;;  %v3486_v58 = vshll.u32 %v2954_v18, 16  ;;  %v3228_v22 = vld [vmem:[#allocation2 + $0x9c] sm:$0x3] }
 0x1eb   : > { %v12659_v54 = vpop.f32.mrf.mxu0  ;;  %v3501_v59 = vshrl.u32 %v12675_v3, 16  ;;  %v12692_v12 = vadd.f32 %v12580_v19, %v12585_v50  ;;  %v3547_v60 = vunpack.c.l.b16 %v3463_v46  ;;  %v2774_v5 = vshll.u32 %v12680_v38, 16  ;;  %v3229_v19 = vld [vmem:[#allocation2 + $0xa4] sm:$0x3] }
 0x1ec   : > { %3182 = vmatmul.bf16.gmra.mxu3 %v3090_v52  ;;  %v11247_v52 = vld [vmem:[%s11664_s25 + $0x2c0] sm:$0xff]  ;;  %v2757_v28 = vor.u32 %v2756_v11, %v2753_v2  ;;  %v3504_v25 = vshll.u32 %v12675_v3, 16  ;;  %v12700_v26 = vrot.slane %v2760_v62, 5  ;;  %v3046_v27 = vrot.slane %v12666_v9, 5 }
 0x1ed   : > { %v1550_v61 = vpop.f32.mrf.mxu2  ;;  %4509 = vmatpush.bf16.msrb.mxu3 %v11247_v52  ;;  %v3485_v63 = vrot.slane %v3483_v40, 5  ;;  %v3492_v35 = vshrl.u32 %v3228_v22, 16  ;;  %v3495_v2 = vshll.u32 %v3228_v22, 16  ;;  %v3503_v11 = vrot.slane %v3501_v59, 5 }
 0x1ee   : > { %v1575_v6 = vadd.f32 %v1550_v61, %v1290_v16  ;;  %3648 = vmatmul.bf16.gmra.mxu0 %v3556_v49  ;;  %v12688_v49 = vadd.f32 %v12537_v39, %v12558_v47  ;;  %v2771_v39 = vor.u32 %v2770_v29, %v2767_v51  ;;  %v9975_v47 = vrot.slane %v2954_v18, 9 }
 0x1ef   : > { %v2019_v36 = vpop.f32.mrf.mxu3  ;;  %v1291_v55 = vpop.f32.mrf.mxu1  ;;  %v2758_v17 = vrot.slane %v2757_v28, 4  ;;  %v3506_v52 = vrot.slane %v3504_v25, 6  ;;  %v3510_v53 = vshrl.u32 %v3229_v19, 16  ;;  %v3513_v46 = vshll.u32 %v3229_v19, 16  ;;  %v4149_v28 = vld [vmem:[#allocation2 + $0x10] sm:$0xf] }
 0x1f0   : > { %v12669_v24 = vadd.f32 %v2019_v36, %v1575_v6  ;;  %v1292_v21 = vadd.f32 %v1291_v55, %v12324_v7  ;;  %v3548_v7 = vunpack.c.l.b16 %v3481_v13  ;;  %v3488_v36 = vrot.slane %v3486_v58, 6  ;;  %v4151_v25 = vld [vmem:[#allocation2 + $0x18] sm:$0xf] }
 0x1f1   : > { %v2772_v62 = vrot.slane %v2771_v39, 4  ;;  %v2776_v18 = vrot.slane %v2774_v5, 5  ;;  %v12705_v51 = vsel %vm11907_vm5, %v9975_v47, %v3046_v27  ;;  %v9976_v29 = vrot.slane %v12675_v3, 9 }
 0x1f2   : > { %v3557_v9 = vpack.c.b16 %v3548_v7, %v3547_v60  ;;  %v3050_v13 = vrot.slane %v12680_v38, 5  ;;  %v2763_v40 = vsel %vm11795_vm2, %v2758_v17, %v12700_v26  ;;  %v3489_v58 = vor.u32 %v3488_v36, %v3485_v63  ;;  %v11294_v7 = vld [vmem:[%s11664_s25 + $0x3f8] sm:$0xff] }
 0x1f3   : > { %v12695_v16 = vpop.f32.mrf.mxu0  ;;  %v3494_v59 = vrot.slane %v3492_v35, 5  ;;  %v3507_v60 = vor.u32 %v3506_v52, %v3503_v11  ;;  %v3512_v5 = vrot.slane %v3510_v53, 5  ;;  %v3515_v22 = vrot.slane %v3513_v46, 6  ;;  %5711 = vmatpush.bf16.msra.mxu3 %v11294_v7  ;;  %v9879_v11 = vld [vmem:[#allocation2 + $0x98] sm:$0xf] }
 0x1f4   : > { %v2777_v38 = vsel %vm11795_vm2, %v2772_v62, %v2776_v18  ;;  %v12718_v26 = vadd.f32 %v12605_v31, %v12621_v57  ;;  %v12724_v27 = vadd.f32 %v12637_v32, %v12643_v20  ;;  %v12728_v19 = vadd.f32 %v12659_v54, %v12669_v24  ;;  %v11190_v54 = vld [vmem:[#allocation2 + $0x9c] sm:$0xf0]  ;;  %v12736_v62 = vld [vmem:[#allocation2 + $0x14] sm:$0x1] }
 0x1f5   : > { %v1552_v61 = vpop.f32.mrf.mxu2  ;;  %v4196_v57 = vshrl.u32 %v4151_v25, 16  ;;  %v3516_v36 = vor.u32 %v3515_v22, %v3512_v5  ;;  %v4199_v35 = vshll.u32 %v4151_v25, 16  ;;  %v2809_v24 = vunpack.c.l.b16 %v2763_v40 }
 0x1f6   : > { %v1576_v50 = vadd.f32 %v1552_v61, %v1292_v21  ;;  %v4185_v61 = vshll.u32 %v4149_v28, 16  ;;  %v2810_v52 = vunpack.c.l.b16 %v2777_v38  ;;  %v3083_v53 = vunpack.c.l.b16 %v12705_v51 }
 0x1f7   : > { %v2021_v1 = vpop.f32.mrf.mxu3  ;;  %v1294_v6 = vpop.f32.mrf.mxu1  ;;  %v4201_v40 = vrot.slane %v4199_v35, 5  ;;  %v4191_v5 = vshll.u32 %v12736_v62, 16 }
 0x1f8   : > { %v2045_v55 = vadd.f32 %v2021_v1, %v1576_v50  ;;  %v3490_v1 = vrot.slane %v3489_v58, 4  ;;  %v4187_v20 = vrot.slane %v4185_v61, 5  ;;  %v11302_v58 = vld [vmem:[%s11664_s25 + $0x438] sm:$0xff] }
 0x1f9   : > { %6129 = vmatpush.bf16.msra.mxu0 %v11302_v58 }
 0x1fa   : > { %2495 = vmatmul.bf16.gmra.mxu1 %v9876_v15  ;;  %2913 = vmatmul.bf16.gmra.mxu2 %v2817_v4  ;;  %v3497_v15 = vrot.slane %v3495_v2, 6  ;;  %v1295_v4 = vadd.f32 %v1294_v6, %v12226_v45  ;;  %v3051_v45 = vsel %vm11907_vm5, %v9976_v29, %v3050_v13  ;;  %v12732_v17 = vadd.f32 %v12695_v16, %v2045_v55  ;;  %v11270_v2 = vld [vmem:[%s11664_s25 + $0x378] sm:$0xff]  ;;  %v3680_v13 = vld [vmem:[#allocation2 + $0x8] sm:$0xc] }
 0x1fb   : > { %v2301_v21 = vpop.f32.mrf.mxu0  ;;  %v3508_v6 = vrot.slane %v3507_v60, 4  ;;  %v3084_v46 = vunpack.c.l.b16 %v3051_v45  ;;  %5242 = vmatpush.bf16.msra.mxu1 %v11270_v2  ;;  %v4198_v55 = vrot.slane %v4196_v57, 4  ;;  %v10073_v61 = vrot.slane %v3680_v13, 10 }
 0x1fc   : > { %3187 = vmatmul.bf16.gmra.mxu3 %v3091_v37  ;;  %v4182_v37 = vshrl.u32 %v4149_v28, 16  ;;  %v3498_v31 = vor.u32 %v3497_v15, %v3494_v59  ;;  %v3681_v28 = vld [vmem:[#allocation2 + $0x10] sm:$0xc]  ;;  %v9880_v15 = vor.u32 %v11190_v54, %v9879_v11 }
 0x1fd   : > { %v1555_v3 = vpop.f32.mrf.mxu2  ;;  %v3517_v29 = vsel %vm11947_vm9, %v3508_v6, %v3516_v36  ;;  %v3092_v8 = vpack.c.b16 %v3084_v46, %v3083_v53  ;;  %v4567_v6 = vld [vmem:[#allocation2 + $0x10] sm:$0xe]  ;;  %v4568_v36 = vld [vmem:[#allocation2 + $0x18] sm:$0xe]  ;;  %v4155_v53 = vld [vmem:[#allocation2 + $0x28] sm:$0xf] }
 0x1fe   : > { %v1577_v39 = vadd.f32 %v1555_v3, %v1295_v4  ;;  %3653 = vmatmul.bf16.gmra.mxu0 %v3557_v9  ;;  %v4184_v32 = vrot.slane %v4182_v37, 4  ;;  %v3499_v16 = vsel %vm11947_vm9, %v3490_v1, %v3498_v31  ;;  %v12746_v4 = vld [vmem:[#allocation2 + $0x1c] sm:$0x1]  ;;  %v3550_v37 = vunpack.c.l.b16 %v3517_v29  ;;  %v11277_v46 = vld [vmem:[%s11664_s25 + $0x3b0] sm:$0xff] }
 0x1ff   : > { %v2024_v47 = vpop.f32.mrf.mxu3  ;;  %v1296_v50 = vpop.f32.mrf.mxu1  ;;  %v3549_v3 = vunpack.c.l.b16 %v3499_v16  ;;  %v4202_v31 = vor.u32 %v4201_v40, %v4198_v55  ;;  %v4205_v57 = vshll.u32 %v12746_v4, 16  ;;  %v4617_v29 = vrot.slane %v12736_v62, 5  ;;  %5517 = vmatpush.bf16.msra.mxu2 %v11277_v46 }
 0x200   : > { %v2046_v63 = vadd.f32 %v2024_v47, %v1577_v39  ;;  %v1297_v18 = vadd.f32 %v1296_v50, %v12253_v34  ;;  %v4188_v60 = vor.u32 %v4187_v20, %v4184_v32  ;;  %v2818_v34 = vpack.c.b16 %v2810_v52, %v2809_v24  ;;  %v11488_v39 = vld [vmem:[#allocation2 + $0xc] sm:$0x3]  ;;  %v11489_v50 = vld [vmem:[#allocation2 + $0x14] sm:$0x3]  ;;  %v4153_v32 = vld [vmem:[#allocation2 + $0x20] sm:$0xf] }
 0x201   : > { %v3730_v47 = vrot.slane %v11488_v39, 6  ;;  %v3734_v1 = vrot.slane %v11489_v50, 6  ;;  %v3558_v35 = vpack.c.b16 %v3550_v37, %v3549_v3  ;;  %v4203_v24 = vrot.slane %v4202_v31, 4 }
 0x202   : > { %v12744_v59 = vadd.f32 %v2301_v21, %v2046_v63  ;;  %v10074_v21 = vrot.slane %v3681_v28, 10  ;;  %v4189_v7 = vrot.slane %v4188_v60, 4  ;;  %v4193_v63 = vrot.slane %v4191_v5, 5 }
 0x203   : > { %v2303_v9 = vpop.f32.mrf.mxu0  ;;  %v3731_v2 = vsel %vm11954_vm11, %v10073_v61, %v3730_v47  ;;  %v4207_v52 = vrot.slane %v4205_v57, 5  ;;  %v10266_v13 = vrot.slane %v4568_v36, 9  ;;  %v4621_v40 = vrot.slane %v12746_v4, 5  ;;  %v10155_v4 = vld [vmem:[#allocation2 + $0x10] sm:$0xf] }
 0x204   : > { %v3735_v54 = vsel %vm11954_vm11, %v10074_v21, %v3734_v1  ;;  %v4194_v55 = vsel %vm11795_vm2, %v4189_v7, %v4193_v63  ;;  %v4210_v58 = vshrl.u32 %v4153_v32, 16  ;;  %v4224_v60 = vshrl.u32 %v4155_v53, 16  ;;  %v11231_v61 = vld [vmem:[#allocation2 + $0x14] sm:$0xf0]  ;;  %v12773_v63 = vld [vmem:[#allocation2 + $0x24] sm:$0x1] }
 0x205   : > { %v1557_v51 = vpop.f32.mrf.mxu2  ;;  %v4227_v5 = vshll.u32 %v4155_v53, 16  ;;  %v4208_v62 = vsel %vm11795_vm2, %v4203_v24, %v4207_v52  ;;  %v3809_v3 = vunpack.c.l.b16 %v3731_v2  ;;  %v4422_v37 = vunpack.c.l.b16 %v4194_v55  ;;  %v11301_v36 = vld [vmem:[%s11664_s25 + $0x430] sm:$0xff]  ;;  %v3682_v53 = vld [vmem:[#allocation2 + $0x18] sm:$0xc]  ;;  %v3683_v55 = vld [vmem:[#allocation2 + $0x20] sm:$0xc] }
 0x206   : > { %v1578_v22 = vadd.f32 %v1557_v51, %v1297_v18  ;;  %v10265_v18 = vrot.slane %v4567_v6, 9  ;;  %v4213_v51 = vshll.u32 %v4153_v32, 16  ;;  %v4622_v47 = vsel %vm11907_vm5, %v10266_v13, %v4621_v40  ;;  %v12775_v6 = vld [vmem:[#allocation2 + $0x2c] sm:$0x1]  ;;  %6130 = vmatpush.bf16.msra.mxu0 %v11301_v36  ;;  %v11490_v40 = vld [vmem:[#allocation2 + $0x1c] sm:$0x3] }
 0x207   : > { %v2026_v25 = vpop.f32.mrf.mxu3  ;;  %v1299_v38 = vpop.f32.mrf.mxu1  ;;  %v4226_v50 = vrot.slane %v4224_v60, 4  ;;  %v4229_v1 = vrot.slane %v4227_v5, 5  ;;  %v10156_v32 = vor.u32 %v11231_v61, %v10155_v4  ;;  %v4697_v52 = vunpack.c.l.b16 %v4622_v47  ;;  %v11491_v60 = vld [vmem:[#allocation2 + $0x24] sm:$0x3]  ;;  %v4570_v61 = vld [vmem:[#allocation2 + $0x28] sm:$0xe] }
 0x208   : > { %v2047_v45 = vadd.f32 %v2026_v25, %v1578_v22  ;;  %v1300_v20 = vadd.f32 %v1299_v38, %v12295_v43  ;;  %v11293_v22 = vld [vmem:[%s11664_s25 + $0x3f0] sm:$0xff]  ;;  %v3810_v38 = vunpack.c.l.b16 %v3735_v54  ;;  %v4618_v39 = vsel %vm11907_vm5, %v10265_v18, %v4617_v29 }
 0x209   : > { %5712 = vmatpush.bf16.msra.mxu3 %v11293_v22  ;;  %v4215_v21 = vrot.slane %v4213_v51, 5  ;;  %v4696_v24 = vunpack.c.l.b16 %v4618_v39  ;;  %v4230_v18 = vor.u32 %v4229_v1, %v4226_v50  ;;  %v4233_v29 = vshll.u32 %v12775_v6, 16  ;;  %v4157_v50 = vld [vmem:[#allocation2 + $0x30] sm:$0xf]  ;;  %v4159_v1 = vld [vmem:[#allocation2 + $0x38] sm:$0xf] }
 0x20a   : > { %2500 = vmatmul.bf16.gmra.mxu1 %v9880_v15  ;;  %2918 = vmatmul.bf16.gmra.mxu2 %v2818_v34  ;;  %v12761_v25 = vadd.f32 %v2303_v9, %v2047_v45  ;;  %v4212_v9 = vrot.slane %v4210_v58, 4  ;;  %v4423_v45 = vunpack.c.l.b16 %v4208_v62  ;;  %v3825_v2 = vpack.c.b16 %v3810_v38, %v3809_v3  ;;  %v4569_v3 = vld [vmem:[#allocation2 + $0x20] sm:$0xe] }
 0x20b   : > { %v2306_v11 = vpop.f32.mrf.mxu0  ;;  %v3738_v58 = vrot.slane %v11490_v40, 6  ;;  %v4712_v51 = vpack.c.b16 %v4697_v52, %v4696_v24  ;;  %v3742_v5 = vrot.slane %v11491_v60, 6  ;;  %v4231_v62 = vrot.slane %v4230_v18, 4  ;;  %v11300_v60 = vld [vmem:[%s11664_s25 + $0x428] sm:$0xff] }
 0x20c   : > { %3192 = vmatmul.bf16.gmra.mxu3 %v3092_v8  ;;  %v11269_v8 = vld [vmem:[%s11664_s25 + $0x370] sm:$0xff]  ;;  %v4216_v46 = vor.u32 %v4215_v21, %v4212_v9  ;;  %v10267_v21 = vrot.slane %v4569_v3, 9  ;;  %v10268_v52 = vrot.slane %v4570_v61, 9  ;;  %v4255_v18 = vshll.u32 %v4159_v1, 16  ;;  %v3684_v61 = vld [vmem:[#allocation2 + $0x28] sm:$0xc]  ;;  %6131 = vmatpush.bf16.msra.mxu0 %v11300_v60 }
 0x20d   : > { %v1560_v16 = vpop.f32.mrf.mxu2  ;;  %5243 = vmatpush.bf16.msra.mxu1 %v11269_v8  ;;  %v4235_v8 = vrot.slane %v4233_v29, 5  ;;  %v10159_v29 = vld [vmem:[#allocation2 + $0x20] sm:$0xf] }
 0x20e   : > { %v1579_v28 = vadd.f32 %v1560_v16, %v1300_v20  ;;  %3658 = vmatmul.bf16.gmra.mxu0 %v3558_v35  ;;  %v4438_v16 = vpack.c.b16 %v4423_v45, %v4422_v37  ;;  %v4217_v22 = vrot.slane %v4216_v46, 4  ;;  %v4625_v45 = vrot.slane %v12773_v63, 5 }
 0x20f   : > { %v2029_v43 = vpop.f32.mrf.mxu3  ;;  %v1301_v15 = vpop.f32.mrf.mxu1  ;;  %v4236_v36 = vsel %vm11795_vm2, %v4231_v62, %v4235_v8 }
 0x210   : > { %v2048_v34 = vadd.f32 %v2029_v43, %v1579_v28  ;;  %v1302_v57 = vadd.f32 %v1301_v15, %v12326_v42  ;;  %v4219_v42 = vshll.u32 %v12773_v63, 16  ;;  %v10075_v43 = vrot.slane %v3682_v53, 10  ;;  %v11268_v53 = vld [vmem:[%s11664_s25 + $0x368] sm:$0xff] }
 0x211   : > { %v10076_v15 = vrot.slane %v3683_v55, 10  ;;  %v4629_v63 = vrot.slane %v12775_v6, 5  ;;  %5244 = vmatpush.bf16.msra.mxu1 %v11268_v53 }
 0x212   : > { %v12770_v31 = vadd.f32 %v2306_v11, %v2048_v34  ;;  %v4221_v34 = vrot.slane %v4219_v42, 5  ;;  %v4425_v42 = vunpack.c.l.b16 %v4236_v36  ;;  %v10077_v36 = vrot.slane %v3684_v61, 10 }
 0x213   : > { %v2308_v7 = vpop.f32.mrf.mxu0  ;;  %v3743_v9 = vsel %vm11954_vm11, %v10076_v15, %v3742_v5  ;;  %v4630_v6 = vsel %vm11907_vm5, %v10268_v52, %v4629_v63  ;;  %v4257_v15 = vrot.slane %v4255_v18, 5 }
 0x215   : > { %v1562_v35 = vpop.f32.mrf.mxu2 }
 0x216   : > { %v1580_v20 = vadd.f32 %v1562_v35, %v1302_v57  ;;  %v4238_v35 = vshrl.u32 %v4157_v50, 16 }
 0x217   : > { %v2031_v54 = vpop.f32.mrf.mxu3  ;;  %v2466_v11 = vpop.f32.mrf.mxu1 }
 0x218   : > { %v2049_v13 = vadd.f32 %v2031_v54, %v1580_v20  ;;  %v2506_v28 = vadd.f32 %v2466_v11, %v12380_v30  ;;  %v3739_v30 = vsel %vm11954_vm11, %v10075_v43, %v3738_v58  ;;  %v11292_v20 = vld [vmem:[%s11664_s25 + $0x3e8] sm:$0xff]  ;;  %v4252_v11 = vshrl.u32 %v4159_v1, 16  ;;  %v12801_v58 = vld [vmem:[#allocation2 + $0x34] sm:$0x1] }
 0x219   : > { %v3811_v46 = vunpack.c.l.b16 %v3739_v30  ;;  %5713 = vmatpush.bf16.msra.mxu3 %v11292_v20  ;;  %v11493_v20 = vld [vmem:[#allocation2 + $0x34] sm:$0x3] }
 0x21a   : > { %3897 = vmatmul.bf16.vlgmr.msrb.gmra.mxu1 %v3825_v2  ;;  %4092 = vmatmul.bf16.vlgmr.msrb.gmra.mxu2 %v10156_v32  ;;  %v12781_v38 = vadd.f32 %v2308_v7, %v2049_v13  ;;  %v4222_v7 = vsel %vm11795_vm2, %v4217_v22, %v4221_v34  ;;  %v4241_v2 = vshll.u32 %v4157_v50, 16  ;;  %v11276_v32 = vld [vmem:[%s11664_s25 + $0x3a8] sm:$0xff]  ;;  %v12804_v22 = vld [vmem:[#allocation2 + $0x3c] sm:$0x1]  ;;  %v4247_v50 = vshll.u32 %v12801_v58, 16 }
 0x21b   : > { %v3624_v37 = vpop.f32.mrf.mxu0  ;;  %5518 = vmatpush.bf16.msra.mxu2 %v11276_v32  ;;  %v4424_v55 = vunpack.c.l.b16 %v4222_v7  ;;  %v11232_v13 = vld [vmem:[#allocation2 + $0x24] sm:$0xf0] }
 0x21c   : > { %4510 = vmatmul.bf16.vlgmr.msrb.gmra.mxu3 %v4438_v16  ;;  %v3812_v16 = vunpack.c.l.b16 %v3743_v9  ;;  %v4243_v43 = vrot.slane %v4241_v2, 5  ;;  %v4699_v9 = vunpack.c.l.b16 %v4630_v6  ;;  %v4249_v53 = vrot.slane %v4247_v50, 5 }
 0x21d   : > { %v2884_v4 = vpop.f32.mrf.mxu2  ;;  %v4439_v30 = vpack.c.b16 %v4425_v42, %v4424_v55  ;;  %v4637_v6 = vrot.slane %v12804_v22, 5 }
 0x21e   : > { %v2924_v39 = vadd.f32 %v2884_v4, %v2506_v28  ;;  %4784 = vmatmul.bf16.vlgmr.msrb.gmra.mxu0 %v4712_v51  ;;  %v4240_v28 = vrot.slane %v4238_v35, 4  ;;  %v4254_v51 = vrot.slane %v4252_v11, 4  ;;  %v3826_v3 = vpack.c.b16 %v3812_v16, %v3811_v46  ;;  %v11492_v35 = vld [vmem:[#allocation2 + $0x2c] sm:$0x3]  ;;  %v4572_v46 = vld [vmem:[#allocation2 + $0x38] sm:$0xe] }
 0x21f   : > { %v3158_v47 = vpop.f32.mrf.mxu3  ;;  %v2468_v57 = vpop.f32.mrf.mxu1  ;;  %v10160_v4 = vor.u32 %v11232_v13, %v10159_v29  ;;  %v3746_v2 = vrot.slane %v11492_v35, 6  ;;  %v4633_v13 = vrot.slane %v12801_v58, 5  ;;  %v11291_v58 = vld [vmem:[%s11664_s25 + $0x3e0] sm:$0xff] }
 0x220   : > { %v3198_v54 = vadd.f32 %v3158_v47, %v2924_v39  ;;  %v2507_v24 = vadd.f32 %v2468_v57, %v12436_v33  ;;  %v4626_v33 = vsel %vm11907_vm5, %v10267_v21, %v4625_v45  ;;  %v3685_v21 = vld [vmem:[#allocation2 + $0x30] sm:$0xc]  ;;  %v4244_v45 = vor.u32 %v4243_v43, %v4240_v28  ;;  %5714 = vmatpush.bf16.msra.mxu3 %v11291_v58  ;;  %v11495_v58 = vld [vmem:[#allocation2 + $0x44] sm:$0x3] }
 0x221   : > { %v4698_v47 = vunpack.c.l.b16 %v4626_v33  ;;  %v4258_v7 = vor.u32 %v4257_v15, %v4254_v51  ;;  %v10078_v32 = vrot.slane %v3685_v21, 10  ;;  %v3747_v18 = vsel %vm11954_vm11, %v10077_v36, %v3746_v2  ;;  %v4161_v51 = vld [vmem:[#allocation2 + $0x40] sm:$0xf]  ;;  %v4163_v15 = vld [vmem:[#allocation2 + $0x48] sm:$0xf] }
 0x222   : > { %v12806_v34 = vadd.f32 %v3624_v37, %v3198_v54  ;;  %v4261_v37 = vshll.u32 %v12804_v22, 16  ;;  %v3750_v54 = vrot.slane %v11493_v20, 6  ;;  %v4245_v63 = vrot.slane %v4244_v45, 4  ;;  %v10163_v21 = vld [vmem:[#allocation2 + $0x30] sm:$0xf] }
 0x223   : > { %v3626_v40 = vpop.f32.mrf.mxu0  ;;  %v4713_v52 = vpack.c.b16 %v4699_v9, %v4698_v47  ;;  %v4259_v16 = vrot.slane %v4258_v7, 4  ;;  %v3813_v47 = vunpack.c.l.b16 %v3747_v18  ;;  %v4280_v9 = vshrl.u32 %v4163_v15, 16  ;;  %v11233_v45 = vld [vmem:[#allocation2 + $0x34] sm:$0xf0]  ;;  %v12833_v20 = vld [vmem:[#allocation2 + $0x4c] sm:$0x1] }
 0x224   : > { %v4263_v55 = vrot.slane %v4261_v37, 5  ;;  %v3751_v33 = vsel %vm11954_vm11, %v10078_v32, %v3750_v54  ;;  %v12831_v37 = vld [vmem:[#allocation2 + $0x44] sm:$0x1] }
 0x225   : > { %v2886_v5 = vpop.f32.mrf.mxu2  ;;  %v3814_v22 = vunpack.c.l.b16 %v3751_v33  ;;  %v4282_v2 = vrot.slane %v4280_v9, 4  ;;  %v3687_v33 = vld [vmem:[#allocation2 + $0x40] sm:$0xc] }
 0x226   : > { %v2925_v62 = vadd.f32 %v2886_v5, %v2507_v24  ;;  %v4571_v24 = vld [vmem:[#allocation2 + $0x30] sm:$0xe]  ;;  %v4250_v5 = vsel %vm11795_vm2, %v4245_v63, %v4249_v53  ;;  %v4264_v61 = vsel %vm11795_vm2, %v4259_v16, %v4263_v55  ;;  %v10164_v53 = vor.u32 %v11233_v45, %v10163_v21  ;;  %v4574_v45 = vld [vmem:[#allocation2 + $0x48] sm:$0xe] }
 0x227   : > { %v3160_v8 = vpop.f32.mrf.mxu3  ;;  %v2471_v39 = vpop.f32.mrf.mxu1  ;;  %v10269_v29 = vrot.slane %v4571_v24, 9  ;;  %v4426_v50 = vunpack.c.l.b16 %v4250_v5  ;;  %v4427_v7 = vunpack.c.l.b16 %v4264_v61  ;;  %v11299_v24 = vld [vmem:[%s11664_s25 + $0x420] sm:$0xff]  ;;  %v3827_v63 = vpack.c.b16 %v3814_v22, %v3813_v47  ;;  %v11494_v5 = vld [vmem:[#allocation2 + $0x3c] sm:$0x3] }
 0x228   : > { %v3199_v1 = vadd.f32 %v3160_v8, %v2925_v62  ;;  %v2508_v57 = vadd.f32 %v2471_v39, %v12445_v41  ;;  %v4266_v62 = vshrl.u32 %v4161_v51, 16  ;;  %v4269_v8 = vshll.u32 %v4161_v51, 16  ;;  %v11267_v39 = vld [vmem:[%s11664_s25 + $0x360] sm:$0xff]  ;;  %6132 = vmatpush.bf16.msra.mxu0 %v11299_v24 }
 0x229   : > { %5245 = vmatpush.bf16.msra.mxu1 %v11267_v39  ;;  %v4289_v51 = vshll.u32 %v12833_v20, 16  ;;  %v4573_v22 = vld [vmem:[#allocation2 + $0x40] sm:$0xe] }
 0x22a   : > { %3902 = vmatmul.bf16.gmra.mxu1 %v3826_v3  ;;  %4097 = vmatmul.bf16.gmra.mxu2 %v10160_v4  ;;  %v12811_v11 = vadd.f32 %v3626_v40, %v3199_v1  ;;  %v10270_v40 = vrot.slane %v4572_v46, 9  ;;  %v11275_v3 = vld [vmem:[%s11664_s25 + $0x3a0] sm:$0xff]  ;;  %v4634_v1 = vsel %vm11907_vm5, %v10269_v29, %v4633_v13  ;;  %v4268_v36 = vrot.slane %v4266_v62, 4  ;;  %v3686_v29 = vld [vmem:[#allocation2 + $0x38] sm:$0xc] }
 0x22b   : > { %v3629_v41 = vpop.f32.mrf.mxu0  ;;  %5519 = vmatpush.bf16.msra.mxu2 %v11275_v3  ;;  %v4271_v35 = vrot.slane %v4269_v8, 5  ;;  %v4275_v13 = vshll.u32 %v12831_v37, 16  ;;  %v3754_v62 = vrot.slane %v11494_v5, 6  ;;  %v10080_v3 = vrot.slane %v3687_v33, 10  ;;  %v10167_v33 = vld [vmem:[#allocation2 + $0x40] sm:$0xf] }
 0x22c   : > { %4515 = vmatmul.bf16.gmra.mxu3 %v4439_v30  ;;  %v4291_v47 = vrot.slane %v4289_v51, 5 }
 0x22d   : > { %v2889_v42 = vpop.f32.mrf.mxu2 }
 0x22e   : > { %v2926_v28 = vadd.f32 %v2889_v42, %v2508_v57  ;;  %4789 = vmatmul.bf16.gmra.mxu0 %v4713_v52  ;;  %v4638_v57 = vsel %vm11907_vm5, %v10270_v40, %v4637_v6  ;;  %v4700_v42 = vunpack.c.l.b16 %v4634_v1  ;;  %v4272_v40 = vor.u32 %v4271_v35, %v4268_v36  ;;  %v4165_v35 = vld [vmem:[#allocation2 + $0x70] sm:$0xf] }
 0x22f   : > { %v3163_v43 = vpop.f32.mrf.mxu3  ;;  %v2473_v60 = vpop.f32.mrf.mxu1  ;;  %v4701_v18 = vunpack.c.l.b16 %v4638_v57  ;;  %v4641_v36 = vrot.slane %v12831_v37, 5  ;;  %v4297_v37 = vshll.u32 %v4165_v35, 16 }
 0x230   : > { %v3200_v4 = vadd.f32 %v3163_v43, %v2926_v28  ;;  %v2509_v30 = vadd.f32 %v2473_v60, %v12511_v14  ;;  %v4283_v14 = vshll.u32 %v4163_v15, 16  ;;  %v4440_v43 = vpack.c.b16 %v4427_v7, %v4426_v50 }
 0x231   : > { %v4714_v8 = vpack.c.b16 %v4701_v18, %v4700_v42  ;;  %v4273_v61 = vrot.slane %v4272_v40, 4  ;;  %v10271_v7 = vrot.slane %v4573_v22, 9  ;;  %v4294_v18 = vshrl.u32 %v4165_v35, 16 }
 0x232   : > { %v4285_v54 = vrot.slane %v4283_v14, 5  ;;  %v12836_v46 = vadd.f32 %v3629_v41, %v3200_v4  ;;  %v10079_v41 = vrot.slane %v3686_v29, 10  ;;  %v3758_v4 = vrot.slane %v11495_v58, 6  ;;  %v11266_v29 = vld [vmem:[%s11664_s25 + $0x358] sm:$0xff] }
 0x233   : > { %v3631_v32 = vpop.f32.mrf.mxu0  ;;  %5246 = vmatpush.bf16.msra.mxu1 %v11266_v29 }
 0x234   : > { %v4286_v6 = vor.u32 %v4285_v54, %v4282_v2  ;;  %v3755_v50 = vsel %vm11954_vm11, %v10079_v41, %v3754_v62  ;;  %v3759_v14 = vsel %vm11954_vm11, %v10080_v3, %v3758_v4  ;;  %v4167_v2 = vld [vmem:[#allocation2 + $0x78] sm:$0xf]  ;;  %v12863_v41 = vld [vmem:[#allocation2 + $0x7c] sm:$0x1]  ;;  %v4296_v62 = vrot.slane %v4294_v18, 4 }
 0x235   : > { %v2891_v52 = vpop.f32.mrf.mxu2  ;;  %v4311_v40 = vshll.u32 %v4167_v2, 16  ;;  %v11298_v4 = vld [vmem:[%s11664_s25 + $0x418] sm:$0xff]  ;;  %v4317_v35 = vshll.u32 %v12863_v41, 16  ;;  %v4575_v18 = vld [vmem:[#allocation2 + $0x70] sm:$0xe] }
 0x236   : > { %v2927_v16 = vadd.f32 %v2891_v52, %v2509_v30  ;;  %v4277_v30 = vrot.slane %v4275_v13, 5  ;;  %v4287_v39 = vrot.slane %v4286_v6, 4  ;;  %v10272_v52 = vrot.slane %v4574_v45, 9  ;;  %v11234_v6 = vld [vmem:[#allocation2 + $0x44] sm:$0xf0]  ;;  %6133 = vmatpush.bf16.msra.mxu0 %v11298_v4 }
 0x237   : > { %v3165_v55 = vpop.f32.mrf.mxu3  ;;  %v2476_v28 = vpop.f32.mrf.mxu1  ;;  %v4308_v13 = vshrl.u32 %v4167_v2, 16  ;;  %v4313_v58 = vrot.slane %v4311_v40, 5  ;;  %v10168_v45 = vor.u32 %v11234_v6, %v10167_v33  ;;  %v4576_v33 = vld [vmem:[#allocation2 + $0x78] sm:$0xe]  ;;  %v4653_v4 = vrot.slane %v12863_v41, 5 }
 0x238   : > { %v3201_v15 = vadd.f32 %v3165_v55, %v2927_v16  ;;  %v2510_v60 = vadd.f32 %v2476_v28, %v12578_v48  ;;  %v4278_v54 = vsel %vm11795_vm2, %v4273_v61, %v4277_v30  ;;  %v4292_v24 = vsel %vm11795_vm2, %v4287_v39, %v4291_v47  ;;  %v11290_v16 = vld [vmem:[%s11664_s25 + $0x3d8] sm:$0xff]  ;;  %v12887_v41 = vld [vmem:[#allocation2 + $0x84] sm:$0x1] }
 0x239   : > { %5715 = vmatpush.bf16.msra.mxu3 %v11290_v16  ;;  %v3815_v28 = vunpack.c.l.b16 %v3755_v50  ;;  %v4428_v51 = vunpack.c.l.b16 %v4278_v54  ;;  %v4310_v3 = vrot.slane %v4308_v13, 4  ;;  %v3688_v50 = vld [vmem:[#allocation2 + $0x68] sm:$0xc]  ;;  %v11497_v16 = vld [vmem:[#allocation2 + $0x74] sm:$0x3] }
 0x23a   : > { %3907 = vmatmul.bf16.gmra.mxu1 %v3827_v63  ;;  %4102 = vmatmul.bf16.gmra.mxu2 %v10164_v53  ;;  %v12841_v9 = vadd.f32 %v3631_v32, %v3201_v15  ;;  %v4645_v63 = vrot.slane %v12833_v20, 5  ;;  %v11274_v53 = vld [vmem:[%s11664_s25 + $0x398] sm:$0xff]  ;;  %v4429_v20 = vunpack.c.l.b16 %v4292_v24  ;;  %v4642_v15 = vsel %vm11907_vm5, %v10271_v7, %v4641_v36  ;;  %v3689_v7 = vld [vmem:[#allocation2 + $0x70] sm:$0xc] }
 0x23b   : > { %v3634_v21 = vpop.f32.mrf.mxu0  ;;  %5520 = vmatpush.bf16.msra.mxu2 %v11274_v53  ;;  %v4314_v54 = vor.u32 %v4313_v58, %v4310_v3  ;;  %v10081_v24 = vrot.slane %v3688_v50, 10  ;;  %v10082_v53 = vrot.slane %v3689_v7, 10  ;;  %v10274_v58 = vrot.slane %v4576_v33, 9  ;;  %v10171_v7 = vld [vmem:[#allocation2 + $0x70] sm:$0xf] }
 0x23c   : > { %4520 = vmatmul.bf16.gmra.mxu3 %v4440_v43  ;;  %v3816_v43 = vunpack.c.l.b16 %v3759_v14 }
 0x23d   : > { %v2894_v48 = vpop.f32.mrf.mxu2 }
 0x23e   : > { %v2928_v1 = vadd.f32 %v2894_v48, %v2510_v60  ;;  %4794 = vmatmul.bf16.gmra.mxu0 %v4714_v8  ;;  %v12861_v60 = vld [vmem:[#allocation2 + $0x74] sm:$0x1]  ;;  %v4299_v8 = vrot.slane %v4297_v37, 5  ;;  %v3828_v22 = vpack.c.b16 %v3816_v43, %v3815_v28  ;;  %v4702_v48 = vunpack.c.l.b16 %v4642_v15 }
 0x23f   : > { %v3168_v57 = vpop.f32.mrf.mxu3  ;;  %v2478_v32 = vpop.f32.mrf.mxu1  ;;  %v4303_v36 = vshll.u32 %v12861_v60, 16  ;;  %v4315_v43 = vrot.slane %v4314_v54, 4 }
 0x240   : > { %v3202_v55 = vadd.f32 %v3168_v57, %v2928_v1  ;;  %v2511_v42 = vadd.f32 %v2478_v32, %v12634_v56  ;;  %v4646_v56 = vsel %vm11907_vm5, %v10272_v52, %v4645_v63  ;;  %v4441_v57 = vpack.c.b16 %v4429_v20, %v4428_v51  ;;  %v11496_v52 = vld [vmem:[#allocation2 + $0x6c] sm:$0x3] }
 0x241   : > { %v4703_v14 = vunpack.c.l.b16 %v4646_v56  ;;  %v3762_v63 = vrot.slane %v11496_v52, 6  ;;  %v4305_v28 = vrot.slane %v4303_v36, 5  ;;  %v10273_v56 = vrot.slane %v4575_v18, 9  ;;  %v11235_v36 = vld [vmem:[#allocation2 + $0x74] sm:$0xf0] }
 0x242   : > { %v12866_v61 = vadd.f32 %v3634_v21, %v3202_v55  ;;  %v4300_v21 = vor.u32 %v4299_v8, %v4296_v62  ;;  %v3766_v55 = vrot.slane %v11497_v16, 6  ;;  %v4169_v62 = vld [vmem:[#allocation2 + $0x80] sm:$0xf]  ;;  %v4171_v8 = vld [vmem:[#allocation2 + $0x88] sm:$0xf]  ;;  %v4654_v16 = vsel %vm11907_vm5, %v10274_v58, %v4653_v4 }
 0x243   : > { %v3636_v5 = vpop.f32.mrf.mxu0  ;;  %v3763_v6 = vsel %vm11954_vm11, %v10081_v24, %v3762_v63  ;;  %v12889_v24 = vld [vmem:[#allocation2 + $0x8c] sm:$0x1] }
 0x244   : > { %v4301_v13 = vrot.slane %v4300_v21, 4  ;;  %v3767_v15 = vsel %vm11954_vm11, %v10082_v53, %v3766_v55 }
 0x245   : > { %v2896_v30 = vpop.f32.mrf.mxu2 }
 0x246   : > { %v2929_v39 = vadd.f32 %v2896_v30, %v2511_v42  ;;  %v4715_v42 = vpack.c.b16 %v4703_v14, %v4702_v48  ;;  %v4322_v30 = vshrl.u32 %v4169_v62, 16  ;;  %v4306_v50 = vsel %vm11795_vm2, %v4301_v13, %v4305_v28 }
 0x247   : > { %v3170_v47 = vpop.f32.mrf.mxu3  ;;  %v2481_v1 = vpop.f32.mrf.mxu1  ;;  %v3818_v14 = vunpack.c.l.b16 %v3767_v15  ;;  %v4430_v21 = vunpack.c.l.b16 %v4306_v50  ;;  %v10172_v28 = vor.u32 %v11235_v36, %v10171_v7 }
 0x248   : > { %v3203_v2 = vadd.f32 %v3170_v47, %v2929_v39  ;;  %v2512_v32 = vadd.f32 %v2481_v1, %v12688_v49  ;;  %v4319_v49 = vrot.slane %v4317_v35, 5  ;;  %v4325_v39 = vshll.u32 %v4169_v62, 16  ;;  %v11273_v47 = vld [vmem:[%s11664_s25 + $0x390] sm:$0xff] }
 0x249   : > { %v11265_v1 = vld [vmem:[%s11664_s25 + $0x350] sm:$0xff]  ;;  %v4336_v35 = vshrl.u32 %v4171_v8, 16  ;;  %5521 = vmatpush.bf16.msra.mxu2 %v11273_v47 }
 0x24a   : > { %3912 = vmatmul.bf16.gmra.mxu1 %v3828_v22  ;;  %4107 = vmatmul.bf16.gmra.mxu2 %v10168_v45  ;;  %v12871_v37 = vadd.f32 %v3636_v5, %v3203_v2  ;;  %v4649_v5 = vrot.slane %v12861_v60, 5  ;;  %v11289_v22 = vld [vmem:[%s11664_s25 + $0x3d0] sm:$0xff]  ;;  %v4320_v60 = vsel %vm11795_vm2, %v4315_v43, %v4319_v49  ;;  %v4324_v2 = vrot.slane %v4322_v30, 4  ;;  %v3690_v43 = vld [vmem:[#allocation2 + $0x78] sm:$0xc] }
 0x24b   : > { %v3639_v29 = vpop.f32.mrf.mxu0  ;;  %5716 = vmatpush.bf16.msra.mxu3 %v11289_v22  ;;  %5247 = vmatpush.bf16.msra.mxu1 %v11265_v1  ;;  %v4431_v54 = vunpack.c.l.b16 %v4320_v60  ;;  %v4338_v52 = vrot.slane %v4336_v35, 4  ;;  %v4331_v49 = vshll.u32 %v12887_v41, 16  ;;  %v10083_v30 = vrot.slane %v3690_v43, 10  ;;  %v11499_v22 = vld [vmem:[#allocation2 + $0x84] sm:$0x3] }
 0x24c   : > { %4525 = vmatmul.bf16.gmra.mxu3 %v4441_v57  ;;  %v3817_v57 = vunpack.c.l.b16 %v3763_v6  ;;  %v4650_v53 = vsel %vm11907_vm5, %v10273_v56, %v4649_v5  ;;  %v4345_v56 = vshll.u32 %v12889_v24, 16 }
 0x24d   : > { %v2899_v40 = vpop.f32.mrf.mxu2  ;;  %v4442_v62 = vpack.c.b16 %v4431_v54, %v4430_v21  ;;  %v4333_v60 = vrot.slane %v4331_v49, 5 }
 0x24e   : > { %v2930_v51 = vadd.f32 %v2899_v40, %v2512_v32  ;;  %4799 = vmatmul.bf16.gmra.mxu0 %v4715_v42  ;;  %v4327_v32 = vrot.slane %v4325_v39, 5  ;;  %v11297_v42 = vld [vmem:[%s11664_s25 + $0x410] sm:$0xff]  ;;  %v3829_v13 = vpack.c.b16 %v3818_v14, %v3817_v57  ;;  %v11498_v39 = vld [vmem:[#allocation2 + $0x7c] sm:$0x3]  ;;  %v4347_v57 = vrot.slane %v4345_v56, 5 }
 0x24f   : > { %v3173_v20 = vpop.f32.mrf.mxu3  ;;  %v2483_v3 = vpop.f32.mrf.mxu1  ;;  %6134 = vmatpush.bf16.msra.mxu0 %v11297_v42  ;;  %v3770_v47 = vrot.slane %v11498_v39, 6  ;;  %v4578_v14 = vld [vmem:[#allocation2 + $0x88] sm:$0xe]  ;;  %v4173_v42 = vld [vmem:[#allocation2 + $0x90] sm:$0xf] }
 0x250   : > { %v3204_v45 = vadd.f32 %v3173_v20, %v2930_v51  ;;  %v2513_v48 = vadd.f32 %v2483_v3, %v12692_v12  ;;  %v4339_v12 = vshll.u32 %v4171_v8, 16  ;;  %v3691_v51 = vld [vmem:[#allocation2 + $0x80] sm:$0xc]  ;;  %v4328_v20 = vor.u32 %v4327_v32, %v4324_v2  ;;  %v3693_v56 = vld [vmem:[#allocation2 + $0x90] sm:$0xc] }
 0x251   : > { %v4704_v8 = vunpack.c.l.b16 %v4650_v53  ;;  %v4705_v3 = vunpack.c.l.b16 %v4654_v16  ;;  %v4657_v32 = vrot.slane %v12887_v41, 5  ;;  %v10276_v54 = vrot.slane %v4578_v14, 9  ;;  %v4175_v41 = vld [vmem:[#allocation2 + $0x98] sm:$0xf] }
 0x252   : > { %v4341_v55 = vrot.slane %v4339_v12, 5  ;;  %v12897_v33 = vadd.f32 %v3639_v29, %v3204_v45  ;;  %v10084_v29 = vrot.slane %v3691_v51, 10  ;;  %v3774_v45 = vrot.slane %v11499_v22, 6 }
 0x253   : > { %v3641_v63 = vpop.f32.mrf.mxu0  ;;  %v4329_v50 = vrot.slane %v4328_v20, 4  ;;  %v4716_v7 = vpack.c.b16 %v4705_v3, %v4704_v8  ;;  %v4350_v43 = vshrl.u32 %v4173_v42, 16  ;;  %v4353_v49 = vshll.u32 %v4173_v42, 16  ;;  %v11236_v8 = vld [vmem:[#allocation2 + $0x84] sm:$0xf0] }
 0x254   : > { %v4342_v15 = vor.u32 %v4341_v55, %v4338_v52  ;;  %v3775_v21 = vsel %vm11954_vm11, %v10084_v29, %v3774_v45  ;;  %v4661_v52 = vrot.slane %v12889_v24, 5  ;;  %v11501_v29 = vld [vmem:[#allocation2 + $0x94] sm:$0x3]  ;;  %v4367_v45 = vshll.u32 %v4175_v41, 16 }
 0x255   : > { %v2901_v18 = vpop.f32.mrf.mxu2  ;;  %v3820_v20 = vunpack.c.l.b16 %v3775_v21  ;;  %v3782_v22 = vrot.slane %v11501_v29, 6 }
 0x256   : > { %v2931_v40 = vadd.f32 %v2901_v18, %v2513_v48  ;;  %v4577_v48 = vld [vmem:[#allocation2 + $0x80] sm:$0xe]  ;;  %v4343_v1 = vrot.slane %v4342_v15, 4 }
 0x257   : > { %v3175_v6 = vpop.f32.mrf.mxu3  ;;  %v2486_v5 = vpop.f32.mrf.mxu1  ;;  %v10275_v2 = vrot.slane %v4577_v48, 9  ;;  %v10086_v48 = vrot.slane %v3693_v56, 10  ;;  %v12932_v56 = vld [vmem:[#allocation2 + $0x90] sm:$0xf] }
 0x258   : > { %v3205_v58 = vadd.f32 %v3175_v6, %v2931_v40  ;;  %v2514_v4 = vadd.f32 %v2486_v5, %v12718_v26  ;;  %v3771_v26 = vsel %vm11954_vm11, %v10083_v30, %v3770_v47  ;;  %v4348_v55 = vsel %vm11795_vm2, %v4343_v1, %v4347_v57  ;;  %v11272_v40 = vld [vmem:[%s11664_s25 + $0x388] sm:$0xff] }
 0x259   : > { %v11288_v6 = vld [vmem:[%s11664_s25 + $0x3c8] sm:$0xff]  ;;  %v4658_v15 = vsel %vm11907_vm5, %v10275_v2, %v4657_v32  ;;  %v4364_v30 = vshrl.u32 %v4175_v41, 16  ;;  %5522 = vmatpush.bf16.msra.mxu2 %v11272_v40  ;;  %v4355_v1 = vrot.slane %v4353_v49, 5  ;;  %v4369_v2 = vrot.slane %v4367_v45, 5 }
 0x25a   : > { %3917 = vmatmul.bf16.gmra.mxu1 %v3829_v13  ;;  %4112 = vmatmul.bf16.gmra.mxu2 %v10172_v28  ;;  %v12901_v36 = vadd.f32 %v3641_v63, %v3205_v58  ;;  %v4334_v63 = vsel %vm11795_vm2, %v4329_v50, %v4333_v60  ;;  %v3819_v13 = vunpack.c.l.b16 %v3771_v26  ;;  %v3692_v28 = vld [vmem:[#allocation2 + $0x88] sm:$0xc]  ;;  %v4433_v58 = vunpack.c.l.b16 %v4348_v55  ;;  %v11500_v47 = vld [vmem:[#allocation2 + $0x8c] sm:$0x3]  ;;  %v12921_v50 = vld [vmem:[#allocation2 + $0x94] sm:$0x1] }
 0x25b   : > { %v3644_v35 = vpop.f32.mrf.mxu0  ;;  %v11264_v5 = vld [vmem:[%s11664_s25 + $0x348] sm:$0xff]  ;;  %v4432_v3 = vunpack.c.l.b16 %v4334_v63  ;;  %5717 = vmatpush.bf16.msra.mxu3 %v11288_v6  ;;  %v10085_v39 = vrot.slane %v3692_v28, 10  ;;  %v4352_v60 = vrot.slane %v4350_v43, 4  ;;  %v4366_v57 = vrot.slane %v4364_v30, 4  ;;  %v4176_v26 = vld [vmem:[#allocation2 + $0x9c] sm:$0x1] }
 0x25c   : > { %4530 = vmatmul.bf16.gmra.mxu3 %v4442_v62  ;;  %v10175_v62 = vld [vmem:[#allocation2 + $0x80] sm:$0xf]  ;;  %5248 = vmatpush.bf16.msra.mxu1 %v11264_v5  ;;  %v11296_v32 = vld [vmem:[%s11664_s25 + $0x408] sm:$0xff]  ;;  %v3830_v21 = vpack.c.b16 %v3820_v20, %v3819_v13  ;;  %v4359_v41 = vshll.u32 %v12921_v50, 16  ;;  %v3783_v28 = vsel %vm11954_vm11, %v10086_v48, %v3782_v22  ;;  %v4373_v13 = vshll.u32 %v4176_v26, 16 }
 0x25d   : > { %v2904_v12 = vpop.f32.mrf.mxu2  ;;  %v4443_v55 = vpack.c.b16 %v4433_v58, %v4432_v3  ;;  %6135 = vmatpush.bf16.msra.mxu0 %v11296_v32  ;;  %v4356_v43 = vor.u32 %v4355_v1, %v4352_v60  ;;  %v4370_v49 = vor.u32 %v4369_v2, %v4366_v57  ;;  %v4579_v6 = vld [vmem:[#allocation2 + $0x90] sm:$0xe]  ;;  %v4177_v1 = vld [vmem:[#allocation2 + $0xa0] sm:$0xf]  ;;  %v4179_v57 = vld [vmem:[#allocation2 + $0xa8] sm:$0xf] }
 0x25e   : > { %v2932_v53 = vadd.f32 %v2904_v12, %v2514_v4  ;;  %4804 = vmatmul.bf16.gmra.mxu0 %v4716_v7  ;;  %v4662_v4 = vsel %vm11907_vm5, %v10276_v54, %v4661_v52  ;;  %v10176_v7 = vor.u32 %v11236_v8, %v10175_v62  ;;  %v4706_v54 = vunpack.c.l.b16 %v4658_v15  ;;  %v12934_v62 = vld [vmem:[#allocation2 + $0x94] sm:$0xf0] }
 0x25f   : > { %v3178_v16 = vpop.f32.mrf.mxu3  ;;  %v2488_v18 = vpop.f32.mrf.mxu1  ;;  %v4707_v52 = vunpack.c.l.b16 %v4662_v4  ;;  %v3822_v15 = vunpack.c.l.b16 %v3783_v28  ;;  %v4361_v5 = vrot.slane %v4359_v41, 5  ;;  %v4357_v8 = vrot.slane %v4356_v43, 4  ;;  %v11263_v41 = vld [vmem:[%s11664_s25 + $0x340] sm:$0xff] }
 0x260   : > { %v3206_v24 = vadd.f32 %v3178_v16, %v2932_v53  ;;  %v2515_v51 = vadd.f32 %v2488_v18, %v12724_v27  ;;  %v3778_v27 = vrot.slane %v11500_v47, 6  ;;  %v4371_v3 = vrot.slane %v4370_v49, 4  ;;  %5249 = vmatpush.bf16.msra.mxu1 %v11263_v41 }
 0x261   : > { %v4375_v58 = vrot.slane %v4373_v13, 5  ;;  %v10180_v60 = vor.u32 %v12934_v62, %v12932_v56  ;;  %v4378_v2 = vshrl.u32 %v4177_v1, 16  ;;  %v4381_v32 = vshll.u32 %v4177_v1, 16  ;;  %v12989_v56 = vld [vmem:[#allocation2 + $0x14] sm:$0x3] }
 0x262   : > { %v12924_v53 = vadd.f32 %v3644_v35, %v3206_v24  ;;  %v3779_v42 = vsel %vm11954_vm11, %v10085_v39, %v3778_v27  ;;  %v4580_v24 = vld [vmem:[#allocation2 + $0x98] sm:$0xe]  ;;  %v4665_v39 = vrot.slane %v12921_v50, 5  ;;  %v4669_v27 = vrot.slane %v4176_v26, 5  ;;  %v12991_v62 = vld [vmem:[#allocation2 + $0x1c] sm:$0x3] }
 0x263   : > { %v3646_v14 = vpop.f32.mrf.mxu0  ;;  %v3821_v20 = vunpack.c.l.b16 %v3779_v42  ;;  %v10278_v47 = vrot.slane %v4580_v24, 9  ;;  %v4362_v50 = vsel %vm11795_vm2, %v4357_v8, %v4361_v5  ;;  %v3694_v26 = vld [vmem:[#allocation2 + $0x98] sm:$0xc]  ;;  %v4178_v42 = vld [vmem:[#allocation2 + $0xa4] sm:$0x1]  ;;  %v4380_v43 = vrot.slane %v4378_v2, 4 }
 0x264   : > { %v4383_v49 = vrot.slane %v4381_v32, 5  ;;  %v4392_v13 = vshrl.u32 %v4179_v57, 16  ;;  %v10087_v5 = vrot.slane %v3694_v26, 10 }
 0x265   : > { %v2906_v12 = vpop.f32.mrf.mxu2  ;;  %v12939_v48 = vpack.c.b16 %v3822_v15, %v3821_v20  ;;  %v4395_v20 = vshll.u32 %v4179_v57, 16  ;;  %v4582_v15 = vld [vmem:[#allocation2 + $0xa8] sm:$0xe] }
 0x266   : > { %v2933_v16 = vadd.f32 %v2906_v12, %v2515_v51  ;;  %v4717_v51 = vpack.c.b16 %v4707_v52, %v4706_v54  ;;  %v11271_v12 = vld [vmem:[%s11664_s25 + $0x380] sm:$0xff] }
 0x267   : > { %v3180_v63 = vpop.f32.mrf.mxu3  ;;  %v2491_v18 = vpop.f32.mrf.mxu1  ;;  %5523 = vmatpush.bf16.msra.mxu2 %v11271_v12 }
 0x268   : > { %v3207_v40 = vadd.f32 %v3180_v63, %v2933_v16  ;;  %v2516_v35 = vadd.f32 %v2491_v18, %v12728_v19  ;;  %v10277_v19 = vrot.slane %v4579_v6, 9  ;;  %v4670_v63 = vsel %vm11907_vm5, %v10278_v47, %v4669_v27  ;;  %v11502_v18 = vld [vmem:[#allocation2 + $0x9c] sm:$0x3] }
 0x269   : > { %v3786_v28 = vrot.slane %v11502_v18, 6  ;;  %v4397_v47 = vrot.slane %v4395_v20, 5  ;;  %v4709_v12 = vunpack.c.l.b16 %v4670_v63 }
 0x26a   : > { %3922 = vmatmul.bf16.gmra.mxu1 %v3830_v21  ;;  %4117 = vmatmul.bf16.gmra.mxu2 %v10176_v7  ;;  %v12936_v4 = vadd.f32 %v3646_v14, %v3207_v40  ;;  %v4376_v7 = vsel %vm11795_vm2, %v4371_v3, %v4375_v58  ;;  %v11287_v21 = vld [vmem:[%s11664_s25 + $0x3c0] sm:$0xff]  ;;  %v4666_v16 = vsel %vm11907_vm5, %v10277_v19, %v4665_v39  ;;  %v4387_v3 = vshll.u32 %v4178_v42, 16 }
 0x26b   : > { %v3649_v30 = vpop.f32.mrf.mxu0  ;;  %v4581_v40 = vld [vmem:[#allocation2 + $0xa0] sm:$0xe]  ;;  %5718 = vmatpush.bf16.msra.mxu3 %v11287_v21  ;;  %v4435_v6 = vunpack.c.l.b16 %v4376_v7  ;;  %v4394_v58 = vrot.slane %v4392_v13, 4  ;;  %v4384_v39 = vor.u32 %v4383_v49, %v4380_v43  ;;  %v4708_v32 = vunpack.c.l.b16 %v4666_v16 }
 0x26c   : > { %4535 = vmatmul.bf16.gmra.mxu3 %v4443_v55  ;;  %v3695_v55 = vld [vmem:[#allocation2 + $0xa0] sm:$0xc]  ;;  %v10279_v27 = vrot.slane %v4581_v40, 9  ;;  %v12960_v41 = vsel %vm11954_vm11, %v10087_v5, %v3786_v28  ;;  %v4389_v18 = vrot.slane %v4387_v3, 5  ;;  %v4867_v5 = vshrl.u32 %v12989_v56, 16 }
 0x26d   : > { %v2909_v29 = vpop.f32.mrf.mxu2  ;;  %v10088_v8 = vrot.slane %v3695_v55, 10  ;;  %v4398_v26 = vor.u32 %v4397_v47, %v4394_v58  ;;  %v4718_v28 = vpack.c.b16 %v4709_v12, %v4708_v32  ;;  %v11505_v3 = vld [vmem:[#allocation2 + $0x18] sm:$0xe] }
 0x26e   : > { %v2934_v22 = vadd.f32 %v2909_v29, %v2516_v35  ;;  %4809 = vmatmul.bf16.gmra.mxu0 %v4717_v51  ;;  %v4434_v35 = vunpack.c.l.b16 %v4362_v50  ;;  %v4180_v51 = vld [vmem:[#allocation2 + $0xac] sm:$0x1]  ;;  %v4673_v29 = vrot.slane %v4178_v42, 5  ;;  %v4876_v58 = vshrl.u32 %v11505_v3, 16 }
 0x26f   : > { %v3183_v45 = vpop.f32.mrf.mxu3  ;;  %v2493_v14 = vpop.f32.mrf.mxu1  ;;  %v4401_v1 = vshll.u32 %v4180_v51, 16  ;;  %v4677_v50 = vrot.slane %v4180_v51, 5  ;;  %v4399_v16 = vrot.slane %v4398_v26, 4 }
 0x270   : > { %v3208_v54 = vadd.f32 %v3183_v45, %v2934_v22  ;;  %v2517_v52 = vadd.f32 %v2493_v14, %v12732_v17  ;;  %v11503_v17 = vld [vmem:[#allocation2 + $0xa4] sm:$0x3]  ;;  %v10280_v14 = vrot.slane %v4582_v15, 9  ;;  %v4444_v55 = vpack.c.b16 %v4435_v6, %v4434_v35 }
 0x271   : > { %v3790_v24 = vrot.slane %v11503_v17, 6  ;;  %v11295_v22 = vld [vmem:[%s11664_s25 + $0x400] sm:$0xff]  ;;  %v4403_v63 = vrot.slane %v4401_v1, 5 }
 0x272   : > { %v12956_v7 = vadd.f32 %v3649_v30, %v3208_v54  ;;  %6136 = vmatpush.bf16.msra.mxu0 %v11295_v22  ;;  %v4385_v54 = vrot.slane %v4384_v39, 4  ;;  %v12973_v49 = vsel %vm11907_vm5, %v10280_v14, %v4677_v50  ;;  %v4879_v22 = vshll.u32 %v11505_v3, 16  ;;  %v12998_v1 = vld [vmem:[#allocation2 + $0xa0] sm:$0xf]  ;;  %v5777_v3 = vld [vmem:[#allocation2 + $0x1c] sm:$0x1] }
 0x273   : > { %v3651_v19 = vpop.f32.mrf.mxu0  ;;  %v12964_v42 = vsel %vm11954_vm11, %v10088_v8, %v3790_v24  ;;  %v4711_v17 = vunpack.c.l.b16 %v12973_v49  ;;  %v4404_v15 = vsel %vm11795_vm2, %v4399_v16, %v4403_v63  ;;  %v4870_v8 = vshll.u32 %v12989_v56, 16 }
 0x274   : > { %v3824_v13 = vunpack.c.l.b16 %v12964_v42  ;;  %v4869_v14 = vrot.slane %v4867_v5, 5  ;;  %v4437_v16 = vunpack.c.l.b16 %v4404_v15  ;;  %v4888_v49 = vshll.u32 %v12991_v62, 16 }
 0x275   : > { %v2911_v45 = vpop.f32.mrf.mxu2  ;;  %v4872_v50 = vrot.slane %v4870_v8, 6  ;;  %v5357_v8 = vrot.slane %v12989_v56, 6 }
 0x276   : > { %v2935_v2 = vadd.f32 %v2911_v45, %v2517_v52  ;;  %v12969_v52 = vsel %vm11907_vm5, %v10279_v27, %v4673_v29  ;;  %v4890_v5 = vrot.slane %v4888_v49, 6 }
 0x277   : > { %v3185_v57 = vpop.f32.mrf.mxu3  ;;  %v2496_v21 = vpop.f32.mrf.mxu1  ;;  %v4710_v40 = vunpack.c.l.b16 %v12969_v52  ;;  %v4873_v63 = vor.u32 %v4872_v50, %v4869_v14 }
 0x278   : > { %v3209_v43 = vadd.f32 %v3185_v57, %v2935_v2  ;;  %v2518_v30 = vadd.f32 %v2496_v21, %v12744_v59  ;;  %v3823_v59 = vunpack.c.l.b16 %v12960_v41  ;;  %v4878_v2 = vrot.slane %v4876_v58, 5 }
 0x279   : > { %v4885_v57 = vshrl.u32 %v12991_v62, 16  ;;  %v4881_v21 = vrot.slane %v4879_v22, 6  ;;  %v4719_v56 = vpack.c.b16 %v4711_v17, %v4710_v40 }
 0x27a   : > { %3927 = vmatmul.bf16.gmra.mxu1 %v12939_v48  ;;  %4122 = vmatmul.bf16.gmra.mxu2 %v10180_v60  ;;  %v12982_v35 = vadd.f32 %v3651_v19, %v3209_v43  ;;  %v4390_v48 = vsel %vm11795_vm2, %v4385_v54, %v4389_v18  ;;  %v11504_v60 = vld [vmem:[#allocation2 + $0x10] sm:$0xe]  ;;  %v11318_v19 = vld [vmem:[%s11664_s25 + $0x4b8] sm:$0xff] }
 0x27b   : > { %v12984_v6 = vpop.f32.mrf.mxu0  ;;  %v4858_v24 = vshrl.u32 %v11504_v60, 16  ;;  %v4861_v51 = vshll.u32 %v11504_v60, 16  ;;  %6869 = vmatpush.bf16.msrb.mxu2 %v11318_v19  ;;  %v5776_v18 = vld [vmem:[#allocation2 + $0x18] sm:$0xf]  ;;  %v4436_v54 = vunpack.c.l.b16 %v4390_v48 }
 0x27c   : > { %4540 = vmatmul.bf16.gmra.mxu3 %v4444_v55  ;;  %v5307_v55 = vld [vmem:[#allocation2 + $0x10] sm:$0xc]  ;;  %v11326_v43 = vld [vmem:[%s11664_s25 + $0x4f8] sm:$0xff]  ;;  %v5809_v58 = vshrl.u32 %v5776_v18, 16 }
 0x27d   : > { %v2914_v20 = vpop.f32.mrf.mxu2  ;;  %v4860_v27 = vrot.slane %v4858_v24, 5  ;;  %v4863_v29 = vrot.slane %v4861_v51, 6  ;;  %v11310_v60 = vld [vmem:[%s11664_s25 + $0x478] sm:$0xff]  ;;  %v4882_v51 = vor.u32 %v4881_v21, %v4878_v2  ;;  %7143 = vmatpush.bf16.msrb.mxu3 %v11326_v43  ;;  %v4445_v14 = vpack.c.b16 %v4437_v16, %v4436_v54 }
 0x27e   : > { %v2936_v39 = vadd.f32 %v2914_v20, %v2518_v30  ;;  %4814 = vmatmul.bf16.gmra.mxu0 %v4718_v28  ;;  %v11238_v30 = vld [vmem:[#allocation2 + $0xa4] sm:$0xf0]  ;;  %v5308_v28 = vld [vmem:[#allocation2 + $0x18] sm:$0xc]  ;;  %v4887_v20 = vrot.slane %v4885_v57, 5  ;;  %6403 = vmatpush.bf16.msrb.mxu1 %v11310_v60  ;;  %v5811_v21 = vrot.slane %v5809_v58, 4 }
 0x27f   : > { %v3188_v47 = vpop.f32.mrf.mxu3  ;;  %v2498_v45 = vpop.f32.mrf.mxu1  ;;  %v4864_v26 = vor.u32 %v4863_v29, %v4860_v27  ;;  %v10184_v48 = vor.u32 %v11238_v30, %v12998_v1  ;;  %v10378_v15 = vrot.slane %v5308_v28, 10  ;;  %v5812_v27 = vshll.u32 %v5776_v18, 16  ;;  %v11342_v29 = vld [vmem:[%s11664_s25 + $0x538] sm:$0xff] }
 0x280   : > { %v13001_v32 = vadd.f32 %v3188_v47, %v2936_v39  ;;  %v2519_v12 = vadd.f32 %v2498_v45, %v12761_v25  ;;  %v10377_v25 = vrot.slane %v5307_v55, 10  ;;  %v5361_v39 = vrot.slane %v12991_v62, 6  ;;  %v5778_v47 = vld [vmem:[#allocation2 + $0x20] sm:$0xf]  ;;  %v13021_v1 = vld [vmem:[#allocation2 + $0x18] sm:$0xf]  ;;  %7338 = vmatpush.bf16.msrb.mxu0 %v11342_v29 }
 0x281   : > { %v4865_v24 = vrot.slane %v4864_v26, 4  ;;  %v3832_v45 = vpack.c.b16 %v3824_v13, %v3823_v59  ;;  %v4883_v57 = vrot.slane %v4882_v51, 4  ;;  %v13023_v26 = vld [vmem:[#allocation2 + $0x1c] sm:$0xf0]  ;;  %v5814_v41 = vrot.slane %v5812_v27, 5  ;;  %v11317_v29 = vld [vmem:[%s11664_s25 + $0x4b0] sm:$0xff] }
 0x282   : > { %v4891_v59 = vor.u32 %v4890_v5, %v4887_v20  ;;  %v5779_v13 = vld [vmem:[#allocation2 + $0x24] sm:$0x1]  ;;  %v5818_v55 = vshll.u32 %v5777_v3, 16  ;;  %v5823_v52 = vshrl.u32 %v5778_v47, 16  ;;  %v5826_v40 = vshll.u32 %v5778_v47, 16  ;;  %6870 = vmatpush.bf16.msrb.mxu2 %v11317_v29 }
 0x283   : > { %v3656_v19 = vpop.f32.mrf.mxu0  ;;  %v13019_v50 = vsel %vm11947_vm9, %v4865_v24, %v4873_v63  ;;  %v13028_v43 = vsel %vm11954_vm11, %v10377_v25, %v5357_v8  ;;  %v5815_v30 = vor.u32 %v5814_v41, %v5811_v21  ;;  %v10460_v28 = vor.u32 %v13023_v26, %v13021_v1 }
 0x284   : > { %v5820_v54 = vrot.slane %v5818_v55, 5  ;;  %v5825_v16 = vrot.slane %v5823_v52, 4  ;;  %v5828_v63 = vrot.slane %v5826_v40, 5  ;;  %v5162_v49 = vunpack.c.l.b16 %v13019_v50  ;;  %v5309_v52 = vld [vmem:[#allocation2 + $0x20] sm:$0xc]  ;;  %v11325_v40 = vld [vmem:[%s11664_s25 + $0x4f0] sm:$0xff] }
 0x285   : > { %v2916_v22 = vpop.f32.mrf.mxu2  ;;  %v13039_v60 = vadd.f32 %v12984_v6, %v13001_v32  ;;  %v4892_v24 = vsel %vm11947_vm9, %v4883_v57, %v4891_v59  ;;  %v5816_v51 = vrot.slane %v5815_v30, 4  ;;  %v5436_v8 = vunpack.c.l.b16 %v13028_v43  ;;  %v11506_v6 = vld [vmem:[#allocation2 + $0x20] sm:$0xe]  ;;  %v11309_v30 = vld [vmem:[%s11664_s25 + $0x470] sm:$0xff]  ;;  %7144 = vmatpush.bf16.msrb.mxu3 %v11325_v40 }
 0x286   : > { %v2937_v62 = vadd.f32 %v2916_v22, %v2519_v12  ;;  %v13032_v12 = vsel %vm11954_vm11, %v10378_v15, %v5361_v39  ;;  %v5829_v20 = vor.u32 %v5828_v63, %v5825_v16  ;;  %v4894_v32 = vshrl.u32 %v11506_v6, 16  ;;  %6404 = vmatpush.bf16.msrb.mxu1 %v11309_v30  ;;  %v5783_v40 = vld [vmem:[#allocation2 + $0x34] sm:$0x1] }
 0x287   : > { %v3190_v2 = vpop.f32.mrf.mxu3  ;;  %v2501_v42 = vpop.f32.mrf.mxu1  ;;  %v5437_v3 = vunpack.c.l.b16 %v13032_v12  ;;  %v5821_v39 = vsel %vm11795_vm2, %v5816_v51, %v5820_v54  ;;  %v4897_v27 = vshll.u32 %v11506_v6, 16  ;;  %v5780_v6 = vld [vmem:[#allocation2 + $0x28] sm:$0xf] }
 0x288   : > { %v3211_v17 = vadd.f32 %v3190_v2, %v2937_v62  ;;  %v2520_v18 = vadd.f32 %v2501_v42, %v12770_v31  ;;  %v5832_v31 = vshll.u32 %v5779_v13, 16  ;;  %v5830_v47 = vrot.slane %v5829_v20, 4  ;;  %v4844_v62 = vld [vmem:[#allocation2 + $0x2c] sm:$0x3]  ;;  %v11507_v13 = vld [vmem:[#allocation2 + $0x28] sm:$0xe] }
 0x289   : > { %v4896_v2 = vrot.slane %v4894_v32, 5  ;;  %v4899_v42 = vrot.slane %v4897_v27, 6  ;;  %v4912_v55 = vshrl.u32 %v11507_v13, 16  ;;  %v13062_v43 = vunpack.c.l.b16 %v5821_v39 }
 0x28a   : > { %3932 = vmatmul.bf16.gmra.mxu1 %v3832_v45  ;;  %4127 = vmatmul.bf16.gmra.mxu2 %v10184_v48  ;;  %v13043_v5 = vadd.f32 %v3656_v19, %v3211_v17  ;;  %v5834_v58 = vrot.slane %v5832_v31, 5  ;;  %v13049_v48 = vld [vmem:[#allocation2 + $0x24] sm:$0x3]  ;;  %v4915_v16 = vshll.u32 %v11507_v13, 16  ;;  %v4921_v63 = vshrl.u32 %v4844_v62, 16 }
 0x28b   : > { %v13045_v25 = vpop.f32.mrf.mxu0  ;;  %v4903_v19 = vshrl.u32 %v13049_v48, 16  ;;  %v4906_v57 = vshll.u32 %v13049_v48, 16  ;;  %v4914_v54 = vrot.slane %v4912_v55, 5  ;;  %v5310_v31 = vld [vmem:[#allocation2 + $0x28] sm:$0xc]  ;;  %v4924_v20 = vshll.u32 %v4844_v62, 16 }
 0x28c   : > { %4545 = vmatmul.bf16.gmra.mxu3 %v4445_v14  ;;  %v5163_v14 = vunpack.c.l.b16 %v4892_v24  ;;  %v5835_v41 = vsel %vm11795_vm2, %v5830_v47, %v5834_v58  ;;  %v10379_v58 = vrot.slane %v5309_v52, 10  ;;  %v5365_v39 = vrot.slane %v13049_v48, 6 }
 0x28d   : > { %v2919_v15 = vpop.f32.mrf.mxu2  ;;  %v4905_v59 = vrot.slane %v4903_v19, 5  ;;  %v4908_v12 = vrot.slane %v4906_v57, 6  ;;  %v13065_v24 = vunpack.c.l.b16 %v5835_v41  ;;  %v5452_v27 = vpack.c.b16 %v5437_v3, %v5436_v8 }
 0x28e   : > { %v2938_v22 = vadd.f32 %v2919_v15, %v2520_v18  ;;  %4819 = vmatmul.bf16.gmra.mxu0 %v4719_v56  ;;  %v4900_v56 = vor.u32 %v4899_v42, %v4896_v2  ;;  %v4923_v15 = vrot.slane %v4921_v63, 5  ;;  %v4926_v19 = vrot.slane %v4924_v20, 6  ;;  %v5781_v42 = vld [vmem:[#allocation2 + $0x2c] sm:$0x1] }
 0x28f   : > { %v3193_v45 = vpop.f32.mrf.mxu3  ;;  %v2503_v21 = vpop.f32.mrf.mxu1  ;;  %v4909_v51 = vor.u32 %v4908_v12, %v4905_v59  ;;  %v10380_v29 = vrot.slane %v5310_v31, 10  ;;  %v5178_v57 = vpack.c.b16 %v5163_v14, %v5162_v49  ;;  %v5837_v59 = vshrl.u32 %v5780_v6, 16 }
 0x290   : > { %v13059_v17 = vadd.f32 %v3193_v45, %v2938_v22  ;;  %v2521_v18 = vadd.f32 %v2503_v21, %v12781_v38  ;;  %v4901_v32 = vrot.slane %v4900_v56, 4  ;;  %v4917_v38 = vrot.slane %v4915_v16, 6  ;;  %v11341_v45 = vld [vmem:[%s11664_s25 + $0x530] sm:$0xff] }
 0x291   : > { %v5369_v22 = vrot.slane %v4844_v62, 6  ;;  %v6065_v8 = vpack.c.b16 %v13065_v24, %v13062_v43  ;;  %v4927_v3 = vor.u32 %v4926_v19, %v4923_v15  ;;  %v13079_v48 = vsel %vm11954_vm11, %v10379_v58, %v5365_v39  ;;  %v5782_v62 = vld [vmem:[#allocation2 + $0x30] sm:$0xf]  ;;  %7339 = vmatpush.bf16.msrb.mxu0 %v11341_v45 }
 0x292   : > { %v13073_v21 = vsel %vm11947_vm9, %v4901_v32, %v4909_v51  ;;  %v4918_v41 = vor.u32 %v4917_v38, %v4914_v54  ;;  %v5840_v30 = vshll.u32 %v5780_v6, 16  ;;  %v5846_v56 = vshll.u32 %v5781_v42, 16 }
 0x293   : > { %v3661_v47 = vpop.f32.mrf.mxu0  ;;  %v5164_v14 = vunpack.c.l.b16 %v13073_v21  ;;  %v13084_v52 = vsel %vm11954_vm11, %v10380_v29, %v5369_v22  ;;  %v5438_v16 = vunpack.c.l.b16 %v13079_v48  ;;  %v5851_v63 = vshrl.u32 %v5782_v62, 16  ;;  %v13105_v29 = vld [vmem:[#allocation2 + $0x34] sm:$0x3]  ;;  %v11508_v22 = vld [vmem:[#allocation2 + $0x30] sm:$0xe] }
 0x294   : > { %v4919_v49 = vrot.slane %v4918_v41, 4  ;;  %v5854_v31 = vshll.u32 %v5782_v62, 16  ;;  %v5439_v51 = vunpack.c.l.b16 %v13084_v52  ;;  %v5842_v20 = vrot.slane %v5840_v30, 5  ;;  %v13110_v41 = vld [vmem:[#allocation2 + $0x28] sm:$0xf] }
 0x295   : > { %v2921_v2 = vpop.f32.mrf.mxu2  ;;  %v5860_v58 = vshll.u32 %v5783_v40, 16  ;;  %v13099_v32 = vadd.f32 %v13045_v25, %v13059_v17  ;;  %v4930_v45 = vshrl.u32 %v11508_v22, 16  ;;  %v11316_v25 = vld [vmem:[%s11664_s25 + $0x4a8] sm:$0xff]  ;;  %v11280_v30 = vld [vmem:[#allocation2 + $0x2c] sm:$0xf0] }
 0x296   : > { %v2939_v13 = vadd.f32 %v2921_v2, %v2521_v18  ;;  %v5839_v18 = vrot.slane %v5837_v59, 4  ;;  %v13089_v54 = vsel %vm11947_vm9, %v4919_v49, %v4927_v3  ;;  %v5856_v6 = vrot.slane %v5854_v31, 5  ;;  %6871 = vmatpush.bf16.msrb.mxu2 %v11316_v25  ;;  %v5311_v31 = vld [vmem:[#allocation2 + $0x30] sm:$0xc] }
 0x297   : > { %v3195_v55 = vpop.f32.mrf.mxu3  ;;  %v3898_v50 = vpop.f32.mrf.mxu1  ;;  %v5165_v24 = vunpack.c.l.b16 %v13089_v54  ;;  %v5862_v19 = vrot.slane %v5860_v58, 5  ;;  %v4939_v2 = vshrl.u32 %v13105_v29, 16  ;;  %v4932_v59 = vrot.slane %v4930_v45, 5  ;;  %v5786_v54 = vld [vmem:[#allocation2 + $0x40] sm:$0xf] }
 0x298   : > { %v3213_v12 = vadd.f32 %v3195_v55, %v2939_v13  ;;  %v3938_v43 = vadd.f32 %v3898_v50, %v12806_v34  ;;  %v5853_v34 = vrot.slane %v5851_v63, 4  ;;  %v5843_v39 = vor.u32 %v5842_v20, %v5839_v18  ;;  %v11509_v13 = vld [vmem:[#allocation2 + $0x38] sm:$0xe]  ;;  %v4846_v50 = vld [vmem:[#allocation2 + $0x3c] sm:$0x3]  ;;  %v11324_v20 = vld [vmem:[%s11664_s25 + $0x4e8] sm:$0xff] }
 0x299   : > { %v4948_v55 = vshrl.u32 %v11509_v13, 16  ;;  %v4941_v40 = vrot.slane %v4939_v2, 5  ;;  %v4951_v45 = vshll.u32 %v11509_v13, 16  ;;  %7145 = vmatpush.bf16.msrb.mxu3 %v11324_v20  ;;  %v10381_v2 = vrot.slane %v5311_v31, 10 }
 0x29a   : > { %5250 = vmatmul.bf16.vlgmr.msra.gmra.mxu1 %v5178_v57  ;;  %5524 = vmatmul.bf16.vlgmr.msra.gmra.mxu2 %v5452_v27  ;;  %v13101_v38 = vadd.f32 %v3661_v47, %v3213_v12  ;;  %v5848_v27 = vrot.slane %v5846_v56, 5  ;;  %v5857_v26 = vor.u32 %v5856_v6, %v5853_v34  ;;  %v4942_v57 = vshll.u32 %v13105_v29, 16 }
 0x29b   : > { %v13103_v15 = vpop.f32.mrf.mxu0  ;;  %v5844_v42 = vrot.slane %v5843_v39, 4  ;;  %v4950_v63 = vrot.slane %v4948_v55, 5  ;;  %v5312_v39 = vld [vmem:[#allocation2 + $0x38] sm:$0xc]  ;;  %v11340_v55 = vld [vmem:[%s11664_s25 + $0x528] sm:$0xff] }
 0x29c   : > { %5719 = vmatmul.bf16.vlgmr.msra.gmra.mxu3 %v10460_v28  ;;  %v4933_v28 = vshll.u32 %v11508_v22, 16  ;;  %v5858_v62 = vrot.slane %v5857_v26, 4  ;;  %v4944_v18 = vrot.slane %v4942_v57, 6  ;;  %v11308_v26 = vld [vmem:[%s11664_s25 + $0x468] sm:$0xff]  ;;  %v5373_v57 = vrot.slane %v13105_v29, 6  ;;  %7340 = vmatpush.bf16.msrb.mxu0 %v11340_v55 }
 0x29d   : > { %v4093_v1 = vpop.f32.mrf.mxu2  ;;  %v5849_v56 = vsel %vm11795_vm2, %v5844_v42, %v5848_v27  ;;  %v10464_v27 = vor.u32 %v11280_v30, %v13110_v41  ;;  %6405 = vmatpush.bf16.msrb.mxu1 %v11308_v26  ;;  %v5453_v41 = vpack.c.b16 %v5439_v51, %v5438_v16  ;;  %v5787_v16 = vld [vmem:[#allocation2 + $0x44] sm:$0x1]  ;;  %v11510_v55 = vld [vmem:[#allocation2 + $0x40] sm:$0xe] }
 0x29e   : > { %v4133_v17 = vadd.f32 %v4093_v1, %v3938_v43  ;;  %6137 = vmatmul.bf16.vlgmr.msra.gmra.mxu0 %v6065_v8  ;;  %v4935_v49 = vrot.slane %v4933_v28, 6  ;;  %v5863_v8 = vsel %vm11795_vm2, %v5858_v62, %v5862_v19  ;;  %v13120_v58 = vunpack.c.l.b16 %v5849_v56  ;;  %v5784_v19 = vld [vmem:[#allocation2 + $0x38] sm:$0xf]  ;;  %v5785_v56 = vld [vmem:[#allocation2 + $0x3c] sm:$0x1] }
 0x29f   : > { %v4511_v47 = vpop.f32.mrf.mxu3  ;;  %v3900_v3 = vpop.f32.mrf.mxu1  ;;  %v4945_v6 = vor.u32 %v4944_v18, %v4941_v40  ;;  %v13122_v22 = vunpack.c.l.b16 %v5863_v8  ;;  %v4960_v1 = vshll.u32 %v4846_v50, 16  ;;  %v5377_v62 = vrot.slane %v4846_v50, 6 }
 0x2a0   : > { %v13112_v12 = vadd.f32 %v4511_v47, %v4133_v17  ;;  %v3939_v43 = vadd.f32 %v3900_v3, %v12811_v11  ;;  %v4936_v34 = vor.u32 %v4935_v49, %v4932_v59  ;;  %v4957_v11 = vshrl.u32 %v4846_v50, 16 }
 0x2a1   : > { %v4953_v17 = vrot.slane %v4951_v45, 6  ;;  %v4962_v42 = vrot.slane %v4960_v1, 6  ;;  %v10382_v59 = vrot.slane %v5312_v39, 10  ;;  %v5179_v3 = vpack.c.b16 %v5165_v24, %v5164_v14 }
 0x2a2   : > { %v4937_v28 = vrot.slane %v4936_v34, 4  ;;  %v4959_v47 = vrot.slane %v4957_v11, 5  ;;  %v6066_v18 = vpack.c.b16 %v13122_v22, %v13120_v58  ;;  %v13145_v52 = vsel %vm11954_vm11, %v10381_v2, %v5373_v57 }
 0x2a3   : > { %v4787_v25 = vpop.f32.mrf.mxu0  ;;  %v4954_v30 = vor.u32 %v4953_v17, %v4950_v63  ;;  %v5865_v24 = vshrl.u32 %v5784_v19, 16  ;;  %v5868_v51 = vshll.u32 %v5784_v19, 16  ;;  %v13150_v63 = vsel %vm11954_vm11, %v10382_v59, %v5377_v62  ;;  %v13161_v19 = vld [vmem:[#allocation2 + $0x44] sm:$0x3] }
 0x2a4   : > { %v13138_v29 = vsel %vm11947_vm9, %v4937_v28, %v4945_v6  ;;  %v4963_v21 = vor.u32 %v4962_v42, %v4959_v47  ;;  %v5874_v58 = vshll.u32 %v5785_v56, 16  ;;  %v5879_v34 = vshrl.u32 %v5786_v54, 16 }
 0x2a5   : > { %v4095_v13 = vpop.f32.mrf.mxu2  ;;  %v5166_v48 = vunpack.c.l.b16 %v13138_v29  ;;  %v4955_v31 = vrot.slane %v4954_v30, 4  ;;  %v5867_v20 = vrot.slane %v5865_v24, 4  ;;  %v5870_v8 = vrot.slane %v5868_v51, 5  ;;  %v11323_v24 = vld [vmem:[%s11664_s25 + $0x4e0] sm:$0xff] }
 0x2a6   : > { %v4134_v49 = vadd.f32 %v4095_v13, %v3939_v43  ;;  %v5440_v39 = vunpack.c.l.b16 %v13145_v52  ;;  %v5882_v22 = vshll.u32 %v5786_v54, 16  ;;  %v5888_v45 = vshll.u32 %v5787_v16, 16  ;;  %7146 = vmatpush.bf16.msrb.mxu3 %v11323_v24 }
 0x2a7   : > { %v4513_v40 = vpop.f32.mrf.mxu3  ;;  %v3903_v14 = vpop.f32.mrf.mxu1  ;;  %v13154_v6 = vsel %vm11947_vm9, %v4955_v31, %v4963_v21  ;;  %v5871_v11 = vor.u32 %v5870_v8, %v5867_v20  ;;  %v5876_v1 = vrot.slane %v5874_v58, 5  ;;  %v5881_v26 = vrot.slane %v5879_v34, 4  ;;  %v5313_v20 = vld [vmem:[#allocation2 + $0x40] sm:$0xc] }
 0x2a8   : > { %v4552_v50 = vadd.f32 %v4513_v40, %v4134_v49  ;;  %v3940_v43 = vadd.f32 %v3903_v14, %v12836_v46  ;;  %v5441_v46 = vunpack.c.l.b16 %v13150_v63  ;;  %v5167_v2 = vunpack.c.l.b16 %v13154_v6  ;;  %v11511_v14 = vld [vmem:[#allocation2 + $0x48] sm:$0xe]  ;;  %v5790_v63 = vld [vmem:[#allocation2 + $0x50] sm:$0xf] }
 0x2a9   : > { %v5884_v57 = vrot.slane %v5882_v22, 5  ;;  %v13165_v17 = vadd.f32 %v13103_v15, %v13112_v12  ;;  %v5872_v42 = vrot.slane %v5871_v11, 4  ;;  %v5890_v59 = vrot.slane %v5888_v45, 5  ;;  %v10467_v22 = vld [vmem:[#allocation2 + $0x38] sm:$0xf] }
 0x2aa   : > { %5255 = vmatmul.bf16.gmra.mxu1 %v5179_v3  ;;  %5529 = vmatmul.bf16.gmra.mxu2 %v5453_v41  ;;  %v13167_v47 = vadd.f32 %v4787_v25, %v4552_v50  ;;  %v4966_v13 = vshrl.u32 %v11510_v55, 16  ;;  %v4969_v3 = vshll.u32 %v11510_v55, 16  ;;  %v11315_v41 = vld [vmem:[%s11664_s25 + $0x4a0] sm:$0xff]  ;;  %v4975_v30 = vshrl.u32 %v13161_v19, 16  ;;  %v4848_v25 = vld [vmem:[#allocation2 + $0x4c] sm:$0x3] }
 0x2ab   : > { %v13158_v28 = vpop.f32.mrf.mxu0  ;;  %v5885_v40 = vor.u32 %v5884_v57, %v5881_v26  ;;  %v4978_v21 = vshll.u32 %v13161_v19, 16  ;;  %v5877_v12 = vsel %vm11795_vm2, %v5872_v42, %v5876_v1  ;;  %v4984_v16 = vshrl.u32 %v11511_v14, 16  ;;  %6872 = vmatpush.bf16.msrb.mxu2 %v11315_v41  ;;  %v5314_v57 = vld [vmem:[#allocation2 + $0x48] sm:$0xc] }
 0x2ac   : > { %5724 = vmatmul.bf16.gmra.mxu3 %v10464_v27  ;;  %v4968_v56 = vrot.slane %v4966_v13, 5  ;;  %v4971_v54 = vrot.slane %v4969_v3, 6  ;;  %v13178_v31 = vunpack.c.l.b16 %v5877_v12  ;;  %v4977_v58 = vrot.slane %v4975_v30, 5  ;;  %v5788_v3 = vld [vmem:[#allocation2 + $0x48] sm:$0xf]  ;;  %v11339_v30 = vld [vmem:[%s11664_s25 + $0x520] sm:$0xff] }
 0x2ad   : > { %v4098_v27 = vpop.f32.mrf.mxu2  ;;  %v4980_v34 = vrot.slane %v4978_v21, 6  ;;  %v4986_v6 = vrot.slane %v4984_v16, 5  ;;  %v4987_v11 = vshll.u32 %v11511_v14, 16  ;;  %v4993_v1 = vshrl.u32 %v4848_v25, 16  ;;  %7341 = vmatpush.bf16.msrb.mxu0 %v11339_v30 }
 0x2ae   : > { %v4135_v62 = vadd.f32 %v4098_v27, %v3940_v43  ;;  %6142 = vmatmul.bf16.gmra.mxu0 %v6066_v18  ;;  %v5886_v43 = vrot.slane %v5885_v40, 4  ;;  %v11307_v18 = vld [vmem:[%s11664_s25 + $0x460] sm:$0xff]  ;;  %v4972_v8 = vor.u32 %v4971_v54, %v4968_v56  ;;  %v4996_v26 = vshll.u32 %v4848_v25, 16 }
 0x2af   : > { %v4516_v49 = vpop.f32.mrf.mxu3  ;;  %v3905_v15 = vpop.f32.mrf.mxu1  ;;  %6406 = vmatpush.bf16.msrb.mxu1 %v11307_v18  ;;  %v4981_v55 = vor.u32 %v4980_v34, %v4977_v58  ;;  %v10383_v13 = vrot.slane %v5313_v20, 10  ;;  %v5454_v12 = vpack.c.b16 %v5441_v46, %v5440_v39  ;;  %v10384_v56 = vrot.slane %v5314_v57, 10  ;;  %v5789_v20 = vld [vmem:[#allocation2 + $0x4c] sm:$0x1]  ;;  %v5791_v39 = vld [vmem:[#allocation2 + $0x54] sm:$0x1] }
 0x2b0   : > { %v13175_v51 = vadd.f32 %v4516_v49, %v4135_v62  ;;  %v3941_v50 = vadd.f32 %v3905_v15, %v12841_v9  ;;  %v5891_v45 = vsel %vm11795_vm2, %v5886_v43, %v5890_v59  ;;  %v11281_v9 = vld [vmem:[#allocation2 + $0x3c] sm:$0xf0]  ;;  %v4973_v42 = vrot.slane %v4972_v8, 4 }
 0x2b1   : > { %v13183_v27 = vunpack.c.l.b16 %v5891_v45  ;;  %v4989_v62 = vrot.slane %v4987_v11, 6  ;;  %v4995_v49 = vrot.slane %v4993_v1, 5  ;;  %v4998_v40 = vrot.slane %v4996_v26, 6 }
 0x2b2   : > { %v5381_v59 = vrot.slane %v13161_v19, 6  ;;  %v5180_v15 = vpack.c.b16 %v5167_v2, %v5166_v48  ;;  %v5385_v54 = vrot.slane %v4848_v25, 6  ;;  %v13197_v24 = vsel %vm11947_vm9, %v4973_v42, %v4981_v55 }
 0x2b3   : > { %v13185_v41 = vpop.f32.mrf.mxu0  ;;  %v4990_v43 = vor.u32 %v4989_v62, %v4986_v6  ;;  %v4999_v19 = vor.u32 %v4998_v40, %v4995_v49  ;;  %v10468_v29 = vor.u32 %v11281_v9, %v10467_v22  ;;  %v6067_v48 = vpack.c.b16 %v13183_v27, %v13178_v31  ;;  %v11512_v62 = vld [vmem:[#allocation2 + $0x70] sm:$0xe] }
 0x2b4   : > { %v13203_v52 = vsel %vm11954_vm11, %v10383_v13, %v5381_v59  ;;  %v5893_v46 = vshrl.u32 %v5788_v3, 16  ;;  %v13210_v8 = vsel %vm11954_vm11, %v10384_v56, %v5385_v54  ;;  %v5168_v58 = vunpack.c.l.b16 %v13197_v24  ;;  %v5794_v24 = vld [vmem:[#allocation2 + $0x80] sm:$0xf] }
 0x2b5   : > { %v4100_v21 = vpop.f32.mrf.mxu2  ;;  %v5896_v31 = vshll.u32 %v5788_v3, 16  ;;  %v5902_v6 = vshll.u32 %v5789_v20, 16  ;;  %v5907_v45 = vshrl.u32 %v5790_v63, 16  ;;  %v5910_v11 = vshll.u32 %v5790_v63, 16  ;;  %v13222_v3 = vld [vmem:[#allocation2 + $0x74] sm:$0x3] }
 0x2b6   : > { %v4136_v14 = vadd.f32 %v4100_v21, %v3941_v50  ;;  %v4991_v50 = vrot.slane %v4990_v43, 4  ;;  %v5895_v34 = vrot.slane %v5893_v46, 4  ;;  %v5916_v1 = vshll.u32 %v5791_v39, 16  ;;  %v4850_v20 = vld [vmem:[#allocation2 + $0x7c] sm:$0x3] }
 0x2b7   : > { %v4518_v16 = vpop.f32.mrf.mxu3  ;;  %v3908_v18 = vpop.f32.mrf.mxu1  ;;  %v5442_v26 = vunpack.c.l.b16 %v13203_v52  ;;  %v5443_v57 = vunpack.c.l.b16 %v13210_v8  ;;  %v5898_v9 = vrot.slane %v5896_v31, 5  ;;  %v5904_v42 = vrot.slane %v5902_v6, 5  ;;  %v11513_v52 = vld [vmem:[#allocation2 + $0x78] sm:$0xe] }
 0x2b8   : > { %v13205_v2 = vadd.f32 %v4518_v16, %v4136_v14  ;;  %v3942_v25 = vadd.f32 %v3908_v18, %v12866_v61  ;;  %v13215_v22 = vsel %vm11947_vm9, %v4991_v50, %v4999_v19  ;;  %v5909_v55 = vrot.slane %v5907_v45, 4  ;;  %v11314_v8 = vld [vmem:[%s11664_s25 + $0x498] sm:$0xff] }
 0x2b9   : > { %v5169_v61 = vunpack.c.l.b16 %v13215_v22  ;;  %v5912_v13 = vrot.slane %v5910_v11, 5  ;;  %v5002_v49 = vshrl.u32 %v11512_v62, 16  ;;  %v5899_v59 = vor.u32 %v5898_v9, %v5895_v34  ;;  %v11322_v34 = vld [vmem:[%s11664_s25 + $0x4d8] sm:$0xff]  ;;  %v5315_v11 = vld [vmem:[#allocation2 + $0x70] sm:$0xc]  ;;  %6873 = vmatpush.bf16.msrb.mxu2 %v11314_v8 }
 0x2ba   : > { %5260 = vmatmul.bf16.gmra.mxu1 %v5180_v15  ;;  %5534 = vmatmul.bf16.gmra.mxu2 %v5454_v12  ;;  %v5918_v30 = vrot.slane %v5916_v1, 5  ;;  %v5005_v21 = vshll.u32 %v11512_v62, 16  ;;  %v5011_v15 = vshrl.u32 %v13222_v3, 16  ;;  %v5014_v16 = vshll.u32 %v13222_v3, 16  ;;  %v5316_v1 = vld [vmem:[#allocation2 + $0x78] sm:$0xc] }
 0x2bb   : > { %v13220_v27 = vpop.f32.mrf.mxu0  ;;  %v5913_v54 = vor.u32 %v5912_v13, %v5909_v55  ;;  %v5004_v14 = vrot.slane %v5002_v49, 5  ;;  %v5900_v19 = vrot.slane %v5899_v59, 4  ;;  %v5020_v63 = vshrl.u32 %v11513_v52, 16  ;;  %v10471_v9 = vld [vmem:[#allocation2 + $0x48] sm:$0xf]  ;;  %7147 = vmatpush.bf16.msrb.mxu3 %v11322_v34 }
 0x2bc   : > { %5729 = vmatmul.bf16.gmra.mxu3 %v10468_v29  ;;  %v5007_v18 = vrot.slane %v5005_v21, 6  ;;  %v5013_v29 = vrot.slane %v5011_v15, 5  ;;  %v5016_v50 = vrot.slane %v5014_v16, 6  ;;  %v5023_v45 = vshll.u32 %v11513_v52, 16  ;;  %v11282_v55 = vld [vmem:[#allocation2 + $0x4c] sm:$0xf0] }
 0x2bd   : > { %v4103_v40 = vpop.f32.mrf.mxu2  ;;  %v5905_v31 = vsel %vm11795_vm2, %v5900_v19, %v5904_v42  ;;  %v5022_v6 = vrot.slane %v5020_v63, 5  ;;  %v5029_v49 = vshrl.u32 %v4850_v20, 16  ;;  %v5032_v15 = vshll.u32 %v4850_v20, 16  ;;  %v11338_v16 = vld [vmem:[%s11664_s25 + $0x518] sm:$0xff] }
 0x2be   : > { %v4137_v12 = vadd.f32 %v4103_v40, %v3942_v25  ;;  %6147 = vmatmul.bf16.gmra.mxu0 %v6067_v48  ;;  %v5914_v25 = vrot.slane %v5913_v54, 4  ;;  %v5008_v48 = vor.u32 %v5007_v18, %v5004_v14  ;;  %v13235_v62 = vunpack.c.l.b16 %v5905_v31  ;;  %v11306_v40 = vld [vmem:[%s11664_s25 + $0x458] sm:$0xff] }
 0x2bf   : > { %v4521_v56 = vpop.f32.mrf.mxu3  ;;  %v3910_v43 = vpop.f32.mrf.mxu1  ;;  %v5025_v21 = vrot.slane %v5023_v45, 6  ;;  %v10385_v54 = vrot.slane %v5315_v11, 10  ;;  %v5389_v14 = vrot.slane %v13222_v3, 6  ;;  %6407 = vmatpush.bf16.msrb.mxu1 %v11306_v40  ;;  %v5455_v19 = vpack.c.b16 %v5443_v57, %v5442_v26  ;;  %v5792_v63 = vld [vmem:[#allocation2 + $0x78] sm:$0xf]  ;;  %7342 = vmatpush.bf16.msrb.mxu0 %v11338_v16 }
 0x2c0   : > { %v13226_v39 = vadd.f32 %v4521_v56, %v4137_v12  ;;  %v3943_v46 = vadd.f32 %v3910_v43, %v12871_v37  ;;  %v5919_v13 = vsel %vm11795_vm2, %v5914_v25, %v5918_v30  ;;  %v5017_v37 = vor.u32 %v5016_v50, %v5013_v29  ;;  %v5793_v31 = vld [vmem:[#allocation2 + $0x7c] sm:$0x1] }
 0x2c1   : > { %v13238_v59 = vunpack.c.l.b16 %v5919_v13  ;;  %v5009_v42 = vrot.slane %v5008_v48, 4  ;;  %v5031_v56 = vrot.slane %v5029_v49, 5  ;;  %v10386_v30 = vrot.slane %v5316_v1, 10 }
 0x2c2   : > { %v10472_v18 = vor.u32 %v11282_v55, %v10471_v9  ;;  %v5026_v29 = vor.u32 %v5025_v21, %v5022_v6  ;;  %v5034_v52 = vrot.slane %v5032_v15, 6  ;;  %v5181_v8 = vpack.c.b16 %v5169_v61, %v5168_v58 }
 0x2c3   : > { %v13240_v12 = vpop.f32.mrf.mxu0  ;;  %v13250_v34 = vsel %vm11947_vm9, %v5009_v42, %v5017_v37  ;;  %v5393_v3 = vrot.slane %v4850_v20, 6  ;;  %v6068_v26 = vpack.c.b16 %v13238_v59, %v13235_v62  ;;  %v5795_v20 = vld [vmem:[#allocation2 + $0x84] sm:$0x1]  ;;  %v5921_v45 = vshrl.u32 %v5792_v63, 16 }
 0x2c4   : > { %v5027_v57 = vrot.slane %v5026_v29, 4  ;;  %v5035_v6 = vor.u32 %v5034_v52, %v5031_v56  ;;  %v5170_v1 = vunpack.c.l.b16 %v13250_v34  ;;  %v5924_v9 = vshll.u32 %v5792_v63, 16  ;;  %v11313_v63 = vld [vmem:[%s11664_s25 + $0x490] sm:$0xff] }
 0x2c5   : > { %v4105_v43 = vpop.f32.mrf.mxu2  ;;  %v13263_v61 = vsel %vm11954_vm11, %v10386_v30, %v5393_v3  ;;  %v5930_v55 = vshll.u32 %v5793_v31, 16  ;;  %v5923_v62 = vrot.slane %v5921_v45, 4  ;;  %v5938_v37 = vshll.u32 %v5794_v24, 16  ;;  %6874 = vmatpush.bf16.msrb.mxu2 %v11313_v63  ;;  %v13289_v45 = vld [vmem:[#allocation2 + $0x78] sm:$0xf] }
 0x2c6   : > { %v4138_v25 = vadd.f32 %v4105_v43, %v3943_v46  ;;  %v13256_v46 = vsel %vm11954_vm11, %v10385_v54, %v5389_v14  ;;  %v13267_v11 = vsel %vm11947_vm9, %v5027_v57, %v5035_v6  ;;  %v5445_v40 = vunpack.c.l.b16 %v13263_v61  ;;  %v13275_v14 = vld [vmem:[#allocation2 + $0x84] sm:$0x3]  ;;  %v13284_v6 = vld [vmem:[#allocation2 + $0x8c] sm:$0x3] }
 0x2c7   : > { %v4523_v50 = vpop.f32.mrf.mxu3  ;;  %v3913_v48 = vpop.f32.mrf.mxu1  ;;  %v5444_v13 = vunpack.c.l.b16 %v13256_v46  ;;  %v5171_v49 = vunpack.c.l.b16 %v13267_v11  ;;  %v5926_v59 = vrot.slane %v5924_v9, 5  ;;  %v5944_v42 = vshll.u32 %v5795_v20, 16 }
 0x2c8   : > { %v13258_v22 = vadd.f32 %v4523_v50, %v4138_v25  ;;  %v3944_v58 = vadd.f32 %v3913_v48, %v12897_v33  ;;  %v5935_v33 = vshrl.u32 %v5794_v24, 16  ;;  %v5932_v15 = vrot.slane %v5930_v55, 5  ;;  %v11515_v24 = vld [vmem:[#allocation2 + $0x88] sm:$0xe] }
 0x2c9   : > { %v5940_v54 = vrot.slane %v5938_v37, 5  ;;  %v13279_v30 = vadd.f32 %v13158_v28, %v13175_v51  ;;  %v5927_v43 = vor.u32 %v5926_v59, %v5923_v62  ;;  %v5047_v3 = vshrl.u32 %v13275_v14, 16 }
 0x2ca   : > { %5265 = vmatmul.bf16.gmra.mxu1 %v5181_v8  ;;  %5539 = vmatmul.bf16.gmra.mxu2 %v5455_v19  ;;  %v5937_v56 = vrot.slane %v5935_v33, 4  ;;  %v5946_v19 = vrot.slane %v5944_v42, 5  ;;  %v5050_v31 = vshll.u32 %v13275_v14, 16  ;;  %v5056_v61 = vshrl.u32 %v11515_v24, 16  ;;  %v5317_v42 = vld [vmem:[#allocation2 + $0x80] sm:$0xc] }
 0x2cb   : > { %v13273_v21 = vpop.f32.mrf.mxu0  ;;  %v5928_v57 = vrot.slane %v5927_v43, 4  ;;  %v5049_v55 = vrot.slane %v5047_v3, 5  ;;  %v5318_v43 = vld [vmem:[#allocation2 + $0x88] sm:$0xc]  ;;  %v5401_v34 = vrot.slane %v13284_v6, 6 }
 0x2cc   : > { %5734 = vmatmul.bf16.gmra.mxu3 %v10472_v18  ;;  %v11514_v18 = vld [vmem:[#allocation2 + $0x80] sm:$0xe]  ;;  %v5941_v8 = vor.u32 %v5940_v54, %v5937_v56  ;;  %v5052_v37 = vrot.slane %v5050_v31, 6  ;;  %v5058_v59 = vrot.slane %v5056_v61, 5  ;;  %v5397_v31 = vrot.slane %v13275_v14, 6 }
 0x2cd   : > { %v4108_v16 = vpop.f32.mrf.mxu2  ;;  %v5038_v29 = vshrl.u32 %v11514_v18, 16  ;;  %v5041_v52 = vshll.u32 %v11514_v18, 16  ;;  %v5933_v62 = vsel %vm11795_vm2, %v5928_v57, %v5932_v15  ;;  %v11321_v18 = vld [vmem:[%s11664_s25 + $0x4d0] sm:$0xff]  ;;  %v10388_v61 = vrot.slane %v5318_v43, 10 }
 0x2ce   : > { %v4139_v25 = vadd.f32 %v4108_v16, %v3944_v58  ;;  %6152 = vmatmul.bf16.gmra.mxu0 %v6068_v26  ;;  %v5942_v9 = vrot.slane %v5941_v8, 4  ;;  %v11283_v26 = vld [vmem:[#allocation2 + $0x7c] sm:$0xf0]  ;;  %v13295_v54 = vunpack.c.l.b16 %v5933_v62  ;;  %v5059_v16 = vshll.u32 %v11515_v24, 16  ;;  %7148 = vmatpush.bf16.msrb.mxu3 %v11321_v18 }
 0x2cf   : > { %v4526_v50 = vpop.f32.mrf.mxu3  ;;  %v3915_v48 = vpop.f32.mrf.mxu1  ;;  %v5040_v28 = vrot.slane %v5038_v29, 5  ;;  %v5043_v51 = vrot.slane %v5041_v52, 6  ;;  %v11305_v29 = vld [vmem:[%s11664_s25 + $0x450] sm:$0xff]  ;;  %v5053_v15 = vor.u32 %v5052_v37, %v5049_v55 }
 0x2d0   : > { %v13286_v20 = vadd.f32 %v4526_v50, %v4139_v25  ;;  %v3945_v58 = vadd.f32 %v3915_v48, %v12901_v36  ;;  %v5947_v56 = vsel %vm11795_vm2, %v5942_v9, %v5946_v19  ;;  %v5065_v36 = vshrl.u32 %v13284_v6, 16  ;;  %6408 = vmatpush.bf16.msrb.mxu1 %v11305_v29  ;;  %v11337_v48 = vld [vmem:[%s11664_s25 + $0x510] sm:$0xff]  ;;  %v5796_v9 = vld [vmem:[#allocation2 + $0x88] sm:$0xf] }
 0x2d1   : > { %v5044_v33 = vor.u32 %v5043_v51, %v5040_v28  ;;  %v13300_v52 = vunpack.c.l.b16 %v5947_v56  ;;  %v5068_v25 = vshll.u32 %v13284_v6, 16  ;;  %v5061_v8 = vrot.slane %v5059_v16, 6  ;;  %v5798_v56 = vld [vmem:[#allocation2 + $0x90] sm:$0xf]  ;;  %7343 = vmatpush.bf16.msrb.mxu0 %v11337_v48  ;;  %v5799_v16 = vld [vmem:[#allocation2 + $0x94] sm:$0x1] }
 0x2d2   : > { %v5067_v3 = vrot.slane %v5065_v36, 5  ;;  %v10387_v19 = vrot.slane %v5317_v42, 10  ;;  %v5456_v28 = vpack.c.b16 %v5445_v40, %v5444_v13  ;;  %v10476_v51 = vor.u32 %v11283_v26, %v13289_v45  ;;  %v5797_v42 = vld [vmem:[#allocation2 + $0x8c] sm:$0x1]  ;;  %v13328_v45 = vld [vmem:[#allocation2 + $0x88] sm:$0xf] }
 0x2d3   : > { %v5045_v63 = vrot.slane %v5044_v33, 4  ;;  %v13303_v50 = vpop.f32.mrf.mxu0  ;;  %v5070_v24 = vrot.slane %v5068_v25, 6  ;;  %v5182_v33 = vpack.c.b16 %v5171_v49, %v5170_v1  ;;  %v6069_v14 = vpack.c.b16 %v13300_v52, %v13295_v54  ;;  %v13330_v26 = vld [vmem:[#allocation2 + $0x8c] sm:$0xf0] }
 0x2d4   : > { %v5062_v37 = vor.u32 %v5061_v8, %v5058_v59  ;;  %v5949_v59 = vshrl.u32 %v5796_v9, 16  ;;  %v5402_v54 = vsel %vm11954_vm11, %v10388_v61, %v5401_v34  ;;  %v5952_v36 = vshll.u32 %v5796_v9, 16  ;;  %v11516_v9 = vld [vmem:[#allocation2 + $0x90] sm:$0xe] }
 0x2d5   : > { %v4110_v57 = vpop.f32.mrf.mxu2  ;;  %v13318_v13 = vsel %vm11947_vm9, %v5045_v63, %v5053_v15  ;;  %v5071_v40 = vor.u32 %v5070_v24, %v5067_v3  ;;  %v5958_v43 = vshll.u32 %v5797_v42, 16  ;;  %v5963_v18 = vshrl.u32 %v5798_v56, 16 }
 0x2d6   : > { %v4140_v55 = vadd.f32 %v4110_v57, %v3945_v58  ;;  %v13322_v58 = vsel %vm11954_vm11, %v10387_v19, %v5397_v31  ;;  %v5063_v49 = vrot.slane %v5062_v37, 4  ;;  %v5172_v6 = vunpack.c.l.b16 %v13318_v13  ;;  %v13342_v57 = vld [vmem:[#allocation2 + $0x94] sm:$0x3] }
 0x2d7   : > { %v4528_v62 = vpop.f32.mrf.mxu3  ;;  %v3918_v46 = vpop.f32.mrf.mxu1  ;;  %v5446_v29 = vunpack.c.l.b16 %v13322_v58  ;;  %v5966_v52 = vshll.u32 %v5798_v56, 16  ;;  %v10480_v15 = vor.u32 %v13330_v26, %v13328_v45  ;;  %v5954_v25 = vrot.slane %v5952_v36, 5 }
 0x2d8   : > { %v13325_v11 = vadd.f32 %v4528_v62, %v4140_v55  ;;  %v3946_v1 = vadd.f32 %v3918_v46, %v12924_v53  ;;  %v5951_v53 = vrot.slane %v5949_v59, 4  ;;  %v5072_v63 = vsel %vm11947_vm9, %v5063_v49, %v5071_v40  ;;  %v13348_v46 = vld [vmem:[#allocation2 + $0x9c] sm:$0x3]  ;;  %v11312_v59 = vld [vmem:[%s11664_s25 + $0x488] sm:$0xff] }
 0x2d9   : > { %v5965_v8 = vrot.slane %v5963_v18, 4  ;;  %v5447_v19 = vunpack.c.l.b16 %v5402_v54  ;;  %v5968_v31 = vrot.slane %v5966_v52, 5  ;;  %v5972_v48 = vshll.u32 %v5799_v16, 16  ;;  %v11320_v54 = vld [vmem:[%s11664_s25 + $0x4c8] sm:$0xff]  ;;  %6875 = vmatpush.bf16.msrb.mxu2 %v11312_v59 }
 0x2da   : > { %5270 = vmatmul.bf16.gmra.mxu1 %v5182_v33  ;;  %5544 = vmatmul.bf16.gmra.mxu2 %v5456_v28  ;;  %v13346_v28 = vadd.f32 %v13185_v41, %v13205_v2  ;;  %v5955_v24 = vor.u32 %v5954_v25, %v5951_v53  ;;  %v5960_v61 = vrot.slane %v5958_v43, 5  ;;  %v5074_v55 = vshrl.u32 %v11516_v9, 16  ;;  %v11517_v25 = vld [vmem:[#allocation2 + $0x98] sm:$0xe] }
 0x2db   : > { %v13340_v3 = vpop.f32.mrf.mxu0  ;;  %v5077_v62 = vshll.u32 %v11516_v9, 16  ;;  %v5969_v42 = vor.u32 %v5968_v31, %v5965_v8  ;;  %v5974_v56 = vrot.slane %v5972_v48, 5  ;;  %v5083_v40 = vshrl.u32 %v13342_v57, 16  ;;  %v5319_v8 = vld [vmem:[#allocation2 + $0x90] sm:$0xc]  ;;  %7149 = vmatpush.bf16.msrb.mxu3 %v11320_v54  ;;  %v11304_v9 = vld [vmem:[%s11664_s25 + $0x448] sm:$0xff] }
 0x2dc   : > { %5739 = vmatmul.bf16.gmra.mxu3 %v10476_v51  ;;  %v5956_v41 = vrot.slane %v5955_v24, 4  ;;  %v5076_v2 = vrot.slane %v5074_v55, 5  ;;  %v5086_v49 = vshll.u32 %v13342_v57, 16  ;;  %v5173_v18 = vunpack.c.l.b16 %v5072_v63  ;;  %6409 = vmatpush.bf16.msrb.mxu1 %v11304_v9 }
 0x2dd   : > { %v4113_v51 = vpop.f32.mrf.mxu2  ;;  %v5079_v34 = vrot.slane %v5077_v62, 6  ;;  %v5970_v36 = vrot.slane %v5969_v42, 4  ;;  %v5085_v43 = vrot.slane %v5083_v40, 5  ;;  %v5457_v31 = vpack.c.b16 %v5447_v19, %v5446_v29 }
 0x2de   : > { %v4141_v33 = vadd.f32 %v4113_v51, %v3946_v1  ;;  %6157 = vmatmul.bf16.gmra.mxu0 %v6069_v14  ;;  %v5088_v52 = vrot.slane %v5086_v49, 6  ;;  %v5092_v14 = vshrl.u32 %v11517_v25, 16  ;;  %v5961_v48 = vsel %vm11795_vm2, %v5956_v41, %v5960_v61 }
 0x2df   : > { %v4531_v37 = vpop.f32.mrf.mxu3  ;;  %v3920_v58 = vpop.f32.mrf.mxu1  ;;  %v5080_v53 = vor.u32 %v5079_v34, %v5076_v2  ;;  %v5095_v51 = vshll.u32 %v11517_v25, 16  ;;  %v5101_v24 = vshrl.u32 %v13348_v46, 16  ;;  %v5975_v63 = vsel %vm11795_vm2, %v5970_v36, %v5974_v56 }
 0x2e0   : > { %v13354_v16 = vadd.f32 %v4531_v37, %v4141_v33  ;;  %v3947_v1 = vadd.f32 %v3920_v58, %v12936_v4  ;;  %v5320_v4 = vld [vmem:[#allocation2 + $0x98] sm:$0xc]  ;;  %v5089_v62 = vor.u32 %v5088_v52, %v5085_v43  ;;  %v5094_v33 = vrot.slane %v5092_v14, 5  ;;  %v11336_v58 = vld [vmem:[%s11664_s25 + $0x508] sm:$0xff] }
 0x2e1   : > { %v5081_v55 = vrot.slane %v5080_v53, 4  ;;  %v5800_v37 = vld [vmem:[#allocation2 + $0x98] sm:$0xf]  ;;  %v5097_v40 = vrot.slane %v5095_v51, 6  ;;  %v5103_v29 = vrot.slane %v5101_v24, 5  ;;  %v5104_v19 = vshll.u32 %v13348_v46, 16  ;;  %7344 = vmatpush.bf16.msrb.mxu0 %v11336_v58 }
 0x2e2   : > { %v10389_v61 = vrot.slane %v5319_v8, 10  ;;  %v5183_v2 = vpack.c.b16 %v5173_v18, %v5172_v6  ;;  %v6059_v34 = vunpack.c.l.b16 %v5961_v48  ;;  %v5405_v56 = vrot.slane %v13342_v57, 6  ;;  %v5801_v6 = vld [vmem:[#allocation2 + $0x9c] sm:$0x1]  ;;  %v5802_v57 = vld [vmem:[#allocation2 + $0xa0] sm:$0xf] }
 0x2e3   : > { %v13363_v42 = vpop.f32.mrf.mxu0  ;;  %v10390_v49 = vrot.slane %v5320_v4, 10  ;;  %v6060_v36 = vunpack.c.l.b16 %v5975_v63  ;;  %v5098_v43 = vor.u32 %v5097_v40, %v5094_v33  ;;  %v5106_v53 = vrot.slane %v5104_v19, 6  ;;  %v5803_v24 = vld [vmem:[#allocation2 + $0xa4] sm:$0x1] }
 0x2e4   : > { %v13372_v25 = vsel %vm11947_vm9, %v5081_v55, %v5089_v62  ;;  %v13376_v14 = vsel %vm11954_vm11, %v10389_v61, %v5405_v56  ;;  %v5409_v13 = vrot.slane %v13348_v46, 6  ;;  %v5977_v18 = vshrl.u32 %v5800_v37, 16 }
 0x2e5   : > { %v4115_v41 = vpop.f32.mrf.mxu2  ;;  %v5099_v48 = vrot.slane %v5098_v43, 4  ;;  %v5107_v51 = vor.u32 %v5106_v53, %v5103_v29  ;;  %v5980_v63 = vshll.u32 %v5800_v37, 16  ;;  %v6070_v55 = vpack.c.b16 %v6060_v36, %v6059_v34  ;;  %v13403_v36 = vld [vmem:[#allocation2 + $0x9c] sm:$0xf0] }
 0x2e6   : > { %v4142_v59 = vadd.f32 %v4115_v41, %v3947_v1  ;;  %v5410_v4 = vsel %vm11954_vm11, %v10390_v49, %v5409_v13  ;;  %v5979_v9 = vrot.slane %v5977_v18, 4  ;;  %v5174_v46 = vunpack.c.l.b16 %v13372_v25  ;;  %v13395_v41 = vld [vmem:[#allocation2 + $0xa4] sm:$0x3]  ;;  %v11518_v43 = vld [vmem:[#allocation2 + $0xa0] sm:$0xe] }
 0x2e7   : > { %v4533_v54 = vpop.f32.mrf.mxu3  ;;  %v3923_v52 = vpop.f32.mrf.mxu1  ;;  %v5986_v62 = vshll.u32 %v5801_v6, 16  ;;  %v5991_v33 = vshrl.u32 %v5802_v57, 16  ;;  %v5982_v40 = vrot.slane %v5980_v63, 5  ;;  %v5994_v29 = vshll.u32 %v5802_v57, 16  ;;  %v11311_v13 = vld [vmem:[%s11664_s25 + $0x480] sm:$0xff] }
 0x2e8   : > { %v13379_v1 = vadd.f32 %v4533_v54, %v4142_v59  ;;  %v3948_v8 = vadd.f32 %v3923_v52, %v12956_v7  ;;  %v5448_v7 = vunpack.c.l.b16 %v13376_v14  ;;  %v6000_v19 = vshll.u32 %v5803_v24, 16  ;;  %v11519_v18 = vld [vmem:[#allocation2 + $0xa8] sm:$0xe]  ;;  %6876 = vmatpush.bf16.msrb.mxu2 %v11311_v13  ;;  %v11335_v13 = vld [vmem:[%s11664_s25 + $0x500] sm:$0xff] }
 0x2e9   : > { %v13393_v37 = vsel %vm11947_vm9, %v5099_v48, %v5107_v51  ;;  %v5993_v58 = vrot.slane %v5991_v33, 4  ;;  %v13399_v45 = vadd.f32 %v13220_v27, %v13226_v39  ;;  %v5988_v34 = vrot.slane %v5986_v62, 5  ;;  %v11319_v51 = vld [vmem:[%s11664_s25 + $0x4c0] sm:$0xff]  ;;  %7345 = vmatpush.bf16.msrb.mxu0 %v11335_v13 }
 0x2ea   : > { %5275 = vmatmul.bf16.gmra.mxu1 %v5183_v2  ;;  %5549 = vmatmul.bf16.gmra.mxu2 %v5457_v31  ;;  %v5449_v31 = vunpack.c.l.b16 %v5410_v4  ;;  %v5983_v2 = vor.u32 %v5982_v40, %v5979_v9  ;;  %v5996_v56 = vrot.slane %v5994_v29, 5  ;;  %v6002_v49 = vrot.slane %v6000_v19, 5  ;;  %v4856_v4 = vld [vmem:[#allocation2 + $0xac] sm:$0x3]  ;;  %v11303_v29 = vld [vmem:[%s11664_s25 + $0x440] sm:$0xff] }
 0x2eb   : > { %v13389_v61 = vpop.f32.mrf.mxu0  ;;  %v5110_v53 = vshrl.u32 %v11518_v43, 16  ;;  %v5113_v52 = vshll.u32 %v11518_v43, 16  ;;  %v5119_v14 = vshrl.u32 %v13395_v41, 16  ;;  %v5122_v57 = vshll.u32 %v13395_v41, 16  ;;  %7150 = vmatpush.bf16.msrb.mxu3 %v11319_v51  ;;  %6410 = vmatpush.bf16.msrb.mxu1 %v11303_v29  ;;  %v5805_v29 = vld [vmem:[#allocation2 + $0xac] sm:$0x1] }
 0x2ec   : > { %5744 = vmatmul.bf16.gmra.mxu3 %v10480_v15  ;;  %v13401_v15 = vld [vmem:[#allocation2 + $0x98] sm:$0xf]  ;;  %v5984_v39 = vrot.slane %v5983_v2, 4  ;;  %v5997_v6 = vor.u32 %v5996_v56, %v5993_v58  ;;  %v5128_v48 = vshrl.u32 %v11519_v18, 16  ;;  %v5175_v19 = vunpack.c.l.b16 %v13393_v37  ;;  %v5321_v56 = vld [vmem:[#allocation2 + $0xa0] sm:$0xc] }
 0x2ed   : > { %v4118_v26 = vpop.f32.mrf.mxu2  ;;  %v5112_v9 = vrot.slane %v5110_v53, 5  ;;  %v5115_v63 = vrot.slane %v5113_v52, 6  ;;  %v5121_v33 = vrot.slane %v5119_v14, 5  ;;  %v5124_v40 = vrot.slane %v5122_v57, 6  ;;  %v5322_v53 = vld [vmem:[#allocation2 + $0xa8] sm:$0xc] }
 0x2ee   : > { %v4143_v59 = vadd.f32 %v4118_v26, %v3948_v8  ;;  %6162 = vmatmul.bf16.gmra.mxu0 %v6070_v55  ;;  %v10484_v55 = vor.u32 %v13403_v36, %v13401_v15  ;;  %v5998_v62 = vrot.slane %v5997_v6, 4  ;;  %v5130_v26 = vrot.slane %v5128_v48, 5 }
 0x2ef   : > { %v4536_v54 = vpop.f32.mrf.mxu3  ;;  %v3925_v27 = vpop.f32.mrf.mxu1  ;;  %v5116_v58 = vor.u32 %v5115_v63, %v5112_v9  ;;  %v5131_v2 = vshll.u32 %v11519_v18, 16  ;;  %v5140_v43 = vshll.u32 %v4856_v4, 16  ;;  %v5125_v37 = vor.u32 %v5124_v40, %v5121_v33  ;;  %v5804_v9 = vld [vmem:[#allocation2 + $0xa8] sm:$0xf] }
 0x2f0   : > { %v13409_v8 = vadd.f32 %v4536_v54, %v4143_v59  ;;  %v3949_v24 = vadd.f32 %v3925_v27, %v12982_v35  ;;  %v5458_v35 = vpack.c.b16 %v5449_v31, %v5448_v7  ;;  %v5989_v59 = vsel %vm11795_vm2, %v5984_v39, %v5988_v34 }
 0x2f1   : > { %v5137_v54 = vshrl.u32 %v4856_v4, 16  ;;  %v6003_v36 = vsel %vm11795_vm2, %v5998_v62, %v6002_v49  ;;  %v5117_v52 = vrot.slane %v5116_v58, 4  ;;  %v5133_v14 = vrot.slane %v5131_v2, 6  ;;  %v5806_v58 = vld [vmem:[#allocation2 + $0xb0] sm:$0xf] }
 0x2f2   : > { %v5142_v57 = vrot.slane %v5140_v43, 6  ;;  %v10391_v7 = vrot.slane %v5321_v56, 10  ;;  %v5413_v31 = vrot.slane %v13395_v41, 6  ;;  %v5184_v18 = vpack.c.b16 %v5175_v19, %v5174_v46  ;;  %v5807_v19 = vld [vmem:[#allocation2 + $0xb4] sm:$0x1] }
 0x2f3   : > { %v13418_v15 = vpop.f32.mrf.mxu0  ;;  %v5139_v6 = vrot.slane %v5137_v54, 5  ;;  %v5134_v48 = vor.u32 %v5133_v14, %v5130_v26  ;;  %v10392_v51 = vrot.slane %v5322_v53, 10  ;;  %v6061_v63 = vunpack.c.l.b16 %v5989_v59 }
 0x2f4   : > { %v6062_v62 = vunpack.c.l.b16 %v6003_v36  ;;  %v5417_v40 = vrot.slane %v4856_v4, 6  ;;  %v5126_v25 = vsel %vm11947_vm9, %v5117_v52, %v5125_v37  ;;  %v5414_v46 = vsel %vm11954_vm11, %v10391_v7, %v5413_v31 }
 0x2f5   : > { %v4120_v27 = vpop.f32.mrf.mxu2  ;;  %v5143_v33 = vor.u32 %v5142_v57, %v5139_v6  ;;  %v6005_v26 = vshrl.u32 %v5804_v9, 16  ;;  %v6008_v56 = vshll.u32 %v5804_v9, 16  ;;  %v6019_v54 = vshrl.u32 %v5806_v58, 16  ;;  %v13439_v6 = vld [vmem:[#allocation2 + $0x18] sm:$0xe] }
 0x2f6   : > { %v4144_v34 = vadd.f32 %v4120_v27, %v3949_v24  ;;  %v5135_v24 = vrot.slane %v5134_v48, 4  ;;  %v5418_v59 = vsel %vm11954_vm11, %v10392_v51, %v5417_v40  ;;  %v6071_v43 = vpack.c.b16 %v6062_v62, %v6061_v63  ;;  %v11358_v57 = vld [vmem:[%s11664_s25 + $0x5b8] sm:$0xff] }
 0x2f7   : > { %v4538_v39 = vpop.f32.mrf.mxu3  ;;  %v3928_v49 = vpop.f32.mrf.mxu1  ;;  %v6007_v53 = vrot.slane %v6005_v26, 4  ;;  %v6010_v36 = vrot.slane %v6008_v56, 5  ;;  %v6022_v52 = vshll.u32 %v5806_v58, 16  ;;  %v5176_v14 = vunpack.c.l.b16 %v5126_v25  ;;  %8030 = vmatpush.bf16.msra.mxu2 %v11358_v57  ;;  %v11366_v58 = vld [vmem:[%s11664_s25 + $0x5f8] sm:$0xff] }
 0x2f8   : > { %v13426_v2 = vadd.f32 %v4538_v39, %v4144_v34  ;;  %v3950_v41 = vadd.f32 %v3928_v49, %v13039_v60  ;;  %v5144_v4 = vsel %vm11947_vm9, %v5135_v24, %v5143_v33  ;;  %v6014_v60 = vshll.u32 %v5805_v29, 16  ;;  %v13442_v39 = vld [vmem:[#allocation2 + $0xa8] sm:$0xf]  ;;  %v11350_v56 = vld [vmem:[%s11664_s25 + $0x578] sm:$0xff]  ;;  %8496 = vmatpush.bf16.msra.mxu3 %v11366_v58 }
 0x2f9   : > { %v5450_v13 = vunpack.c.l.b16 %v5414_v46  ;;  %v6021_v27 = vrot.slane %v6019_v54, 4  ;;  %v5177_v31 = vunpack.c.l.b16 %v5144_v4  ;;  %v5451_v34 = vunpack.c.l.b16 %v5418_v59  ;;  %7756 = vmatpush.bf16.msra.mxu1 %v11350_v56  ;;  %v6935_v56 = vld [vmem:[#allocation2 + $0x20] sm:$0xc] }
 0x2fa   : > { %5280 = vmatmul.bf16.gmra.mxu1 %v5184_v18  ;;  %5554 = vmatmul.bf16.gmra.mxu2 %v5458_v35  ;;  %v6028_v35 = vshll.u32 %v5807_v19, 16  ;;  %v6011_v18 = vor.u32 %v6010_v36, %v6007_v53  ;;  %v6024_v48 = vrot.slane %v6022_v52, 5  ;;  %v6016_v49 = vrot.slane %v6014_v60, 5  ;;  %v13455_v19 = vld [vmem:[#allocation2 + $0x1c] sm:$0x3] }
 0x2fb   : > { %v13437_v37 = vpop.f32.mrf.mxu0  ;;  %v6485_v29 = vshrl.u32 %v13439_v6, 16  ;;  %v6488_v26 = vshll.u32 %v13439_v6, 16  ;;  %v5185_v4 = vpack.c.b16 %v5177_v31, %v5176_v14  ;;  %v5459_v59 = vpack.c.b16 %v5451_v34, %v5450_v13  ;;  %v6469_v36 = vld [vmem:[#allocation2 + $0x24] sm:$0x3] }
 0x2fc   : > { %5749 = vmatmul.bf16.gmra.mxu3 %v10484_v55  ;;  %v13444_v55 = vld [vmem:[#allocation2 + $0xac] sm:$0xf0]  ;;  %v6012_v62 = vrot.slane %v6011_v18, 4  ;;  %v6025_v33 = vor.u32 %v6024_v48, %v6021_v27  ;;  %v6030_v40 = vrot.slane %v6028_v35, 5  ;;  %v10569_v54 = vrot.slane %v13439_v6, 9  ;;  %v11374_v18 = vld [vmem:[%s11664_s25 + $0x638] sm:$0xff] }
 0x2fd   : > { %v4123_v7 = vpop.f32.mrf.mxu2  ;;  %v10488_v46 = vor.u32 %v13444_v55, %v13442_v39  ;;  %v6487_v52 = vrot.slane %v6485_v29, 5  ;;  %v6490_v27 = vrot.slane %v6488_v26, 6  ;;  %v6494_v14 = vshrl.u32 %v13455_v19, 16  ;;  %v11521_v31 = vld [vmem:[#allocation2 + $0x24] sm:$0x1]  ;;  %8770 = vmatpush.bf16.msra.mxu0 %v11374_v18 }
 0x2fe   : > { %v4145_v51 = vadd.f32 %v4123_v7, %v3950_v41  ;;  %6167 = vmatmul.bf16.gmra.mxu0 %v6071_v43  ;;  %v13453_v41 = vld [vmem:[#allocation2 + $0x20] sm:$0xe]  ;;  %v6026_v60 = vrot.slane %v6025_v33, 4  ;;  %v6017_v43 = vsel %vm11795_vm2, %v6012_v62, %v6016_v49  ;;  %v6497_v13 = vshll.u32 %v13455_v19, 16  ;;  %v6934_v62 = vld [vmem:[#allocation2 + $0x18] sm:$0xc] }
 0x2ff   : > { %v4541_v9 = vpop.f32.mrf.mxu3  ;;  %v3930_v63 = vpop.f32.mrf.mxu1  ;;  %v6503_v6 = vshrl.u32 %v13453_v41, 16  ;;  %v10570_v7 = vrot.slane %v13453_v41, 9  ;;  %v6248_v34 = vrot.slane %v11521_v31, 5  ;;  %v6491_v39 = vor.u32 %v6490_v27, %v6487_v52 }
 0x300   : > { %v13448_v24 = vadd.f32 %v4541_v9, %v4145_v51  ;;  %v3951_v25 = vadd.f32 %v3930_v63, %v13043_v5  ;;  %v11520_v5 = vld [vmem:[#allocation2 + $0x1c] sm:$0x1]  ;;  %v6031_v35 = vsel %vm11795_vm2, %v6026_v60, %v6030_v40  ;;  %v6506_v55 = vshll.u32 %v13453_v41, 16 }
 0x301   : > { %v6244_v53 = vrot.slane %v11520_v5, 5  ;;  %v6496_v51 = vrot.slane %v6494_v14, 5  ;;  %v6499_v9 = vrot.slane %v6497_v13, 6  ;;  %v6505_v49 = vrot.slane %v6503_v6, 5 }
 0x302   : > { %v6512_v63 = vshrl.u32 %v6469_v36, 16  ;;  %v6063_v29 = vunpack.c.l.b16 %v6017_v43  ;;  %v6064_v58 = vunpack.c.l.b16 %v6031_v35  ;;  %v6508_v26 = vrot.slane %v6506_v55, 6 }
 0x303   : > { %v13467_v57 = vpop.f32.mrf.mxu0  ;;  %v6492_v5 = vrot.slane %v6491_v39, 4  ;;  %v6500_v31 = vor.u32 %v6499_v9, %v6496_v51  ;;  %v6515_v27 = vshll.u32 %v6469_v36, 16  ;;  %v10681_v6 = vrot.slane %v6934_v62, 10  ;;  %v11357_v9 = vld [vmem:[%s11664_s25 + $0x5b0] sm:$0xff] }
 0x304   : > { %v6514_v52 = vrot.slane %v6512_v63, 5  ;;  %v6509_v13 = vor.u32 %v6508_v26, %v6505_v49  ;;  %v6988_v43 = vrot.slane %v6469_v36, 6  ;;  %v6072_v55 = vpack.c.b16 %v6064_v58, %v6063_v29  ;;  %8031 = vmatpush.bf16.msra.mxu2 %v11357_v9 }
 0x305   : > { %v4125_v48 = vpop.f32.mrf.mxu2  ;;  %v6517_v0 = vrot.slane %v6515_v27, 6  ;;  %v6245_v39 = vsel %vm11907_vm5, %v10569_v54, %v6244_v53  ;;  %v13480_v51 = vadd.f32 %v13240_v12, %v13258_v22  ;;  %v13498_v54 = vld [vmem:[#allocation2 + $0x2c] sm:$0x3]  ;;  %v13502_v53 = vadd.f32 %v13303_v50, %v13325_v11 }
 0x306   : > { %v4146_v33 = vadd.f32 %v4125_v48, %v3951_v25  ;;  %v6984_v25 = vrot.slane %v13455_v19, 6  ;;  %v10682_v48 = vrot.slane %v6935_v56, 10  ;;  %v6510_v35 = vrot.slane %v6509_v13, 4 }
 0x307   : > { %v4543_v40 = vpop.f32.mrf.mxu3  ;;  %v3933_v60 = vpop.f32.mrf.mxu1  ;;  %v6518_v18 = vor.u32 %v6517_v0, %v6514_v52  ;;  %v6249_v19 = vsel %vm11907_vm5, %v10570_v7, %v6248_v34  ;;  %v6323_v34 = vunpack.c.l.b16 %v6245_v39  ;;  %v6530_v11 = vshrl.u32 %v13498_v54, 16  ;;  %v11522_v52 = vld [vmem:[#allocation2 + $0x2c] sm:$0x1] }
 0x308   : > { %v13472_v41 = vadd.f32 %v4543_v40, %v4146_v33  ;;  %v3952_v14 = vadd.f32 %v3933_v60, %v13099_v32  ;;  %v6985_v12 = vsel %vm11954_vm11, %v10681_v6, %v6984_v25  ;;  %v6989_v22 = vsel %vm11954_vm11, %v10682_v48, %v6988_v43  ;;  %v13508_v33 = vld [vmem:[#allocation2 + $0x30] sm:$0xe]  ;;  %v13510_v40 = vld [vmem:[#allocation2 + $0x34] sm:$0x3] }
 0x309   : > { %v6324_v63 = vunpack.c.l.b16 %v6249_v19  ;;  %v7063_v26 = vunpack.c.l.b16 %v6985_v12  ;;  %v7064_v56 = vunpack.c.l.b16 %v6989_v22  ;;  %v11365_v60 = vld [vmem:[%s11664_s25 + $0x5f0] sm:$0xff]  ;;  %v6252_v27 = vrot.slane %v11522_v52, 5 }
 0x30a   : > { %5285 = vmatmul.bf16.gmra.mxu1 %v5185_v4  ;;  %5559 = vmatmul.bf16.gmra.mxu2 %v5459_v59  ;;  %v6501_v4 = vsel %vm11947_vm9, %v6492_v5, %v6500_v31  ;;  %v13488_v59 = vld [vmem:[#allocation2 + $0x28] sm:$0xe]  ;;  %v11349_v5 = vld [vmem:[%s11664_s25 + $0x570] sm:$0xff]  ;;  %v6533_v6 = vshll.u32 %v13498_v54, 16  ;;  %v6539_v25 = vshrl.u32 %v13508_v33, 16  ;;  %v6542_v48 = vshll.u32 %v13508_v33, 16 }
 0x30b   : > { %v13482_v32 = vpop.f32.mrf.mxu0  ;;  %v6789_v62 = vunpack.c.l.b16 %v6501_v4  ;;  %v6524_v50 = vshll.u32 %v13488_v59, 16  ;;  %v6548_v43 = vshrl.u32 %v13510_v40, 16  ;;  %8497 = vmatpush.bf16.msra.mxu3 %v11365_v60  ;;  %7757 = vmatpush.bf16.msra.mxu1 %v11349_v5  ;;  %v6532_v39 = vrot.slane %v6530_v11, 5  ;;  %v6937_v60 = vld [vmem:[#allocation2 + $0x30] sm:$0xc] }
 0x30c   : > { %5754 = vmatmul.bf16.gmra.mxu3 %v10488_v46  ;;  %v13492_v46 = vadd.f32 %v13273_v21, %v13286_v20  ;;  %v6519_v21 = vsel %vm11947_vm9, %v6510_v35, %v6518_v18  ;;  %v6521_v20 = vshrl.u32 %v13488_v59, 16  ;;  %v6551_v18 = vshll.u32 %v13510_v40, 16 }
 0x30d   : > { %v4128_v0 = vpop.f32.mrf.mxu2  ;;  %v6790_v31 = vunpack.c.l.b16 %v6519_v21  ;;  %v6526_v13 = vrot.slane %v6524_v50, 6  ;;  %v6339_v4 = vpack.c.b16 %v6324_v63, %v6323_v34  ;;  %v6541_v12 = vrot.slane %v6539_v25, 5 }
 0x30e   : > { %v4147_v36 = vadd.f32 %v4128_v0, %v3952_v14  ;;  %6172 = vmatmul.bf16.gmra.mxu0 %v6072_v55  ;;  %v6523_v14 = vrot.slane %v6521_v20, 5  ;;  %v6535_v0 = vrot.slane %v6533_v6, 6  ;;  %v6544_v22 = vrot.slane %v6542_v48, 6 }
 0x30f   : > { %v4546_v7 = vpop.f32.mrf.mxu3  ;;  %v3935_v49 = vpop.f32.mrf.mxu1  ;;  %v10571_v20 = vrot.slane %v13488_v59, 9  ;;  %v10572_v9 = vrot.slane %v13508_v33, 9  ;;  %v6553_v50 = vrot.slane %v6551_v18, 6  ;;  %v6805_v52 = vpack.c.b16 %v6790_v31, %v6789_v62 }
 0x310   : > { %v13514_v29 = vadd.f32 %v4546_v7, %v4147_v36  ;;  %v3953_v58 = vadd.f32 %v3935_v49, %v13101_v38  ;;  %v11523_v38 = vld [vmem:[#allocation2 + $0x34] sm:$0x1]  ;;  %v6527_v55 = vor.u32 %v6526_v13, %v6523_v14  ;;  %v6936_v36 = vld [vmem:[#allocation2 + $0x28] sm:$0xc]  ;;  %v6550_v49 = vrot.slane %v6548_v43, 5 }
 0x311   : > { %v6256_v35 = vrot.slane %v11523_v38, 5  ;;  %v11373_v7 = vld [vmem:[%s11664_s25 + $0x630] sm:$0xff]  ;;  %v7079_v14 = vpack.c.b16 %v7064_v56, %v7063_v26  ;;  %v6545_v13 = vor.u32 %v6544_v22, %v6541_v12  ;;  %v6536_v6 = vor.u32 %v6535_v0, %v6532_v39  ;;  %v10763_v43 = vld [vmem:[#allocation2 + $0x20] sm:$0xf]  ;;  %v11327_v38 = vld [vmem:[#allocation2 + $0x24] sm:$0xf0] }
 0x312   : > { %8771 = vmatpush.bf16.msra.mxu0 %v11373_v7  ;;  %v6528_v63 = vrot.slane %v6527_v55, 4  ;;  %v10683_v25 = vrot.slane %v6936_v36, 10  ;;  %v13531_v48 = vadd.f32 %v13340_v3, %v13354_v16  ;;  %v10684_v62 = vrot.slane %v6937_v60, 10 }
 0x313   : > { %v13524_v19 = vpop.f32.mrf.mxu0  ;;  %v6546_v26 = vrot.slane %v6545_v13, 4  ;;  %v6554_v56 = vor.u32 %v6553_v50, %v6550_v49  ;;  %v6996_v31 = vrot.slane %v13510_v40, 6  ;;  %v13540_v55 = vadd.f32 %v13363_v42, %v13379_v1  ;;  %v13576_v49 = vld [vmem:[#allocation2 + $0x44] sm:$0x3] }
 0x314   : > { %v6253_v3 = vsel %vm11907_vm5, %v10571_v20, %v6252_v27  ;;  %v13548_v16 = vadd.f32 %v13389_v61, %v13409_v8  ;;  %v13552_v40 = vsel %vm11947_vm9, %v6528_v63, %v6536_v6  ;;  %v13556_v42 = vadd.f32 %v13418_v15, %v13426_v2  ;;  %v13564_v61 = vld [vmem:[#allocation2 + $0x40] sm:$0xe]  ;;  %v13570_v2 = vld [vmem:[#allocation2 + $0x3c] sm:$0x3]  ;;  %v11348_v63 = vld [vmem:[%s11664_s25 + $0x568] sm:$0xff] }
 0x315   : > { %v4130_v21 = vpop.f32.mrf.mxu2  ;;  %v6325_v39 = vunpack.c.l.b16 %v6253_v3  ;;  %v6997_v15 = vsel %vm11954_vm11, %v10684_v62, %v6996_v31  ;;  %v6791_v22 = vunpack.c.l.b16 %v13552_v40  ;;  %v6566_v50 = vshrl.u32 %v13570_v2, 16  ;;  %v11524_v6 = vld [vmem:[#allocation2 + $0x3c] sm:$0x1]  ;;  %7758 = vmatpush.bf16.msra.mxu1 %v11348_v63 }
 0x316   : > { %v4148_v5 = vadd.f32 %v4130_v21, %v3953_v58  ;;  %v6992_v58 = vrot.slane %v13498_v54, 6  ;;  %v10764_v54 = vor.u32 %v11327_v38, %v10763_v43  ;;  %v11356_v21 = vld [vmem:[%s11664_s25 + $0x5a8] sm:$0xff]  ;;  %v6569_v60 = vshll.u32 %v13570_v2, 16 }
 0x317   : > { %v4548_v11 = vpop.f32.mrf.mxu3  ;;  %v5251_v34 = vpop.f32.mrf.mxu1  ;;  %v7066_v13 = vunpack.c.l.b16 %v6997_v15  ;;  %8032 = vmatpush.bf16.msra.mxu2 %v11356_v21  ;;  %v6584_v31 = vshrl.u32 %v13576_v49, 16  ;;  %v10574_v3 = vrot.slane %v13564_v61, 9  ;;  %v6587_v40 = vshll.u32 %v13576_v49, 16 }
 0x318   : > { %v13533_v59 = vadd.f32 %v4548_v11, %v4148_v5  ;;  %v5291_v33 = vadd.f32 %v5251_v34, %v13165_v17  ;;  %v6257_v17 = vsel %vm11907_vm5, %v10572_v9, %v6256_v35  ;;  %v6993_v27 = vsel %vm11954_vm11, %v10683_v25, %v6992_v58  ;;  %v13562_v35 = vld [vmem:[#allocation2 + $0x38] sm:$0xe]  ;;  %v11364_v34 = vld [vmem:[%s11664_s25 + $0x5e8] sm:$0xff] }
 0x319   : > { %v6326_v18 = vunpack.c.l.b16 %v6257_v17  ;;  %v6557_v36 = vshrl.u32 %v13562_v35, 16  ;;  %v6560_v7 = vshll.u32 %v13562_v35, 16  ;;  %v7065_v9 = vunpack.c.l.b16 %v6993_v27  ;;  %8498 = vmatpush.bf16.msra.mxu3 %v11364_v34 }
 0x31a   : > { %6411 = vmatmul.bf16.vlgmr.msrb.gmra.mxu1 %v6339_v4  ;;  %6877 = vmatmul.bf16.vlgmr.msrb.gmra.mxu2 %v6805_v52  ;;  %v6555_v4 = vsel %vm11947_vm9, %v6546_v26, %v6554_v56  ;;  %v6575_v5 = vshrl.u32 %v13564_v61, 16  ;;  %v6260_v25 = vrot.slane %v11524_v6, 5  ;;  %v10573_v62 = vrot.slane %v13562_v35, 9  ;;  %v11328_v6 = vld [vmem:[#allocation2 + $0x34] sm:$0xf0] }
 0x31b   : > { %v13558_v1 = vpop.f32.mrf.mxu0  ;;  %v6559_v38 = vrot.slane %v6557_v36, 5  ;;  %v6562_v58 = vrot.slane %v6560_v7, 6  ;;  %v6578_v56 = vshll.u32 %v13564_v61, 16  ;;  %v6568_v17 = vrot.slane %v6566_v50, 5 }
 0x31c   : > { %7151 = vmatmul.bf16.vlgmr.msrb.gmra.mxu3 %v7079_v14  ;;  %v6792_v14 = vunpack.c.l.b16 %v6555_v4  ;;  %v6577_v26 = vrot.slane %v6575_v5, 5  ;;  %v7080_v4 = vpack.c.b16 %v7066_v13, %v7065_v9  ;;  %v6586_v7 = vrot.slane %v6584_v31, 5 }
 0x31d   : > { %v5525_v8 = vpop.f32.mrf.mxu2  ;;  %v6563_v35 = vor.u32 %v6562_v58, %v6559_v38  ;;  %v6580_v15 = vrot.slane %v6578_v56, 6  ;;  %v6589_v21 = vrot.slane %v6587_v40, 6  ;;  %v7000_v5 = vrot.slane %v13570_v2, 6 }
 0x31e   : > { %v5565_v0 = vadd.f32 %v5525_v8, %v5291_v33  ;;  %7346 = vmatmul.bf16.vlgmr.msrb.gmra.mxu0 %v10764_v54  ;;  %v11525_v33 = vld [vmem:[#allocation2 + $0x44] sm:$0x1]  ;;  %v6571_v54 = vrot.slane %v6569_v60, 6  ;;  %v6340_v8 = vpack.c.b16 %v6326_v18, %v6325_v39  ;;  %v6806_v50 = vpack.c.b16 %v6792_v14, %v6791_v22  ;;  %v10767_v14 = vld [vmem:[#allocation2 + $0x30] sm:$0xf] }
 0x31f   : > { %v5720_v12 = vpop.f32.mrf.mxu3  ;;  %v5253_v20 = vpop.f32.mrf.mxu1  ;;  %v6264_v43 = vrot.slane %v11525_v33, 5  ;;  %v6581_v60 = vor.u32 %v6580_v15, %v6577_v26  ;;  %v13597_v63 = vadd.f32 %v13437_v37, %v13448_v24  ;;  %v13601_v18 = vsel %vm11907_vm5, %v10573_v62, %v6260_v25  ;;  %v13627_v15 = vld [vmem:[#allocation2 + $0x4c] sm:$0x3] }
 0x320   : > { %v13581_v11 = vadd.f32 %v5720_v12, %v5565_v0  ;;  %v5292_v52 = vadd.f32 %v5253_v20, %v13167_v47  ;;  %v6938_v47 = vld [vmem:[#allocation2 + $0x38] sm:$0xc]  ;;  %v6939_v0 = vld [vmem:[#allocation2 + $0x40] sm:$0xc]  ;;  %v11372_v12 = vld [vmem:[%s11664_s25 + $0x628] sm:$0xff]  ;;  %v6572_v13 = vor.u32 %v6571_v54, %v6568_v17  ;;  %v6564_v33 = vrot.slane %v6563_v35, 4 }
 0x321   : > { %v10685_v20 = vrot.slane %v6938_v47, 10  ;;  %8772 = vmatpush.bf16.msra.mxu0 %v11372_v12  ;;  %v13605_v9 = vsel %vm11907_vm5, %v10574_v3, %v6264_v43  ;;  %v10686_v2 = vrot.slane %v6939_v0, 10  ;;  %v7004_v37 = vrot.slane %v13576_v49, 6  ;;  %v6200_v47 = vld [vmem:[#allocation2 + $0x48] sm:$0xe] }
 0x322   : > { %v6582_v24 = vrot.slane %v6581_v60, 4  ;;  %v6590_v38 = vor.u32 %v6589_v21, %v6586_v7  ;;  %v10768_v43 = vor.u32 %v11328_v6, %v10767_v14  ;;  %v6327_v58 = vunpack.c.l.b16 %v13601_v18  ;;  %v6201_v3 = vld [vmem:[#allocation2 + $0x50] sm:$0xe]  ;;  %v11526_v17 = vld [vmem:[#allocation2 + $0x4c] sm:$0x1]  ;;  %v11347_v14 = vld [vmem:[%s11664_s25 + $0x560] sm:$0xff] }
 0x323   : > { %v13591_v27 = vpop.f32.mrf.mxu0  ;;  %v7001_v25 = vsel %vm11954_vm11, %v10685_v20, %v7000_v5  ;;  %v6328_v62 = vunpack.c.l.b16 %v13605_v9  ;;  %v6573_v49 = vsel %vm11947_vm9, %v6564_v33, %v6572_v13  ;;  %v7005_v56 = vsel %vm11954_vm11, %v10686_v2, %v7004_v37  ;;  %v11355_v20 = vld [vmem:[%s11664_s25 + $0x5a0] sm:$0xff]  ;;  %7759 = vmatpush.bf16.msra.mxu1 %v11347_v14 }
 0x324   : > { %v7067_v31 = vunpack.c.l.b16 %v7001_v25  ;;  %v6268_v54 = vrot.slane %v11526_v17, 5  ;;  %v6596_v7 = vshll.u32 %v6200_v47, 16  ;;  %v6602_v21 = vshrl.u32 %v13627_v15, 16  ;;  %8033 = vmatpush.bf16.msra.mxu2 %v11355_v20  ;;  %v6940_v17 = vld [vmem:[#allocation2 + $0x48] sm:$0xc] }
 0x325   : > { %v5527_v36 = vpop.f32.mrf.mxu2  ;;  %v6605_v60 = vshll.u32 %v13627_v15, 16 }
 0x326   : > { %v5566_v34 = vadd.f32 %v5527_v36, %v5292_v52  ;;  %v6593_v36 = vshrl.u32 %v6200_v47, 16  ;;  %v6598_v33 = vrot.slane %v6596_v7, 6  ;;  %v6604_v37 = vrot.slane %v6602_v21, 5 }
 0x327   : > { %v5722_v61 = vpop.f32.mrf.mxu3  ;;  %v5256_v39 = vpop.f32.mrf.mxu1 }
 0x328   : > { %v13607_v52 = vadd.f32 %v5722_v61, %v5566_v34  ;;  %v5293_v22 = vadd.f32 %v5256_v39, %v13279_v30  ;;  %v13617_v30 = vadd.f32 %v13467_v57, %v13472_v41  ;;  %v10575_v57 = vrot.slane %v6200_v47, 9 }
 0x329   : > { %v10576_v41 = vrot.slane %v6201_v3, 9  ;;  %v6793_v34 = vunpack.c.l.b16 %v6573_v49  ;;  %v7068_v61 = vunpack.c.l.b16 %v7005_v56  ;;  %v6611_v39 = vshrl.u32 %v6201_v3, 16 }
 0x32a   : > { %6416 = vmatmul.bf16.gmra.mxu1 %v6340_v8  ;;  %6882 = vmatmul.bf16.gmra.mxu2 %v6806_v50  ;;  %v6591_v8 = vsel %vm11947_vm9, %v6582_v24, %v6590_v38  ;;  %v13631_v50 = vld [vmem:[#allocation2 + $0x54] sm:$0x3]  ;;  %v6269_v2 = vsel %vm11907_vm5, %v10575_v57, %v6268_v54  ;;  %v6595_v6 = vrot.slane %v6593_v36, 5  ;;  %v6607_v24 = vrot.slane %v6605_v60, 6 }
 0x32b   : > { %v13619_v26 = vpop.f32.mrf.mxu0  ;;  %v6794_v13 = vunpack.c.l.b16 %v6591_v8  ;;  %v6613_v25 = vrot.slane %v6611_v39, 5  ;;  %v6620_v49 = vshrl.u32 %v13631_v50, 16  ;;  %v6623_v47 = vshll.u32 %v13631_v50, 16 }
 0x32c   : > { %7156 = vmatmul.bf16.gmra.mxu3 %v7080_v4  ;;  %v11527_v4 = vld [vmem:[#allocation2 + $0x54] sm:$0x1]  ;;  %v6599_v56 = vor.u32 %v6598_v33, %v6595_v6  ;;  %v7081_v8 = vpack.c.b16 %v7068_v61, %v7067_v31  ;;  %v6608_v36 = vor.u32 %v6607_v24, %v6604_v37  ;;  %v10687_v61 = vrot.slane %v6940_v17, 10  ;;  %v13677_v17 = vld [vmem:[#allocation2 + $0x7c] sm:$0x3] }
 0x32d   : > { %v5530_v40 = vpop.f32.mrf.mxu2  ;;  %v6272_v35 = vrot.slane %v11527_v4, 5  ;;  %v6622_v4 = vrot.slane %v6620_v49, 5  ;;  %v6625_v7 = vrot.slane %v6623_v47, 6  ;;  %v7008_v60 = vrot.slane %v13627_v15, 6 }
 0x32e   : > { %v5567_v0 = vadd.f32 %v5530_v40, %v5293_v22  ;;  %7351 = vmatmul.bf16.gmra.mxu0 %v10768_v43  ;;  %v11363_v22 = vld [vmem:[%s11664_s25 + $0x5e0] sm:$0xff]  ;;  %v6614_v43 = vshll.u32 %v6201_v3, 16  ;;  %v6807_v40 = vpack.c.b16 %v6794_v13, %v6793_v34  ;;  %v7012_v6 = vrot.slane %v13631_v50, 6 }
 0x32f   : > { %v5725_v12 = vpop.f32.mrf.mxu3  ;;  %v5258_v5 = vpop.f32.mrf.mxu1  ;;  %v6273_v38 = vsel %vm11907_vm5, %v10576_v41, %v6272_v35  ;;  %8499 = vmatpush.bf16.msra.mxu3 %v11363_v22  ;;  %v11371_v41 = vld [vmem:[%s11664_s25 + $0x620] sm:$0xff]  ;;  %v6626_v31 = vor.u32 %v6625_v7, %v6622_v4  ;;  %v13663_v33 = vadd.f32 %v13524_v19, %v13533_v59  ;;  %v13671_v50 = vsel %vm11954_vm11, %v10687_v61, %v7008_v60  ;;  %v11528_v19 = vld [vmem:[#allocation2 + $0x7c] sm:$0x1] }
 0x330   : > { %v13634_v18 = vadd.f32 %v5725_v12, %v5567_v0  ;;  %v5294_v9 = vadd.f32 %v5258_v5, %v13346_v28  ;;  %v6341_v28 = vpack.c.b16 %v6328_v62, %v6327_v58  ;;  %v6616_v57 = vrot.slane %v6614_v43, 6  ;;  %v6941_v0 = vld [vmem:[#allocation2 + $0x50] sm:$0xc]  ;;  %8773 = vmatpush.bf16.msra.mxu0 %v11371_v41  ;;  %v10771_v22 = vld [vmem:[#allocation2 + $0x40] sm:$0xf]  ;;  %v11354_v41 = vld [vmem:[%s11664_s25 + $0x598] sm:$0xff] }
 0x331   : > { %v6329_v12 = vunpack.c.l.b16 %v6269_v2  ;;  %v6330_v3 = vunpack.c.l.b16 %v6273_v38  ;;  %v6600_v58 = vrot.slane %v6599_v56, 4  ;;  %v13650_v5 = vadd.f32 %v13482_v32, %v13514_v29  ;;  %v6202_v38 = vld [vmem:[#allocation2 + $0x78] sm:$0xe]  ;;  %v11529_v56 = vld [vmem:[#allocation2 + $0x84] sm:$0x1]  ;;  %8034 = vmatpush.bf16.msra.mxu2 %v11354_v41 }
 0x332   : > { %v6617_v62 = vor.u32 %v6616_v57, %v6613_v25  ;;  %v10688_v39 = vrot.slane %v6941_v0, 10  ;;  %v6203_v25 = vld [vmem:[#allocation2 + $0x80] sm:$0xe]  ;;  %v6276_v59 = vrot.slane %v11528_v19, 5  ;;  %v6280_v47 = vrot.slane %v11529_v56, 5  ;;  %v11346_v61 = vld [vmem:[%s11664_s25 + $0x558] sm:$0xff] }
 0x333   : > { %v13645_v54 = vpop.f32.mrf.mxu0  ;;  %v6609_v32 = vsel %vm11947_vm9, %v6600_v58, %v6608_v36  ;;  %v13667_v37 = vpack.c.b16 %v6330_v3, %v6329_v12  ;;  %v6629_v57 = vshrl.u32 %v6202_v38, 16  ;;  %v6632_v4 = vshll.u32 %v6202_v38, 16  ;;  %v6477_v36 = vld [vmem:[#allocation2 + $0x84] sm:$0x3]  ;;  %7760 = vmatpush.bf16.msra.mxu1 %v11346_v61 }
 0x334   : > { %v6618_v14 = vrot.slane %v6617_v62, 4  ;;  %v13675_v24 = vsel %vm11954_vm11, %v10688_v39, %v7012_v6  ;;  %v6795_v49 = vunpack.c.l.b16 %v6609_v32  ;;  %v6638_v0 = vshrl.u32 %v13677_v17, 16 }
 0x335   : > { %v5532_v35 = vpop.f32.mrf.mxu2  ;;  %v10577_v12 = vrot.slane %v6202_v38, 9  ;;  %v10578_v3 = vrot.slane %v6203_v25, 9  ;;  %v6641_v7 = vshll.u32 %v13677_v17, 16  ;;  %v7069_v62 = vunpack.c.l.b16 %v13671_v50 }
 0x336   : > { %v5568_v21 = vadd.f32 %v5532_v35, %v5294_v9  ;;  %v11329_v9 = vld [vmem:[#allocation2 + $0x44] sm:$0xf0]  ;;  %v6627_v29 = vsel %vm11947_vm9, %v6618_v14, %v6626_v31  ;;  %v11362_v31 = vld [vmem:[%s11664_s25 + $0x5d8] sm:$0xff]  ;;  %v6631_v60 = vrot.slane %v6629_v57, 5  ;;  %v6634_v39 = vrot.slane %v6632_v4, 6 }
 0x337   : > { %v5727_v20 = vpop.f32.mrf.mxu3  ;;  %v5261_v34 = vpop.f32.mrf.mxu1  ;;  %v10772_v15 = vor.u32 %v11329_v9, %v10771_v22  ;;  %v6643_v22 = vrot.slane %v6641_v7, 6  ;;  %v6942_v9 = vld [vmem:[#allocation2 + $0x78] sm:$0xc]  ;;  %v6650_v32 = vshll.u32 %v6203_v25, 16  ;;  %8500 = vmatpush.bf16.msra.mxu3 %v11362_v31  ;;  %v6281_v50 = vsel %vm11907_vm5, %v10578_v3, %v6280_v47 }
 0x338   : > { %v13653_v13 = vadd.f32 %v5727_v20, %v5568_v21  ;;  %v5295_v2 = vadd.f32 %v5261_v34, %v13399_v45  ;;  %v6647_v21 = vshrl.u32 %v6203_v25, 16  ;;  %v7070_v34 = vunpack.c.l.b16 %v13675_v24 }
 0x339   : > { %v6635_v24 = vor.u32 %v6634_v39, %v6631_v60  ;;  %v6659_v38 = vshll.u32 %v6477_v36, 16  ;;  %v6652_v56 = vrot.slane %v6650_v32, 6  ;;  %v7016_v4 = vrot.slane %v13677_v17, 6  ;;  %v10775_v39 = vld [vmem:[#allocation2 + $0x50] sm:$0xf] }
 0x33a   : > { %6421 = vmatmul.bf16.gmra.mxu1 %v6341_v28  ;;  %6887 = vmatmul.bf16.gmra.mxu2 %v6807_v40  ;;  %v6796_v28 = vunpack.c.l.b16 %v6627_v29  ;;  %v6649_v6 = vrot.slane %v6647_v21, 5  ;;  %v6656_v29 = vshrl.u32 %v6477_v36, 16  ;;  %v13699_v47 = vadd.f32 %v13558_v1, %v13581_v11  ;;  %v11330_v17 = vld [vmem:[#allocation2 + $0x54] sm:$0xf0] }
 0x33b   : > { %v13665_v45 = vpop.f32.mrf.mxu0  ;;  %v6661_v57 = vrot.slane %v6659_v38, 6  ;;  %v7082_v7 = vpack.c.b16 %v7070_v34, %v7069_v62  ;;  %v10776_v62 = vor.u32 %v11330_v17, %v10775_v39  ;;  %v13719_v34 = vadd.f32 %v13591_v27, %v13607_v52 }
 0x33c   : > { %7161 = vmatmul.bf16.gmra.mxu3 %v7081_v8  ;;  %v6808_v14 = vpack.c.b16 %v6796_v28, %v6795_v49  ;;  %v6658_v49 = vrot.slane %v6656_v29, 5  ;;  %v10689_v28 = vrot.slane %v6942_v9, 10  ;;  %v6204_v9 = vld [vmem:[#allocation2 + $0x88] sm:$0xe] }
 0x33d   : > { %v5535_v43 = vpop.f32.mrf.mxu2  ;;  %v6668_v27 = vshll.u32 %v6204_v9, 16 }
 0x33e   : > { %v5569_v40 = vadd.f32 %v5535_v43, %v5295_v2  ;;  %7356 = vmatmul.bf16.gmra.mxu0 %v10772_v15  ;;  %v6640_v2 = vrot.slane %v6638_v0, 5  ;;  %v6943_v15 = vld [vmem:[#allocation2 + $0x80] sm:$0xc]  ;;  %v6662_v31 = vor.u32 %v6661_v57, %v6658_v49 }
 0x33f   : > { %v5730_v8 = vpop.f32.mrf.mxu3  ;;  %v5263_v35 = vpop.f32.mrf.mxu1  ;;  %v10690_v0 = vrot.slane %v6943_v15, 10 }
 0x340   : > { %v13682_v20 = vadd.f32 %v5730_v8, %v5569_v40  ;;  %v5296_v58 = vadd.f32 %v5263_v35, %v13480_v51  ;;  %v6277_v51 = vsel %vm11907_vm5, %v10577_v12, %v6276_v59  ;;  %v6644_v19 = vor.u32 %v6643_v22, %v6640_v2  ;;  %v11370_v40 = vld [vmem:[%s11664_s25 + $0x618] sm:$0xff] }
 0x341   : > { %v6636_v8 = vrot.slane %v6635_v24, 4  ;;  %v6653_v35 = vor.u32 %v6652_v56, %v6649_v6  ;;  %v7020_v12 = vrot.slane %v6477_v36, 6  ;;  %8774 = vmatpush.bf16.msra.mxu0 %v11370_v40  ;;  %v6331_v21 = vunpack.c.l.b16 %v6277_v51  ;;  %v11353_v56 = vld [vmem:[%s11664_s25 + $0x590] sm:$0xff]  ;;  %v11530_v40 = vld [vmem:[#allocation2 + $0x8c] sm:$0x1] }
 0x342   : > { %v6332_v2 = vunpack.c.l.b16 %v6281_v50  ;;  %v13706_v36 = vsel %vm11954_vm11, %v10689_v28, %v7016_v4  ;;  %v6478_v50 = vld [vmem:[#allocation2 + $0x8c] sm:$0x3]  ;;  %v10579_v28 = vrot.slane %v6204_v9, 9  ;;  %8035 = vmatpush.bf16.msra.mxu2 %v11353_v56 }
 0x343   : > { %v13693_v43 = vpop.f32.mrf.mxu0  ;;  %v6645_v1 = vsel %vm11947_vm9, %v6636_v8, %v6644_v19  ;;  %v7071_v15 = vunpack.c.l.b16 %v13706_v36  ;;  %v6665_v19 = vshrl.u32 %v6204_v9, 16  ;;  %v6674_v52 = vshrl.u32 %v6478_v50, 16  ;;  %v6479_v8 = vld [vmem:[#allocation2 + $0x94] sm:$0x3] }
 0x344   : > { %v6797_v32 = vunpack.c.l.b16 %v6645_v1  ;;  %v6677_v57 = vshll.u32 %v6478_v50, 16 }
 0x345   : > { %v5537_v25 = vpop.f32.mrf.mxu2  ;;  %v6676_v39 = vrot.slane %v6674_v52, 5  ;;  %v11369_v52 = vld [vmem:[%s11664_s25 + $0x610] sm:$0xff] }
 0x346   : > { %v5570_v41 = vadd.f32 %v5537_v25, %v5296_v58  ;;  %v6654_v58 = vrot.slane %v6653_v35, 4  ;;  %v6284_v25 = vrot.slane %v11530_v40, 5  ;;  %v11531_v35 = vld [vmem:[#allocation2 + $0x94] sm:$0x1]  ;;  %v6679_v17 = vrot.slane %v6677_v57, 6  ;;  %8775 = vmatpush.bf16.msra.mxu0 %v11369_v52 }
 0x347   : > { %v5732_v59 = vpop.f32.mrf.mxu3  ;;  %v5266_v3 = vpop.f32.mrf.mxu1  ;;  %v6481_v52 = vld [vmem:[#allocation2 + $0xa4] sm:$0x3] }
 0x348   : > { %v13701_v61 = vadd.f32 %v5732_v59, %v5570_v41  ;;  %v5297_v60 = vadd.f32 %v5266_v3, %v13492_v46  ;;  %v6663_v11 = vsel %vm11947_vm9, %v6654_v58, %v6662_v31  ;;  %v13715_v46 = vsel %vm11954_vm11, %v10690_v0, %v7020_v12  ;;  %v6944_v3 = vld [vmem:[#allocation2 + $0x88] sm:$0xc] }
 0x349   : > { %v6798_v29 = vunpack.c.l.b16 %v6663_v11  ;;  %v7072_v51 = vunpack.c.l.b16 %v13715_v46  ;;  %v6288_v12 = vrot.slane %v11531_v35, 5  ;;  %v6667_v31 = vrot.slane %v6665_v19, 5 }
 0x34a   : > { %6426 = vmatmul.bf16.gmra.mxu1 %v13667_v37  ;;  %6892 = vmatmul.bf16.gmra.mxu2 %v6808_v14  ;;  %v13723_v37 = vpack.c.b16 %v6332_v2, %v6331_v21  ;;  %v6205_v14 = vld [vmem:[#allocation2 + $0x90] sm:$0xe]  ;;  %v6692_v11 = vshrl.u32 %v6479_v8, 16  ;;  %v10691_v9 = vrot.slane %v6944_v3, 10  ;;  %v7024_v19 = vrot.slane %v6478_v50, 6 }
 0x34b   : > { %v13721_v22 = vpop.f32.mrf.mxu0  ;;  %v6683_v4 = vshrl.u32 %v6205_v14, 16  ;;  %v10580_v59 = vrot.slane %v6205_v14, 9  ;;  %v11345_v21 = vld [vmem:[%s11664_s25 + $0x550] sm:$0xff]  ;;  %v6809_v58 = vpack.c.b16 %v6798_v29, %v6797_v32  ;;  %v6686_v1 = vshll.u32 %v6205_v14, 16 }
 0x34c   : > { %7166 = vmatmul.bf16.gmra.mxu3 %v7082_v7  ;;  %v11361_v7 = vld [vmem:[%s11664_s25 + $0x5d0] sm:$0xff]  ;;  %7761 = vmatpush.bf16.msra.mxu1 %v11345_v21  ;;  %v6680_v32 = vor.u32 %v6679_v17, %v6676_v39  ;;  %v7083_v50 = vpack.c.b16 %v7072_v51, %v7071_v15  ;;  %v13758_v51 = vadd.f32 %v13645_v54, %v13653_v13 }
 0x34d   : > { %v5540_v6 = vpop.f32.mrf.mxu2  ;;  %v6945_v2 = vld [vmem:[#allocation2 + $0x90] sm:$0xc]  ;;  %v6685_v36 = vrot.slane %v6683_v4, 5  ;;  %8501 = vmatpush.bf16.msra.mxu3 %v11361_v7  ;;  %v6289_v14 = vsel %vm11907_vm5, %v10580_v59, %v6288_v12  ;;  %v13742_v4 = vadd.f32 %v13619_v26, %v13634_v18  ;;  %v7025_v7 = vsel %vm11954_vm11, %v10691_v9, %v7024_v19 }
 0x34e   : > { %v5571_v24 = vadd.f32 %v5540_v6, %v5297_v60  ;;  %7361 = vmatmul.bf16.gmra.mxu0 %v10776_v62  ;;  %v6670_v60 = vrot.slane %v6668_v27, 6  ;;  %v6695_v62 = vshll.u32 %v6479_v8, 16  ;;  %v10692_v27 = vrot.slane %v6945_v2, 10 }
 0x34f   : > { %v5735_v38 = vpop.f32.mrf.mxu3  ;;  %v5268_v49 = vpop.f32.mrf.mxu1  ;;  %v6334_v39 = vunpack.c.l.b16 %v6289_v14  ;;  %v7073_v15 = vunpack.c.l.b16 %v7025_v7 }
 0x350   : > { %v13728_v0 = vadd.f32 %v5735_v38, %v5571_v24  ;;  %v5298_v41 = vadd.f32 %v5268_v49, %v13502_v53  ;;  %v6285_v53 = vsel %vm11907_vm5, %v10579_v28, %v6284_v25  ;;  %v6671_v46 = vor.u32 %v6670_v60, %v6667_v31 }
 0x351   : > { %v6688_v24 = vrot.slane %v6686_v1, 6  ;;  %v6694_v38 = vrot.slane %v6692_v11, 5  ;;  %v6697_v29 = vrot.slane %v6695_v62, 6  ;;  %v7028_v49 = vrot.slane %v6479_v8, 6  ;;  %v10779_v8 = vld [vmem:[#allocation2 + $0x80] sm:$0xf] }
 0x352   : > { %v6672_v28 = vrot.slane %v6671_v46, 4  ;;  %v6333_v60 = vunpack.c.l.b16 %v6285_v53  ;;  %v13771_v53 = vld [vmem:[#allocation2 + $0x9c] sm:$0x3] }
 0x353   : > { %v13735_v6 = vpop.f32.mrf.mxu0  ;;  %v6689_v25 = vor.u32 %v6688_v24, %v6685_v36  ;;  %v6698_v3 = vor.u32 %v6697_v29, %v6694_v38  ;;  %v7029_v31 = vsel %vm11954_vm11, %v10692_v27, %v7028_v49  ;;  %v6710_v9 = vshrl.u32 %v13771_v53, 16  ;;  %v11352_v24 = vld [vmem:[%s11664_s25 + $0x588] sm:$0xff]  ;;  %v11532_v49 = vld [vmem:[#allocation2 + $0x9c] sm:$0x1] }
 0x354   : > { %v13754_v26 = vsel %vm11947_vm9, %v6672_v28, %v6680_v32  ;;  %v13768_v1 = vpack.c.b16 %v6334_v39, %v6333_v60  ;;  %8036 = vmatpush.bf16.msra.mxu2 %v11352_v24 }
 0x355   : > { %v5542_v56 = vpop.f32.mrf.mxu2  ;;  %v6690_v12 = vrot.slane %v6689_v25, 4  ;;  %v6799_v11 = vunpack.c.l.b16 %v13754_v26  ;;  %v6946_v25 = vld [vmem:[#allocation2 + $0x98] sm:$0xc] }
 0x356   : > { %v5572_v40 = vadd.f32 %v5542_v56, %v5298_v41  ;;  %v11331_v41 = vld [vmem:[#allocation2 + $0x84] sm:$0xf0]  ;;  %v6713_v56 = vshll.u32 %v13771_v53, 16 }
 0x357   : > { %v5737_v57 = vpop.f32.mrf.mxu3  ;;  %v5271_v35 = vpop.f32.mrf.mxu1  ;;  %v10780_v18 = vor.u32 %v11331_v41, %v10779_v8  ;;  %v6699_v2 = vsel %vm11947_vm9, %v6690_v12, %v6698_v3  ;;  %v6947_v41 = vld [vmem:[#allocation2 + $0xa0] sm:$0xc] }
 0x358   : > { %v13746_v21 = vadd.f32 %v5737_v57, %v5572_v40  ;;  %v5299_v59 = vadd.f32 %v5271_v35, %v13531_v48  ;;  %v7074_v48 = vunpack.c.l.b16 %v7029_v31  ;;  %v6800_v19 = vunpack.c.l.b16 %v6699_v2  ;;  %v11533_v57 = vld [vmem:[#allocation2 + $0xa4] sm:$0x1]  ;;  %v11360_v35 = vld [vmem:[%s11664_s25 + $0x5c8] sm:$0xff] }
 0x359   : > { %v6292_v40 = vrot.slane %v11532_v49, 5  ;;  %v6296_v28 = vrot.slane %v11533_v57, 5  ;;  %v6715_v8 = vrot.slane %v6713_v56, 6  ;;  %8502 = vmatpush.bf16.msra.mxu3 %v11360_v35  ;;  %v13795_v57 = vadd.f32 %v13665_v45, %v13682_v20  ;;  %v10783_v35 = vld [vmem:[#allocation2 + $0x90] sm:$0xf] }
 0x35a   : > { %6431 = vmatmul.bf16.gmra.mxu1 %v13723_v37  ;;  %6897 = vmatmul.bf16.gmra.mxu2 %v6809_v58  ;;  %v13764_v37 = vld [vmem:[#allocation2 + $0x98] sm:$0xe]  ;;  %v13766_v58 = vld [vmem:[#allocation2 + $0xa0] sm:$0xe]  ;;  %v13777_v27 = vpack.c.b16 %v7074_v48, %v7073_v15  ;;  %v10693_v15 = vrot.slane %v6946_v25, 10  ;;  %v6810_v49 = vpack.c.b16 %v6800_v19, %v6799_v11 }
 0x35b   : > { %v13760_v17 = vpop.f32.mrf.mxu0  ;;  %v6701_v54 = vshrl.u32 %v13764_v37, 16  ;;  %v6704_v13 = vshll.u32 %v13764_v37, 16  ;;  %v6719_v14 = vshrl.u32 %v13766_v58, 16  ;;  %v10581_v12 = vrot.slane %v13764_v37, 9 }
 0x35c   : > { %7171 = vmatmul.bf16.gmra.mxu3 %v7083_v50  ;;  %v11344_v50 = vld [vmem:[%s11664_s25 + $0x548] sm:$0xff]  ;;  %v6722_v60 = vshll.u32 %v13766_v58, 16  ;;  %v10582_v39 = vrot.slane %v13766_v58, 9 }
 0x35d   : > { %v5545_v36 = vpop.f32.mrf.mxu2  ;;  %v6703_v3 = vrot.slane %v6701_v54, 5  ;;  %v6706_v7 = vrot.slane %v6704_v13, 6  ;;  %v6721_v31 = vrot.slane %v6719_v14, 5  ;;  %7762 = vmatpush.bf16.msra.mxu1 %v11344_v50  ;;  %v11368_v54 = vld [vmem:[%s11664_s25 + $0x608] sm:$0xff]  ;;  %v11332_v50 = vld [vmem:[#allocation2 + $0x94] sm:$0xf0] }
 0x35e   : > { %v5573_v46 = vadd.f32 %v5545_v36, %v5299_v59  ;;  %7366 = vmatmul.bf16.gmra.mxu0 %v10780_v18  ;;  %v6712_v59 = vrot.slane %v6710_v9, 5  ;;  %v6731_v18 = vshll.u32 %v6481_v52, 16  ;;  %v6724_v2 = vrot.slane %v6722_v60, 6 }
 0x35f   : > { %v5740_v62 = vpop.f32.mrf.mxu3  ;;  %v5273_v38 = vpop.f32.mrf.mxu1  ;;  %v6707_v26 = vor.u32 %v6706_v7, %v6703_v3  ;;  %8776 = vmatpush.bf16.msra.mxu0 %v11368_v54  ;;  %v6297_v3 = vsel %vm11907_vm5, %v10582_v39, %v6296_v28  ;;  %v6209_v39 = vld [vmem:[#allocation2 + $0xb0] sm:$0xe] }
 0x360   : > { %v13781_v32 = vadd.f32 %v5740_v62, %v5573_v46  ;;  %v5300_v29 = vadd.f32 %v5273_v38, %v13540_v55  ;;  %v6728_v55 = vshrl.u32 %v6481_v52, 16  ;;  %v7032_v46 = vrot.slane %v13771_v53, 6 }
 0x361   : > { %v10694_v62 = vrot.slane %v6947_v41, 10  ;;  %v6708_v13 = vrot.slane %v6707_v26, 4  ;;  %v6716_v9 = vor.u32 %v6715_v8, %v6712_v59  ;;  %v6733_v24 = vrot.slane %v6731_v18, 6  ;;  %v11534_v26 = vld [vmem:[#allocation2 + $0xac] sm:$0x1] }
 0x362   : > { %v6730_v36 = vrot.slane %v6728_v55, 5  ;;  %v7036_v38 = vrot.slane %v6481_v52, 6  ;;  %v6725_v58 = vor.u32 %v6724_v2, %v6721_v31  ;;  %v6293_v53 = vsel %vm11907_vm5, %v10581_v12, %v6292_v40 }
 0x363   : > { %v13789_v48 = vpop.f32.mrf.mxu0  ;;  %v7033_v52 = vsel %vm11954_vm11, %v10693_v15, %v7032_v46  ;;  %v6717_v20 = vsel %vm11947_vm9, %v6708_v13, %v6716_v9  ;;  %v10784_v40 = vor.u32 %v11332_v50, %v10783_v35  ;;  %v6335_v28 = vunpack.c.l.b16 %v6293_v53  ;;  %v11351_v9 = vld [vmem:[%s11664_s25 + $0x580] sm:$0xff] }
 0x364   : > { %v6734_v7 = vor.u32 %v6733_v24, %v6730_v36  ;;  %v7037_v45 = vsel %vm11954_vm11, %v10694_v62, %v7036_v38  ;;  %v6336_v8 = vunpack.c.l.b16 %v6297_v3  ;;  %v7075_v41 = vunpack.c.l.b16 %v7033_v52  ;;  %v6482_v62 = vld [vmem:[#allocation2 + $0xac] sm:$0x3]  ;;  %v6948_v3 = vld [vmem:[#allocation2 + $0xa8] sm:$0xc]  ;;  %8037 = vmatpush.bf16.msra.mxu2 %v11351_v9  ;;  %v11343_v52 = vld [vmem:[%s11664_s25 + $0x540] sm:$0xff] }
 0x365   : > { %v5547_v37 = vpop.f32.mrf.mxu2  ;;  %v13816_v12 = vadd.f32 %v13693_v43, %v13701_v61  ;;  %v6801_v60 = vunpack.c.l.b16 %v6717_v20  ;;  %v6300_v18 = vrot.slane %v11534_v26, 5  ;;  %v10584_v36 = vrot.slane %v6209_v39, 9  ;;  %7763 = vmatpush.bf16.msra.mxu1 %v11343_v52  ;;  %v11333_v52 = vld [vmem:[#allocation2 + $0xa4] sm:$0xf0] }
 0x366   : > { %v5574_v56 = vadd.f32 %v5547_v37, %v5300_v29  ;;  %v6726_v29 = vrot.slane %v6725_v58, 4  ;;  %v6746_v61 = vshrl.u32 %v6482_v62, 16  ;;  %v6345_v38 = vpack.c.b16 %v6336_v8, %v6335_v28 }
 0x367   : > { %v5742_v14 = vpop.f32.mrf.mxu3  ;;  %v5276_v25 = vpop.f32.mrf.mxu1  ;;  %v6755_v58 = vshrl.u32 %v6209_v39, 16  ;;  %v6758_v8 = vshll.u32 %v6209_v39, 16 }
 0x368   : > { %v13803_v11 = vadd.f32 %v5742_v14, %v5574_v56  ;;  %v5301_v19 = vadd.f32 %v5276_v25, %v13548_v16  ;;  %v6735_v59 = vsel %vm11947_vm9, %v6726_v29, %v6734_v7  ;;  %v7076_v16 = vunpack.c.l.b16 %v7037_v45  ;;  %v6483_v14 = vld [vmem:[#allocation2 + $0xb4] sm:$0x3]  ;;  %v11359_v7 = vld [vmem:[%s11664_s25 + $0x5c0] sm:$0xff] }
 0x369   : > { %v6802_v55 = vunpack.c.l.b16 %v6735_v59  ;;  %v6748_v45 = vrot.slane %v6746_v61, 5  ;;  %v6757_v59 = vrot.slane %v6755_v58, 5  ;;  %8503 = vmatpush.bf16.msra.mxu3 %v11359_v7  ;;  %v6760_v26 = vrot.slane %v6758_v8, 6  ;;  %v10787_v7 = vld [vmem:[#allocation2 + $0xa0] sm:$0xf] }
 0x36a   : > { %6436 = vmatmul.bf16.gmra.mxu1 %v13768_v1  ;;  %6902 = vmatmul.bf16.gmra.mxu2 %v6810_v49  ;;  %v6208_v1 = vld [vmem:[#allocation2 + $0xa8] sm:$0xe]  ;;  %v13821_v56 = vpack.c.b16 %v7076_v16, %v7075_v41  ;;  %v6749_v49 = vshll.u32 %v6482_v62, 16 }
 0x36b   : > { %v13818_v31 = vpop.f32.mrf.mxu0  ;;  %v10583_v2 = vrot.slane %v6208_v1, 9  ;;  %v6737_v13 = vshrl.u32 %v6208_v1, 16  ;;  %v6740_v43 = vshll.u32 %v6208_v1, 16  ;;  %v6811_v50 = vpack.c.b16 %v6802_v55, %v6801_v60 }
 0x36c   : > { %7176 = vmatmul.bf16.gmra.mxu3 %v13777_v27  ;;  %v11535_v27 = vld [vmem:[#allocation2 + $0xb4] sm:$0x1]  ;;  %v6751_v20 = vrot.slane %v6749_v49, 6  ;;  %v6767_v60 = vshll.u32 %v6483_v14, 16  ;;  %v10695_v55 = vrot.slane %v6948_v3, 10  ;;  %v6761_v61 = vor.u32 %v6760_v26, %v6757_v59 }
 0x36d   : > { %v5550_v15 = vpop.f32.mrf.mxu2  ;;  %v6304_v46 = vrot.slane %v11535_v27, 5  ;;  %v6301_v53 = vsel %vm11907_vm5, %v10583_v2, %v6300_v18  ;;  %v6742_v29 = vrot.slane %v6740_v43, 6  ;;  %v11367_v27 = vld [vmem:[%s11664_s25 + $0x600] sm:$0xff]  ;;  %v7406_v26 = vld [vmem:[#allocation2 + $0x2c] sm:$0x1] }
 0x36e   : > { %v5575_v54 = vadd.f32 %v5550_v15, %v5301_v19  ;;  %7371 = vmatmul.bf16.gmra.mxu0 %v10784_v40  ;;  %v6739_v19 = vrot.slane %v6737_v13, 5  ;;  %v6949_v40 = vld [vmem:[#allocation2 + $0xb0] sm:$0xc]  ;;  %v6752_v16 = vor.u32 %v6751_v20, %v6748_v45  ;;  %v7040_v15 = vrot.slane %v6482_v62, 6  ;;  %v13850_v20 = vld [vmem:[#allocation2 + $0xb4] sm:$0xf0] }
 0x36f   : > { %v5745_v37 = vpop.f32.mrf.mxu3  ;;  %v5278_v24 = vpop.f32.mrf.mxu1  ;;  %v6305_v28 = vsel %vm11907_vm5, %v10584_v36, %v6304_v46  ;;  %v10696_v2 = vrot.slane %v6949_v40, 10  ;;  %v6769_v36 = vrot.slane %v6767_v60, 6  ;;  %v7044_v46 = vrot.slane %v6483_v14, 6  ;;  %8777 = vmatpush.bf16.msra.mxu0 %v11367_v27  ;;  %v7405_v60 = vld [vmem:[#allocation2 + $0x28] sm:$0xf] }
 0x370   : > { %v13823_v25 = vadd.f32 %v5745_v37, %v5575_v54  ;;  %v5302_v35 = vadd.f32 %v5278_v24, %v13556_v42  ;;  %v6764_v42 = vshrl.u32 %v6483_v14, 16  ;;  %v6743_v41 = vor.u32 %v6742_v29, %v6739_v19 }
 0x371   : > { %v6337_v37 = vunpack.c.l.b16 %v6301_v53  ;;  %v7041_v9 = vsel %vm11954_vm11, %v10695_v55, %v7040_v15  ;;  %v13839_v24 = vadd.f32 %v13721_v22, %v13728_v0  ;;  %v6338_v62 = vunpack.c.l.b16 %v6305_v28  ;;  %v13848_v0 = vld [vmem:[#allocation2 + $0xb0] sm:$0xf] }
 0x372   : > { %v6766_v18 = vrot.slane %v6764_v42, 5  ;;  %v6744_v13 = vrot.slane %v6743_v41, 4  ;;  %v7045_v14 = vsel %vm11954_vm11, %v10696_v2, %v7044_v46  ;;  %v6762_v19 = vrot.slane %v6761_v61, 4 }
 0x373   : > { %v13832_v1 = vpop.f32.mrf.mxu0  ;;  %v7077_v29 = vunpack.c.l.b16 %v7041_v9  ;;  %v7078_v22 = vunpack.c.l.b16 %v7045_v14  ;;  %v10788_v28 = vor.u32 %v11333_v52, %v10787_v7  ;;  %v13861_v42 = vpack.c.b16 %v6338_v62, %v6337_v37  ;;  %v8095_v14 = vld [vmem:[#allocation2 + $0x24] sm:$0x3] }
 0x374   : > { %v6753_v58 = vsel %vm11947_vm9, %v6744_v13, %v6752_v16  ;;  %v6770_v53 = vor.u32 %v6769_v36, %v6766_v18  ;;  %v7404_v16 = vld [vmem:[#allocation2 + $0x24] sm:$0x1]  ;;  %v7450_v27 = vshrl.u32 %v7405_v60, 16  ;;  %v7459_v37 = vshll.u32 %v7406_v26, 16  ;;  %v7821_v13 = vld [vmem:[#allocation2 + $0x20] sm:$0xe] }
 0x375   : > { %v5552_v54 = vpop.f32.mrf.mxu2  ;;  %v6803_v45 = vunpack.c.l.b16 %v6753_v58  ;;  %v13863_v41 = vpack.c.b16 %v7078_v22, %v7077_v29  ;;  %v10873_v61 = vrot.slane %v7821_v13, 9  ;;  %v7871_v52 = vrot.slane %v7404_v16, 5 }
 0x376   : > { %v5576_v39 = vadd.f32 %v5552_v54, %v5302_v35  ;;  %v6771_v40 = vsel %vm11947_vm9, %v6762_v19, %v6770_v53  ;;  %v7453_v54 = vshll.u32 %v7405_v60, 16  ;;  %v7452_v62 = vrot.slane %v7450_v27, 4  ;;  %v7822_v53 = vld [vmem:[#allocation2 + $0x28] sm:$0xe] }
 0x377   : > { %v5747_v43 = vpop.f32.mrf.mxu3  ;;  %v5281_v49 = vpop.f32.mrf.mxu1  ;;  %v6804_v59 = vunpack.c.l.b16 %v6771_v40  ;;  %v7461_v7 = vrot.slane %v7459_v37, 5  ;;  %v10874_v19 = vrot.slane %v7822_v53, 9  ;;  %v8112_v22 = vshrl.u32 %v7821_v13, 16 }
 0x378   : > { %v13845_v35 = vadd.f32 %v5747_v43, %v5576_v39  ;;  %v5303_v3 = vadd.f32 %v5281_v49, %v13597_v63  ;;  %v13857_v63 = vadd.f32 %v13735_v6, %v13746_v21  ;;  %v7445_v6 = vshll.u32 %v7404_v16, 16 }
 0x379   : > { %v7455_v58 = vrot.slane %v7453_v54, 5  ;;  %v8115_v40 = vshll.u32 %v7821_v13, 16  ;;  %v8124_v60 = vshll.u32 %v8095_v14, 16 }
 0x37a   : > { %6441 = vmatmul.bf16.gmra.mxu1 %v6345_v38  ;;  %6907 = vmatmul.bf16.gmra.mxu2 %v6811_v50  ;;  %v10792_v38 = vor.u32 %v13850_v20, %v13848_v0  ;;  %v7403_v50 = vld [vmem:[#allocation2 + $0x20] sm:$0xf]  ;;  %v7447_v43 = vrot.slane %v7445_v6, 5  ;;  %v8114_v6 = vrot.slane %v8112_v22, 5  ;;  %v8133_v22 = vshll.u32 %v7822_v53, 16 }
 0x37b   : > { %v13859_v8 = vpop.f32.mrf.mxu0  ;;  %v7436_v18 = vshrl.u32 %v7403_v50, 16  ;;  %v7439_v15 = vshll.u32 %v7403_v50, 16  ;;  %v7456_v29 = vor.u32 %v7455_v58, %v7452_v62  ;;  %v8121_v50 = vshrl.u32 %v8095_v14, 16  ;;  %v7823_v20 = vld [vmem:[#allocation2 + $0x30] sm:$0xe] }
 0x37c   : > { %7181 = vmatmul.bf16.gmra.mxu3 %v13821_v56  ;;  %v13867_v56 = vpack.c.b16 %v6804_v59, %v6803_v45  ;;  %v7875_v45 = vrot.slane %v7406_v26, 5  ;;  %v7872_v59 = vsel %vm11907_vm5, %v10873_v61, %v7871_v52  ;;  %v8117_v27 = vrot.slane %v8115_v40, 6  ;;  %v8562_v40 = vld [vmem:[#allocation2 + $0x28] sm:$0xc] }
 0x37d   : > { %v5555_v55 = vpop.f32.mrf.mxu2  ;;  %v7438_v46 = vrot.slane %v7436_v18, 4  ;;  %v7441_v39 = vrot.slane %v7439_v15, 5  ;;  %v7950_v15 = vunpack.c.l.b16 %v7872_v59  ;;  %v8123_v54 = vrot.slane %v8121_v50, 5 }
 0x37e   : > { %v5577_v21 = vadd.f32 %v5555_v55, %v5303_v3  ;;  %7376 = vmatmul.bf16.gmra.mxu0 %v10788_v28  ;;  %v7876_v18 = vsel %vm11907_vm5, %v10874_v19, %v7875_v45  ;;  %v8126_v61 = vrot.slane %v8124_v60, 6  ;;  %v8118_v52 = vor.u32 %v8117_v27, %v8114_v6 }
 0x37f   : > { %v5750_v2 = vpop.f32.mrf.mxu3  ;;  %v5283_v36 = vpop.f32.mrf.mxu1  ;;  %v7442_v3 = vor.u32 %v7441_v39, %v7438_v46  ;;  %v8096_v39 = vld [vmem:[#allocation2 + $0x2c] sm:$0x3]  ;;  %v8130_v19 = vshrl.u32 %v7822_v53, 16  ;;  %v8135_v60 = vrot.slane %v8133_v22, 6  ;;  %v10986_v6 = vrot.slane %v8562_v40, 10 }
 0x380   : > { %v13869_v9 = vadd.f32 %v5750_v2, %v5577_v21  ;;  %v5304_v49 = vadd.f32 %v5283_v36, %v13617_v30  ;;  %v7457_v30 = vrot.slane %v7456_v29, 4  ;;  %v7951_v2 = vunpack.c.l.b16 %v7876_v18  ;;  %v7410_v40 = vld [vmem:[#allocation2 + $0x3c] sm:$0x1] }
 0x381   : > { %v7443_v28 = vrot.slane %v7442_v3, 4  ;;  %v8127_v45 = vor.u32 %v8126_v61, %v8123_v54  ;;  %v8132_v59 = vrot.slane %v8130_v19, 5  ;;  %v8139_v50 = vshrl.u32 %v8096_v39, 16 }
 0x382   : > { %v7462_v36 = vsel %vm11795_vm2, %v7457_v30, %v7461_v7  ;;  %v13886_v3 = vpack.c.b16 %v7951_v2, %v7950_v15  ;;  %v8142_v30 = vshll.u32 %v8096_v39, 16  ;;  %v8611_v15 = vrot.slane %v8095_v14, 6 }
 0x383   : > { %v13874_v55 = vpop.f32.mrf.mxu0  ;;  %v7448_v26 = vsel %vm11795_vm2, %v7443_v28, %v7447_v43  ;;  %v13884_v58 = vunpack.c.l.b16 %v7462_v36  ;;  %v8561_v43 = vld [vmem:[#allocation2 + $0x20] sm:$0xc]  ;;  %v8119_v28 = vrot.slane %v8118_v52, 4  ;;  %v8141_v53 = vrot.slane %v8139_v50, 5  ;;  %v7409_v36 = vld [vmem:[#allocation2 + $0x38] sm:$0xf] }
 0x384   : > { %v13882_v46 = vunpack.c.l.b16 %v7448_v26  ;;  %v10985_v18 = vrot.slane %v8561_v43, 10  ;;  %v8136_v2 = vor.u32 %v8135_v60, %v8132_v59  ;;  %v8144_v27 = vrot.slane %v8142_v30, 6 }
 0x385   : > { %v5557_v16 = vpop.f32.mrf.mxu2  ;;  %v7478_v60 = vshrl.u32 %v7409_v36, 16 }
 0x386   : > { %v5578_v37 = vadd.f32 %v5557_v16, %v5304_v49  ;;  %v7692_v7 = vpack.c.b16 %v13884_v58, %v13882_v46  ;;  %v8615_v16 = vrot.slane %v8096_v39, 6  ;;  %v8137_v19 = vrot.slane %v8136_v2, 4  ;;  %v7824_v2 = vld [vmem:[#allocation2 + $0x38] sm:$0xe] }
 0x387   : > { %v5752_v13 = vpop.f32.mrf.mxu3  ;;  %v5286_v62 = vpop.f32.mrf.mxu1  ;;  %v8145_v43 = vor.u32 %v8144_v27, %v8141_v53  ;;  %v7480_v0 = vrot.slane %v7478_v60, 4  ;;  %v10875_v27 = vrot.slane %v7823_v20, 9 }
 0x388   : > { %v13888_v29 = vadd.f32 %v5752_v13, %v5578_v37  ;;  %v5305_v49 = vadd.f32 %v5286_v62, %v13650_v5  ;;  %v8128_v5 = vsel %vm11947_vm9, %v8119_v28, %v8127_v45  ;;  %v7408_v37 = vld [vmem:[#allocation2 + $0x34] sm:$0x1] }
 0x389   : > { %v8416_v54 = vunpack.c.l.b16 %v8128_v5  ;;  %v7473_v50 = vshll.u32 %v7408_v37, 16 }
 0x38a   : > { %6446 = vmatmul.bf16.gmra.mxu1 %v13861_v42  ;;  %6912 = vmatmul.bf16.gmra.mxu2 %v13867_v56  ;;  %v8612_v42 = vsel %vm11954_vm11, %v10985_v18, %v8611_v15  ;;  %v7407_v56 = vld [vmem:[#allocation2 + $0x30] sm:$0xf] }
 0x38b   : > { %v13898_v26 = vpop.f32.mrf.mxu0  ;;  %v8690_v14 = vunpack.c.l.b16 %v8612_v42  ;;  %v7464_v61 = vshrl.u32 %v7407_v56, 16  ;;  %v7467_v62 = vshll.u32 %v7407_v56, 16  ;;  %v7879_v42 = vrot.slane %v7408_v37, 5 }
 0x38c   : > { %7186 = vmatmul.bf16.gmra.mxu3 %v13863_v41  ;;  %v8616_v41 = vsel %vm11954_vm11, %v10986_v6, %v8615_v16  ;;  %v7475_v6 = vrot.slane %v7473_v50, 5  ;;  %v7487_v16 = vshll.u32 %v7410_v40, 16 }
 0x38d   : > { %v5560_v13 = vpop.f32.mrf.mxu2  ;;  %v8691_v45 = vunpack.c.l.b16 %v8616_v41  ;;  %v7466_v28 = vrot.slane %v7464_v61, 4  ;;  %v7469_v59 = vrot.slane %v7467_v62, 5  ;;  %v10876_v41 = vrot.slane %v7824_v2, 9 }
 0x38e   : > { %v5579_v52 = vadd.f32 %v5560_v13, %v5305_v49  ;;  %7381 = vmatmul.bf16.gmra.mxu0 %v10792_v38  ;;  %v8146_v49 = vsel %vm11947_vm9, %v8137_v19, %v8145_v43  ;;  %v7481_v38 = vshll.u32 %v7409_v36, 16  ;;  %v7883_v61 = vrot.slane %v7410_v40, 5 }
 0x38f   : > { %v5755_v39 = vpop.f32.mrf.mxu3  ;;  %v5288_v22 = vpop.f32.mrf.mxu1  ;;  %v13912_v15 = vpack.c.b16 %v8691_v45, %v8690_v14  ;;  %v8417_v5 = vunpack.c.l.b16 %v8146_v49  ;;  %v7470_v53 = vor.u32 %v7469_v59, %v7466_v28  ;;  %v7880_v14 = vsel %vm11907_vm5, %v10875_v27, %v7879_v42  ;;  %v8098_v49 = vld [vmem:[#allocation2 + $0x3c] sm:$0x3] }
 0x390   : > { %v13907_v30 = vadd.f32 %v5755_v39, %v5579_v52  ;;  %v5306_v18 = vadd.f32 %v5288_v22, %v13663_v33  ;;  %v7483_v62 = vrot.slane %v7481_v38, 5  ;;  %v7489_v52 = vrot.slane %v7487_v16, 5  ;;  %v8097_v39 = vld [vmem:[#allocation2 + $0x34] sm:$0x3] }
 0x391   : > { %v8432_v56 = vpack.c.b16 %v8417_v5, %v8416_v54  ;;  %v7471_v13 = vrot.slane %v7470_v53, 4  ;;  %v8148_v19 = vshrl.u32 %v7823_v20, 16  ;;  %v7884_v37 = vsel %vm11907_vm5, %v10876_v41, %v7883_v61  ;;  %v8563_v61 = vld [vmem:[#allocation2 + $0x30] sm:$0xc] }
 0x392   : > { %v7952_v54 = vunpack.c.l.b16 %v7880_v14  ;;  %v8151_v45 = vshll.u32 %v7823_v20, 16  ;;  %v7484_v28 = vor.u32 %v7483_v62, %v7480_v0  ;;  %v7953_v50 = vunpack.c.l.b16 %v7884_v37 }
 0x393   : > { %v13914_v33 = vpop.f32.mrf.mxu0  ;;  %v7476_v36 = vsel %vm11795_vm2, %v7471_v13, %v7475_v6  ;;  %v8150_v5 = vrot.slane %v8148_v19, 5  ;;  %v8157_v38 = vshrl.u32 %v8097_v39, 16  ;;  %v8160_v16 = vshll.u32 %v8097_v39, 16 }
 0x394   : > { %v13922_v59 = vunpack.c.l.b16 %v7476_v36  ;;  %v8153_v53 = vrot.slane %v8151_v45, 6  ;;  %v7485_v42 = vrot.slane %v7484_v28, 4  ;;  %v13927_v13 = vpack.c.b16 %v7953_v50, %v7952_v54 }
 0x395   : > { %v5562_v43 = vpop.f32.mrf.mxu2  ;;  %v8162_v41 = vrot.slane %v8160_v16, 6  ;;  %v8166_v0 = vshrl.u32 %v7824_v2, 16  ;;  %v8169_v14 = vshll.u32 %v7824_v2, 16  ;;  %v8175_v19 = vshrl.u32 %v8098_v49, 16 }
 0x396   : > { %v5580_v22 = vadd.f32 %v5562_v43, %v5306_v18  ;;  %v8154_v20 = vor.u32 %v8153_v53, %v8150_v5  ;;  %v8159_v18 = vrot.slane %v8157_v38, 5  ;;  %v7490_v62 = vsel %vm11795_vm2, %v7485_v42, %v7489_v52  ;;  %v8564_v43 = vld [vmem:[#allocation2 + $0x38] sm:$0xc]  ;;  %v7412_v42 = vld [vmem:[#allocation2 + $0x44] sm:$0x1] }
 0x397   : > { %v5757_v40 = vpop.f32.mrf.mxu3  ;;  %v6412_v60 = vpop.f32.mrf.mxu1  ;;  %v13935_v36 = vunpack.c.l.b16 %v7490_v62  ;;  %v8168_v45 = vrot.slane %v8166_v0, 5  ;;  %v8177_v46 = vrot.slane %v8175_v19, 5  ;;  %v10988_v50 = vrot.slane %v8564_v43, 10  ;;  %v7413_v0 = vld [vmem:[#allocation2 + $0x48] sm:$0xf] }
 0x398   : > { %v13924_v27 = vadd.f32 %v5757_v40, %v5580_v22  ;;  %v6452_v6 = vadd.f32 %v6412_v60, %v13699_v47  ;;  %v8178_v47 = vshll.u32 %v8098_v49, 16  ;;  %v8155_v37 = vrot.slane %v8154_v20, 4 }
 0x399   : > { %v8163_v54 = vor.u32 %v8162_v41, %v8159_v18  ;;  %v8171_v40 = vrot.slane %v8169_v14, 6  ;;  %v7693_v2 = vpack.c.b16 %v13935_v36, %v13922_v59  ;;  %v8623_v41 = vrot.slane %v8098_v49, 6 }
 0x39a   : > { %7764 = vmatmul.bf16.vlgmr.msra.gmra.mxu1 %v7692_v7  ;;  %8038 = vmatmul.bf16.vlgmr.msra.gmra.mxu2 %v13886_v3  ;;  %v8180_v58 = vrot.slane %v8178_v47, 6  ;;  %v10987_v7 = vrot.slane %v8563_v61, 10  ;;  %v7411_v3 = vld [vmem:[#allocation2 + $0x40] sm:$0xf]  ;;  %v7414_v47 = vld [vmem:[#allocation2 + $0x4c] sm:$0x1] }
 0x39b   : > { %v13937_v22 = vpop.f32.mrf.mxu0  ;;  %v8164_v52 = vsel %vm11947_vm9, %v8155_v37, %v8163_v54  ;;  %v8172_v53 = vor.u32 %v8171_v40, %v8168_v45  ;;  %v7492_v61 = vshrl.u32 %v7411_v3, 16  ;;  %v7495_v62 = vshll.u32 %v7411_v3, 16 }
 0x39c   : > { %8504 = vmatmul.bf16.vlgmr.msra.gmra.mxu3 %v8432_v56  ;;  %v8619_v56 = vrot.slane %v8097_v39, 6  ;;  %v8181_v38 = vor.u32 %v8180_v58, %v8177_v46  ;;  %v8418_v16 = vunpack.c.l.b16 %v8164_v52  ;;  %v8624_v43 = vsel %vm11954_vm11, %v10988_v50, %v8623_v41 }
 0x39d   : > { %v6878_v28 = vpop.f32.mrf.mxu2  ;;  %v7494_v37 = vrot.slane %v7492_v61, 4  ;;  %v7501_v54 = vshll.u32 %v7412_v42, 16  ;;  %v8693_v49 = vunpack.c.l.b16 %v8624_v43  ;;  %v7506_v40 = vshrl.u32 %v7413_v0, 16  ;;  %v7826_v61 = vld [vmem:[#allocation2 + $0x48] sm:$0xe] }
 0x39e   : > { %v6918_v60 = vadd.f32 %v6878_v28, %v6452_v6  ;;  %8778 = vmatmul.bf16.vlgmr.msra.gmra.mxu0 %v13912_v15  ;;  %v8620_v18 = vsel %vm11954_vm11, %v10987_v7, %v8619_v56  ;;  %v8173_v6 = vrot.slane %v8172_v53, 4  ;;  %v7497_v15 = vrot.slane %v7495_v62, 5 }
 0x39f   : > { %v7152_v5 = vpop.f32.mrf.mxu3  ;;  %v6414_v20 = vpop.f32.mrf.mxu1  ;;  %v8692_v19 = vunpack.c.l.b16 %v8620_v18  ;;  %v7509_v46 = vshll.u32 %v7413_v0, 16  ;;  %v7503_v3 = vrot.slane %v7501_v54, 5  ;;  %v7515_v28 = vshll.u32 %v7414_v47, 16 }
 0x3a0   : > { %v13946_v14 = vadd.f32 %v7152_v5, %v6918_v60  ;;  %v6453_v39 = vadd.f32 %v6414_v20, %v13719_v34  ;;  %v8182_v45 = vsel %vm11947_vm9, %v8173_v6, %v8181_v38  ;;  %v7498_v7 = vor.u32 %v7497_v15, %v7494_v37  ;;  %v7825_v34 = vld [vmem:[#allocation2 + $0x40] sm:$0xe] }
 0x3a1   : > { %v8419_v58 = vunpack.c.l.b16 %v8182_v45  ;;  %v8707_v56 = vpack.c.b16 %v8693_v49, %v8692_v19  ;;  %v7508_v60 = vrot.slane %v7506_v40, 4  ;;  %v7511_v5 = vrot.slane %v7509_v46, 5  ;;  %v8099_v45 = vld [vmem:[#allocation2 + $0x44] sm:$0x3] }
 0x3a2   : > { %v10877_v50 = vrot.slane %v7825_v34, 9  ;;  %v7499_v18 = vrot.slane %v7498_v7, 4  ;;  %v7517_v41 = vrot.slane %v7515_v28, 5  ;;  %v7887_v38 = vrot.slane %v7412_v42, 5  ;;  %v8100_v7 = vld [vmem:[#allocation2 + $0x4c] sm:$0x3] }
 0x3a3   : > { %v13953_v52 = vpop.f32.mrf.mxu0  ;;  %v8433_v20 = vpack.c.b16 %v8419_v58, %v8418_v16  ;;  %v7512_v0 = vor.u32 %v7511_v5, %v7508_v60  ;;  %v10878_v43 = vrot.slane %v7826_v61, 9  ;;  %v7891_v37 = vrot.slane %v7414_v47, 5 }
 0x3a4   : > { %v7504_v54 = vsel %vm11795_vm2, %v7499_v18, %v7503_v3  ;;  %v7888_v19 = vsel %vm11907_vm5, %v10877_v50, %v7887_v38  ;;  %v8184_v49 = vshrl.u32 %v7825_v34, 16  ;;  %v8187_v40 = vshll.u32 %v7825_v34, 16 }
 0x3a5   : > { %v6880_v53 = vpop.f32.mrf.mxu2  ;;  %v7513_v42 = vrot.slane %v7512_v0, 4  ;;  %v7892_v47 = vsel %vm11907_vm5, %v10878_v43, %v7891_v37  ;;  %v7954_v58 = vunpack.c.l.b16 %v7888_v19  ;;  %v8193_v60 = vshrl.u32 %v8099_v45, 16 }
 0x3a6   : > { %v6919_v62 = vadd.f32 %v6880_v53, %v6453_v39  ;;  %v13962_v39 = vunpack.c.l.b16 %v7504_v54  ;;  %v8186_v28 = vrot.slane %v8184_v49, 5  ;;  %v8189_v3 = vrot.slane %v8187_v40, 6 }
 0x3a7   : > { %v7154_v6 = vpop.f32.mrf.mxu3  ;;  %v6417_v15 = vpop.f32.mrf.mxu1  ;;  %v7518_v34 = vsel %vm11795_vm2, %v7513_v42, %v7517_v41  ;;  %v8196_v5 = vshll.u32 %v8099_v45, 16  ;;  %v8202_v18 = vshrl.u32 %v7826_v61, 16  ;;  %v8205_v38 = vshll.u32 %v7826_v61, 16 }
 0x3a8   : > { %v13959_v16 = vadd.f32 %v7154_v6, %v6919_v62  ;;  %v6454_v46 = vadd.f32 %v6417_v15, %v13742_v4  ;;  %v7955_v4 = vunpack.c.l.b16 %v7892_v47  ;;  %v13972_v50 = vunpack.c.l.b16 %v7518_v34  ;;  %v8565_v62 = vld [vmem:[#allocation2 + $0x40] sm:$0xc]  ;;  %v7415_v34 = vld [vmem:[#allocation2 + $0x50] sm:$0xf] }
 0x3a9   : > { %v8190_v53 = vor.u32 %v8189_v3, %v8186_v28  ;;  %v8195_v59 = vrot.slane %v8193_v60, 5  ;;  %v8198_v36 = vrot.slane %v8196_v5, 6  ;;  %v8207_v15 = vrot.slane %v8205_v38, 6 }
 0x3aa   : > { %7769 = vmatmul.bf16.gmra.mxu1 %v7693_v2  ;;  %8043 = vmatmul.bf16.gmra.mxu2 %v13927_v13  ;;  %v13976_v0 = vpack.c.b16 %v7955_v4, %v7954_v58  ;;  %v8211_v13 = vshrl.u32 %v8100_v7, 16  ;;  %v8566_v2 = vld [vmem:[#allocation2 + $0x48] sm:$0xc]  ;;  %v8214_v40 = vshll.u32 %v8100_v7, 16  ;;  %v10989_v58 = vrot.slane %v8565_v62, 10 }
 0x3ab   : > { %v13974_v6 = vpop.f32.mrf.mxu0  ;;  %v8191_v37 = vrot.slane %v8190_v53, 4  ;;  %v8199_v49 = vor.u32 %v8198_v36, %v8195_v59  ;;  %v8627_v28 = vrot.slane %v8099_v45, 6  ;;  %v10990_v3 = vrot.slane %v8566_v2, 10 }
 0x3ac   : > { %8509 = vmatmul.bf16.gmra.mxu3 %v8433_v20  ;;  %14507 = vst [vmem:[#allocation6_spill] sm:$0xff] %v13974_v6  ;;  %v8204_v20 = vrot.slane %v8202_v18, 5  ;;  %v8213_v61 = vrot.slane %v8211_v13, 5  ;;  %v8216_v53 = vrot.slane %v8214_v40, 6  ;;  %v7417_v18 = vld [vmem:[#allocation2 + $0x58] sm:$0xf] }
 0x3ad   : > { %v6883_v43 = vpop.f32.mrf.mxu2  ;;  %v8200_v5 = vsel %vm11947_vm9, %v8191_v37, %v8199_v49  ;;  %v8631_v36 = vrot.slane %v8100_v7, 6  ;;  %v7520_v13 = vshrl.u32 %v7415_v34, 16  ;;  %v7523_v2 = vshll.u32 %v7415_v34, 16 }
 0x3ae   : > { %v6920_v54 = vadd.f32 %v6883_v43, %v6454_v46  ;;  %8783 = vmatmul.bf16.gmra.mxu0 %v8707_v56  ;;  %v8208_v47 = vor.u32 %v8207_v15, %v8204_v20  ;;  %v7416_v46 = vld [vmem:[#allocation2 + $0x54] sm:$0x1]  ;;  %v8420_v59 = vunpack.c.l.b16 %v8200_v5  ;;  %v8628_v56 = vsel %vm11954_vm11, %v10989_v58, %v8627_v28 }
 0x3af   : > { %v7157_v19 = vpop.f32.mrf.mxu3  ;;  %v6419_v42 = vpop.f32.mrf.mxu1  ;;  %v8217_v62 = vor.u32 %v8216_v53, %v8213_v61  ;;  %v8694_v45 = vunpack.c.l.b16 %v8628_v56  ;;  %v8632_v43 = vsel %vm11954_vm11, %v10990_v3, %v8631_v36  ;;  %v7529_v20 = vshll.u32 %v7416_v46, 16  ;;  %v7827_v36 = vld [vmem:[#allocation2 + $0x50] sm:$0xe] }
 0x3b0   : > { %v13980_v4 = vadd.f32 %v7157_v19, %v6920_v54  ;;  %v6455_v60 = vadd.f32 %v6419_v42, %v13758_v51  ;;  %v8209_v38 = vrot.slane %v8208_v47, 4  ;;  %v7418_v51 = vld [vmem:[#allocation2 + $0x5c] sm:$0x1]  ;;  %v7534_v15 = vshrl.u32 %v7417_v18, 16 }
 0x3b1   : > { %v7537_v37 = vshll.u32 %v7417_v18, 16  ;;  %v8695_v49 = vunpack.c.l.b16 %v8632_v43  ;;  %v7522_v40 = vrot.slane %v7520_v13, 4  ;;  %v7525_v42 = vrot.slane %v7523_v2, 5  ;;  %v7828_v43 = vld [vmem:[#allocation2 + $0x58] sm:$0xe] }
 0x3b2   : > { %14508 = vst [vmem:[#allocation7_spill] sm:$0xff] %v13980_v4  ;;  %v8218_v19 = vsel %vm11947_vm9, %v8209_v38, %v8217_v62  ;;  %v7531_v47 = vrot.slane %v7529_v20, 5  ;;  %v7536_v58 = vrot.slane %v7534_v15, 4  ;;  %v7543_v56 = vshll.u32 %v7418_v51, 16  ;;  %v13996_v20 = vld [vmem:[#allocation2 + $0x54] sm:$0x3] }
 0x3b3   : > { %v13989_v54 = vpop.f32.mrf.mxu0  ;;  %v8421_v61 = vunpack.c.l.b16 %v8218_v19  ;;  %v7539_v28 = vrot.slane %v7537_v37, 5  ;;  %v8708_v3 = vpack.c.b16 %v8695_v49, %v8694_v45  ;;  %v7526_v53 = vor.u32 %v7525_v42, %v7522_v40 }
 0x3b4   : > { %14509 = vst [vmem:[#allocation8_spill] sm:$0xff] %v13989_v54  ;;  %v10879_v6 = vrot.slane %v7827_v36, 9  ;;  %v7895_v4 = vrot.slane %v7416_v46, 5  ;;  %v7545_v2 = vrot.slane %v7543_v56, 5  ;;  %v10880_v15 = vrot.slane %v7828_v43, 9 }
 0x3b5   : > { %v6885_v7 = vpop.f32.mrf.mxu2  ;;  %v8434_v41 = vpack.c.b16 %v8421_v61, %v8420_v59  ;;  %v7540_v54 = vor.u32 %v7539_v28, %v7536_v58  ;;  %v7527_v13 = vrot.slane %v7526_v53, 4  ;;  %v7899_v37 = vrot.slane %v7418_v51, 5  ;;  %v8102_v51 = vld [vmem:[#allocation2 + $0x5c] sm:$0x3] }
 0x3b6   : > { %v6921_v34 = vadd.f32 %v6885_v7, %v6455_v60  ;;  %v7896_v45 = vsel %vm11907_vm5, %v10879_v6, %v7895_v4  ;;  %v14510_v59 = vpack.c.b16 %v13972_v50, %v13962_v39  ;;  %v8220_v19 = vshrl.u32 %v7827_v36, 16 }
 0x3b7   : > { %v7159_v5 = vpop.f32.mrf.mxu3  ;;  %v6422_v18 = vpop.f32.mrf.mxu1  ;;  %v7541_v60 = vrot.slane %v7540_v54, 4  ;;  %v7956_v46 = vunpack.c.l.b16 %v7896_v45  ;;  %v8223_v49 = vshll.u32 %v7827_v36, 16  ;;  %v7900_v6 = vsel %vm11907_vm5, %v10880_v15, %v7899_v37  ;;  %v8568_v37 = vld [vmem:[#allocation2 + $0x58] sm:$0xc] }
 0x3b8   : > { %v13993_v38 = vadd.f32 %v7159_v5, %v6921_v34  ;;  %v6456_v62 = vadd.f32 %v6422_v18, %v13795_v57  ;;  %v7532_v57 = vsel %vm11795_vm2, %v7527_v13, %v7531_v47  ;;  %v8229_v39 = vshrl.u32 %v13996_v20, 16  ;;  %v8567_v18 = vld [vmem:[#allocation2 + $0x50] sm:$0xc] }
 0x3b9   : > { %v7546_v54 = vsel %vm11795_vm2, %v7541_v60, %v7545_v2  ;;  %v14008_v40 = vunpack.c.l.b16 %v7532_v57  ;;  %v7957_v4 = vunpack.c.l.b16 %v7900_v6  ;;  %v8222_v42 = vrot.slane %v8220_v19, 5  ;;  %v7419_v19 = vld [vmem:[#allocation2 + $0x80] sm:$0xf] }
 0x3ba   : > { %7774 = vmatmul.bf16.gmra.mxu1 %v14510_v59  ;;  %8048 = vmatmul.bf16.gmra.mxu2 %v13976_v0  ;;  %v14015_v0 = vunpack.c.l.b16 %v7546_v54  ;;  %v8225_v7 = vrot.slane %v8223_v49, 6  ;;  %v8232_v47 = vshll.u32 %v13996_v20, 16  ;;  %v8238_v58 = vshrl.u32 %v7828_v43, 16 }
 0x3bb   : > { %v14013_v50 = vpop.f32.mrf.mxu0  ;;  %v8241_v28 = vshll.u32 %v7828_v43, 16  ;;  %v7969_v56 = vpack.c.b16 %v7957_v4, %v7956_v46  ;;  %v8247_v15 = vshrl.u32 %v8102_v51, 16  ;;  %v10991_v46 = vrot.slane %v8567_v18, 10 }
 0x3bc   : > { %8514 = vmatmul.bf16.gmra.mxu3 %v8434_v41  ;;  %v8231_v41 = vrot.slane %v8229_v39, 5  ;;  %v7695_v53 = vpack.c.b16 %v14015_v0, %v14008_v40  ;;  %v8226_v36 = vor.u32 %v8225_v7, %v8222_v42  ;;  %v8234_v2 = vrot.slane %v8232_v47, 6 }
 0x3bd   : > { %v6888_v61 = vpop.f32.mrf.mxu2  ;;  %v8240_v60 = vrot.slane %v8238_v58, 5  ;;  %v8243_v45 = vrot.slane %v8241_v28, 6  ;;  %v8249_v40 = vrot.slane %v8247_v15, 5  ;;  %v10992_v39 = vrot.slane %v8568_v37, 10 }
 0x3be   : > { %v6922_v34 = vadd.f32 %v6888_v61, %v6456_v62  ;;  %8788 = vmatmul.bf16.gmra.mxu0 %v8708_v3  ;;  %v8227_v43 = vrot.slane %v8226_v36, 4  ;;  %v8250_v62 = vshll.u32 %v8102_v51, 16  ;;  %v8235_v49 = vor.u32 %v8234_v2, %v8231_v41  ;;  %v7421_v61 = vld [vmem:[#allocation2 + $0x88] sm:$0xf] }
 0x3bf   : > { %v7162_v5 = vpop.f32.mrf.mxu3  ;;  %v6424_v13 = vpop.f32.mrf.mxu1  ;;  %v8244_v54 = vor.u32 %v8243_v45, %v8240_v60  ;;  %v8635_v3 = vrot.slane %v13996_v20, 6  ;;  %v8639_v0 = vrot.slane %v8102_v51, 6  ;;  %v14028_v7 = vadd.f32 %v13760_v17, %v13781_v32  ;;  %v7422_v60 = vld [vmem:[#allocation2 + $0x8c] sm:$0x1] }
 0x3c0   : > { %v14020_v59 = vadd.f32 %v7162_v5, %v6922_v34  ;;  %v6457_v57 = vadd.f32 %v6424_v13, %v13816_v12  ;;  %v8252_v6 = vrot.slane %v8250_v62, 6  ;;  %v8236_v4 = vsel %vm11947_vm9, %v8227_v43, %v8235_v49  ;;  %v7420_v12 = vld [vmem:[#allocation2 + $0x84] sm:$0x1] }
 0x3c1   : > { %v8245_v42 = vrot.slane %v8244_v54, 4  ;;  %v7548_v47 = vshrl.u32 %v7419_v19, 16  ;;  %v8422_v28 = vunpack.c.l.b16 %v8236_v4  ;;  %v8636_v20 = vsel %vm11954_vm11, %v10991_v46, %v8635_v3 }
 0x3c2   : > { %v8253_v58 = vor.u32 %v8252_v6, %v8249_v40  ;;  %v8640_v51 = vsel %vm11954_vm11, %v10992_v39, %v8639_v0  ;;  %v8696_v5 = vunpack.c.l.b16 %v8636_v20  ;;  %v7551_v13 = vshll.u32 %v7419_v19, 16  ;;  %v7829_v19 = vld [vmem:[#allocation2 + $0x80] sm:$0xe] }
 0x3c3   : > { %v14030_v41 = vpop.f32.mrf.mxu0  ;;  %v8697_v36 = vunpack.c.l.b16 %v8640_v51  ;;  %v7550_v18 = vrot.slane %v7548_v47, 4  ;;  %v7557_v45 = vshll.u32 %v7420_v12, 16  ;;  %v7562_v15 = vshrl.u32 %v7421_v61, 16  ;;  %v14041_v47 = vld [vmem:[#allocation2 + $0x84] sm:$0x3] }
 0x3c4   : > { %v8254_v2 = vsel %vm11947_vm9, %v8245_v42, %v8253_v58  ;;  %v7553_v49 = vrot.slane %v7551_v13, 5  ;;  %v7565_v54 = vshll.u32 %v7421_v61, 16  ;;  %v7571_v4 = vshll.u32 %v7422_v60, 16  ;;  %v7830_v42 = vld [vmem:[#allocation2 + $0x88] sm:$0xe] }
 0x3c5   : > { %v6890_v34 = vpop.f32.mrf.mxu2  ;;  %v8423_v43 = vunpack.c.l.b16 %v8254_v2  ;;  %v8709_v62 = vpack.c.b16 %v8697_v36, %v8696_v5  ;;  %v7559_v6 = vrot.slane %v7557_v45, 5  ;;  %v7564_v3 = vrot.slane %v7562_v15, 4 }
 0x3c6   : > { %v6923_v17 = vadd.f32 %v6890_v34, %v6457_v57  ;;  %v7554_v39 = vor.u32 %v7553_v49, %v7550_v18  ;;  %v7567_v0 = vrot.slane %v7565_v54, 5  ;;  %v10881_v58 = vrot.slane %v7829_v19, 9 }
 0x3c7   : > { %v7164_v32 = vpop.f32.mrf.mxu3  ;;  %v6427_v37 = vpop.f32.mrf.mxu1  ;;  %v8435_v57 = vpack.c.b16 %v8423_v43, %v8422_v28  ;;  %v7903_v20 = vrot.slane %v7420_v12, 5  ;;  %v10882_v51 = vrot.slane %v7830_v42, 9  ;;  %v7907_v61 = vrot.slane %v7422_v60, 5  ;;  %v8104_v43 = vld [vmem:[#allocation2 + $0x8c] sm:$0x3] }
 0x3c8   : > { %v14038_v40 = vadd.f32 %v7164_v32, %v6923_v17  ;;  %v6458_v46 = vadd.f32 %v6427_v37, %v13839_v24  ;;  %v7555_v34 = vrot.slane %v7554_v39, 4  ;;  %v7568_v5 = vor.u32 %v7567_v0, %v7564_v3 }
 0x3c9   : > { %v7573_v24 = vrot.slane %v7571_v4, 5  ;;  %v8256_v36 = vshrl.u32 %v7829_v19, 16  ;;  %v7904_v28 = vsel %vm11907_vm5, %v10881_v58, %v7903_v20  ;;  %v7908_v18 = vsel %vm11907_vm5, %v10882_v51, %v7907_v61  ;;  %v8569_v4 = vld [vmem:[#allocation2 + $0x80] sm:$0xc] }
 0x3ca   : > { %7779 = vmatmul.bf16.gmra.mxu1 %v7695_v53  ;;  %8053 = vmatmul.bf16.gmra.mxu2 %v7969_v56  ;;  %v8259_v17 = vshll.u32 %v7829_v19, 16  ;;  %v8265_v53 = vshrl.u32 %v14041_v47, 16  ;;  %v7560_v12 = vsel %vm11795_vm2, %v7555_v34, %v7559_v6  ;;  %v7569_v32 = vrot.slane %v7568_v5, 4 }
 0x3cb   : > { %v14043_v13 = vpop.f32.mrf.mxu0  ;;  %v7958_v2 = vunpack.c.l.b16 %v7904_v28  ;;  %v7959_v60 = vunpack.c.l.b16 %v7908_v18  ;;  %v7684_v37 = vunpack.c.l.b16 %v7560_v12  ;;  %v8258_v49 = vrot.slane %v8256_v36, 5 }
 0x3cc   : > { %8519 = vmatmul.bf16.gmra.mxu3 %v8435_v57  ;;  %v8261_v54 = vrot.slane %v8259_v17, 6  ;;  %v7574_v19 = vsel %vm11795_vm2, %v7569_v32, %v7573_v24  ;;  %v8267_v39 = vrot.slane %v8265_v53, 5  ;;  %v8268_v0 = vshll.u32 %v14041_v47, 16 }
 0x3cd   : > { %v6893_v56 = vpop.f32.mrf.mxu2  ;;  %v7970_v57 = vpack.c.b16 %v7959_v60, %v7958_v2  ;;  %v8274_v61 = vshrl.u32 %v7830_v42, 16  ;;  %v8277_v34 = vshll.u32 %v7830_v42, 16  ;;  %v8283_v5 = vshrl.u32 %v8104_v43, 16 }
 0x3ce   : > { %v6924_v45 = vadd.f32 %v6893_v56, %v6458_v46  ;;  %8793 = vmatmul.bf16.gmra.mxu0 %v8709_v62  ;;  %v7685_v46 = vunpack.c.l.b16 %v7574_v19  ;;  %v8262_v20 = vor.u32 %v8261_v54, %v8258_v49  ;;  %v8270_v51 = vrot.slane %v8268_v0, 6  ;;  %v8570_v62 = vld [vmem:[#allocation2 + $0x88] sm:$0xc] }
 0x3cf   : > { %v7167_v15 = vpop.f32.mrf.mxu3  ;;  %v6429_v3 = vpop.f32.mrf.mxu1  ;;  %v8286_v18 = vshll.u32 %v8104_v43, 16  ;;  %v10993_v24 = vrot.slane %v8569_v4, 10  ;;  %v8276_v53 = vrot.slane %v8274_v61, 5  ;;  %v8279_v56 = vrot.slane %v8277_v34, 6 }
 0x3d0   : > { %v14055_v6 = vadd.f32 %v7167_v15, %v6924_v45  ;;  %v6459_v58 = vadd.f32 %v6429_v3, %v13857_v63  ;;  %v7696_v36 = vpack.c.b16 %v7685_v46, %v7684_v37  ;;  %v8263_v28 = vrot.slane %v8262_v20, 4  ;;  %v7423_v15 = vld [vmem:[#allocation2 + $0x90] sm:$0xf]  ;;  %v7425_v46 = vld [vmem:[#allocation2 + $0x98] sm:$0xf] }
 0x3d1   : > { %v8271_v17 = vor.u32 %v8270_v51, %v8267_v39  ;;  %v8285_v12 = vrot.slane %v8283_v5, 5  ;;  %v8288_v2 = vrot.slane %v8286_v18, 6  ;;  %v8643_v63 = vrot.slane %v14041_v47, 6 }
 0x3d2   : > { %v10994_v60 = vrot.slane %v8570_v62, 10  ;;  %v8647_v45 = vrot.slane %v8104_v43, 6  ;;  %v8280_v37 = vor.u32 %v8279_v56, %v8276_v53  ;;  %v6187_v54 = vadd.f32 %v13789_v48, %v13803_v11  ;;  %v7424_v43 = vld [vmem:[#allocation2 + $0x94] sm:$0x1] }
 0x3d3   : > { %v14058_v32 = vpop.f32.mrf.mxu0  ;;  %v8272_v42 = vsel %vm11947_vm9, %v8263_v28, %v8271_v17  ;;  %v14067_v3 = vadd.f32 %v13818_v31, %v13823_v25  ;;  %v8289_v0 = vor.u32 %v8288_v2, %v8285_v12  ;;  %v8644_v47 = vsel %vm11954_vm11, %v10993_v24, %v8643_v63  ;;  %v7831_v2 = vld [vmem:[#allocation2 + $0x90] sm:$0xe] }
 0x3d4   : > { %v8424_v4 = vunpack.c.l.b16 %v8272_v42  ;;  %v8281_v51 = vrot.slane %v8280_v37, 4  ;;  %v8648_v61 = vsel %vm11954_vm11, %v10994_v60, %v8647_v45  ;;  %v8698_v34 = vunpack.c.l.b16 %v8644_v47 }
 0x3d5   : > { %v6895_v49 = vpop.f32.mrf.mxu2  ;;  %v7576_v48 = vshrl.u32 %v7423_v15, 16  ;;  %v8699_v25 = vunpack.c.l.b16 %v8648_v61  ;;  %v7579_v5 = vshll.u32 %v7423_v15, 16  ;;  %v7585_v18 = vshll.u32 %v7424_v43, 16 }
 0x3d6   : > { %v6925_v19 = vadd.f32 %v6895_v49, %v6459_v58  ;;  %v7426_v58 = vld [vmem:[#allocation2 + $0x9c] sm:$0x1]  ;;  %v8290_v62 = vsel %vm11947_vm9, %v8281_v51, %v8289_v0  ;;  %v7590_v24 = vshrl.u32 %v7425_v46, 16  ;;  %v7593_v12 = vshll.u32 %v7425_v46, 16 }
 0x3d7   : > { %v7169_v39 = vpop.f32.mrf.mxu3  ;;  %v6432_v20 = vpop.f32.mrf.mxu1  ;;  %v7578_v28 = vrot.slane %v7576_v48, 4  ;;  %v8425_v17 = vunpack.c.l.b16 %v8290_v62  ;;  %v8710_v53 = vpack.c.b16 %v8699_v25, %v8698_v34  ;;  %v7581_v56 = vrot.slane %v7579_v5, 5  ;;  %v8105_v25 = vld [vmem:[#allocation2 + $0x94] sm:$0x3] }
 0x3d8   : > { %v14073_v11 = vadd.f32 %v7169_v39, %v6925_v19  ;;  %v6460_v31 = vadd.f32 %v6432_v20, %v14028_v7  ;;  %v7587_v63 = vrot.slane %v7585_v18, 5  ;;  %v7592_v60 = vrot.slane %v7590_v24, 4  ;;  %v7832_v19 = vld [vmem:[#allocation2 + $0x98] sm:$0xe] }
 0x3d9   : > { %v7599_v45 = vshll.u32 %v7426_v58, 16  ;;  %v10883_v7 = vrot.slane %v7831_v2, 9  ;;  %v8436_v15 = vpack.c.b16 %v8425_v17, %v8424_v4  ;;  %v7582_v42 = vor.u32 %v7581_v56, %v7578_v28 }
 0x3da   : > { %7784 = vmatmul.bf16.gmra.mxu1 %v7696_v36  ;;  %8058 = vmatmul.bf16.gmra.mxu2 %v7970_v57  ;;  %v7595_v37 = vrot.slane %v7593_v12, 5  ;;  %v7911_v39 = vrot.slane %v7424_v43, 5  ;;  %v10884_v36 = vrot.slane %v7832_v19, 9  ;;  %v7915_v57 = vrot.slane %v7426_v58, 5  ;;  %v8106_v12 = vld [vmem:[#allocation2 + $0x9c] sm:$0x3] }
 0x3db   : > { %v14078_v49 = vpop.f32.mrf.mxu0  ;;  %v7601_v47 = vrot.slane %v7599_v45, 5  ;;  %v8292_v20 = vshrl.u32 %v7831_v2, 16  ;;  %v7583_v61 = vrot.slane %v7582_v42, 4  ;;  %v8295_v28 = vshll.u32 %v7831_v2, 16 }
 0x3dc   : > { %8524 = vmatmul.bf16.gmra.mxu3 %v8436_v15  ;;  %v7596_v34 = vor.u32 %v7595_v37, %v7592_v60  ;;  %v7912_v48 = vsel %vm11907_vm5, %v10883_v7, %v7911_v39  ;;  %v7916_v5 = vsel %vm11907_vm5, %v10884_v36, %v7915_v57  ;;  %v8301_v45 = vshrl.u32 %v8105_v25, 16  ;;  %v8571_v37 = vld [vmem:[#allocation2 + $0x90] sm:$0xc] }
 0x3dd   : > { %v6898_v0 = vpop.f32.mrf.mxu2  ;;  %v7960_v43 = vunpack.c.l.b16 %v7912_v48  ;;  %v8294_v62 = vrot.slane %v8292_v20, 5  ;;  %v7961_v56 = vunpack.c.l.b16 %v7916_v5  ;;  %v8297_v60 = vrot.slane %v8295_v28, 6 }
 0x3de   : > { %v6926_v51 = vadd.f32 %v6898_v0, %v6460_v31  ;;  %8798 = vmatmul.bf16.gmra.mxu0 %v8710_v53  ;;  %v7588_v31 = vsel %vm11795_vm2, %v7583_v61, %v7587_v63  ;;  %v7597_v24 = vrot.slane %v7596_v34, 4  ;;  %v8304_v7 = vshll.u32 %v8105_v25, 16 }
 0x3df   : > { %v7172_v46 = vpop.f32.mrf.mxu3  ;;  %v6434_v4 = vpop.f32.mrf.mxu1  ;;  %v7686_v17 = vunpack.c.l.b16 %v7588_v31  ;;  %v8310_v15 = vshrl.u32 %v7832_v19, 16  ;;  %v8313_v42 = vshll.u32 %v7832_v19, 16  ;;  %v7971_v39 = vpack.c.b16 %v7961_v56, %v7960_v43 }
 0x3e0   : > { %v14084_v18 = vadd.f32 %v7172_v46, %v6926_v51  ;;  %v6461_v58 = vadd.f32 %v6434_v4, %v6187_v54  ;;  %v7602_v53 = vsel %vm11795_vm2, %v7597_v24, %v7601_v47  ;;  %v8298_v0 = vor.u32 %v8297_v60, %v8294_v62  ;;  %v8572_v46 = vld [vmem:[#allocation2 + $0x98] sm:$0xc] }
 0x3e1   : > { %v7687_v2 = vunpack.c.l.b16 %v7602_v53  ;;  %v8303_v54 = vrot.slane %v8301_v45, 5  ;;  %v8306_v63 = vrot.slane %v8304_v7, 6  ;;  %v8312_v57 = vrot.slane %v8310_v15, 5 }
 0x3e2   : > { %v8315_v20 = vrot.slane %v8313_v42, 6  ;;  %v8319_v51 = vshrl.u32 %v8106_v12, 16  ;;  %v8299_v48 = vrot.slane %v8298_v0, 4  ;;  %v8322_v4 = vshll.u32 %v8106_v12, 16  ;;  %v7427_v42 = vld [vmem:[#allocation2 + $0xa0] sm:$0xf] }
 0x3e3   : > { %v14090_v36 = vpop.f32.mrf.mxu0  ;;  %v7697_v34 = vpack.c.b16 %v7687_v2, %v7686_v17  ;;  %v10995_v47 = vrot.slane %v8571_v37, 10  ;;  %v8307_v19 = vor.u32 %v8306_v63, %v8303_v54  ;;  %v8651_v56 = vrot.slane %v8105_v25, 6  ;;  %v7428_v37 = vld [vmem:[#allocation2 + $0xa4] sm:$0x1]  ;;  %v7429_v54 = vld [vmem:[#allocation2 + $0xa8] sm:$0xf] }
 0x3e4   : > { %v8316_v31 = vor.u32 %v8315_v20, %v8312_v57  ;;  %v8321_v24 = vrot.slane %v8319_v51, 5  ;;  %v8324_v62 = vrot.slane %v8322_v4, 6  ;;  %v10996_v60 = vrot.slane %v8572_v46, 10  ;;  %v7430_v20 = vld [vmem:[#allocation2 + $0xac] sm:$0x1] }
 0x3e5   : > { %v6900_v61 = vpop.f32.mrf.mxu2  ;;  %v8655_v45 = vrot.slane %v8106_v12, 6  ;;  %v8308_v17 = vsel %vm11947_vm9, %v8299_v48, %v8307_v19  ;;  %v8652_v0 = vsel %vm11954_vm11, %v10995_v47, %v8651_v56  ;;  %v14105_v57 = vadd.f32 %v13859_v8, %v13869_v9  ;;  %v7833_v56 = vld [vmem:[#allocation2 + $0xa0] sm:$0xe] }
 0x3e6   : > { %v6927_v5 = vadd.f32 %v6900_v61, %v6461_v58  ;;  %v8317_v15 = vrot.slane %v8316_v31, 4  ;;  %v8325_v58 = vor.u32 %v8324_v62, %v8321_v24  ;;  %v8426_v2 = vunpack.c.l.b16 %v8308_v17 }
 0x3e7   : > { %v7174_v28 = vpop.f32.mrf.mxu3  ;;  %v6437_v43 = vpop.f32.mrf.mxu1  ;;  %v8656_v25 = vsel %vm11954_vm11, %v10996_v60, %v8655_v45  ;;  %v8700_v12 = vunpack.c.l.b16 %v8652_v0  ;;  %v7604_v46 = vshrl.u32 %v7427_v42, 16  ;;  %v7607_v61 = vshll.u32 %v7427_v42, 16  ;;  %v7834_v60 = vld [vmem:[#allocation2 + $0xa8] sm:$0xe]  ;;  %v8107_v0 = vld [vmem:[#allocation2 + $0xa4] sm:$0x3] }
 0x3e8   : > { %v14092_v53 = vadd.f32 %v7174_v28, %v6927_v5  ;;  %v6462_v7 = vadd.f32 %v6437_v43, %v14067_v3  ;;  %v8701_v63 = vunpack.c.l.b16 %v8656_v25  ;;  %v6189_v3 = vadd.f32 %v13832_v1, %v13845_v35 }
 0x3e9   : > { %v8326_v51 = vsel %vm11947_vm9, %v8317_v15, %v8325_v58  ;;  %v7613_v48 = vshll.u32 %v7428_v37, 16  ;;  %v7618_v47 = vshrl.u32 %v7429_v54, 16  ;;  %v7621_v5 = vshll.u32 %v7429_v54, 16 }
 0x3ea   : > { %7789 = vmatmul.bf16.gmra.mxu1 %v7697_v34  ;;  %8063 = vmatmul.bf16.gmra.mxu2 %v7971_v39  ;;  %v8427_v34 = vunpack.c.l.b16 %v8326_v51  ;;  %v8711_v39 = vpack.c.b16 %v8701_v63, %v8700_v12  ;;  %v7606_v19 = vrot.slane %v7604_v46, 4  ;;  %v7609_v1 = vrot.slane %v7607_v61, 5 }
 0x3eb   : > { %v14109_v4 = vpop.f32.mrf.mxu0  ;;  %v7615_v35 = vrot.slane %v7613_v48, 5  ;;  %v7627_v31 = vshll.u32 %v7430_v20, 16  ;;  %v7620_v43 = vrot.slane %v7618_v47, 4  ;;  %v7623_v62 = vrot.slane %v7621_v5, 5 }
 0x3ec   : > { %v8437_v8 = vpack.c.b16 %v8427_v34, %v8426_v2  ;;  %v7610_v17 = vor.u32 %v7609_v1, %v7606_v19  ;;  %v10885_v42 = vrot.slane %v7833_v56, 9  ;;  %v7919_v58 = vrot.slane %v7428_v37, 5 }
 0x3ed   : > { %v6903_v28 = vpop.f32.mrf.mxu2  ;;  %v7629_v15 = vrot.slane %v7627_v31, 5  ;;  %v7624_v12 = vor.u32 %v7623_v62, %v7620_v43  ;;  %v10886_v63 = vrot.slane %v7834_v60, 9  ;;  %v7923_v51 = vrot.slane %v7430_v20, 5  ;;  %v8108_v31 = vld [vmem:[#allocation2 + $0xac] sm:$0x3] }
 0x3ee   : > { %v6928_v9 = vadd.f32 %v6903_v28, %v6462_v7  ;;  %8803 = vmatmul.bf16.gmra.mxu0 %v8711_v39  ;;  %8529 = vmatmul.bf16.gmra.mxu3 %v8437_v8  ;;  %v7611_v2 = vrot.slane %v7610_v17, 4  ;;  %v7920_v7 = vsel %vm11907_vm5, %v10885_v42, %v7919_v58  ;;  %v8328_v46 = vshrl.u32 %v7833_v56, 16 }
 0x3ef   : > { %v7177_v24 = vpop.f32.mrf.mxu3  ;;  %v6439_v45 = vpop.f32.mrf.mxu1  ;;  %v7625_v61 = vrot.slane %v7624_v12, 4  ;;  %v7962_v48 = vunpack.c.l.b16 %v7920_v7  ;;  %v8331_v34 = vshll.u32 %v7833_v56, 16  ;;  %v8337_v39 = vshrl.u32 %v8107_v0, 16  ;;  %v8573_v12 = vld [vmem:[#allocation2 + $0xa0] sm:$0xc] }
 0x3f0   : > { %v14111_v25 = vadd.f32 %v7177_v24, %v6928_v9  ;;  %v6463_v54 = vadd.f32 %v6439_v45, %v6189_v3  ;;  %v7616_v37 = vsel %vm11795_vm2, %v7611_v2, %v7615_v35  ;;  %v7924_v47 = vsel %vm11907_vm5, %v10886_v63, %v7923_v51 }
 0x3f1   : > { %v8330_v5 = vrot.slane %v8328_v46, 5  ;;  %v8340_v3 = vshll.u32 %v8107_v0, 16  ;;  %v7630_v19 = vsel %vm11795_vm2, %v7625_v61, %v7629_v15  ;;  %v7688_v1 = vunpack.c.l.b16 %v7616_v37  ;;  %v8574_v46 = vld [vmem:[#allocation2 + $0xa8] sm:$0xc] }
 0x3f2   : > { %v7963_v20 = vunpack.c.l.b16 %v7924_v47  ;;  %v8333_v8 = vrot.slane %v8331_v34, 6  ;;  %v7689_v24 = vunpack.c.l.b16 %v7630_v19  ;;  %v8339_v43 = vrot.slane %v8337_v39, 5 }
 0x3f3   : > { %v14119_v28 = vpop.f32.mrf.mxu0  ;;  %v8342_v62 = vrot.slane %v8340_v3, 6  ;;  %v8346_v56 = vshrl.u32 %v7834_v60, 16  ;;  %v8349_v58 = vshll.u32 %v7834_v60, 16  ;;  %v8355_v15 = vshrl.u32 %v8108_v31, 16 }
 0x3f4   : > { %v7972_v17 = vpack.c.b16 %v7963_v20, %v7962_v48  ;;  %v8334_v42 = vor.u32 %v8333_v8, %v8330_v5  ;;  %v7698_v2 = vpack.c.b16 %v7689_v24, %v7688_v1  ;;  %v8358_v3 = vshll.u32 %v8108_v31, 16  ;;  %v7431_v20 = vld [vmem:[#allocation2 + $0xb0] sm:$0xf] }
 0x3f5   : > { %v6905_v9 = vpop.f32.mrf.mxu2  ;;  %v8343_v7 = vor.u32 %v8342_v62, %v8339_v43  ;;  %v8348_v51 = vrot.slane %v8346_v56, 5  ;;  %v8351_v39 = vrot.slane %v8349_v58, 6  ;;  %v8357_v47 = vrot.slane %v8355_v15, 5  ;;  %v7432_v43 = vld [vmem:[#allocation2 + $0xb4] sm:$0x1] }
 0x3f6   : > { %v6929_v35 = vadd.f32 %v6905_v9, %v6463_v54  ;;  %v8335_v37 = vrot.slane %v8334_v42, 4  ;;  %v10997_v54 = vrot.slane %v8573_v12, 10  ;;  %v8659_v19 = vrot.slane %v8107_v0, 6  ;;  %v7433_v62 = vld [vmem:[#allocation2 + $0xb8] sm:$0xf] }
 0x3f7   : > { %v7179_v45 = vpop.f32.mrf.mxu3  ;;  %v6442_v63 = vpop.f32.mrf.mxu1  ;;  %v8352_v48 = vor.u32 %v8351_v39, %v8348_v51  ;;  %v10998_v5 = vrot.slane %v8574_v46, 10  ;;  %v8663_v1 = vrot.slane %v8108_v31, 6  ;;  %v8360_v8 = vrot.slane %v8358_v3, 6 }
 0x3f8   : > { %v14123_v61 = vadd.f32 %v7179_v45, %v6929_v35  ;;  %v6464_v34 = vadd.f32 %v6442_v63, %v14105_v57  ;;  %v8344_v60 = vsel %vm11947_vm9, %v8335_v37, %v8343_v7  ;;  %v8660_v57 = vsel %vm11954_vm11, %v10997_v54, %v8659_v19 }
 0x3f9   : > { %v8428_v9 = vunpack.c.l.b16 %v8344_v60  ;;  %v6191_v24 = vadd.f32 %v13874_v55, %v13888_v29  ;;  %v8353_v56 = vrot.slane %v8352_v48, 4  ;;  %v8664_v35 = vsel %vm11954_vm11, %v10998_v5, %v8663_v1  ;;  %v7434_v55 = vld [vmem:[#allocation2 + $0xbc] sm:$0x1]  ;;  %v7835_v60 = vld [vmem:[#allocation2 + $0xb0] sm:$0xe] }
 0x3fa   : > { %7794 = vmatmul.bf16.gmra.mxu1 %v7698_v2  ;;  %8068 = vmatmul.bf16.gmra.mxu2 %v7972_v17  ;;  %v8702_v45 = vunpack.c.l.b16 %v8660_v57  ;;  %v6192_v31 = vadd.f32 %v13898_v26, %v13907_v30  ;;  %v8361_v17 = vor.u32 %v8360_v8, %v8357_v47  ;;  %v8703_v42 = vunpack.c.l.b16 %v8664_v35  ;;  %v7836_v48 = vld [vmem:[#allocation2 + $0xb8] sm:$0xe]  ;;  %v14142_v8 = vld [vmem:[#allocation2 + $0xb4] sm:$0x3] }
 0x3fb   : > { %v14132_v0 = vpop.f32.mrf.mxu0  ;;  %v7632_v12 = vshrl.u32 %v7431_v20, 16  ;;  %v7635_v63 = vshll.u32 %v7431_v20, 16  ;;  %v7641_v29 = vshll.u32 %v7432_v43, 16  ;;  %v7646_v51 = vshrl.u32 %v7433_v62, 16 }
 0x3fc   : > { %v7649_v15 = vshll.u32 %v7433_v62, 16  ;;  %v8362_v46 = vsel %vm11947_vm9, %v8353_v56, %v8361_v17  ;;  %v8712_v37 = vpack.c.b16 %v8703_v42, %v8702_v45  ;;  %v7655_v20 = vshll.u32 %v7434_v55, 16 }
 0x3fd   : > { %v6908_v58 = vpop.f32.mrf.mxu2  ;;  %v7634_v3 = vrot.slane %v7632_v12, 4  ;;  %v7637_v54 = vrot.slane %v7635_v63, 5  ;;  %v8429_v19 = vunpack.c.l.b16 %v8362_v46  ;;  %v7643_v47 = vrot.slane %v7641_v29, 5 }
 0x3fe   : > { %v6930_v2 = vadd.f32 %v6908_v58, %v6464_v34  ;;  %8808 = vmatmul.bf16.gmra.mxu0 %v8712_v37  ;;  %v7648_v5 = vrot.slane %v7646_v51, 4  ;;  %v7651_v1 = vrot.slane %v7649_v15, 5  ;;  %v10887_v62 = vrot.slane %v7835_v60, 9 }
 0x3ff   : > { %v7182_v7 = vpop.f32.mrf.mxu3  ;;  %v6444_v39 = vpop.f32.mrf.mxu1  ;;  %v7638_v34 = vor.u32 %v7637_v54, %v7634_v3  ;;  %v8438_v57 = vpack.c.b16 %v8429_v19, %v8428_v9  ;;  %v7927_v56 = vrot.slane %v7432_v43, 5  ;;  %v10888_v35 = vrot.slane %v7836_v48, 9  ;;  %v8110_v3 = vld [vmem:[#allocation2 + $0xbc] sm:$0x3] }
 0x400   : > { %v14140_v26 = vadd.f32 %v7182_v7, %v6930_v2  ;;  %v6465_v30 = vadd.f32 %v6444_v39, %v6191_v24  ;;  %v7652_v17 = vor.u32 %v7651_v1, %v7648_v5  ;;  %v7657_v42 = vrot.slane %v7655_v20, 5 }
 0x401   : > { %v7639_v45 = vrot.slane %v7638_v34, 4  ;;  %v7931_v58 = vrot.slane %v7434_v55, 5  ;;  %8534 = vmatmul.bf16.gmra.mxu3 %v8438_v57  ;;  %v7928_v12 = vsel %vm11907_vm5, %v10887_v62, %v7927_v56  ;;  %v8364_v63 = vshrl.u32 %v7835_v60, 16 }
 0x402   : > { %v8367_v2 = vshll.u32 %v7835_v60, 16  ;;  %v8373_v7 = vshrl.u32 %v14142_v8, 16  ;;  %v7653_v43 = vrot.slane %v7652_v17, 4  ;;  %v7964_v15 = vunpack.c.l.b16 %v7928_v12  ;;  %v8576_v17 = vld [vmem:[#allocation2 + $0xb8] sm:$0xc] }
 0x403   : > { %v14144_v24 = vpop.f32.mrf.mxu0  ;;  %v7644_v9 = vsel %vm11795_vm2, %v7639_v45, %v7643_v47  ;;  %v7932_v51 = vsel %vm11907_vm5, %v10888_v35, %v7931_v58  ;;  %v8366_v54 = vrot.slane %v8364_v63, 5  ;;  %v8376_v1 = vshll.u32 %v14142_v8, 16  ;;  %v8575_v47 = vld [vmem:[#allocation2 + $0xb0] sm:$0xc] }
 0x404   : > { %v7690_v37 = vunpack.c.l.b16 %v7644_v9  ;;  %v7965_v39 = vunpack.c.l.b16 %v7932_v51  ;;  %v7658_v60 = vsel %vm11795_vm2, %v7653_v43, %v7657_v42  ;;  %v8369_v34 = vrot.slane %v8367_v2, 6 }
 0x405   : > { %v6910_v29 = vpop.f32.mrf.mxu2  ;;  %v8375_v5 = vrot.slane %v8373_v7, 5  ;;  %v7691_v57 = vunpack.c.l.b16 %v7658_v60  ;;  %v8378_v56 = vrot.slane %v8376_v1, 6  ;;  %v8382_v35 = vshrl.u32 %v7836_v48, 16 }
 0x406   : > { %v6931_v55 = vadd.f32 %v6910_v29, %v6465_v30  ;;  %v7973_v62 = vpack.c.b16 %v7965_v39, %v7964_v15  ;;  %v8370_v30 = vor.u32 %v8369_v34, %v8366_v54  ;;  %v8385_v45 = vshll.u32 %v7836_v48, 16 }
 0x407   : > { %v7184_v46 = vpop.f32.mrf.mxu3  ;;  %v6447_v19 = vpop.f32.mrf.mxu1  ;;  %v7699_v58 = vpack.c.b16 %v7691_v57, %v7690_v37  ;;  %v8391_v12 = vshrl.u32 %v8110_v3, 16  ;;  %v8394_v21 = vshll.u32 %v8110_v3, 16  ;;  %v10999_v42 = vrot.slane %v8575_v47, 10 }
 0x408   : > { %v14156_v20 = vadd.f32 %v7184_v46, %v6931_v55  ;;  %v6466_v44 = vadd.f32 %v6447_v19, %v6192_v31  ;;  %v8371_v63 = vrot.slane %v8370_v30, 4  ;;  %v8379_v2 = vor.u32 %v8378_v56, %v8375_v5 }
 0x409   : > { %v8384_v7 = vrot.slane %v8382_v35, 5  ;;  %v8387_v29 = vrot.slane %v8385_v45, 6  ;;  %v8393_v31 = vrot.slane %v8391_v12, 5  ;;  %v8396_v43 = vrot.slane %v8394_v21, 6 }
 0x40a   : > { %8073 = vmatmul.bf16.gmra.mxu2 %v7973_v62  ;;  %7799 = vmatmul.bf16.gmra.mxu1 %v7699_v58  ;;  %v8667_v51 = vrot.slane %v14142_v8, 6  ;;  %v11000_v15 = vrot.slane %v8576_v17, 10  ;;  %v8380_v48 = vsel %vm11947_vm9, %v8371_v63, %v8379_v2  ;;  %v8671_v46 = vrot.slane %v8110_v3, 6 }
 0x40b   : > { %v14158_v9 = vpop.f32.mrf.mxu0  ;;  %v8388_v55 = vor.u32 %v8387_v29, %v8384_v7  ;;  %v8397_v39 = vor.u32 %v8396_v43, %v8393_v31  ;;  %v6193_v34 = vadd.f32 %v13914_v33, %v13924_v27  ;;  %v8430_v57 = vunpack.c.l.b16 %v8380_v48 }
 0x40c   : > { %14511 = vst [vmem:[#allocation9_spill] sm:$0xff] %v14158_v9  ;;  %v8668_v54 = vsel %vm11954_vm11, %v10999_v42, %v8667_v51  ;;  %v8672_v8 = vsel %vm11954_vm11, %v11000_v15, %v8671_v46  ;;  %v7387_v58 = vadd.f32 %v13937_v22, %v13946_v14  ;;  %v7388_v29 = vadd.f32 %v13953_v52, %v13959_v16  ;;  %v14514_v14 = vld [vmem:[#allocation7_spill] sm:$0xff] }
 0x40d   : > { %v6913_v37 = vpop.f32.mrf.mxu2  ;;  %v8389_v5 = vrot.slane %v8388_v55, 4  ;;  %v8704_v1 = vunpack.c.l.b16 %v8668_v54  ;;  %v8705_v62 = vunpack.c.l.b16 %v8672_v8 }
 0x40e   : > { %v6932_v19 = vadd.f32 %v6913_v37, %v6466_v44  ;;  %v14515_v37 = vld [vmem:[#allocation6_spill] sm:$0xff] }
 0x40f   : > { %v7187_v60 = vpop.f32.mrf.mxu3  ;;  %v6449_v47 = vpop.f32.mrf.mxu1  ;;  %v8398_v56 = vsel %vm11947_vm9, %v8389_v5, %v8397_v39  ;;  %v8713_v44 = vpack.c.b16 %v8705_v62, %v8704_v1  ;;  %v7389_v39 = vadd.f32 %v14515_v37, %v14514_v14  ;;  %v14516_v1 = vld [vmem:[#allocation8_spill] sm:$0xff] }
 0x410   : > { %v14169_v30 = vadd.f32 %v7187_v60, %v6932_v19  ;;  %v6467_v3 = vadd.f32 %v6449_v47, %v6193_v34  ;;  %v8431_v35 = vunpack.c.l.b16 %v8398_v56  ;;  %v7390_v47 = vadd.f32 %v14516_v1, %v13993_v38 }
 0x411   : > { %8813 = vmatmul.bf16.gmra.mxu0 %v8713_v44 }
 0x412   : > { %v8439_v45 = vpack.c.b16 %v8431_v35, %v8430_v57 }
 0x413   : > { %v14173_v17 = vpop.f32.mrf.mxu0 }
 0x414   : > { %14512 = vst [vmem:[#allocation10_spill] sm:$0xff] %v14173_v17  ;;  %8539 = vmatmul.bf16.gmra.mxu3 %v8439_v45 }
 0x415   : > { %v6915_v33 = vpop.f32.mrf.mxu2 }
 0x416   : > { %v6933_v23 = vadd.f32 %v6915_v33, %v6467_v3 }
 0x417   : > { %v7189_v27 = vpop.f32.mrf.mxu3  ;;  %v7765_v12 = vpop.f32.mrf.mxu1 }
 0x418   : > { %v14177_v21 = vadd.f32 %v7189_v27, %v6933_v23  ;;  %v7805_v42 = vadd.f32 %v7765_v12, %v7387_v58  ;;  %v7391_v23 = vadd.f32 %v14013_v50, %v14020_v59 }
 0x41a   : > { %14513 = vst [vmem:[#allocation11_spill] sm:$0xff] %v14177_v21 }
 0x41b   : > { %v8779_v63 = vpop.f32.mrf.mxu0 }
 0x41d   : > { %v8039_v10 = vpop.f32.mrf.mxu2 }
 0x41e   : > { %v8079_v2 = vadd.f32 %v8039_v10, %v7805_v42 }
 0x41f   : > { %v8505_v7 = vpop.f32.mrf.mxu3  ;;  %v7767_v31 = vpop.f32.mrf.mxu1 }
 0x420   : > { %v8545_v43 = vadd.f32 %v8505_v7, %v8079_v2  ;;  %v7806_v51 = vadd.f32 %v7767_v31, %v7388_v29 }
 0x422   : > { %v14181_v15 = vadd.f32 %v8779_v63, %v8545_v43 }
 0x423   : > { %v8781_v48 = vpop.f32.mrf.mxu0 }
 0x425   : > { %v8041_v55 = vpop.f32.mrf.mxu2 }
 0x426   : > { %v8080_v46 = vadd.f32 %v8041_v55, %v7806_v51 }
 0x427   : > { %v8507_v22 = vpop.f32.mrf.mxu3  ;;  %v7770_v54 = vpop.f32.mrf.mxu1 }
 0x428   : > { %v8546_v19 = vadd.f32 %v8507_v22, %v8080_v46  ;;  %v7807_v60 = vadd.f32 %v7770_v54, %v7389_v39 }
 0x42a   : > { %v14185_v34 = vadd.f32 %v8781_v48, %v8546_v19 }
 0x42b   : > { %v8784_v5 = vpop.f32.mrf.mxu0 }
 0x42d   : > { %v8044_v8 = vpop.f32.mrf.mxu2 }
 0x42e   : > { %v8081_v52 = vadd.f32 %v8044_v8, %v7807_v60 }
 0x42f   : > { %v8510_v16 = vpop.f32.mrf.mxu3  ;;  %v7772_v57 = vpop.f32.mrf.mxu1 }
 0x430   : > { %v8547_v62 = vadd.f32 %v8510_v16, %v8081_v52  ;;  %v7808_v3 = vadd.f32 %v7772_v57, %v7390_v47 }
 0x432   : > { %v14189_v56 = vadd.f32 %v8784_v5, %v8547_v62 }
 0x433   : > { %v8786_v35 = vpop.f32.mrf.mxu0 }
 0x435   : > { %v8046_v44 = vpop.f32.mrf.mxu2 }
 0x436   : > { %v8082_v45 = vadd.f32 %v8046_v44, %v7808_v3 }
 0x437   : > { %v8512_v33 = vpop.f32.mrf.mxu3  ;;  %v7775_v27 = vpop.f32.mrf.mxu1 }
 0x438   : > { %v8548_v58 = vadd.f32 %v8512_v33, %v8082_v45  ;;  %v7809_v12 = vadd.f32 %v7775_v27, %v7391_v23 }
 0x43a   : > { %v14193_v42 = vadd.f32 %v8786_v35, %v8548_v58  ;;  %v7392_v58 = vadd.f32 %v14030_v41, %v14038_v40  ;;  %v8835_v41 = vadd.f32 %v14185_v34, %v14181_v15 }
 0x43b   : > { %v8789_v63 = vpop.f32.mrf.mxu0 }
 0x43d   : > { %v8049_v10 = vpop.f32.mrf.mxu2 }
 0x43e   : > { %v8083_v38 = vadd.f32 %v8049_v10, %v7809_v12 }
 0x43f   : > { %v8515_v2 = vpop.f32.mrf.mxu3  ;;  %v7777_v7 = vpop.f32.mrf.mxu1 }
 0x440   : > { %v8549_v29 = vadd.f32 %v8515_v2, %v8083_v38  ;;  %v7810_v12 = vadd.f32 %v7777_v7, %v7392_v58  ;;  %v7396_v7 = vadd.f32 %v14090_v36, %v14092_v53 }
 0x442   : > { %v14195_v31 = vadd.f32 %v8789_v63, %v8549_v29  ;;  %v7393_v63 = vadd.f32 %v14043_v13, %v14055_v6  ;;  %v7394_v29 = vadd.f32 %v14058_v32, %v14073_v11 }
 0x443   : > { %v8791_v43 = vpop.f32.mrf.mxu0 }
 0x445   : > { %v8051_v51 = vpop.f32.mrf.mxu2 }
 0x446   : > { %v8084_v38 = vadd.f32 %v8051_v51, %v7810_v12  ;;  %v8836_v51 = vadd.f32 %v8835_v41, %v14189_v56 }
 0x447   : > { %v8517_v48 = vpop.f32.mrf.mxu3  ;;  %v7780_v55 = vpop.f32.mrf.mxu1 }
 0x448   : > { %v7811_v2 = vadd.f32 %v7780_v55, %v7393_v63  ;;  %v8550_v40 = vadd.f32 %v8517_v48, %v8084_v38 }
 0x44b   : > { %v8794_v46 = vpop.f32.mrf.mxu0 }
 0x44d   : > { %v8054_v22 = vpop.f32.mrf.mxu2 }
 0x44e   : > { %v8085_v21 = vadd.f32 %v8054_v22, %v7811_v2  ;;  %v7397_v22 = vadd.f32 %v14109_v4, %v14111_v25  ;;  %v7399_v25 = vadd.f32 %v14132_v0, %v14140_v26  ;;  %v14520_v0 = vld [vmem:[#allocation9_spill] sm:$0xff] }
 0x44f   : > { %v8520_v50 = vpop.f32.mrf.mxu3  ;;  %v7782_v59 = vpop.f32.mrf.mxu1  ;;  %v7401_v26 = vadd.f32 %v14520_v0, %v14169_v30 }
 0x450   : > { %v8551_v32 = vadd.f32 %v8520_v50, %v8085_v21 }
 0x452   : > { %v14228_v53 = vadd.f32 %v8794_v46, %v8551_v32  ;;  %v7400_v46 = vadd.f32 %v14144_v24, %v14156_v20 }
 0x453   : > { %v8796_v14 = vpop.f32.mrf.mxu0 }
 0x455   : > { %v8056_v37 = vpop.f32.mrf.mxu2 }
 0x457   : > { %v8522_v39 = vpop.f32.mrf.mxu3  ;;  %v7785_v54 = vpop.f32.mrf.mxu1 }
 0x45b   : > { %v14197_v19 = vpop.f32.mrf.mxu0 }
 0x45d   : > { %v8059_v60 = vpop.f32.mrf.mxu2 }
 0x45f   : > { %v7787_v5 = vpop.f32.mrf.mxu1  ;;  %v8525_v8 = vpop.f32.mrf.mxu3 }
 0x460   : > { %v7814_v55 = vadd.f32 %v7787_v5, %v7396_v7 }
 0x463   : > { %v14199_v16 = vpop.f32.mrf.mxu0 }
 0x464   : > { %14517 = vst [vmem:[#allocation7_spill] sm:$0xff] %v14199_v16 }
 0x465   : > { %v8061_v52 = vpop.f32.mrf.mxu2 }
 0x466   : > { %v8088_v58 = vadd.f32 %v8061_v52, %v7814_v55 }
 0x467   : > { %v7790_v1 = vpop.f32.mrf.mxu1  ;;  %v8527_v47 = vpop.f32.mrf.mxu3 }
 0x468   : > { %v7815_v48 = vadd.f32 %v7790_v1, %v7397_v22  ;;  %v8554_v1 = vadd.f32 %v8527_v47, %v8088_v58 }
 0x46b   : > { %v14201_v62 = vpop.f32.mrf.mxu0  ;;  %v14521_v12 = vld [vmem:[#allocation7_spill] sm:$0xff] }
 0x46c   : > { %14518 = vst [vmem:[#allocation6_spill] sm:$0xff] %v14201_v62  ;;  %v7395_v62 = vadd.f32 %v14078_v49, %v14084_v18  ;;  %v8837_v49 = vadd.f32 %v8836_v51, %v14193_v42  ;;  %v14223_v18 = vadd.f32 %v8791_v43, %v8550_v40  ;;  %v14245_v47 = vadd.f32 %v14521_v12, %v8554_v1 }
 0x46d   : > { %v8064_v57 = vpop.f32.mrf.mxu2 }
 0x46e   : > { %v7813_v6 = vadd.f32 %v7785_v54, %v7395_v62  ;;  %v8838_v36 = vadd.f32 %v8837_v49, %v14195_v31  ;;  %v8089_v5 = vadd.f32 %v8064_v57, %v7815_v48 }
 0x46f   : > { %v7792_v3 = vpop.f32.mrf.mxu1 }
 0x470   : > { %v8087_v11 = vadd.f32 %v8059_v60, %v7813_v6  ;;  %v8839_v43 = vadd.f32 %v8838_v36, %v14223_v18 }
 0x471   : > { %v8530_v35 = vpop.f32.mrf.mxu3 }
 0x472   : > { %v8553_v21 = vadd.f32 %v8525_v8, %v8087_v11  ;;  %v8840_v8 = vadd.f32 %v8839_v43, %v14228_v53  ;;  %v8555_v57 = vadd.f32 %v8530_v35, %v8089_v5 }
 0x473   : > { %v14203_v45 = vpop.f32.mrf.mxu0  ;;  %v14522_v20 = vld [vmem:[#allocation6_spill] sm:$0xff] }
 0x474   : > { %14519 = vst [vmem:[#allocation8_spill] sm:$0xff] %v14203_v45  ;;  %v7812_v45 = vadd.f32 %v7782_v59, %v7394_v29  ;;  %v14239_v62 = vadd.f32 %v14197_v19, %v8553_v21  ;;  %v14249_v38 = vadd.f32 %v14522_v20, %v8555_v57 }
 0x475   : > { %v8066_v44 = vpop.f32.mrf.mxu2 }
 0x476   : > { %v8086_v13 = vadd.f32 %v8056_v37, %v7812_v45  ;;  %v7398_v37 = vadd.f32 %v14119_v28, %v14123_v61 }
 0x477   : > { %v7795_v33 = vpop.f32.mrf.mxu1 }
 0x478   : > { %v8552_v59 = vadd.f32 %v8522_v39, %v8086_v13  ;;  %v7816_v4 = vadd.f32 %v7792_v3, %v7398_v37  ;;  %v7817_v61 = vadd.f32 %v7795_v33, %v7399_v25  ;;  %v14525_v13 = vld [vmem:[#allocation10_spill] sm:$0xff] }
 0x479   : > { %v8532_v23 = vpop.f32.mrf.mxu3 }
 0x47a   : > { %v14233_v39 = vadd.f32 %v8796_v14, %v8552_v59  ;;  %v8090_v28 = vadd.f32 %v8066_v44, %v7816_v4 }
 0x47b   : > { %v14209_v10 = vpop.f32.mrf.mxu0  ;;  %v14523_v41 = vld [vmem:[#allocation8_spill] sm:$0xff] }
 0x47c   : > { %v8841_v14 = vadd.f32 %v8840_v8, %v14233_v39  ;;  %v8556_v44 = vadd.f32 %v8532_v23, %v8090_v28 }
 0x47d   : > { %v8069_v27 = vpop.f32.mrf.mxu2 }
 0x47e   : > { %v8091_v3 = vadd.f32 %v8069_v27, %v7817_v61  ;;  %v8842_v24 = vadd.f32 %v8841_v14, %v14239_v62  ;;  %v14253_v40 = vadd.f32 %v14523_v41, %v8556_v44 }
 0x47f   : > { %v7797_v17 = vpop.f32.mrf.mxu1 }
 0x480   : > { %v7818_v45 = vadd.f32 %v7797_v17, %v7400_v46  ;;  %v11579_v17 = vmov 128.0   ;;  %v8843_v29 = vadd.f32 %v8842_v24, %v14245_v47 }
 0x481   : > { %11476 = vrcp.f32 %v11579_v17 }
 0x482   : > { %v8844_v51 = vadd.f32 %v8843_v29, %v14249_v38 }
 0x483   : > { %v8811_v54 = vpop.f32.mrf.mxu0 }
 0x484   : > { %v8535_v16 = vpop.f32.mrf.mxu3  ;;  %v8845_v22 = vadd.f32 %v8844_v51, %v14253_v40 }
 0x485   : > { %v8071_v9 = vpop.f32.mrf.mxu2  ;;  %v8557_v19 = vadd.f32 %v8535_v16, %v8091_v3 }
 0x486   : > { %v8092_v33 = vadd.f32 %v8071_v9, %v7818_v45  ;;  %v14524_v9 = vld [vmem:[#allocation11_spill] sm:$0xff] }
 0x487   : > { %v7800_v60 = vpop.f32.mrf.mxu1  ;;  %v7402_v6 = vadd.f32 %v14525_v13, %v14524_v9  ;;  %v14259_v16 = vadd.f32 %v14209_v10, %v8557_v19  ;;  %v11477_v55 = vpop.eup %11476 }
 0x488   : > { %v7819_v63 = vadd.f32 %v7800_v60, %v7401_v26  ;;  %v8857_v36 = vmul.f32 128.0, %v11477_v55  ;;  %vm8861_vm12 = vweird.f32 %v11477_v55 }
 0x489   : > { %v8846_v58 = vadd.f32 %v8845_v22, %v14259_v16 }
 0x48a   : > { %v8858_v4 = vsub.f32 1.0, %v8857_v36 }
 0x48c   : > { %v8537_v50 = vpop.f32.mrf.mxu3  ;;  %v8859_v43 = vmul.f32 %v11477_v55, %v8858_v4 }
 0x48d   : > { %v8074_v52 = vpop.f32.mrf.mxu2  ;;  %v8558_v23 = vadd.f32 %v8537_v50, %v8092_v33 }
 0x48e   : > { %v8814_v35 = vpop.f32.mrf.mxu0  ;;  %v8093_v27 = vadd.f32 %v8074_v52, %v7819_v63  ;;  %v8860_v28 = vadd.f32 %v11477_v55, %v8859_v43 }
 0x48f   : > { %v7802_v30 = vpop.f32.mrf.mxu1  ;;  %v14262_v49 = vadd.f32 %v8811_v54, %v8558_v23 }
 0x490   : > { %v7820_v11 = vadd.f32 %v7802_v30, %v7402_v6  ;;  %v8862_v8 = vsel %vm8861_vm12, %v11477_v55, %v8860_v28 }
 0x491   : > { %v8847_v21 = vadd.f32 %v8846_v58, %v14262_v49 }
 0x495   : > { %v8076_v7 = vpop.f32.mrf.mxu2 }
 0x496   : > { %v8094_v59 = vadd.f32 %v8076_v7, %v7820_v11  ;;  %v8816_v60 = vpop.f32.mrf.mxu0 }
 0x497   : > { %v8540_v2 = vpop.f32.mrf.mxu3 }
 0x498   : > { %v8559_v32 = vadd.f32 %v8540_v2, %v8093_v27 }
 0x49a   : > { %v14265_v48 = vadd.f32 %v8814_v35, %v8559_v32 }
 0x49c   : > { %v8848_v10 = vadd.f32 %v8847_v21, %v14265_v48 }
 0x49f   : > { %v8542_v37 = vpop.f32.mrf.mxu3 }
 0x4a0   : > { %v8560_v50 = vadd.f32 %v8542_v37, %v8094_v59 }
 0x4a2   : > { %v14269_v5 = vadd.f32 %v8816_v60, %v8560_v50 }
 0x4a4   : > { %v8849_v25 = vadd.f32 %v8848_v10, %v14269_v5 }
 0x4a6   : > { %v8850_v54 = vrot.slane %v8849_v25, 4 }
 0x4a8   : > { %v8851_v52 = vadd.f32 %v8850_v54, %v8849_v25 }
 0x4aa   : > { %v8852_v1 = vrot.slane %v8851_v52, 2 }
 0x4ac   : > { %v8853_v61 = vadd.f32 %v8852_v1, %v8851_v52 }
 0x4ae   : > { %v8854_v46 = vrot.slane %v8853_v61, 1 }
 0x4b0   : > { %v8855_v57 = vadd.f32 %v8854_v46, %v8853_v61 }
 0x4b2   : > { %v14272_v3 = vmul.f32 %v8862_v8, %v8855_v57 }
 0x4b4   : > { %v8864_v45 = vsub.f32 %v14181_v15, %v14272_v3  ;;  %v8865_v0 = vsub.f32 %v14185_v34, %v14272_v3  ;;  %v8866_v26 = vsub.f32 %v14189_v56, %v14272_v3  ;;  %v8867_v44 = vsub.f32 %v14193_v42, %v14272_v3 }
 0x4b5   : > { %v8868_v33 = vsub.f32 %v14195_v31, %v14272_v3  ;;  %v8869_v20 = vsub.f32 %v14223_v18, %v14272_v3  ;;  %v8870_v27 = vsub.f32 %v14228_v53, %v14272_v3  ;;  %v8871_v30 = vsub.f32 %v14233_v39, %v14272_v3 }
 0x4b6   : > { %v8880_v14 = vmul.f32 %v8864_v45, %v8864_v45  ;;  %v8881_v12 = vmul.f32 %v8865_v0, %v8865_v0  ;;  %v8882_v63 = vmul.f32 %v8866_v26, %v8866_v26  ;;  %v8883_v19 = vmul.f32 %v8867_v44, %v8867_v44 }
 0x4b7   : > { %v8884_v17 = vmul.f32 %v8868_v33, %v8868_v33  ;;  %v8885_v29 = vmul.f32 %v8869_v20, %v8869_v20  ;;  %v8872_v23 = vsub.f32 %v14239_v62, %v14272_v3  ;;  %v8886_v9 = vmul.f32 %v8870_v27, %v8870_v27 }
 0x4b8   : > { %v8896_v24 = vadd.f32 %v8881_v12, %v8880_v14  ;;  %v8873_v6 = vsub.f32 %v14245_v47, %v14272_v3  ;;  %v8887_v7 = vmul.f32 %v8871_v30, %v8871_v30  ;;  %v8874_v32 = vsub.f32 %v14249_v38, %v14272_v3 }
 0x4b9   : > { %v8888_v11 = vmul.f32 %v8872_v23, %v8872_v23  ;;  %v8875_v22 = vsub.f32 %v14253_v40, %v14272_v3  ;;  %v8876_v37 = vsub.f32 %v14259_v16, %v14272_v3  ;;  %v8877_v50 = vsub.f32 %v14262_v49, %v14272_v3 }
 0x4ba   : > { %v8897_v35 = vadd.f32 %v8896_v24, %v8882_v63  ;;  %v8889_v59 = vmul.f32 %v8873_v6, %v8873_v6  ;;  %v8890_v36 = vmul.f32 %v8874_v32, %v8874_v32  ;;  %v8878_v4 = vsub.f32 %v14265_v48, %v14272_v3 }
 0x4bb   : > { %v8891_v60 = vmul.f32 %v8875_v22, %v8875_v22  ;;  %v8892_v25 = vmul.f32 %v8876_v37, %v8876_v37  ;;  %v8879_v43 = vsub.f32 %v14269_v5, %v14272_v3  ;;  %v8893_v52 = vmul.f32 %v8877_v50, %v8877_v50 }
 0x4bc   : > { %v8898_v2 = vadd.f32 %v8897_v35, %v8883_v19  ;;  %v8894_v28 = vmul.f32 %v8878_v4, %v8878_v4 }
 0x4bd   : > { %v8895_v46 = vmul.f32 %v8879_v43, %v8879_v43 }
 0x4be   : > { %v8899_v41 = vadd.f32 %v8898_v2, %v8884_v17  ;;  %v8918_v2 = vld [vmem:[%s370_s19] sm:$0x1] }
 0x4c0   : > { %v8900_v13 = vadd.f32 %v8899_v41, %v8885_v29 }
 0x4c2   : > { %v8901_v51 = vadd.f32 %v8900_v13, %v8886_v9 }
 0x4c4   : > { %v8902_v55 = vadd.f32 %v8901_v51, %v8887_v7 }
 0x4c6   : > { %v8903_v58 = vadd.f32 %v8902_v55, %v8888_v11 }
 0x4c8   : > { %v8904_v21 = vadd.f32 %v8903_v58, %v8889_v59 }
 0x4ca   : > { %v8905_v10 = vadd.f32 %v8904_v21, %v8890_v36 }
 0x4cc   : > { %v8906_v54 = vadd.f32 %v8905_v10, %v8891_v60 }
 0x4ce   : > { %v8907_v1 = vadd.f32 %v8906_v54, %v8892_v25 }
 0x4d0   : > { %v8908_v61 = vadd.f32 %v8907_v1, %v8893_v52 }
 0x4d2   : > { %v8909_v57 = vadd.f32 %v8908_v61, %v8894_v28 }
 0x4d4   : > { %v8910_v45 = vadd.f32 %v8909_v57, %v8895_v46 }
 0x4d6   : > { %v8911_v0 = vrot.slane %v8910_v45, 4 }
 0x4d8   : > { %v8912_v26 = vadd.f32 %v8911_v0, %v8910_v45 }
 0x4da   : > { %v8913_v14 = vrot.slane %v8912_v26, 2 }
 0x4dc   : > { %v8914_v12 = vadd.f32 %v8913_v14, %v8912_v26 }
 0x4de   : > { %v8915_v44 = vrot.slane %v8914_v12, 1 }
 0x4e0   : > { %v8916_v33 = vadd.f32 %v8915_v44, %v8914_v12 }
 0x4e2   : > { %v8917_v63 = vmul.f32 %v8916_v33, %v8862_v8  ;;  %v8931_v8 = vld [vmem:[%s373_s22] sm:$0x1] }
 0x4e4   : > { %v8919_v24 = vadd.f32 1e-05, %v8917_v63 }
 0x4e6   : > { %11478 = vrsqrt.f32 %v8919_v24  ;;  %vm8926_vm14 = vweird.f32 %v8919_v24 }
 0x4ec   : > { %v11479_v20 = vpop.eup %11478 }
 0x4ed   : > { %v8921_v19 = vmul.f32 %v11479_v20, %v8919_v24  ;;  %vm8927_vm13 = vweird.f32 %v11479_v20 }
 0x4ee   : > { %vm8928_vm15 = vmor %vm8926_vm14, %vm8927_vm13 }
 0x4ef   : > { %v8922_v35 = vmul.f32 %v11479_v20, %v8921_v19 }
 0x4f1   : > { %v8923_v27 = vmul.f32 0.5, %v8922_v35 }
 0x4f3   : > { %v8924_v17 = vsub.f32 1.5, %v8923_v27 }
 0x4f5   : > { %v8925_v30 = vmul.f32 %v11479_v20, %v8924_v17 }
 0x4f7   : > { %v8929_v29 = vsel %vm8928_vm15, %v11479_v20, %v8925_v30 }
 0x4f8   : > { %v8930_v41 = vmul.f32 %v8929_v29, %v8918_v2 }
 0x4fa   : > { %v8932_v23 = vmul.f32 %v8930_v41, %v14272_v3  ;;  %v8935_v9 = vperm.slane %v8930_v41, 0 }
 0x4fc   : > { %v8933_v13 = vsub.f32 %v8931_v8, %v8932_v23  ;;  %v8937_v6 = vmul.f32 %v8935_v9, %v14181_v15  ;;  %v8938_v7 = vmul.f32 %v8935_v9, %v14185_v34  ;;  %v8939_v51 = vmul.f32 %v8935_v9, %v14189_v56 }
 0x4fd   : > { %v8940_v32 = vmul.f32 %v8935_v9, %v14193_v42  ;;  %v8941_v11 = vmul.f32 %v8935_v9, %v14195_v31  ;;  %v8942_v55 = vmul.f32 %v8935_v9, %v14223_v18  ;;  %v8943_v22 = vmul.f32 %v8935_v9, %v14228_v53 }
 0x4fe   : > { %v8944_v59 = vmul.f32 %v8935_v9, %v14233_v39  ;;  %v8945_v3 = vmul.f32 %v8935_v9, %v14239_v62  ;;  %v8946_v58 = vmul.f32 %v8935_v9, %v14245_v47  ;;  %v8947_v15 = vmul.f32 %v8935_v9, %v14249_v38 }
 0x4ff   : > { %v8948_v34 = vmul.f32 %v8935_v9, %v14253_v40  ;;  %v8954_v37 = vperm.slane %v8933_v13, 0  ;;  %v8949_v56 = vmul.f32 %v8935_v9, %v14259_v16  ;;  %v8950_v42 = vmul.f32 %v8935_v9, %v14262_v49 }
 0x500   : > { %v8951_v31 = vmul.f32 %v8935_v9, %v14265_v48  ;;  %v8952_v18 = vmul.f32 %v8935_v9, %v14269_v5 }
 0x501   : > { %v8956_v53 = vadd.f32 %v8954_v37, %v8937_v6  ;;  %v8957_v36 = vadd.f32 %v8954_v37, %v8938_v7  ;;  %v8958_v39 = vadd.f32 %v8954_v37, %v8939_v51  ;;  %v8959_v21 = vadd.f32 %v8954_v37, %v8940_v32 }
 0x502   : > { %v8960_v62 = vadd.f32 %v8954_v37, %v8941_v11  ;;  %v8961_v50 = vadd.f32 %v8954_v37, %v8942_v55  ;;  %v8962_v47 = vadd.f32 %v8954_v37, %v8943_v22  ;;  %v8963_v60 = vadd.f32 %v8954_v37, %v8944_v59 }
 0x503   : > { %v8964_v38 = vadd.f32 %v8954_v37, %v8945_v3  ;;  %v8965_v10 = vadd.f32 %v8954_v37, %v8946_v58  ;;  %v8966_v40 = vadd.f32 %v8954_v37, %v8947_v15  ;;  %v8967_v4 = vadd.f32 %v8954_v37, %v8948_v34 }
 0x504   : > { %v8968_v25 = vadd.f32 %v8954_v37, %v8949_v56  ;;  %v8969_v16 = vadd.f32 %v8954_v37, %v8950_v42  ;;  %v8970_v54 = vadd.f32 %v8954_v37, %v8951_v31  ;;  %v8971_v49 = vadd.f32 %v8954_v37, %v8952_v18  ;;  %8991 = sbr.rel (%p11049_p5) target bundleno = 1325 (0x52d), region = 68 }
 0x505   : > { %v14333_v43 = vmax.f32 %v8956_v53, 0.0  ;;  %v14335_v48 = vmax.f32 %v8957_v36, 0.0  ;;  %v14337_v5 = vmax.f32 %v8958_v39, 0.0  ;;  %v14339_v52 = vmax.f32 %v8959_v21, 0.0 }
 0x506   : > { %v14341_v1 = vmax.f32 %v8960_v62, 0.0  ;;  %v14343_v28 = vmax.f32 %v8961_v50, 0.0  ;;  %v14345_v61 = vmax.f32 %v8962_v47, 0.0  ;;  %v14347_v46 = vmax.f32 %v8963_v60, 0.0 }
 0x507   : > { %v14349_v57 = vmax.f32 %v8964_v38, 0.0  ;;  %v14351_v45 = vmax.f32 %v8965_v10, 0.0  ;;  %v14353_v0 = vmax.f32 %v8966_v40, 0.0  ;;  %v14355_v26 = vmax.f32 %v8967_v4, 0.0 }
 0x508   : > { %v14357_v14 = vmax.f32 %v8968_v25, 0.0  ;;  %v14359_v12 = vmax.f32 %v8969_v16, 0.0  ;;  %v14361_v44 = vmax.f32 %v8970_v54, 0.0  ;;  %v14363_v33 = vmax.f32 %v8971_v49, 0.0 }
 0x509   : > { %v8992_v63 = vpack.c.bf16 %v14333_v43, %v14333_v43  ;;  %v8993_v24 = vpack.c.bf16 %v14335_v48, %v14335_v48  ;;  %v8994_v20 = vpack.c.bf16 %v14337_v5, %v14337_v5  ;;  %v8995_v19 = vpack.c.bf16 %v14339_v52, %v14339_v52 }
 0x50a   : > { %v8996_v35 = vpack.c.bf16 %v14341_v1, %v14341_v1  ;;  %v8997_v29 = vpack.c.bf16 %v14343_v28, %v14343_v28  ;;  %v8998_v13 = vpack.c.bf16 %v14345_v61, %v14345_v61  ;;  %v8999_v51 = vpack.c.bf16 %v14347_v46, %v14347_v46 }
 0x50b   : > { %v9016_v27 = vrot.slane %v8992_v63, 7  ;;  %v9018_v17 = vrot.slane %v8993_v24, 7  ;;  %v9020_v2 = vrot.slane %v8994_v20, 7  ;;  %v9022_v30 = vrot.slane %v8995_v19, 7 }
 0x50c   : > { %v9024_v9 = vrot.slane %v8996_v35, 7  ;;  %v9026_v7 = vrot.slane %v8997_v29, 7  ;;  %v9028_v11 = vrot.slane %v8998_v13, 7  ;;  %v9000_v55 = vpack.c.bf16 %v14349_v57, %v14349_v57 }
 0x50d   : > { %9048 = vst [vmem:[#allocation2 + $0x10] sm:$0xe] %v9016_v27  ;;  %v9017_v41 = vrot.slane %v9016_v27, 4  ;;  %v9019_v8 = vrot.slane %v9018_v17, 4  ;;  %v9021_v23 = vrot.slane %v9020_v2, 4  ;;  %v9023_v6 = vrot.slane %v9022_v30, 4 }
 0x50e   : > { %9050 = vst [vmem:[#allocation2 + $0x18] sm:$0xe] %v9018_v17  ;;  %v9025_v32 = vrot.slane %v9024_v9, 4  ;;  %v9027_v22 = vrot.slane %v9026_v7, 4  ;;  %v9030_v59 = vrot.slane %v8999_v51, 7  ;;  %v9001_v3 = vpack.c.bf16 %v14351_v45, %v14351_v45 }
 0x50f   : > { %9049 = vst [vmem:[#allocation2 + $0x14] sm:$0x1] %v9017_v41  ;;  %v9029_v58 = vrot.slane %v9028_v11, 4  ;;  %v9072_v15 = vrot.slane %v9000_v55, 7  ;;  %v9002_v34 = vpack.c.bf16 %v14353_v0, %v14353_v0  ;;  %v9003_v42 = vpack.c.bf16 %v14355_v26, %v14355_v26 }
 0x510   : > { %9051 = vst [vmem:[#allocation2 + $0x1c] sm:$0x1] %v9019_v8  ;;  %v9031_v37 = vrot.slane %v9030_v59, 4  ;;  %v9074_v56 = vrot.slane %v9001_v3, 7  ;;  %v9004_v53 = vpack.c.bf16 %v14357_v14, %v14357_v14  ;;  %v9005_v21 = vpack.c.bf16 %v14359_v12, %v14359_v12 }
 0x511   : > { %9052 = vst [vmem:[#allocation2 + $0x20] sm:$0xe] %v9020_v2  ;;  %v9073_v31 = vrot.slane %v9072_v15, 4  ;;  %v9076_v18 = vrot.slane %v9002_v34, 7  ;;  %v9078_v39 = vrot.slane %v9003_v42, 7  ;;  %v9006_v47 = vpack.c.bf16 %v14361_v44, %v14361_v44 }
 0x512   : > { %9053 = vst [vmem:[#allocation2 + $0x24] sm:$0x1] %v9021_v23  ;;  %v9075_v36 = vrot.slane %v9074_v56, 4  ;;  %v9080_v50 = vrot.slane %v9004_v53, 7  ;;  %v9082_v38 = vrot.slane %v9005_v21, 7  ;;  %v9007_v10 = vpack.c.bf16 %v14363_v33, %v14363_v33 }
 0x513   : > { %9054 = vst [vmem:[#allocation2 + $0x28] sm:$0xe] %v9022_v30  ;;  %v9077_v62 = vrot.slane %v9076_v18, 4  ;;  %v9079_v60 = vrot.slane %v9078_v39, 4  ;;  %v9084_v4 = vrot.slane %v9006_v47, 7 }
 0x514   : > { %9055 = vst [vmem:[#allocation2 + $0x2c] sm:$0x1] %v9023_v6  ;;  %v9081_v40 = vrot.slane %v9080_v50, 4  ;;  %v9083_v25 = vrot.slane %v9082_v38, 4  ;;  %v9086_v16 = vrot.slane %v9007_v10, 7 }
 0x515   : > { %9056 = vst [vmem:[#allocation2 + $0x30] sm:$0xe] %v9024_v9  ;;  %v9085_v54 = vrot.slane %v9084_v4, 4 }
 0x516   : > { %9057 = vst [vmem:[#allocation2 + $0x34] sm:$0x1] %v9025_v32  ;;  %v9087_v49 = vrot.slane %v9086_v16, 4 }
 0x517   : > { %9058 = vst [vmem:[#allocation2 + $0x38] sm:$0xe] %v9026_v7 }
 0x518   : > { %9059 = vst [vmem:[#allocation2 + $0x3c] sm:$0x1] %v9027_v22 }
 0x519   : > { %9060 = vst [vmem:[#allocation2 + $0x40] sm:$0xe] %v9028_v11 }
 0x51a   : > { %9061 = vst [vmem:[#allocation2 + $0x44] sm:$0x1] %v9029_v58 }
 0x51b   : > { %9062 = vst [vmem:[#allocation2 + $0x48] sm:$0xe] %v9030_v59 }
 0x51c   : > { %9063 = vst [vmem:[#allocation2 + $0x4c] sm:$0x1] %v9031_v37 }
 0x51d   : > { %9105 = vst [vmem:[#allocation2 + $0x70] sm:$0xe] %v9072_v15 }
 0x51e   : > { %9106 = vst [vmem:[#allocation2 + $0x74] sm:$0x1] %v9073_v31 }
 0x51f   : > { %9107 = vst [vmem:[#allocation2 + $0x78] sm:$0xe] %v9074_v56 }
 0x520   : > { %9108 = vst [vmem:[#allocation2 + $0x7c] sm:$0x1] %v9075_v36 }
 0x521   : > { %9109 = vst [vmem:[#allocation2 + $0x80] sm:$0xe] %v9076_v18 }
 0x522   : > { %9110 = vst [vmem:[#allocation2 + $0x84] sm:$0x1] %v9077_v62 }
 0x523   : > { %9111 = vst [vmem:[#allocation2 + $0x88] sm:$0xe] %v9078_v39 }
 0x524   : > { %9112 = vst [vmem:[#allocation2 + $0x8c] sm:$0x1] %v9079_v60 }
 0x525   : > { %9113 = vst [vmem:[#allocation2 + $0x90] sm:$0xe] %v9080_v50 }
 0x526   : > { %9114 = vst [vmem:[#allocation2 + $0x94] sm:$0x1] %v9081_v40 }
 0x527   : > { %9115 = vst [vmem:[#allocation2 + $0x98] sm:$0xe] %v9082_v38 }
 0x528   : > { %9116 = vst [vmem:[#allocation2 + $0x9c] sm:$0x1] %v9083_v25 }
 0x529   : > { %9117 = vst [vmem:[#allocation2 + $0xa0] sm:$0xe] %v9084_v4 }
 0x52a   : > { %9118 = vst [vmem:[#allocation2 + $0xa4] sm:$0x1] %v9085_v54 }
 0x52b   : > { %9119 = vst [vmem:[#allocation2 + $0xa8] sm:$0xe] %v9086_v16 }
 0x52c   : > { %9120 = vst [vmem:[#allocation2 + $0xac] sm:$0x1] %v9087_v49 }
 0x52d PF: > { %p11050_p6 = scmp.ne.s32.totalorder %s11644_s14, 8 }
 0x52f   : > { %9124 = sbr.rel (%p11050_p6) target bundleno = 1701 (0x6a5), region = 72 }
 0x534   : > { %v11382_v63 = vld [vmem:[%s14489_s6 + $0x38] sm:$0xff]  ;;  %v11381_v24 = vld [vmem:[%s14489_s6 + $0x30] sm:$0xff]  ;;  %v11380_v20 = vld [vmem:[%s14489_s6 + $0x28] sm:$0xff]  ;;  %v9125_v30 = vpack.c.bf16 %v14335_v48, %v14333_v43  ;;  %v9129_v29 = vpack.c.bf16 %v14351_v45, %v14349_v57  ;;  %v9126_v41 = vpack.c.bf16 %v14339_v52, %v14337_v5  ;;  %v9130_v8 = vpack.c.bf16 %v14355_v26, %v14353_v0 }
 0x535   : > { %9201 = vmatpush.bf16.msra.mxu0 %v11382_v63  ;;  %11439 = vmatpush.bf16.msra.mxu2 %v11382_v63  ;;  %v11379_v19 = vld [vmem:[%s14489_s6 + $0x20] sm:$0xff]  ;;  %v11378_v35 = vld [vmem:[%s14489_s6 + $0x18] sm:$0xff]  ;;  %v11377_v27 = vld [vmem:[%s14489_s6 + $0x10] sm:$0xff]  ;;  %v9127_v52 = vpack.c.bf16 %v14343_v28, %v14341_v1  ;;  %v9131_v57 = vpack.c.bf16 %v14359_v12, %v14357_v14  ;;  %v9128_v45 = vpack.c.bf16 %v14347_v46, %v14345_v61 }
 0x536   : > { %v11376_v17 = vld [vmem:[%s14489_s6 + $0x8] sm:$0xff]  ;;  %v11375_v2 = vld [vmem:[%s14489_s6] sm:$0xff]  ;;  %v11390_v23 = vld [vmem:[%s14491_s8 + $0x38] sm:$0xff]  ;;  %v9132_v0 = vpack.c.bf16 %v14363_v33, %v14361_v44 }
 0x537   : > { %9342 = vmatpush.bf16.msra.mxu1 %v11390_v23  ;;  %v11389_v43 = vld [vmem:[%s14491_s8 + $0x30] sm:$0xff]  ;;  %11447 = vmatpush.bf16.msra.mxu3 %v11390_v23  ;;  %v11388_v48 = vld [vmem:[%s14491_s8 + $0x28] sm:$0xff]  ;;  %v11387_v5 = vld [vmem:[%s14491_s8 + $0x20] sm:$0xff] }
 0x538   : > { %v11386_v26 = vld [vmem:[%s14491_s8 + $0x18] sm:$0xff]  ;;  %v11385_v1 = vld [vmem:[%s14491_s8 + $0x10] sm:$0xff]  ;;  %v11384_v28 = vld [vmem:[%s14491_s8 + $0x8] sm:$0xff] }
 0x539   : > { %9202 = vmatpush.bf16.msra.mxu0 %v11381_v24  ;;  %11440 = vmatpush.bf16.msra.mxu2 %v11381_v24  ;;  %v11383_v61 = vld [vmem:[%s14491_s8] sm:$0xff] }
 0x53a   : > { %v11536_v14 = vld [vmem:[%s14490_s7] ss:$0 sm:$0xff] }
 0x53b   : > { %9343 = vmatpush.bf16.msra.mxu1 %v11389_v43  ;;  %11448 = vmatpush.bf16.msra.mxu3 %v11389_v43 }
 0x53d   : > { %9203 = vmatpush.bf16.msra.mxu0 %v11380_v20  ;;  %11441 = vmatpush.bf16.msra.mxu2 %v11380_v20 }
 0x53f   : > { %9344 = vmatpush.bf16.msra.mxu1 %v11388_v48  ;;  %11449 = vmatpush.bf16.msra.mxu3 %v11388_v48 }
 0x541   : > { %9204 = vmatpush.bf16.msra.mxu0 %v11379_v19  ;;  %11442 = vmatpush.bf16.msra.mxu2 %v11379_v19 }
 0x543   : > { %9345 = vmatpush.bf16.msra.mxu1 %v11387_v5  ;;  %11450 = vmatpush.bf16.msra.mxu3 %v11387_v5 }
 0x545   : > { %9205 = vmatpush.bf16.msra.mxu0 %v11378_v35  ;;  %11443 = vmatpush.bf16.msra.mxu2 %v11378_v35 }
 0x547   : > { %9346 = vmatpush.bf16.msra.mxu1 %v11386_v26  ;;  %11451 = vmatpush.bf16.msra.mxu3 %v11386_v26 }
 0x549   : > { %9206 = vmatpush.bf16.msra.mxu0 %v11377_v27  ;;  %11444 = vmatpush.bf16.msra.mxu2 %v11377_v27 }
 0x54b   : > { %9347 = vmatpush.bf16.msra.mxu1 %v11385_v1  ;;  %11452 = vmatpush.bf16.msra.mxu3 %v11385_v1 }
 0x54d   : > { %9207 = vmatpush.bf16.msra.mxu0 %v11376_v17  ;;  %11445 = vmatpush.bf16.msra.mxu2 %v11376_v17 }
 0x54f   : > { %9348 = vmatpush.bf16.msra.mxu1 %v11384_v28  ;;  %11453 = vmatpush.bf16.msra.mxu3 %v11384_v28 }
 0x551   : > { %9208 = vmatpush.bf16.msra.mxu0 %v11375_v2  ;;  %11446 = vmatpush.bf16.msra.mxu2 %v11375_v2 }
 0x553   : > { %9349 = vmatpush.bf16.msra.mxu1 %v11383_v61  ;;  %11454 = vmatpush.bf16.msra.mxu3 %v11383_v61 }
 0x554   : > { %9209 = vmatmul.bf16.vlgmr.msra.gmra.mxu0 %v9125_v30  ;;  %9229 = vmatmul.bf16.vlgmr.msra.gmra.mxu2 %v9129_v29 }
 0x564   : > { %9214 = vmatmul.bf16.gmra.mxu0 %v9126_v41  ;;  %9234 = vmatmul.bf16.gmra.mxu2 %v9130_v8 }
 0x574   : > { %9219 = vmatmul.bf16.gmra.mxu0 %v9127_v52  ;;  %9239 = vmatmul.bf16.gmra.mxu2 %v9131_v57  ;;  %v11537_v57 = vld [vmem:[%s14492_s9] ss:$0 sm:$0xff] }
 0x584   : > { %9224 = vmatmul.bf16.gmra.mxu0 %v9128_v45  ;;  %9244 = vmatmul.bf16.gmra.mxu2 %v9132_v0 }
 0x5d1   : > { %v9210_v46 = vpop.f32.mrf.mxu0 }
 0x5d2   : > { %v9211_v12 = vadd.f32 %v11536_v14, %v9210_v46 }
 0x5d4   : > { %v9250_v9 = vmax.f32 %v9211_v12, 0.0 }
 0x5d7   : > { %v9230_v44 = vpop.f32.mrf.mxu2 }
 0x5d8   : > { %v9231_v7 = vadd.f32 %v11536_v14, %v9230_v44 }
 0x5d9   : > { %v9212_v33 = vpop.f32.mrf.mxu0 }
 0x5da   : > { %v9213_v13 = vadd.f32 %v11536_v14, %v9212_v33  ;;  %v9258_v22 = vmax.f32 %v9231_v7, 0.0 }
 0x5dc   : > { %v9251_v6 = vmax.f32 %v9213_v13, 0.0 }
 0x5de   : > { %v9266_v51 = vpack.c.bf16 %v9251_v6, %v9250_v9 }
 0x5df   : > { %v9232_v32 = vpop.f32.mrf.mxu2 }
 0x5e0   : > { %v9233_v11 = vadd.f32 %v11536_v14, %v9232_v32  ;;  %9350 = vmatmul.bf16.vlgmr.msra.gmra.mxu1 %v9266_v51 }
 0x5e1   : > { %v9215_v55 = vpop.f32.mrf.mxu0 }
 0x5e2   : > { %v9259_v59 = vmax.f32 %v9233_v11, 0.0  ;;  %v9216_v58 = vadd.f32 %v11536_v14, %v9215_v55 }
 0x5e4   : > { %v9270_v3 = vpack.c.bf16 %v9259_v59, %v9258_v22  ;;  %v9252_v37 = vmax.f32 %v9216_v58, 0.0 }
 0x5e6   : > { %9370 = vmatmul.bf16.vlgmr.msra.gmra.mxu3 %v9270_v3 }
 0x5e7   : > { %v9235_v15 = vpop.f32.mrf.mxu2 }
 0x5e8   : > { %v9236_v31 = vadd.f32 %v11536_v14, %v9235_v15 }
 0x5e9   : > { %v9217_v34 = vpop.f32.mrf.mxu0 }
 0x5ea   : > { %v9218_v56 = vadd.f32 %v11536_v14, %v9217_v34  ;;  %v9260_v21 = vmax.f32 %v9236_v31, 0.0 }
 0x5ec   : > { %v9253_v42 = vmax.f32 %v9218_v56, 0.0 }
 0x5ee   : > { %v9267_v18 = vpack.c.bf16 %v9253_v42, %v9252_v37 }
 0x5ef   : > { %v9237_v53 = vpop.f32.mrf.mxu2 }
 0x5f0   : > { %v9238_v36 = vadd.f32 %v11536_v14, %v9237_v53  ;;  %9355 = vmatmul.bf16.gmra.mxu1 %v9267_v18 }
 0x5f1   : > { %v9220_v39 = vpop.f32.mrf.mxu0 }
 0x5f2   : > { %v9261_v62 = vmax.f32 %v9238_v36, 0.0  ;;  %v9221_v47 = vadd.f32 %v11536_v14, %v9220_v39 }
 0x5f4   : > { %v9271_v50 = vpack.c.bf16 %v9261_v62, %v9260_v21  ;;  %v9254_v10 = vmax.f32 %v9221_v47, 0.0 }
 0x5f6   : > { %9375 = vmatmul.bf16.gmra.mxu3 %v9271_v50 }
 0x5f7   : > { %v9240_v60 = vpop.f32.mrf.mxu2 }
 0x5f8   : > { %v9241_v25 = vadd.f32 %v11536_v14, %v9240_v60 }
 0x5f9   : > { %v9222_v38 = vpop.f32.mrf.mxu0 }
 0x5fa   : > { %v9223_v40 = vadd.f32 %v11536_v14, %v9222_v38  ;;  %v9262_v24 = vmax.f32 %v9241_v25, 0.0 }
 0x5fc   : > { %v9255_v4 = vmax.f32 %v9223_v40, 0.0 }
 0x5fe   : > { %v9268_v16 = vpack.c.bf16 %v9255_v4, %v9254_v10 }
 0x5ff   : > { %v9242_v54 = vpop.f32.mrf.mxu2 }
 0x600   : > { %v9243_v49 = vadd.f32 %v11536_v14, %v9242_v54  ;;  %9360 = vmatmul.bf16.gmra.mxu1 %v9268_v16 }
 0x601   : > { %v9225_v63 = vpop.f32.mrf.mxu0 }
 0x602   : > { %v9263_v20 = vmax.f32 %v9243_v49, 0.0  ;;  %v9226_v35 = vadd.f32 %v11536_v14, %v9225_v63 }
 0x604   : > { %v9272_v19 = vpack.c.bf16 %v9263_v20, %v9262_v24  ;;  %v9256_v2 = vmax.f32 %v9226_v35, 0.0 }
 0x606   : > { %9380 = vmatmul.bf16.gmra.mxu3 %v9272_v19 }
 0x607   : > { %v9245_v27 = vpop.f32.mrf.mxu2 }
 0x608   : > { %v9246_v41 = vadd.f32 %v11536_v14, %v9245_v27 }
 0x609   : > { %v9227_v17 = vpop.f32.mrf.mxu0 }
 0x60a   : > { %v9228_v30 = vadd.f32 %v11536_v14, %v9227_v17  ;;  %v9264_v48 = vmax.f32 %v9246_v41, 0.0 }
 0x60c   : > { %v9257_v29 = vmax.f32 %v9228_v30, 0.0 }
 0x60e   : > { %v9269_v8 = vpack.c.bf16 %v9257_v29, %v9256_v2 }
 0x60f   : > { %v9247_v23 = vpop.f32.mrf.mxu2 }
 0x610   : > { %v9248_v43 = vadd.f32 %v11536_v14, %v9247_v23  ;;  %9365 = vmatmul.bf16.gmra.mxu1 %v9269_v8 }
 0x612   : > { %v9265_v5 = vmax.f32 %v9248_v43, 0.0 }
 0x614   : > { %v9273_v52 = vpack.c.bf16 %v9265_v5, %v9264_v48 }
 0x616   : > { %9385 = vmatmul.bf16.gmra.mxu3 %v9273_v52 }
 0x65d   : > { %v9351_v45 = vpop.f32.mrf.mxu1 }
 0x65e   : > { %v9352_v0 = vadd.f32 %v11537_v57, %v9351_v45 }
 0x660   : > { %9391 = vst [vmem:[#allocation3] sm:$0xff] %v9352_v0 }
 0x665   : > { %v9353_v26 = vpop.f32.mrf.mxu1 }
 0x666   : > { %v9354_v1 = vadd.f32 %v11537_v57, %v9353_v26 }
 0x668   : > { %9392 = vst [vmem:[#allocation3 + $0x8] sm:$0xff] %v9354_v1 }
 0x669   : > { %v9371_v28 = vpop.f32.mrf.mxu3 }
 0x66a   : > { %v9372_v61 = vadd.f32 %v11537_v57, %v9371_v28 }
 0x66c   : > { %9399 = vst [vmem:[#allocation3 + $0x40] sm:$0xff] %v9372_v61 }
 0x66d   : > { %v9356_v46 = vpop.f32.mrf.mxu1 }
 0x66e   : > { %v9357_v14 = vadd.f32 %v11537_v57, %v9356_v46 }
 0x670   : > { %9393 = vst [vmem:[#allocation3 + $0x10] sm:$0xff] %v9357_v14 }
 0x671   : > { %v9373_v12 = vpop.f32.mrf.mxu3 }
 0x672   : > { %v9374_v44 = vadd.f32 %v11537_v57, %v9373_v12 }
 0x674   : > { %9400 = vst [vmem:[#allocation3 + $0x48] sm:$0xff] %v9374_v44 }
 0x675   : > { %v9358_v33 = vpop.f32.mrf.mxu1 }
 0x676   : > { %v9359_v9 = vadd.f32 %v11537_v57, %v9358_v33 }
 0x678   : > { %9394 = vst [vmem:[#allocation3 + $0x18] sm:$0xff] %v9359_v9 }
 0x679   : > { %v9376_v13 = vpop.f32.mrf.mxu3 }
 0x67a   : > { %v9377_v6 = vadd.f32 %v11537_v57, %v9376_v13 }
 0x67c   : > { %9401 = vst [vmem:[#allocation3 + $0x50] sm:$0xff] %v9377_v6 }
 0x67d   : > { %v9361_v7 = vpop.f32.mrf.mxu1 }
 0x67e   : > { %v9362_v51 = vadd.f32 %v11537_v57, %v9361_v7 }
 0x680   : > { %9395 = vst [vmem:[#allocation3 + $0x20] sm:$0xff] %v9362_v51 }
 0x681   : > { %v9378_v32 = vpop.f32.mrf.mxu3 }
 0x682   : > { %v9379_v11 = vadd.f32 %v11537_v57, %v9378_v32 }
 0x684   : > { %9402 = vst [vmem:[#allocation3 + $0x58] sm:$0xff] %v9379_v11 }
 0x685   : > { %v9363_v55 = vpop.f32.mrf.mxu1 }
 0x686   : > { %v9364_v22 = vadd.f32 %v11537_v57, %v9363_v55 }
 0x688   : > { %9396 = vst [vmem:[#allocation3 + $0x28] sm:$0xff] %v9364_v22 }
 0x689   : > { %v9381_v59 = vpop.f32.mrf.mxu3 }
 0x68a   : > { %v9382_v3 = vadd.f32 %v11537_v57, %v9381_v59 }
 0x68c   : > { %9403 = vst [vmem:[#allocation3 + $0x60] sm:$0xff] %v9382_v3 }
 0x68d   : > { %v9366_v58 = vpop.f32.mrf.mxu1 }
 0x68e   : > { %v9367_v15 = vadd.f32 %v11537_v57, %v9366_v58 }
 0x690   : > { %9397 = vst [vmem:[#allocation3 + $0x30] sm:$0xff] %v9367_v15 }
 0x691   : > { %v9383_v34 = vpop.f32.mrf.mxu3 }
 0x692   : > { %v9384_v37 = vadd.f32 %v11537_v57, %v9383_v34 }
 0x694   : > { %9404 = vst [vmem:[#allocation3 + $0x68] sm:$0xff] %v9384_v37 }
 0x695   : > { %v9368_v56 = vpop.f32.mrf.mxu1 }
 0x696   : > { %v9369_v42 = vadd.f32 %v11537_v57, %v9368_v56 }
 0x698   : > { %9398 = vst [vmem:[#allocation3 + $0x38] sm:$0xff] %v9369_v42 }
 0x699   : > { %v9386_v31 = vpop.f32.mrf.mxu3 }
 0x69a   : > { %v9387_v18 = vadd.f32 %v11537_v57, %v9386_v31 }
 0x69c   : > { %9405 = vst [vmem:[#allocation3 + $0x70] sm:$0xff] %v9387_v18 }
 0x6a1   : > { %v9388_v53 = vpop.f32.mrf.mxu3 }
 0x6a2   : > { %v9389_v36 = vadd.f32 %v11537_v57, %v9388_v53 }
 0x6a4   : > { %9406 = vst [vmem:[#allocation3 + $0x78] sm:$0xff] %v9389_v36 }
 0x6a5 PF: > { %s9414_s22 = sshll.u32 %s14493_s10, 4  ;;  %s11580_s18 = smov [#allocation3]   ;;  %s9415_s22 = int_to_ptr.hbm [resolvable:$true] %s9414_s22 }
 0x6a6   : > { %s9412_s20 = sshll.u32 %s11580_s18, 4  ;;  %s11581_s21 = smov 128   ;;  %s9413_s20 = int_to_ptr.vmem [resolvable:$true] %s9412_s20 }
 0x6a7   : > { %s11582_s23 = smov 8  }
 0x6a8   : > { %11457 = dma.vmem_to_hbm [thread:$0]  (%p11049_p5), %s9413_s20, 2048, %s9415_s22, [#allocation4], %s11581_s21, %s11581_s21, %s11582_s23  }
 0x6a9   : > { %11571 = dma.done.wait (%p11049_p5), [#allocation4], 2048  }
 0x6aa   : > { %11573 = vsyncadd (%p11049_p5), [#allocation4], 4294965248 }
 0x6ab PF: > { %s21_s13 = sadd.s32 1, %s11576_s13  }
 0x6ac   : > { %p18_p7 = scmp.ge.s32.totalorder %s21_s13, 11  }
 0x6ae   :  { %20 = sbr.rel (!%p18_p7) target bundleno = 1 (0x1), region = 136 }
 0x6b3   :  { %9431 = vsyncpa [#allocation4], 1 }
 0x6b4   :  { %9433 = vsyncpa [#allocation4 + $0x1], 1 }

</bundles_post_ra>
